<compile_context>
chip_gen: v7x
topology: tpu7x:2x2x1
jax: 0.10.0
libtpu: 0.0.40
codegen_flags: <defaults>
</compile_context>

<pallas_src>
import jax
import jax.numpy as jnp
from jax import lax
from jax.experimental import pallas as pl
from jax.experimental.pallas import tpu as pltpu


def _round_up(n, m):
    return ((n + m - 1) // m) * m


def _make_kernel(H, W, Cp, Cop, stride, has_proj):
    Ho = (H - 1) // stride + 1
    Wo = (W - 1) // stride + 1

    def kernel(*refs):
        if has_proj:
            (x_ref, s1_ref, t1_ref, w1_ref, b1_ref,
             s2_ref, t2_ref, w2_ref, b2_ref,
             ws_ref, bs_ref, o_ref, pad1, pad2) = refs
        else:
            (x_ref, s1_ref, t1_ref, w1_ref, b1_ref,
             s2_ref, t2_ref, w2_ref, b2_ref,
             o_ref, pad1, pad2) = refs

        # Zero only the 1-pixel halo strips (interior is fully rewritten below).
        # Done every step so it is correct even when the batch axis is sharded
        # across TensorCores ("parallel"); the cost is a few KB of stores.
        zrow1 = jnp.zeros((1, W + 2, Cp), pad1.dtype)
        zcol1 = jnp.zeros((H + 2, 1, Cp), pad1.dtype)
        pad1[0:1, :, :] = zrow1
        pad1[H + 1:H + 2, :, :] = zrow1
        pad1[:, 0:1, :] = zcol1
        pad1[:, W + 1:W + 2, :] = zcol1
        zrow2 = jnp.zeros((1, W + 2, Cop), pad2.dtype)
        zcol2 = jnp.zeros((H + 2, 1, Cop), pad2.dtype)
        pad2[0:1, :, :] = zrow2
        pad2[H + 1:H + 2, :, :] = zrow2
        pad2[:, 0:1, :] = zcol2
        pad2[:, W + 1:W + 2, :] = zcol2

        x = x_ref[0]                                            # (H, W, Cp) f32

        # ---- BN1 (folded affine) + ReLU in f32; bf16 into padded scratch ----
        h1 = jnp.maximum(x * s1_ref[0] + t1_ref[0], 0.0)
        pad1[1:H + 1, 1:W + 1, :] = h1.astype(pad1.dtype)

        # ---- conv1: 3x3, stride 1, pad 1 -> nine (H*W,Cp)x(Cp,Cop) matmuls ----
        acc1 = jnp.broadcast_to(b1_ref[...], (H * W, Cop)).astype(jnp.float32)
        for dy in range(3):
            for dx in range(3):
                tap = pad1[dy:dy + H, dx:dx + W, :].reshape(H * W, Cp)
                acc1 = acc1 + jnp.dot(tap, w1_ref[dy * 3 + dx],
                                      preferred_element_type=jnp.float32)
        # dropout: inference mode -> identity

        # ---- BN2 + ReLU in f32; bf16 into second padded scratch ----
        h2 = jnp.maximum(acc1 * s2_ref[...] + t2_ref[...], 0.0)
        pad2[1:H + 1, 1:W + 1, :] = h2.reshape(H, W, Cop).astype(pad2.dtype)

        # ---- conv2: 3x3, pad 1, computed dense; subsample once if stride>1 ----
        acc2 = jnp.broadcast_to(b2_ref[...], (H * W, Cop)).astype(jnp.float32)
        for dy in range(3):
            for dx in range(3):
                tap = pad2[dy:dy + H, dx:dx + W, :].reshape(H * W, Cop)
                acc2 = acc2 + jnp.dot(tap, w2_ref[dy * 3 + dx],
                                      preferred_element_type=jnp.float32)
        out = acc2.reshape(H, W, Cop)
        if stride != 1:
            out = out[::stride, ::stride, :]                    # (Ho, Wo, Cop)

        # ---- shortcut ----
        if has_proj:
            xs = x[::stride, ::stride, :] if stride != 1 else x
            sc = jnp.dot(xs.reshape(Ho * Wo, Cp).astype(jnp.bfloat16),
                         ws_ref[...],
                         preferred_element_type=jnp.float32) + bs_ref[...]
            sc = sc.reshape(Ho, Wo, Cop)
        else:
            sc = x                                              # Cp == Cop here

        o_ref[0] = (out + sc).astype(o_ref.dtype)

    return kernel, Ho, Wo


def wide_basic_pallas(x_nchw, params, stride=1):
    """Fused wide_basic forward. x_nchw: (N, Cin, H, W) f32 -> (N, Cout, Ho, Wo)."""
    N, Cin, H, W = x_nchw.shape
    Cout = params['w1'].shape[-1]
    has_proj = (stride != 1) or (Cin != Cout)
    eps = 1e-5

    # Lane-dense channel padding (128 lanes).
    Cp = _round_up(Cin, 128)
    Cop = _round_up(Cout, 128)

    x = jnp.transpose(x_nchw, (0, 2, 3, 1)).astype(jnp.float32)        # NHWC
    x = jnp.pad(x, ((0, 0), (0, 0), (0, 0), (0, Cp - Cin)))

    def padc(v, c):
        return jnp.pad(v.astype(jnp.float32), (0, c - v.shape[0]))

    def padw(w, ci, co):
        w = w.astype(jnp.float32)
        return jnp.pad(w, ((0, 0), (0, 0),
                           (0, ci - w.shape[2]), (0, co - w.shape[3])))

    # Fold BN (eval mode) into per-channel scale/shift; zero the padded
    # channels so they stay exactly zero through BN + ReLU.
    s1v = params['gamma1'] / jnp.sqrt(params['var1'] + eps)
    t1v = params['beta1'] - params['mean1'] * s1v
    s2v = params['gamma2'] / jnp.sqrt(params['var2'] + eps)
    t2v = params['beta2'] - params['mean2'] * s2v
    s1, t1 = padc(s1v, Cp).reshape(1, Cp), padc(t1v, Cp).reshape(1, Cp)
    s2, t2 = padc(s2v, Cop).reshape(1, Cop), padc(t2v, Cop).reshape(1, Cop)

    # 3x3 weights: HWIO -> (tap, Cin_p, Cout_p); bf16 MXU operands, f32 biases.
    w1 = padw(params['w1'], Cp, Cop).reshape(9, Cp, Cop).astype(jnp.bfloat16)
    w2 = padw(params['w2'], Cop, Cop).reshape(9, Cop, Cop).astype(jnp.bfloat16)
    b1 = padc(params['b1'], Cop).reshape(1, Cop)
    b2 = padc(params['b2'], Cop).reshape(1, Cop)

    kernel, Ho, Wo = _make_kernel(H, W, Cp, Cop, stride, has_proj)

    def full(shape):
        return pl.BlockSpec(shape, lambda b, _r=len(shape): (0,) * _r)

    in_specs = [
        pl.BlockSpec((1, H, W, Cp), lambda b: (b, 0, 0, 0)),
        full((1, Cp)), full((1, Cp)), full((9, Cp, Cop)), full((1, Cop)),
        full((1, Cop)), full((1, Cop)), full((9, Cop, Cop)), full((1, Cop)),
    ]
    args = [x, s1, t1, w1, b1, s2, t2, w2, b2]
    if has_proj:
        ws = padw(params['ws'], Cp, Cop).reshape(Cp, Cop).astype(jnp.bfloat16)
        bs = padc(params['bs'], Cop).reshape(1, Cop)
        in_specs += [full((Cp, Cop)), full((1, Cop))]
        args += [ws, bs]

    # TODO(synk): for real WideResNet widths (C=160/320/640) add a Cout-tile
    #             grid axis and single-buffer the grid-invariant weight specs
    #             (pl.Buffered(1) / persistent-VMEM weights) so the per-step
    #             footprint fits v7x's 64 MiB VMEM.
    out = pl.pallas_call(
        kernel,
        out_shape=jax.ShapeDtypeStruct((N, Ho, Wo, Cop), jnp.float32),
        grid_spec=pltpu.PrefetchScalarGridSpec(
            num_scalar_prefetch=0,
            grid=(N,),
            in_specs=in_specs,
            out_specs=pl.BlockSpec((1, Ho, Wo, Cop), lambda b: (b, 0, 0, 0)),
            scratch_shapes=[pltpu.VMEM((H + 2, W + 2, Cp), jnp.bfloat16),
                            pltpu.VMEM((H + 2, W + 2, Cop), jnp.bfloat16)]),
        compiler_params=pltpu.CompilerParams(
            dimension_semantics=("parallel",),
            vmem_limit_bytes=48 * 1024 * 1024),
    )(*args)

    out = out[:, :, :, :Cout]
    return jnp.transpose(out, (0, 3, 1, 2))   # back to NCHW


def wide_basic_ref(x_nchw, params, stride=1):
    """Pure-JAX f32 reference (eval-mode BN, identity dropout)."""
    eps = 1e-5
    x = jnp.transpose(x_nchw, (0, 2, 3, 1)).astype(jnp.float32)
    dn = ('NHWC', 'HWIO', 'NHWC')

    def bn(v, g, b, m, var):
        return (v - m) / jnp.sqrt(var + eps) * g + b

    h = jax.nn.relu(bn(x, params['gamma1'], params['beta1'],
                       params['mean1'], params['var1']))
    h = lax.conv_general_dilated(h, params['w1'], (1, 1), [(1, 1), (1, 1)],
                                 dimension_numbers=dn) + params['b1']
    h = jax.nn.relu(bn(h, params['gamma2'], params['beta2'],
                       params['mean2'], params['var2']))
    h = lax.conv_general_dilated(h, params['w2'], (stride, stride), [(1, 1), (1, 1)],
                                 dimension_numbers=dn) + params['b2']
    Cin, Cout = x.shape[-1], params['w1'].shape[-1]
    if stride != 1 or Cin != Cout:
        sc = lax.conv_general_dilated(x, params['ws'], (stride, stride),
                                      [(0, 0), (0, 0)],
                                      dimension_numbers=dn) + params['bs']
    else:
        sc = x
    return jnp.transpose(h + sc, (0, 3, 1, 2))


if __name__ == "__main__":
    key = jax.random.PRNGKey(0)
    N, Cin, H, W = 2, 4, 16, 16     # small synthetic shapes
    Cout, stride = 8, 1             # Cin != Cout -> projection shortcut (1x1 conv)
    ks = jax.random.split(key, 16)

    params = {
        'gamma1': 1.0 + 0.1 * jax.random.normal(ks[0], (Cin,)),
        'beta1':  0.1 * jax.random.normal(ks[1], (Cin,)),
        'mean1':  0.1 * jax.random.normal(ks[2], (Cin,)),
        'var1':   jax.random.uniform(ks[3], (Cin,), minval=0.5, maxval=1.5),
        'w1':     0.1 * jax.random.normal(ks[4], (3, 3, Cin, Cout)),
        'b1':     0.1 * jax.random.normal(ks[5], (Cout,)),
        'gamma2': 1.0 + 0.1 * jax.random.normal(ks[6], (Cout,)),
        'beta2':  0.1 * jax.random.normal(ks[7], (Cout,)),
        'mean2':  0.1 * jax.random.normal(ks[8], (Cout,)),
        'var2':   jax.random.uniform(ks[9], (Cout,), minval=0.5, maxval=1.5),
        'w2':     0.1 * jax.random.normal(ks[10], (3, 3, Cout, Cout)),
        'b2':     0.1 * jax.random.normal(ks[11], (Cout,)),
        'ws':     0.1 * jax.random.normal(ks[12], (1, 1, Cin, Cout)),
        'bs':     0.1 * jax.random.normal(ks[13], (Cout,)),
    }
    x = jax.random.normal(ks[15], (N, Cin, H, W), jnp.float32)

    out = jax.block_until_ready(wide_basic_pallas(x, params, stride))
    ref = wide_basic_ref(x, params, stride)

    assert out.shape == ref.shape, (out.shape, ref.shape)
    # Kernel uses bf16 MXU operands (f32 accumulation); compare against the
    # f32 reference with a bf16-appropriate tolerance.
    max_err = float(jnp.max(jnp.abs(out - ref)))
    assert max_err < 5e-2, f"max abs error {max_err}"
    print("KERNEL_OK")
</pallas_src>

<mosaic_0001>
module attributes {stable_mosaic.version = 11 : i64} {
  func.func @kernel(%arg0: i32, %arg1: memref<1x16x16x128xf32, #tpu.memory_space<vmem>>, %arg2: memref<1x128xf32, #tpu.memory_space<vmem>>, %arg3: memref<1x128xf32, #tpu.memory_space<vmem>>, %arg4: memref<9x128x128xbf16, #tpu.memory_space<vmem>>, %arg5: memref<1x128xf32, #tpu.memory_space<vmem>>, %arg6: memref<1x128xf32, #tpu.memory_space<vmem>>, %arg7: memref<1x128xf32, #tpu.memory_space<vmem>>, %arg8: memref<9x128x128xbf16, #tpu.memory_space<vmem>>, %arg9: memref<1x128xf32, #tpu.memory_space<vmem>>, %arg10: memref<128x128xbf16, #tpu.memory_space<vmem>>, %arg11: memref<1x128xf32, #tpu.memory_space<vmem>>, %arg12: memref<1x16x16x128xf32, #tpu.memory_space<vmem>>, %arg13: memref<18x18x128xbf16, #tpu.memory_space<vmem>>, %arg14: memref<18x18x128xbf16, #tpu.memory_space<vmem>>) attributes {dimension_semantics = [#tpu.dimension_semantics<parallel>], iteration_bounds = array<i64: 2>, scalar_prefetch = 0 : i64, scratch_operands = 2 : i64, tpu.core_type = #tpu.core_type<tc>, window_params = [{transform_indices = @transform_0, window_bounds = array<i64: 1, 16, 16, 128>}, {pipeline_mode = #tpu.pipeline_mode<synchronous>, transform_indices = @transform_1, window_bounds = array<i64: 1, 128>}, {pipeline_mode = #tpu.pipeline_mode<synchronous>, transform_indices = @transform_2, window_bounds = array<i64: 1, 128>}, {pipeline_mode = #tpu.pipeline_mode<synchronous>, transform_indices = @transform_3, window_bounds = array<i64: 9, 128, 128>}, {pipeline_mode = #tpu.pipeline_mode<synchronous>, transform_indices = @transform_4, window_bounds = array<i64: 1, 128>}, {pipeline_mode = #tpu.pipeline_mode<synchronous>, transform_indices = @transform_5, window_bounds = array<i64: 1, 128>}, {pipeline_mode = #tpu.pipeline_mode<synchronous>, transform_indices = @transform_6, window_bounds = array<i64: 1, 128>}, {pipeline_mode = #tpu.pipeline_mode<synchronous>, transform_indices = @transform_7, window_bounds = array<i64: 9, 128, 128>}, {pipeline_mode = #tpu.pipeline_mode<synchronous>, transform_indices = @transform_8, window_bounds = array<i64: 1, 128>}, {pipeline_mode = #tpu.pipeline_mode<synchronous>, transform_indices = @transform_9, window_bounds = array<i64: 128, 128>}, {pipeline_mode = #tpu.pipeline_mode<synchronous>, transform_indices = @transform_10, window_bounds = array<i64: 1, 128>}, {transform_indices = @transform_11, window_bounds = array<i64: 1, 16, 16, 128>}]} {
    %cst = arith.constant 0.000000e+00 : bf16
    %0 = vector.broadcast %cst : bf16 to vector<1x18x128xbf16>
    %cst_0 = arith.constant 0.000000e+00 : bf16
    %1 = vector.broadcast %cst_0 : bf16 to vector<18x1x128xbf16>
    %c0 = arith.constant 0 : index
    %c0_1 = arith.constant 0 : index
    %c0_2 = arith.constant 0 : index
    %2 = vector.load %arg13[%c0, %c0_1, %c0_2] : memref<18x18x128xbf16, #tpu.memory_space<vmem>>, vector<1x18x128xbf16>
    tpu.vector_store %arg13[%c0, %c0_1, %c0_2], %0 {strides = array<i32>} : memref<18x18x128xbf16, #tpu.memory_space<vmem>>, vector<1x18x128xbf16>,
    %c17 = arith.constant 17 : index
    %c0_3 = arith.constant 0 : index
    %c0_4 = arith.constant 0 : index
    %3 = vector.load %arg13[%c17, %c0_3, %c0_4] : memref<18x18x128xbf16, #tpu.memory_space<vmem>>, vector<1x18x128xbf16>
    tpu.vector_store %arg13[%c17, %c0_3, %c0_4], %0 {strides = array<i32>} : memref<18x18x128xbf16, #tpu.memory_space<vmem>>, vector<1x18x128xbf16>,
    %c0_5 = arith.constant 0 : index
    %c0_6 = arith.constant 0 : index
    %c0_7 = arith.constant 0 : index
    %4 = vector.load %arg13[%c0_5, %c0_6, %c0_7] : memref<18x18x128xbf16, #tpu.memory_space<vmem>>, vector<18x1x128xbf16>
    tpu.vector_store %arg13[%c0_5, %c0_6, %c0_7], %1 {strides = array<i32>} : memref<18x18x128xbf16, #tpu.memory_space<vmem>>, vector<18x1x128xbf16>,
    %c0_8 = arith.constant 0 : index
    %c17_9 = arith.constant 17 : index
    %c0_10 = arith.constant 0 : index
    %5 = vector.load %arg13[%c0_8, %c17_9, %c0_10] : memref<18x18x128xbf16, #tpu.memory_space<vmem>>, vector<18x1x128xbf16>
    tpu.vector_store %arg13[%c0_8, %c17_9, %c0_10], %1 {strides = array<i32>} : memref<18x18x128xbf16, #tpu.memory_space<vmem>>, vector<18x1x128xbf16>,
    %cst_11 = arith.constant 0.000000e+00 : bf16
    %6 = vector.broadcast %cst_11 : bf16 to vector<1x18x128xbf16>
    %cst_12 = arith.constant 0.000000e+00 : bf16
    %7 = vector.broadcast %cst_12 : bf16 to vector<18x1x128xbf16>
    %c0_13 = arith.constant 0 : index
    %c0_14 = arith.constant 0 : index
    %c0_15 = arith.constant 0 : index
    %8 = vector.load %arg14[%c0_13, %c0_14, %c0_15] : memref<18x18x128xbf16, #tpu.memory_space<vmem>>, vector<1x18x128xbf16>
    tpu.vector_store %arg14[%c0_13, %c0_14, %c0_15], %6 {strides = array<i32>} : memref<18x18x128xbf16, #tpu.memory_space<vmem>>, vector<1x18x128xbf16>,
    %c17_16 = arith.constant 17 : index
    %c0_17 = arith.constant 0 : index
    %c0_18 = arith.constant 0 : index
    %9 = vector.load %arg14[%c17_16, %c0_17, %c0_18] : memref<18x18x128xbf16, #tpu.memory_space<vmem>>, vector<1x18x128xbf16>
    tpu.vector_store %arg14[%c17_16, %c0_17, %c0_18], %6 {strides = array<i32>} : memref<18x18x128xbf16, #tpu.memory_space<vmem>>, vector<1x18x128xbf16>,
    %c0_19 = arith.constant 0 : index
    %c0_20 = arith.constant 0 : index
    %c0_21 = arith.constant 0 : index
    %10 = vector.load %arg14[%c0_19, %c0_20, %c0_21] : memref<18x18x128xbf16, #tpu.memory_space<vmem>>, vector<18x1x128xbf16>
    tpu.vector_store %arg14[%c0_19, %c0_20, %c0_21], %7 {strides = array<i32>} : memref<18x18x128xbf16, #tpu.memory_space<vmem>>, vector<18x1x128xbf16>,
    %c0_22 = arith.constant 0 : index
    %c17_23 = arith.constant 17 : index
    %c0_24 = arith.constant 0 : index
    %11 = vector.load %arg14[%c0_22, %c17_23, %c0_24] : memref<18x18x128xbf16, #tpu.memory_space<vmem>>, vector<18x1x128xbf16>
    tpu.vector_store %arg14[%c0_22, %c17_23, %c0_24], %7 {strides = array<i32>} : memref<18x18x128xbf16, #tpu.memory_space<vmem>>, vector<18x1x128xbf16>,
    %c0_25 = arith.constant 0 : index
    %c0_26 = arith.constant 0 : index
    %c0_27 = arith.constant 0 : index
    %c0_28 = arith.constant 0 : index
    %12 = vector.load %arg1[%c0_25, %c0_26, %c0_27, %c0_28] : memref<1x16x16x128xf32, #tpu.memory_space<vmem>>, vector<1x16x16x128xf32>
    %13 = vector.shape_cast %12 : vector<1x16x16x128xf32> to vector<16x16x128xf32>
    %c0_29 = arith.constant 0 : index
    %c0_30 = arith.constant 0 : index
    %14 = vector.load %arg2[%c0_29, %c0_30] : memref<1x128xf32, #tpu.memory_space<vmem>>, vector<1x128xf32>
    %15 = vector.shape_cast %14 : vector<1x128xf32> to vector<128xf32>
    %16 = vector.shape_cast %15 : vector<128xf32> to vector<1x1x128xf32>
    %17 = vector.broadcast %16 : vector<1x1x128xf32> to vector<16x16x128xf32>
    %18 = arith.mulf %13, %17 : vector<16x16x128xf32>
    %c0_31 = arith.constant 0 : index
    %c0_32 = arith.constant 0 : index
    %19 = vector.load %arg3[%c0_31, %c0_32] : memref<1x128xf32, #tpu.memory_space<vmem>>, vector<1x128xf32>
    %20 = vector.shape_cast %19 : vector<1x128xf32> to vector<128xf32>
    %21 = vector.shape_cast %20 : vector<128xf32> to vector<1x1x128xf32>
    %22 = vector.broadcast %21 : vector<1x1x128xf32> to vector<16x16x128xf32>
    %23 = arith.addf %18, %22 : vector<16x16x128xf32>
    %cst_33 = arith.constant 0.000000e+00 : f32
    %24 = vector.broadcast %cst_33 : f32 to vector<16x16x128xf32>
    %25 = arith.maximumf %23, %24 : vector<16x16x128xf32>
    %26 = arith.truncf %25 : vector<16x16x128xf32> to vector<16x16x128xbf16>
    %c1 = arith.constant 1 : index
    %c1_34 = arith.constant 1 : index
    %c0_35 = arith.constant 0 : index
    %27 = vector.load %arg13[%c1, %c1_34, %c0_35] : memref<18x18x128xbf16, #tpu.memory_space<vmem>>, vector<16x16x128xbf16>
    tpu.vector_store %arg13[%c1, %c1_34, %c0_35], %26 {strides = array<i32>} : memref<18x18x128xbf16, #tpu.memory_space<vmem>>, vector<16x16x128xbf16>,
    %c0_36 = arith.constant 0 : index
    %c0_37 = arith.constant 0 : index
    %28 = vector.load %arg5[%c0_36, %c0_37] : memref<1x128xf32, #tpu.memory_space<vmem>>, vector<1x128xf32>
    %29 = vector.shape_cast %28 : vector<1x128xf32> to vector<1x128xf32>
    %30 = vector.broadcast %29 : vector<1x128xf32> to vector<256x128xf32>
    %c0_38 = arith.constant 0 : index
    %c0_39 = arith.constant 0 : index
    %c0_40 = arith.constant 0 : index
    %31 = vector.load %arg13[%c0_38, %c0_39, %c0_40] : memref<18x18x128xbf16, #tpu.memory_space<vmem>>, vector<16x16x128xbf16>
    %32 = vector.shape_cast %31 : vector<16x16x128xbf16> to vector<256x128xbf16>
    %c0_41 = arith.constant 0 : index
    %c0_42 = arith.constant 0 : index
    %c0_43 = arith.constant 0 : index
    %33 = vector.load %arg4[%c0_41, %c0_42, %c0_43] : memref<9x128x128xbf16, #tpu.memory_space<vmem>>, vector<1x128x128xbf16>
    %34 = vector.shape_cast %33 : vector<1x128x128xbf16> to vector<128x128xbf16>
    %cst_44 = arith.constant dense<0.000000e+00> : vector<256x128xf32>
    %35 = tpu.matmul %32, %34, %cst_44 {dimension_numbers = #tpu.dot_dimension_numbers<[1], [0], [0], [1], [0, 0, 1, 1], [], []>} : vector<256x128xbf16>, vector<128x128xbf16>, vector<256x128xf32> -> vector<256x128xf32>
    %36 = arith.addf %30, %35 : vector<256x128xf32>
    %c0_45 = arith.constant 0 : index
    %c1_46 = arith.constant 1 : index
    %c0_47 = arith.constant 0 : index
    %37 = vector.load %arg13[%c0_45, %c1_46, %c0_47] : memref<18x18x128xbf16, #tpu.memory_space<vmem>>, vector<16x16x128xbf16>
    %38 = vector.shape_cast %37 : vector<16x16x128xbf16> to vector<256x128xbf16>
    %c1_48 = arith.constant 1 : index
    %c0_49 = arith.constant 0 : index
    %c0_50 = arith.constant 0 : index
    %39 = vector.load %arg4[%c1_48, %c0_49, %c0_50] : memref<9x128x128xbf16, #tpu.memory_space<vmem>>, vector<1x128x128xbf16>
    %40 = vector.shape_cast %39 : vector<1x128x128xbf16> to vector<128x128xbf16>
    %cst_51 = arith.constant dense<0.000000e+00> : vector<256x128xf32>
    %41 = tpu.matmul %38, %40, %cst_51 {dimension_numbers = #tpu.dot_dimension_numbers<[1], [0], [0], [1], [0, 0, 1, 1], [], []>} : vector<256x128xbf16>, vector<128x128xbf16>, vector<256x128xf32> -> vector<256x128xf32>
    %42 = arith.addf %36, %41 : vector<256x128xf32>
    %c0_52 = arith.constant 0 : index
    %c2 = arith.constant 2 : index
    %c0_53 = arith.constant 0 : index
    %43 = vector.load %arg13[%c0_52, %c2, %c0_53] : memref<18x18x128xbf16, #tpu.memory_space<vmem>>, vector<16x16x128xbf16>
    %44 = vector.shape_cast %43 : vector<16x16x128xbf16> to vector<256x128xbf16>
    %c2_54 = arith.constant 2 : index
    %c0_55 = arith.constant 0 : index
    %c0_56 = arith.constant 0 : index
    %45 = vector.load %arg4[%c2_54, %c0_55, %c0_56] : memref<9x128x128xbf16, #tpu.memory_space<vmem>>, vector<1x128x128xbf16>
    %46 = vector.shape_cast %45 : vector<1x128x128xbf16> to vector<128x128xbf16>
    %cst_57 = arith.constant dense<0.000000e+00> : vector<256x128xf32>
    %47 = tpu.matmul %44, %46, %cst_57 {dimension_numbers = #tpu.dot_dimension_numbers<[1], [0], [0], [1], [0, 0, 1, 1], [], []>} : vector<256x128xbf16>, vector<128x128xbf16>, vector<256x128xf32> -> vector<256x128xf32>
    %48 = arith.addf %42, %47 : vector<256x128xf32>
    %c1_58 = arith.constant 1 : index
    %c0_59 = arith.constant 0 : index
    %c0_60 = arith.constant 0 : index
    %49 = vector.load %arg13[%c1_58, %c0_59, %c0_60] : memref<18x18x128xbf16, #tpu.memory_space<vmem>>, vector<16x16x128xbf16>
    %50 = vector.shape_cast %49 : vector<16x16x128xbf16> to vector<256x128xbf16>
    %c3 = arith.constant 3 : index
    %c0_61 = arith.constant 0 : index
    %c0_62 = arith.constant 0 : index
    %51 = vector.load %arg4[%c3, %c0_61, %c0_62] : memref<9x128x128xbf16, #tpu.memory_space<vmem>>, vector<1x128x128xbf16>
    %52 = vector.shape_cast %51 : vector<1x128x128xbf16> to vector<128x128xbf16>
    %cst_63 = arith.constant dense<0.000000e+00> : vector<256x128xf32>
    %53 = tpu.matmul %50, %52, %cst_63 {dimension_numbers = #tpu.dot_dimension_numbers<[1], [0], [0], [1], [0, 0, 1, 1], [], []>} : vector<256x128xbf16>, vector<128x128xbf16>, vector<256x128xf32> -> vector<256x128xf32>
    %54 = arith.addf %48, %53 : vector<256x128xf32>
    %c1_64 = arith.constant 1 : index
    %c1_65 = arith.constant 1 : index
    %c0_66 = arith.constant 0 : index
    %55 = vector.load %arg13[%c1_64, %c1_65, %c0_66] : memref<18x18x128xbf16, #tpu.memory_space<vmem>>, vector<16x16x128xbf16>
    %56 = vector.shape_cast %55 : vector<16x16x128xbf16> to vector<256x128xbf16>
    %c4 = arith.constant 4 : index
    %c0_67 = arith.constant 0 : index
    %c0_68 = arith.constant 0 : index
    %57 = vector.load %arg4[%c4, %c0_67, %c0_68] : memref<9x128x128xbf16, #tpu.memory_space<vmem>>, vector<1x128x128xbf16>
    %58 = vector.shape_cast %57 : vector<1x128x128xbf16> to vector<128x128xbf16>
    %cst_69 = arith.constant dense<0.000000e+00> : vector<256x128xf32>
    %59 = tpu.matmul %56, %58, %cst_69 {dimension_numbers = #tpu.dot_dimension_numbers<[1], [0], [0], [1], [0, 0, 1, 1], [], []>} : vector<256x128xbf16>, vector<128x128xbf16>, vector<256x128xf32> -> vector<256x128xf32>
    %60 = arith.addf %54, %59 : vector<256x128xf32>
    %c1_70 = arith.constant 1 : index
    %c2_71 = arith.constant 2 : index
    %c0_72 = arith.constant 0 : index
    %61 = vector.load %arg13[%c1_70, %c2_71, %c0_72] : memref<18x18x128xbf16, #tpu.memory_space<vmem>>, vector<16x16x128xbf16>
    %62 = vector.shape_cast %61 : vector<16x16x128xbf16> to vector<256x128xbf16>
    %c5 = arith.constant 5 : index
    %c0_73 = arith.constant 0 : index
    %c0_74 = arith.constant 0 : index
    %63 = vector.load %arg4[%c5, %c0_73, %c0_74] : memref<9x128x128xbf16, #tpu.memory_space<vmem>>, vector<1x128x128xbf16>
    %64 = vector.shape_cast %63 : vector<1x128x128xbf16> to vector<128x128xbf16>
    %cst_75 = arith.constant dense<0.000000e+00> : vector<256x128xf32>
    %65 = tpu.matmul %62, %64, %cst_75 {dimension_numbers = #tpu.dot_dimension_numbers<[1], [0], [0], [1], [0, 0, 1, 1], [], []>} : vector<256x128xbf16>, vector<128x128xbf16>, vector<256x128xf32> -> vector<256x128xf32>
    %66 = arith.addf %60, %65 : vector<256x128xf32>
    %c2_76 = arith.constant 2 : index
    %c0_77 = arith.constant 0 : index
    %c0_78 = arith.constant 0 : index
    %67 = vector.load %arg13[%c2_76, %c0_77, %c0_78] : memref<18x18x128xbf16, #tpu.memory_space<vmem>>, vector<16x16x128xbf16>
    %68 = vector.shape_cast %67 : vector<16x16x128xbf16> to vector<256x128xbf16>
    %c6 = arith.constant 6 : index
    %c0_79 = arith.constant 0 : index
    %c0_80 = arith.constant 0 : index
    %69 = vector.load %arg4[%c6, %c0_79, %c0_80] : memref<9x128x128xbf16, #tpu.memory_space<vmem>>, vector<1x128x128xbf16>
    %70 = vector.shape_cast %69 : vector<1x128x128xbf16> to vector<128x128xbf16>
    %cst_81 = arith.constant dense<0.000000e+00> : vector<256x128xf32>
    %71 = tpu.matmul %68, %70, %cst_81 {dimension_numbers = #tpu.dot_dimension_numbers<[1], [0], [0], [1], [0, 0, 1, 1], [], []>} : vector<256x128xbf16>, vector<128x128xbf16>, vector<256x128xf32> -> vector<256x128xf32>
    %72 = arith.addf %66, %71 : vector<256x128xf32>
    %c2_82 = arith.constant 2 : index
    %c1_83 = arith.constant 1 : index
    %c0_84 = arith.constant 0 : index
    %73 = vector.load %arg13[%c2_82, %c1_83, %c0_84] : memref<18x18x128xbf16, #tpu.memory_space<vmem>>, vector<16x16x128xbf16>
    %74 = vector.shape_cast %73 : vector<16x16x128xbf16> to vector<256x128xbf16>
    %c7 = arith.constant 7 : index
    %c0_85 = arith.constant 0 : index
    %c0_86 = arith.constant 0 : index
    %75 = vector.load %arg4[%c7, %c0_85, %c0_86] : memref<9x128x128xbf16, #tpu.memory_space<vmem>>, vector<1x128x128xbf16>
    %76 = vector.shape_cast %75 : vector<1x128x128xbf16> to vector<128x128xbf16>
    %cst_87 = arith.constant dense<0.000000e+00> : vector<256x128xf32>
    %77 = tpu.matmul %74, %76, %cst_87 {dimension_numbers = #tpu.dot_dimension_numbers<[1], [0], [0], [1], [0, 0, 1, 1], [], []>} : vector<256x128xbf16>, vector<128x128xbf16>, vector<256x128xf32> -> vector<256x128xf32>
    %78 = arith.addf %72, %77 : vector<256x128xf32>
    %c2_88 = arith.constant 2 : index
    %c2_89 = arith.constant 2 : index
    %c0_90 = arith.constant 0 : index
    %79 = vector.load %arg13[%c2_88, %c2_89, %c0_90] : memref<18x18x128xbf16, #tpu.memory_space<vmem>>, vector<16x16x128xbf16>
    %80 = vector.shape_cast %79 : vector<16x16x128xbf16> to vector<256x128xbf16>
    %c8 = arith.constant 8 : index
    %c0_91 = arith.constant 0 : index
    %c0_92 = arith.constant 0 : index
    %81 = vector.load %arg4[%c8, %c0_91, %c0_92] : memref<9x128x128xbf16, #tpu.memory_space<vmem>>, vector<1x128x128xbf16>
    %82 = vector.shape_cast %81 : vector<1x128x128xbf16> to vector<128x128xbf16>
    %cst_93 = arith.constant dense<0.000000e+00> : vector<256x128xf32>
    %83 = tpu.matmul %80, %82, %cst_93 {dimension_numbers = #tpu.dot_dimension_numbers<[1], [0], [0], [1], [0, 0, 1, 1], [], []>} : vector<256x128xbf16>, vector<128x128xbf16>, vector<256x128xf32> -> vector<256x128xf32>
    %84 = arith.addf %78, %83 : vector<256x128xf32>
    %c0_94 = arith.constant 0 : index
    %c0_95 = arith.constant 0 : index
    %85 = vector.load %arg6[%c0_94, %c0_95] : memref<1x128xf32, #tpu.memory_space<vmem>>, vector<1x128xf32>
    %86 = vector.broadcast %85 : vector<1x128xf32> to vector<256x128xf32>
    %87 = arith.mulf %84, %86 : vector<256x128xf32>
    %c0_96 = arith.constant 0 : index
    %c0_97 = arith.constant 0 : index
    %88 = vector.load %arg7[%c0_96, %c0_97] : memref<1x128xf32, #tpu.memory_space<vmem>>, vector<1x128xf32>
    %89 = vector.broadcast %88 : vector<1x128xf32> to vector<256x128xf32>
    %90 = arith.addf %87, %89 : vector<256x128xf32>
    %cst_98 = arith.constant 0.000000e+00 : f32
    %91 = vector.broadcast %cst_98 : f32 to vector<256x128xf32>
    %92 = arith.maximumf %90, %91 : vector<256x128xf32>
    %93 = vector.shape_cast %92 : vector<256x128xf32> to vector<16x16x128xf32>
    %94 = arith.truncf %93 : vector<16x16x128xf32> to vector<16x16x128xbf16>
    %c1_99 = arith.constant 1 : index
    %c1_100 = arith.constant 1 : index
    %c0_101 = arith.constant 0 : index
    %95 = vector.load %arg14[%c1_99, %c1_100, %c0_101] : memref<18x18x128xbf16, #tpu.memory_space<vmem>>, vector<16x16x128xbf16>
    tpu.vector_store %arg14[%c1_99, %c1_100, %c0_101], %94 {strides = array<i32>} : memref<18x18x128xbf16, #tpu.memory_space<vmem>>, vector<16x16x128xbf16>,
    %c0_102 = arith.constant 0 : index
    %c0_103 = arith.constant 0 : index
    %96 = vector.load %arg9[%c0_102, %c0_103] : memref<1x128xf32, #tpu.memory_space<vmem>>, vector<1x128xf32>
    %97 = vector.shape_cast %96 : vector<1x128xf32> to vector<1x128xf32>
    %98 = vector.broadcast %97 : vector<1x128xf32> to vector<256x128xf32>
    %c0_104 = arith.constant 0 : index
    %c0_105 = arith.constant 0 : index
    %c0_106 = arith.constant 0 : index
    %99 = vector.load %arg14[%c0_104, %c0_105, %c0_106] : memref<18x18x128xbf16, #tpu.memory_space<vmem>>, vector<16x16x128xbf16>
    %100 = vector.shape_cast %99 : vector<16x16x128xbf16> to vector<256x128xbf16>
    %c0_107 = arith.constant 0 : index
    %c0_108 = arith.constant 0 : index
    %c0_109 = arith.constant 0 : index
    %101 = vector.load %arg8[%c0_107, %c0_108, %c0_109] : memref<9x128x128xbf16, #tpu.memory_space<vmem>>, vector<1x128x128xbf16>
    %102 = vector.shape_cast %101 : vector<1x128x128xbf16> to vector<128x128xbf16>
    %cst_110 = arith.constant dense<0.000000e+00> : vector<256x128xf32>
    %103 = tpu.matmul %100, %102, %cst_110 {dimension_numbers = #tpu.dot_dimension_numbers<[1], [0], [0], [1], [0, 0, 1, 1], [], []>} : vector<256x128xbf16>, vector<128x128xbf16>, vector<256x128xf32> -> vector<256x128xf32>
    %104 = arith.addf %98, %103 : vector<256x128xf32>
    %c0_111 = arith.constant 0 : index
    %c1_112 = arith.constant 1 : index
    %c0_113 = arith.constant 0 : index
    %105 = vector.load %arg14[%c0_111, %c1_112, %c0_113] : memref<18x18x128xbf16, #tpu.memory_space<vmem>>, vector<16x16x128xbf16>
    %106 = vector.shape_cast %105 : vector<16x16x128xbf16> to vector<256x128xbf16>
    %c1_114 = arith.constant 1 : index
    %c0_115 = arith.constant 0 : index
    %c0_116 = arith.constant 0 : index
    %107 = vector.load %arg8[%c1_114, %c0_115, %c0_116] : memref<9x128x128xbf16, #tpu.memory_space<vmem>>, vector<1x128x128xbf16>
    %108 = vector.shape_cast %107 : vector<1x128x128xbf16> to vector<128x128xbf16>
    %cst_117 = arith.constant dense<0.000000e+00> : vector<256x128xf32>
    %109 = tpu.matmul %106, %108, %cst_117 {dimension_numbers = #tpu.dot_dimension_numbers<[1], [0], [0], [1], [0, 0, 1, 1], [], []>} : vector<256x128xbf16>, vector<128x128xbf16>, vector<256x128xf32> -> vector<256x128xf32>
    %110 = arith.addf %104, %109 : vector<256x128xf32>
    %c0_118 = arith.constant 0 : index
    %c2_119 = arith.constant 2 : index
    %c0_120 = arith.constant 0 : index
    %111 = vector.load %arg14[%c0_118, %c2_119, %c0_120] : memref<18x18x128xbf16, #tpu.memory_space<vmem>>, vector<16x16x128xbf16>
    %112 = vector.shape_cast %111 : vector<16x16x128xbf16> to vector<256x128xbf16>
    %c2_121 = arith.constant 2 : index
    %c0_122 = arith.constant 0 : index
    %c0_123 = arith.constant 0 : index
    %113 = vector.load %arg8[%c2_121, %c0_122, %c0_123] : memref<9x128x128xbf16, #tpu.memory_space<vmem>>, vector<1x128x128xbf16>
    %114 = vector.shape_cast %113 : vector<1x128x128xbf16> to vector<128x128xbf16>
    %cst_124 = arith.constant dense<0.000000e+00> : vector<256x128xf32>
    %115 = tpu.matmul %112, %114, %cst_124 {dimension_numbers = #tpu.dot_dimension_numbers<[1], [0], [0], [1], [0, 0, 1, 1], [], []>} : vector<256x128xbf16>, vector<128x128xbf16>, vector<256x128xf32> -> vector<256x128xf32>
    %116 = arith.addf %110, %115 : vector<256x128xf32>
    %c1_125 = arith.constant 1 : index
    %c0_126 = arith.constant 0 : index
    %c0_127 = arith.constant 0 : index
    %117 = vector.load %arg14[%c1_125, %c0_126, %c0_127] : memref<18x18x128xbf16, #tpu.memory_space<vmem>>, vector<16x16x128xbf16>
    %118 = vector.shape_cast %117 : vector<16x16x128xbf16> to vector<256x128xbf16>
    %c3_128 = arith.constant 3 : index
    %c0_129 = arith.constant 0 : index
    %c0_130 = arith.constant 0 : index
    %119 = vector.load %arg8[%c3_128, %c0_129, %c0_130] : memref<9x128x128xbf16, #tpu.memory_space<vmem>>, vector<1x128x128xbf16>
    %120 = vector.shape_cast %119 : vector<1x128x128xbf16> to vector<128x128xbf16>
    %cst_131 = arith.constant dense<0.000000e+00> : vector<256x128xf32>
    %121 = tpu.matmul %118, %120, %cst_131 {dimension_numbers = #tpu.dot_dimension_numbers<[1], [0], [0], [1], [0, 0, 1, 1], [], []>} : vector<256x128xbf16>, vector<128x128xbf16>, vector<256x128xf32> -> vector<256x128xf32>
    %122 = arith.addf %116, %121 : vector<256x128xf32>
    %c1_132 = arith.constant 1 : index
    %c1_133 = arith.constant 1 : index
    %c0_134 = arith.constant 0 : index
    %123 = vector.load %arg14[%c1_132, %c1_133, %c0_134] : memref<18x18x128xbf16, #tpu.memory_space<vmem>>, vector<16x16x128xbf16>
    %124 = vector.shape_cast %123 : vector<16x16x128xbf16> to vector<256x128xbf16>
    %c4_135 = arith.constant 4 : index
    %c0_136 = arith.constant 0 : index
    %c0_137 = arith.constant 0 : index
    %125 = vector.load %arg8[%c4_135, %c0_136, %c0_137] : memref<9x128x128xbf16, #tpu.memory_space<vmem>>, vector<1x128x128xbf16>
    %126 = vector.shape_cast %125 : vector<1x128x128xbf16> to vector<128x128xbf16>
    %cst_138 = arith.constant dense<0.000000e+00> : vector<256x128xf32>
    %127 = tpu.matmul %124, %126, %cst_138 {dimension_numbers = #tpu.dot_dimension_numbers<[1], [0], [0], [1], [0, 0, 1, 1], [], []>} : vector<256x128xbf16>, vector<128x128xbf16>, vector<256x128xf32> -> vector<256x128xf32>
    %128 = arith.addf %122, %127 : vector<256x128xf32>
    %c1_139 = arith.constant 1 : index
    %c2_140 = arith.constant 2 : index
    %c0_141 = arith.constant 0 : index
    %129 = vector.load %arg14[%c1_139, %c2_140, %c0_141] : memref<18x18x128xbf16, #tpu.memory_space<vmem>>, vector<16x16x128xbf16>
    %130 = vector.shape_cast %129 : vector<16x16x128xbf16> to vector<256x128xbf16>
    %c5_142 = arith.constant 5 : index
    %c0_143 = arith.constant 0 : index
    %c0_144 = arith.constant 0 : index
    %131 = vector.load %arg8[%c5_142, %c0_143, %c0_144] : memref<9x128x128xbf16, #tpu.memory_space<vmem>>, vector<1x128x128xbf16>
    %132 = vector.shape_cast %131 : vector<1x128x128xbf16> to vector<128x128xbf16>
    %cst_145 = arith.constant dense<0.000000e+00> : vector<256x128xf32>
    %133 = tpu.matmul %130, %132, %cst_145 {dimension_numbers = #tpu.dot_dimension_numbers<[1], [0], [0], [1], [0, 0, 1, 1], [], []>} : vector<256x128xbf16>, vector<128x128xbf16>, vector<256x128xf32> -> vector<256x128xf32>
    %134 = arith.addf %128, %133 : vector<256x128xf32>
    %c2_146 = arith.constant 2 : index
    %c0_147 = arith.constant 0 : index
    %c0_148 = arith.constant 0 : index
    %135 = vector.load %arg14[%c2_146, %c0_147, %c0_148] : memref<18x18x128xbf16, #tpu.memory_space<vmem>>, vector<16x16x128xbf16>
    %136 = vector.shape_cast %135 : vector<16x16x128xbf16> to vector<256x128xbf16>
    %c6_149 = arith.constant 6 : index
    %c0_150 = arith.constant 0 : index
    %c0_151 = arith.constant 0 : index
    %137 = vector.load %arg8[%c6_149, %c0_150, %c0_151] : memref<9x128x128xbf16, #tpu.memory_space<vmem>>, vector<1x128x128xbf16>
    %138 = vector.shape_cast %137 : vector<1x128x128xbf16> to vector<128x128xbf16>
    %cst_152 = arith.constant dense<0.000000e+00> : vector<256x128xf32>
    %139 = tpu.matmul %136, %138, %cst_152 {dimension_numbers = #tpu.dot_dimension_numbers<[1], [0], [0], [1], [0, 0, 1, 1], [], []>} : vector<256x128xbf16>, vector<128x128xbf16>, vector<256x128xf32> -> vector<256x128xf32>
    %140 = arith.addf %134, %139 : vector<256x128xf32>
    %c2_153 = arith.constant 2 : index
    %c1_154 = arith.constant 1 : index
    %c0_155 = arith.constant 0 : index
    %141 = vector.load %arg14[%c2_153, %c1_154, %c0_155] : memref<18x18x128xbf16, #tpu.memory_space<vmem>>, vector<16x16x128xbf16>
    %142 = vector.shape_cast %141 : vector<16x16x128xbf16> to vector<256x128xbf16>
    %c7_156 = arith.constant 7 : index
    %c0_157 = arith.constant 0 : index
    %c0_158 = arith.constant 0 : index
    %143 = vector.load %arg8[%c7_156, %c0_157, %c0_158] : memref<9x128x128xbf16, #tpu.memory_space<vmem>>, vector<1x128x128xbf16>
    %144 = vector.shape_cast %143 : vector<1x128x128xbf16> to vector<128x128xbf16>
    %cst_159 = arith.constant dense<0.000000e+00> : vector<256x128xf32>
    %145 = tpu.matmul %142, %144, %cst_159 {dimension_numbers = #tpu.dot_dimension_numbers<[1], [0], [0], [1], [0, 0, 1, 1], [], []>} : vector<256x128xbf16>, vector<128x128xbf16>, vector<256x128xf32> -> vector<256x128xf32>
    %146 = arith.addf %140, %145 : vector<256x128xf32>
    %c2_160 = arith.constant 2 : index
    %c2_161 = arith.constant 2 : index
    %c0_162 = arith.constant 0 : index
    %147 = vector.load %arg14[%c2_160, %c2_161, %c0_162] : memref<18x18x128xbf16, #tpu.memory_space<vmem>>, vector<16x16x128xbf16>
    %148 = vector.shape_cast %147 : vector<16x16x128xbf16> to vector<256x128xbf16>
    %c8_163 = arith.constant 8 : index
    %c0_164 = arith.constant 0 : index
    %c0_165 = arith.constant 0 : index
    %149 = vector.load %arg8[%c8_163, %c0_164, %c0_165] : memref<9x128x128xbf16, #tpu.memory_space<vmem>>, vector<1x128x128xbf16>
    %150 = vector.shape_cast %149 : vector<1x128x128xbf16> to vector<128x128xbf16>
    %cst_166 = arith.constant dense<0.000000e+00> : vector<256x128xf32>
    %151 = tpu.matmul %148, %150, %cst_166 {dimension_numbers = #tpu.dot_dimension_numbers<[1], [0], [0], [1], [0, 0, 1, 1], [], []>} : vector<256x128xbf16>, vector<128x128xbf16>, vector<256x128xf32> -> vector<256x128xf32>
    %152 = arith.addf %146, %151 : vector<256x128xf32>
    %153 = vector.shape_cast %152 : vector<256x128xf32> to vector<16x16x128xf32>
    %154 = vector.shape_cast %13 : vector<16x16x128xf32> to vector<256x128xf32>
    %155 = arith.truncf %154 : vector<256x128xf32> to vector<256x128xbf16>
    %c0_167 = arith.constant 0 : index
    %c0_168 = arith.constant 0 : index
    %156 = vector.load %arg10[%c0_167, %c0_168] : memref<128x128xbf16, #tpu.memory_space<vmem>>, vector<128x128xbf16>
    %cst_169 = arith.constant dense<0.000000e+00> : vector<256x128xf32>
    %157 = tpu.matmul %155, %156, %cst_169 {dimension_numbers = #tpu.dot_dimension_numbers<[1], [0], [0], [1], [0, 0, 1, 1], [], []>} : vector<256x128xbf16>, vector<128x128xbf16>, vector<256x128xf32> -> vector<256x128xf32>
    %c0_170 = arith.constant 0 : index
    %c0_171 = arith.constant 0 : index
    %158 = vector.load %arg11[%c0_170, %c0_171] : memref<1x128xf32, #tpu.memory_space<vmem>>, vector<1x128xf32>
    %159 = vector.broadcast %158 : vector<1x128xf32> to vector<256x128xf32>
    %160 = arith.addf %157, %159 : vector<256x128xf32>
    %161 = vector.shape_cast %160 : vector<256x128xf32> to vector<16x16x128xf32>
    %162 = arith.addf %153, %161 : vector<16x16x128xf32>
    %c0_172 = arith.constant 0 : index
    %c0_173 = arith.constant 0 : index
    %c0_174 = arith.constant 0 : index
    %c0_175 = arith.constant 0 : index
    %163 = vector.load %arg12[%c0_172, %c0_173, %c0_174, %c0_175] : memref<1x16x16x128xf32, #tpu.memory_space<vmem>>, vector<1x16x16x128xf32>
    %164 = vector.shape_cast %163 : vector<1x16x16x128xf32> to vector<16x16x128xf32>
    %165 = vector.shape_cast %162 : vector<16x16x128xf32> to vector<1x16x16x128xf32>
    tpu.vector_store %arg12[%c0_172, %c0_173, %c0_174, %c0_175], %165 {strides = array<i32>} : memref<1x16x16x128xf32, #tpu.memory_space<vmem>>, vector<1x16x16x128xf32>,
    return
  }
  func.func @transform_0(%arg0: i32) -> (i32, i32, i32, i32) {
    %c0_i32 = arith.constant 0 : i32
    %c0_i32_0 = arith.constant 0 : i32
    %c0_i32_1 = arith.constant 0 : i32
    %c0_i32_2 = arith.constant 0 : i32
    return %arg0, %c0_i32, %c0_i32_0, %c0_i32_1 : i32, i32, i32, i32
  }
  func.func @transform_1(%arg0: i32) -> (i32, i32) {
    %c0_i32 = arith.constant 0 : i32
    %c0_i32_0 = arith.constant 0 : i32
    %c0_i32_1 = arith.constant 0 : i32
    return %c0_i32, %c0_i32_0 : i32, i32
  }
  func.func @transform_2(%arg0: i32) -> (i32, i32) {
    %c0_i32 = arith.constant 0 : i32
    %c0_i32_0 = arith.constant 0 : i32
    %c0_i32_1 = arith.constant 0 : i32
    return %c0_i32, %c0_i32_0 : i32, i32
  }
  func.func @transform_3(%arg0: i32) -> (i32, i32, i32) {
    %c0_i32 = arith.constant 0 : i32
    %c0_i32_0 = arith.constant 0 : i32
    %c0_i32_1 = arith.constant 0 : i32
    %c0_i32_2 = arith.constant 0 : i32
    return %c0_i32, %c0_i32_0, %c0_i32_1 : i32, i32, i32
  }
  func.func @transform_4(%arg0: i32) -> (i32, i32) {
    %c0_i32 = arith.constant 0 : i32
    %c0_i32_0 = arith.constant 0 : i32
    %c0_i32_1 = arith.constant 0 : i32
    return %c0_i32, %c0_i32_0 : i32, i32
  }
  func.func @transform_5(%arg0: i32) -> (i32, i32) {
    %c0_i32 = arith.constant 0 : i32
    %c0_i32_0 = arith.constant 0 : i32
    %c0_i32_1 = arith.constant 0 : i32
    return %c0_i32, %c0_i32_0 : i32, i32
  }
  func.func @transform_6(%arg0: i32) -> (i32, i32) {
    %c0_i32 = arith.constant 0 : i32
    %c0_i32_0 = arith.constant 0 : i32
    %c0_i32_1 = arith.constant 0 : i32
    return %c0_i32, %c0_i32_0 : i32, i32
  }
  func.func @transform_7(%arg0: i32) -> (i32, i32, i32) {
    %c0_i32 = arith.constant 0 : i32
    %c0_i32_0 = arith.constant 0 : i32
    %c0_i32_1 = arith.constant 0 : i32
    %c0_i32_2 = arith.constant 0 : i32
    return %c0_i32, %c0_i32_0, %c0_i32_1 : i32, i32, i32
  }
  func.func @transform_8(%arg0: i32) -> (i32, i32) {
    %c0_i32 = arith.constant 0 : i32
    %c0_i32_0 = arith.constant 0 : i32
    %c0_i32_1 = arith.constant 0 : i32
    return %c0_i32, %c0_i32_0 : i32, i32
  }
  func.func @transform_9(%arg0: i32) -> (i32, i32) {
    %c0_i32 = arith.constant 0 : i32
    %c0_i32_0 = arith.constant 0 : i32
    %c0_i32_1 = arith.constant 0 : i32
    return %c0_i32, %c0_i32_0 : i32, i32
  }
  func.func @transform_10(%arg0: i32) -> (i32, i32) {
    %c0_i32 = arith.constant 0 : i32
    %c0_i32_0 = arith.constant 0 : i32
    %c0_i32_1 = arith.constant 0 : i32
    return %c0_i32, %c0_i32_0 : i32, i32
  }
  func.func @transform_11(%arg0: i32) -> (i32, i32, i32, i32) {
    %c0_i32 = arith.constant 0 : i32
    %c0_i32_0 = arith.constant 0 : i32
    %c0_i32_1 = arith.constant 0 : i32
    %c0_i32_2 = arith.constant 0 : i32
    return %arg0, %c0_i32, %c0_i32_0, %c0_i32_1 : i32, i32, i32, i32
  }
}

</mosaic_0001>

<bundles_post_ra>
// kernel: tpu_custom_call.1
= control target key start
LH: loop header
LB: loop body
LE: loop exit
PB: predicated region body
PF: predicated region fallthrough
CT: control target
= control target key end

     0   :  { %s19943_s0 = inlined_call_operand.hbm [shape: f32[2,16,16,128], index: 0, kind: input, shape index: {}]   ;;  %s19944_s1 = inlined_call_operand.vmem [shape: f32[1,128], index: 1, kind: input, shape index: {}]   ;;  %s19945_s2 = inlined_call_operand.vmem [shape: f32[1,128], index: 2, kind: input, shape index: {}]   ;;  %s19946_s3 = inlined_call_operand.hbm [shape: bf16[9,128,128], index: 3, kind: input, shape index: {}]   ;;  %s19947_s4 = inlined_call_operand.vmem [shape: f32[1,128], index: 4, kind: input, shape index: {}]   ;;  %s19948_s5 = inlined_call_operand.vmem [shape: f32[1,128], index: 5, kind: input, shape index: {}]   ;;  %s19949_s6 = inlined_call_operand.vmem [shape: f32[1,128], index: 6, kind: input, shape index: {}]   ;;  %s19950_s7 = inlined_call_operand.hbm [shape: bf16[9,128,128], index: 7, kind: input, shape index: {}]   ;;  %s19951_s8 = inlined_call_operand.vmem [shape: f32[1,128], index: 8, kind: input, shape index: {}]   ;;  %s19952_s9 = inlined_call_operand.hbm [shape: bf16[128,128], index: 9, kind: input, shape index: {}]   ;;  %s19953_s10 = inlined_call_operand.vmem [shape: f32[1,128], index: 10, kind: input, shape index: {}]   ;;  %s19954_s11 = inlined_call_operand.hbm [shape: f32[2,16,16,128], index: 11, kind: output, shape index: {}]  }
   0x1   :  { %20064 = sst [smem:[#allocation86_spill]] %s19951_s8 }
   0x2   :  { %20065 = sst [smem:[#allocation87_spill]] %s19953_s10 }
   0x3   :  { %20066 = sst [smem:[#allocation88_spill]] %s19954_s11 }
   0x4   :  { %16 = vsyncpa [#allocation5], 0 }
   0x5   :  { %18 = vsyncpa [#allocation5 + $0x1], 0 }
   0x6   :  { %19 = vsyncpa [#allocation8], 0 }
   0x7   :  { %20 = vsyncpa [#allocation11], 0 }
   0x8   :  { %21 = vsyncpa [#allocation6], 0 }
   0x9   :  { %23 = vsyncpa [#allocation6 + $0x1], 0  ;;  %s15630_s17 = smov 0   ;;  %s15632_s18 = smov 0  }
   0xa   :  { %s15634_s19 = smov 0   ;;  %s15636_s20 = smov 0  }
   0xb LB: > { %20067 = sst [smem:[#allocation17_spill]] %s15544_s17  ;;  %s15651_s21 = sadd.s32 4294967295, %s15556_s20   ;;  %s15556_s20 = sphi %s15636_s20, %s20447_s20   ;;  %s15552_s19 = sphi %s15634_s19, %s20446_s19   ;;  %s15548_s18 = sphi %s15632_s18, %s20445_s18   ;;  %s15544_s17 = sphi %s15630_s17, %s20444_s17  }
   0xc   : > { %s12275_s22 = sadd.s32 4294967294, %s15556_s20   ;;  %p49_p0 = scmp.ne.s32.totalorder %s15548_s18, %s15544_s17 }
   0xd   : > { %p19956_p1 = scmp.eq.s32.totalorder %s15651_s21, 0  ;;  %p289_p3 = scmp.eq.s32.totalorder %s12275_s22, 1 }
   0xe   : > { %p12276_p5 = scmp.ge.s32.totalorder %s15556_s20, 1  ;;  %p296_p7 = scmp.lt.s32.totalorder %s15556_s20, 3 }
   0xf   : > { %p15660_p4 = por %p19956_p1, %p49_p0  ;;  %p15665_p6 = por %p289_p3, %p49_p0 }
  0x10   : > { %p15670_p8 = pnand %p12276_p5, %p296_p7  ;;  %s15558_s26 = smov [#allocation7]  }
  0x11   : > { %s20068_s23 = scalar_select %p15660_p4, 1, 0 }
  0x12   : > { %s20069_s24 = scalar_select %p15665_p6, 1, 0 }
  0x13   : > { %s20071_s25 = scalar_select %p15670_p8, 1, 0 }
  0x14   : > { %20070 = sst [smem:[#allocation18_spill]] %s20069_s24  ;;  %s314_s27 = sshll.u32 %s15558_s26, 4  ;;  %s15674_s27 = int_to_ptr.vmem [resolvable:$true] %s314_s27 }
  0x15   : > { %p15008_p9 = pneg %p15670_p8  ;;  %s15559_s29 = smov [#allocation9]  }
  0x16   : > { %s336_s30 = sshll.u32 %s15559_s29, 4  ;;  %s15560_s12 = smov [#allocation10]   ;;  %s15685_s30 = int_to_ptr.vmem [resolvable:$true] %s336_s30 }
  0x17   : > { %p15681_p11 = pnand %p15008_p9, %p19956_p1  ;;  %s15687_s13 = sshll.u32 %s15560_s12, 4  ;;  %s353_s13 = int_to_ptr.vmem [resolvable:$true] %s15687_s13 }
  0x18   : > { %s15368_s16 = scalar_lea.hbm %s19946_s3, 9216 }
  0x19   : > { %p15369_p12 = scmp.ne.s32.totalorder %s19946_s3, %s15368_s16  ;;  %p15697_p13 = pneg %p15681_p11 }
  0x1a   : > { %p15375_p5 = scmp.lt.u32.totalorder %s15368_s16, %s19946_s3 }
  0x1b   : > { %p15371_p0 = pnand %p15697_p13, %p15369_p12 }
  0x1d   : > { %p15372_p3 = pneg %p15371_p0 }
  0x1f   : > { %p15377_p7 = pnand %p15375_p5, %p15372_p3 }
  0x21   : > { %15380 = shalt.err (!%p15377_p7)
}
  0x22   : > { %s15381_s14 = scalar_lea.vmem %s15674_s27, 9216  ;;  %p15389_p2 = scmp.lt.s32.totalorder %s15674_s27, %s15674_s27 }
  0x23   : > { %p15382_p9 = scmp.ne.s32.totalorder %s15674_s27, %s15381_s14  ;;  %p15390_p6 = scmp.lt.s32.totalorder %s15381_s14, %s15381_s14 }
  0x25   : > { %p15384_p10 = pnand %p15382_p9, %p15697_p13  ;;  %p15391_p12 = por %p15390_p6, %p15389_p2 }
  0x27   : > { %p15385_p1 = pneg %p15384_p10 }
  0x29   : > { %p15392_p0 = pnand %p15391_p12, %p15385_p1 }
  0x2b   : > { %15395 = shalt.err (!%p15392_p0)
}
  0x2c   : > { %s15561_s15 = smov 64   ;;  %s15562_s16 = smov 4  }
  0x2d   : > { %15011 = dma.hbm_to_vmem [thread:$0]  (!%p15681_p11), %s19946_s3, 9216, %s15674_s27, [#allocation8], %s15561_s15, %s15561_s15, %s15562_s16  }
  0x2e   : > { %s15396_s14 = scalar_lea.hbm %s19950_s7, 9216 }
  0x2f   : > { %p15397_p1 = scmp.ne.s32.totalorder %s19950_s7, %s15396_s14  ;;  %p15403_p10 = scmp.lt.u32.totalorder %s15396_s14, %s19950_s7 }
  0x31   : > { %p15399_p2 = pnand %p15397_p1, %p15697_p13 }
  0x33   : > { %p15400_p6 = pneg %p15399_p2 }
  0x35   : > { %p15405_p3 = pnand %p15403_p10, %p15400_p6 }
  0x37   : > { %15408 = shalt.err (!%p15405_p3)
}
  0x38   : > { %s15409_s27 = scalar_lea.vmem %s15685_s30, 9216  ;;  %p15417_p12 = scmp.lt.s32.totalorder %s15685_s30, %s15685_s30 }
  0x39   : > { %p15410_p5 = scmp.ne.s32.totalorder %s15685_s30, %s15409_s27  ;;  %p15418_p0 = scmp.lt.s32.totalorder %s15409_s27, %s15409_s27 }
  0x3b   : > { %p15412_p7 = pnand %p15410_p5, %p15697_p13  ;;  %p15419_p1 = por %p15418_p0, %p15417_p12 }
  0x3d   : > { %p15413_p9 = pneg %p15412_p7 }
  0x3f   : > { %p15420_p2 = pnand %p15419_p1, %p15413_p9 }
  0x41   : > { %15423 = shalt.err (!%p15420_p2)
}
  0x42   : > { %15014 = dma.hbm_to_vmem [thread:$0]  (!%p15681_p11), %s19950_s7, 9216, %s15685_s30, [#allocation8], %s15561_s15, %s15561_s15, %s15562_s16  }
  0x43   : > { %s15424_s22 = scalar_lea.hbm %s19952_s9, 1024 }
  0x44   : > { %p15425_p6 = scmp.ne.s32.totalorder %s19952_s9, %s15424_s22  ;;  %p15431_p5 = scmp.lt.u32.totalorder %s15424_s22, %s19952_s9 }
  0x46   : > { %p15427_p10 = pnand %p15425_p6, %p15697_p13 }
  0x48   : > { %p15428_p3 = pneg %p15427_p10 }
  0x4a   : > { %p15433_p7 = pnand %p15431_p5, %p15428_p3 }
  0x4c   : > { %15436 = shalt.err (!%p15433_p7)
}
  0x4d   : > { %s15437_s27 = scalar_lea.vmem %s353_s13, 1024  ;;  %p15445_p1 = scmp.lt.s32.totalorder %s353_s13, %s353_s13 }
  0x4e   : > { %p15438_p9 = scmp.ne.s32.totalorder %s353_s13, %s15437_s27  ;;  %p15446_p2 = scmp.lt.s32.totalorder %s15437_s27, %s15437_s27 }
  0x50   : > { %p15440_p12 = pnand %p15438_p9, %p15697_p13  ;;  %p15447_p4 = por %p15446_p2, %p15445_p1 }
  0x52   : > { %p15441_p0 = pneg %p15440_p12 }
  0x54   : > { %p15448_p8 = pnand %p15447_p4, %p15441_p0 }
  0x56   : > { %15451 = shalt.err (!%p15448_p8)
}
  0x57   : > { %15017 = dma.hbm_to_vmem [thread:$0]  (!%p15681_p11), %s19952_s9, 1024, %s353_s13, [#allocation11], %s15561_s15, %s15561_s15, %s15562_s16  }
  0x58   : > { %s15770_s24 = sadd.s32 1, %s15556_s20   ;;  %s36_s10 = sadd.s32 1, %s15552_s19 }
  0x59   : > { %s33_s28 = ssub.s32 %s15556_s20, %s15770_s24  ;;  %p43_p8 = scmp.ne.s32.totalorder %s15552_s19, %s15548_s18 }
  0x5a   : > { %p34_p4 = scmp.eq.s32.totalorder %s33_s28, 0  ;;  %p44_p13 = scmp.eq.s32.totalorder %s15556_s20, 0 }
  0x5b   : > { %p15029_p6 = scmp.lt.s32.totalorder %s15556_s20, 2  ;;  %p20074_p3 = scmp.eq.s32.totalorder %s15651_s21, 1 }
  0x5c   : > { %s15780_s11 = scalar_select %p34_p4, %s15552_s19, %s36_s10  }
  0x5d   : > { %p45_p10 = por %p44_p13, %p43_p8  ;;  %p15784_p5 = por %p20074_p3, %p43_p8 }
  0x5e   : > { %s369_s22 = sand.u32 1, %s15552_s19   ;;  %s12902_s26 = sshll.u32 %s15556_s20, 12 }
  0x5f   : > { %s12281_s13 = sshll.u32 %s369_s22, 8  ;;  %s15793_s29 = scalar_lea.hbm %s19943_s0, %s12902_s26 }
  0x60   : > { %s373_s12 = scalar_lea.vmem [#allocation4], %s12281_s13  ;;  %p15795_p11 = pnand %p15029_p6, %p45_p10 }
  0x61   : > { %s380_s14 = sshll.u32 %s373_s12, 4  ;;  %s15801_s30 = scalar_lea.sflag [#allocation5], %s369_s22  ;;  %s15799_s14 = int_to_ptr.vmem [resolvable:$true] %s380_s14 }
  0x62   : > { %s15452_s8 = scalar_lea.hbm %s15793_s29, 4096  ;;  %p15454_p9 = pneg %p15795_p11 }
  0x63   : > { %p15453_p7 = scmp.ne.s32.totalorder %s15793_s29, %s15452_s8  ;;  %s15457_s26 = scalar_lea.hbm %s19943_s0, 8192 }
  0x64   : > { %p15458_p1 = scmp.lt.u32.totalorder %s15793_s29, %s19943_s0  ;;  %p15459_p2 = scmp.lt.u32.totalorder %s15457_s26, %s15452_s8 }
  0x65   : > { %p15455_p12 = pnand %p15454_p9, %p15453_p7  ;;  %p15461_p8 = scmp.lt.u32.totalorder %s15452_s8, %s15793_s29 }
  0x66   : > { %p15460_p4 = por %p15459_p2, %p15458_p1 }
  0x67   : > { %p15456_p0 = pneg %p15455_p12 }
  0x68   : > { %p15462_p13 = por %p15461_p8, %p15460_p4 }
  0x6a   : > { %p15463_p6 = pnand %p15462_p13, %p15456_p0 }
  0x6c   : > { %15466 = shalt.err (!%p15463_p6)
}
  0x6d   : > { %s15467_s22 = scalar_lea.vmem %s15799_s14, 4096  ;;  %s15563_s16 = smov [#allocation4]  }
  0x6e   : > { %p15468_p10 = scmp.ne.s32.totalorder %s15799_s14, %s15467_s22  ;;  %s15472_s12 = sshll.u32 %s15563_s16, 4  ;;  %s15473_s12 = int_to_ptr.vmem [resolvable:$false] %s15472_s12 }
  0x6f   : > { %s15474_s28 = scalar_lea.vmem %s15473_s12, 8192  ;;  %p15475_p12 = scmp.lt.s32.totalorder %s15799_s14, %s15473_s12 }
  0x70   : > { %p15470_p3 = pnand %p15468_p10, %p15454_p9  ;;  %p15476_p1 = scmp.lt.s32.totalorder %s15474_s28, %s15467_s22 }
  0x72   : > { %p15471_p7 = pneg %p15470_p3  ;;  %p15477_p2 = por %p15476_p1, %p15475_p12 }
  0x74   : > { %p15478_p4 = pnand %p15477_p2, %p15471_p7 }
  0x76   : > { %15481 = shalt.err (!%p15478_p4)
}
  0x77   : > { %s15564_s8 = smov 128   ;;  %s15565_s10 = smov 8  }
  0x78   : > { %15021 = dma.hbm_to_vmem [thread:$0]  (!%p15795_p11), %s15793_s29, 4096, %s15799_s14, %s15801_s30, %s15564_s8, %s15564_s8, %s15565_s10  }
  0x79   : > { %p20077_p9 = scmp.ne.s32.totalorder %s20071_s25, 0 }
  0x7b   : > { %392 = sbr.rel (%p20077_p9) target bundleno = 1852 (0x73c), region = 64 }
  0x82   : > { %s15832_s26 = sand.u32 1, %s15548_s18   ;;  %p20078_p0 = scmp.ne.s32.totalorder %s20068_s23, 0 }
  0x83   : > { %s12285_s13 = sshll.u32 %s15832_s26, 8  ;;  %s395_s15 = scalar_lea.sflag [#allocation5], %s15832_s26 }
  0x84   : > { %s15838_s22 = scalar_lea.vmem [#allocation4], %s12285_s13 }
  0x85   : > { %15527 = dma.done.wait (%p20078_p0), %s395_s15, 4096  }
  0x86   : > { %15529 = vsyncadd (%p20078_p0), %s395_s15, 4294963200  ;;  %p20079_p11 = scmp.eq.s32.totalorder %s15651_s21, 0 }
  0x88   : > { %15531 = dma.done.wait (%p20079_p11), [#allocation8], 18432   ;;  %p20080_p8 = pmov %p20079_p11 }
  0x8a   : > { %15533 = vsyncadd (%p20080_p8), [#allocation8], 4294948864  ;;  %p20081_p13 = pmov %p20080_p8 }
  0x8b   : > { %p20082_p6 = pmov %p20080_p8 }
  0x8c   : > { %15535 = dma.done.wait (%p20081_p13), [#allocation11], 1024  }
  0x8d   : > { %15537 = vsyncadd (%p20082_p6), [#allocation11], 4294966272  ;;  %v15566_v0 = vmov 0   ;;  %v15076_v1 = vld [vmem:[#allocation7] sm:$0xff]   ;;  %v15077_v2 = vld [vmem:[#allocation7 + $0x8] sm:$0xff]   ;;  %vm457_vm0 = vcmask 1040384  }
  0x8e   : > { %450 = vst [vmem:[#allocation2] sm:$0xf] %v15566_v0  ;;  %451 = vst [vmem:[#allocation2 + $0x4] sm:$0xf] %v15566_v0  ;;  %13424 = vmatprep.subr.bf16.mxu0 %v15076_v1  ;;  %vm458_vm1 = vsmask.f32 256 }
  0x8f   : > { %452 = vst [vmem:[#allocation2 + $0x8] sm:$0x1] %v15566_v0  ;;  %454 = vst [vmem:[#allocation2 + $0xcc] sm:$0xf] %v15566_v0  ;;  %13425 = vmatpush3.bf16.msra.mxu0 %v15076_v1  ;;  %v15078_v3 = vld [vmem:[#allocation7 + $0x10] sm:$0xff]   ;;  %v20083_v4 = vmov 0 }
  0x90   : > { %455 = vst [vmem:[#allocation2 + $0xd0] sm:$0xf] %v15566_v0  ;;  %456 = vst [vmem:[#allocation2 + $0xd4] sm:$0x1] %v15566_v0  ;;  %13426 = vmatprep.subr.bf16.mxu0 %v15077_v2  ;;  %vm514_vm3 = vsmask.f32 7938 }
  0x91   : > { %570 = vst [vmem:[#allocation3] sm:$0xf] %v15566_v0  ;;  %571 = vst [vmem:[#allocation3 + $0x4] sm:$0xf] %v15566_v0  ;;  %v20086_v5 = vmov 0  ;;  %v15079_v6 = vld [vmem:[#allocation7 + $0x18] sm:$0xff]  }
  0x92   : > { %572 = vst [vmem:[#allocation3 + $0x8] sm:$0x1] %v15566_v0  ;;  %574 = vst [vmem:[#allocation3 + $0xcc] sm:$0xf] %v15566_v0  ;;  %v463_v8 = vld [vmem:[#allocation2 + $0xc] sm:$0x1] }
  0x93   : > { %575 = vst [vmem:[#allocation3 + $0xd0] sm:$0xf] %v15566_v0  ;;  %576 = vst [vmem:[#allocation3 + $0xd4] sm:$0x1] %v15566_v0  ;;  %13427 = vmatpush3.bf16.msra.mxu0 %v15077_v2  ;;  %v519_v11 = vld [vmem:[#allocation2 + $0x14] sm:$0x1] }
  0x94   : > { %vm15853_vm2 = vmand %vm457_vm0, %vm458_vm1  ;;  %13428 = vmatprep.subr.bf16.mxu0 %v15078_v3  ;;  %v685_v12 = vld [vmem:[%s15838_s22] sm:$0xff]  ;;  %v686_v13 = vld [vmem:[%s15838_s22 + $0x8] sm:$0xff]  ;;  %vm923_vm5 = vsmask.f32 4368  ;;  %vm1246_vm6 = vcmask 1043456   ;;  %v20089_v0 = vmov 0 }
  0x95   : > { %v20084_v4 = vsel %vm15853_vm2, 4294967295, %v20083_v4  ;;  %vm15858_vm4 = vmand %vm457_vm0, %vm514_vm3  ;;  %v460_v7 = vld [vmem:[#allocation2] sm:$0x1]  ;;  %v464_v10 = vsel %vm15853_vm2, 0, %v463_v8  ;;  %v15080_v14 = vld [vmem:[#allocation7 + $0x20] sm:$0xff]   ;;  %v20092_v8 = vmov 0 }
  0x96   : > { %20085 = vst [vmem:[#allocation19_spill] sm:$0xff] %v20084_v4  ;;  %v20087_v5 = vsel %vm15858_vm4, 4294967295, %v20086_v5  ;;  %v461_v9 = vsel %vm15853_vm2, 0, %v460_v7  ;;  %465 = vst [vmem:[#allocation2 + $0xc] sm:$0x1] %v464_v10  ;;  %v520_v15 = vsel %vm15858_vm4, 0, %v519_v11 }
  0x97   : > { %20088 = vst [vmem:[#allocation20_spill] sm:$0xff] %v20087_v5  ;;  %462 = vst [vmem:[#allocation2] sm:$0x1] %v461_v9  ;;  %v15873_v16 = vld [vmem:[%s19944_s1] ss:$0 sm:$0xff]  ;;  %13429 = vmatpush3.bf16.msra.mxu0 %v15078_v3  ;;  %v688_v23 = vld [vmem:[%s15838_s22 + $0x18] sm:$0xff] }
  0x98   : > { %v15878_v17 = vld [vmem:[%s19945_s2] ss:$0 sm:$0xff]  ;;  %521 = vst [vmem:[#allocation2 + $0x14] sm:$0x1] %v520_v15  ;;  %v724_v18 = vmul.f32 %v15873_v16, %v685_v12  ;;  %v725_v19 = vmul.f32 %v15873_v16, %v686_v13  ;;  %v466_v20 = vld [vmem:[#allocation2 + $0x18] sm:$0x1]  ;;  %13430 = vmatprep.subr.bf16.mxu0 %v15079_v6  ;;  %v727_v28 = vmul.f32 %v15873_v16, %v688_v23  ;;  %vm15909_vm7 = vmor %vm458_vm1, %vm923_vm5 }
  0x99   : > { %v467_v21 = vsel %vm15853_vm2, 0, %v466_v20  ;;  %v687_v22 = vld [vmem:[%s15838_s22 + $0x10] sm:$0xff]  ;;  %v689_v29 = vld [vmem:[%s15838_s22 + $0x20] sm:$0xff]  ;;  %v690_v30 = vld [vmem:[%s15838_s22 + $0x28] sm:$0xff]  ;;  %v20090_v0 = vsel %vm15909_vm7, 4294967295, %v20089_v0  ;;  %vm2573_vm12 = vcmask 1042432  }
  0x9a   : > { %v469_v24 = vld [vmem:[#allocation2 + $0x24] sm:$0x1]  ;;  %v763_v25 = vadd.f32 %v15878_v17, %v724_v18  ;;  %v764_v26 = vadd.f32 %v15878_v17, %v725_v19  ;;  %468 = vst [vmem:[#allocation2 + $0x18] sm:$0x1] %v467_v21  ;;  %v726_v27 = vmul.f32 %v15873_v16, %v687_v22  ;;  %v728_v32 = vmul.f32 %v15873_v16, %v689_v29  ;;  %v472_v34 = vld [vmem:[#allocation2 + $0x30] sm:$0x1]  ;;  %vm15916_vm8 = vmand %vm1246_vm6, %vm514_vm3 }
  0x9b   : > { %v470_v31 = vsel %vm15853_vm2, 0, %v469_v24  ;;  %v729_v33 = vmul.f32 %v15873_v16, %v690_v30  ;;  %13431 = vmatpush3.bf16.msra.mxu0 %v15079_v6  ;;  %v766_v38 = vadd.f32 %v15878_v17, %v727_v28  ;;  %v691_v39 = vld [vmem:[%s15838_s22 + $0x30] sm:$0xff]  ;;  %v692_v40 = vld [vmem:[%s15838_s22 + $0x38] sm:$0xff]  ;;  %v15081_v41 = vld [vmem:[#allocation7 + $0x28] sm:$0xff]   ;;  %v473_v44 = vsel %vm15853_vm2, 0, %v472_v34  ;;  %20091 = vst [vmem:[#allocation21_spill] sm:$0xff] %v20090_v0 }
  0x9c   : > { %v795_v35 = vmax.f32 %v763_v25, 0.0  ;;  %v796_v36 = vmax.f32 %v764_v26, 0.0  ;;  %v765_v37 = vadd.f32 %v15878_v17, %v726_v27  ;;  %471 = vst [vmem:[#allocation2 + $0x24] sm:$0x1] %v470_v31  ;;  %13432 = vmatprep.subr.bf16.mxu0 %v15080_v14  ;;  %v767_v42 = vadd.f32 %v15878_v17, %v728_v32  ;;  %474 = vst [vmem:[#allocation2 + $0x30] sm:$0x1] %v473_v44 }
  0x9d   : > { %v768_v43 = vadd.f32 %v15878_v17, %v729_v33  ;;  %v730_v45 = vmul.f32 %v15873_v16, %v691_v39  ;;  %v731_v50 = vmul.f32 %v15873_v16, %v692_v40  ;;  %v798_v51 = vmax.f32 %v766_v38, 0.0  ;;  %v15082_v59 = vld [vmem:[#allocation7 + $0x30] sm:$0xff]   ;;  %v1248_v3 = vld [vmem:[#allocation2 + $0xc] sm:$0xf]  ;;  %v475_v25 = vld [vmem:[#allocation2 + $0x3c] sm:$0x1] }
  0x9e   : > { %v15084_v46 = vld [vmem:[#allocation2] sm:$0xff]   ;;  %v12903_v47 = vpack.c.bf16 %v795_v35, %v795_v35  ;;  %v12904_v48 = vpack.c.bf16 %v796_v36, %v796_v36  ;;  %v797_v49 = vmax.f32 %v765_v37, 0.0  ;;  %v799_v52 = vmax.f32 %v767_v42, 0.0  ;;  %v15928_v31 = vld [vmem:[#allocation7 + $0x40] sm:$0xff]   ;;  %v478_v37 = vld [vmem:[#allocation2 + $0x48] sm:$0x1] }
  0x9f   : > { %v800_v53 = vmax.f32 %v768_v43, 0.0  ;;  %v769_v54 = vadd.f32 %v15878_v17, %v730_v45  ;;  %13433 = vmatpush3.bf16.msra.mxu0 %v15080_v14  ;;  %13440 = vmatprep.mubr.bf16.mxu0 %v15084_v46  ;;  %v12906_v61 = vpack.c.bf16 %v798_v51, %v798_v51  ;;  %v770_v6 = vadd.f32 %v15878_v17, %v731_v50  ;;  %v1252_v9 = vld [vmem:[#allocation2 + $0x14] sm:$0x1]  ;;  %v15083_v14 = vld [vmem:[#allocation7 + $0x38] sm:$0xff]   ;;  %s20421_s10 = sld [smem:[#allocation86_spill]]  ;;  %s20424_s25 = sld [smem:[#allocation87_spill]] }
  0xa0   : > { %v926_v55 = vshrl.u32 %v12903_v47, 16  ;;  %v929_v56 = vshll.u32 %v12903_v47, 16  ;;  %v934_v57 = vshrl.u32 %v12904_v48, 16  ;;  %v937_v58 = vshll.u32 %v12904_v48, 16  ;;  %13434 = vmatprep.subr.bf16.mxu0 %v15081_v41  ;;  %v693_v36 = vld [vmem:[%s15838_s22 + $0x40] sm:$0xff]  ;;  %v694_v47 = vld [vmem:[%s15838_s22 + $0x48] sm:$0xff] }
  0xa1   : > { %v12905_v60 = vpack.c.bf16 %v797_v49, %v797_v49  ;;  %v12907_v62 = vpack.c.bf16 %v799_v52, %v799_v52  ;;  %v12908_v63 = vpack.c.bf16 %v800_v53, %v800_v53  ;;  %v801_v7 = vmax.f32 %v769_v54, 0.0  ;;  %v1255_v29 = vld [vmem:[#allocation2 + $0x18] sm:$0xf]  ;;  %s20439_s30 = sld [smem:[#allocation88_spill]]  ;;  %s15567_s28 = smov [#allocation12]  }
  0xa2   : > { %v928_v1 = vrot.slane %v926_v55, 7  ;;  %v936_v2 = vrot.slane %v934_v57, 7  ;;  %v20093_v8 = vsel %vm15916_vm8, 4294967295, %v20092_v8  ;;  %v951_v12 = vshrl.u32 %v12906_v61, 16  ;;  %v696_v57 = vld [vmem:[%s15838_s22 + $0x58] sm:$0xff]  ;;  %s15486_s8 = sshll.u32 %s15567_s28, 4  ;;  %s15487_s8 = int_to_ptr.vmem [resolvable:$false] %s15486_s8 }
  0xa3   : > { %20094 = vst [vmem:[#allocation22_spill] sm:$0xff] %v20093_v8  ;;  %v943_v10 = vshrl.u32 %v12905_v60, 16  ;;  %v946_v11 = vshll.u32 %v12905_v60, 16  ;;  %v954_v13 = vshll.u32 %v12906_v61, 16  ;;  %13435 = vmatpush3.bf16.msra.mxu0 %v15081_v41  ;;  %v960_v23 = vshrl.u32 %v12907_v62, 16  ;;  %v15089_v61 = vld [vmem:[#allocation7 + $0x48] sm:$0xff]  }
  0xa4   : > { %v931_v15 = vor.u32 %v929_v56, %v928_v1  ;;  %v932_v18 = vrot.slane %v928_v1, 4  ;;  %v939_v19 = vor.u32 %v937_v58, %v936_v2  ;;  %v941_v20 = vrot.slane %v936_v2, 4  ;;  %13436 = vmatprep.subr.bf16.mxu0 %v15082_v59  ;;  %v1262_v41 = vld [vmem:[#allocation2 + $0x24] sm:$0xf]  ;;  %v481_v58 = vld [vmem:[#allocation2 + $0x54] sm:$0x1] }
  0xa5   : > { %v945_v21 = vrot.slane %v943_v10, 7  ;;  %v15920_v22 = vrot.slane %v951_v12, 7  ;;  %v963_v24 = vshll.u32 %v12907_v62, 16  ;;  %v968_v30 = vshrl.u32 %v12908_v63, 16  ;;  %v695_v56 = vld [vmem:[%s15838_s22 + $0x50] sm:$0xff] }
  0xa6   : > { %v940_v26 = vsel %vm15909_vm7, %v932_v18, %v939_v19  ;;  %v1249_v27 = vsel %vm15916_vm8, %v931_v15, %v1248_v3  ;;  %v1253_v28 = vsel %vm15853_vm2, %v941_v20, %v1252_v9  ;;  %v962_v38 = vrot.slane %v960_v23, 7  ;;  %v697_v9 = vld [vmem:[%s15838_s22 + $0x60] sm:$0xff] }
  0xa7   : > { %1250 = vst [vmem:[#allocation2 + $0xc] sm:$0xf] %v1249_v27  ;;  %1251 = vst [vmem:[#allocation2 + $0x10] sm:$0xf] %v940_v26  ;;  %v948_v32 = vor.u32 %v946_v11, %v945_v21  ;;  %v949_v33 = vrot.slane %v945_v21, 4  ;;  %v956_v34 = vor.u32 %v954_v13, %v15920_v22  ;;  %v958_v35 = vrot.slane %v15920_v22, 4  ;;  %13437 = vmatpush3.bf16.msra.mxu0 %v15082_v59 }
  0xa8   : > { %1254 = vst [vmem:[#allocation2 + $0x14] sm:$0x1] %v1253_v28  ;;  %v15933_v39 = vrot.slane %v968_v30, 7  ;;  %v971_v40 = vshll.u32 %v12908_v63, 16  ;;  %v802_v42 = vmax.f32 %v770_v6, 0.0  ;;  %13438 = vmatprep.subr.bf16.mxu0 %v15083_v14  ;;  %v12909_v45 = vpack.c.bf16 %v801_v7, %v801_v7  ;;  %v698_v21 = vld [vmem:[%s15838_s22 + $0x68] sm:$0xff] }
  0xa9   : > { %v957_v43 = vsel %vm15909_vm7, %v949_v33, %v956_v34  ;;  %v1256_v44 = vsel %vm15916_vm8, %v948_v32, %v1255_v29  ;;  %v476_v46 = vsel %vm15853_vm2, 0, %v475_v25  ;;  %v965_v48 = vor.u32 %v963_v24, %v962_v38  ;;  %v1269_v6 = vld [vmem:[#allocation2 + $0x30] sm:$0xf]  ;;  %v15092_v24 = vld [vmem:[#allocation7 + $0x50] sm:$0xff]  }
  0xaa   : > { %1257 = vst [vmem:[#allocation2 + $0x18] sm:$0xf] %v1256_v44  ;;  %1258 = vst [vmem:[#allocation2 + $0x1c] sm:$0xf] %v957_v43  ;;  %v966_v49 = vrot.slane %v962_v38, 4  ;;  %v973_v50 = vor.u32 %v971_v40, %v15933_v39  ;;  %v975_v51 = vrot.slane %v15933_v39, 4  ;;  %v12910_v52 = vpack.c.bf16 %v802_v42, %v802_v42 }
  0xab   : > { %477 = vst [vmem:[#allocation2 + $0x3c] sm:$0x1] %v476_v46  ;;  %v977_v53 = vshrl.u32 %v12909_v45, 16  ;;  %v980_v54 = vshll.u32 %v12909_v45, 16  ;;  %v732_v55 = vmul.f32 %v15873_v16, %v693_v36  ;;  %13439 = vmatpush3.bf16.msra.mxu0 %v15083_v14  ;;  %v1263_v60 = vsel %vm15916_vm8, %v965_v48, %v1262_v41  ;;  %v484_v40 = vld [vmem:[#allocation2 + $0x60] sm:$0x1] }
  0xac   : > { %v974_v59 = vsel %vm15909_vm7, %v966_v49, %v973_v50  ;;  %v733_v62 = vmul.f32 %v15873_v16, %v694_v47  ;;  %v479_v63 = vsel %vm15853_vm2, 0, %v478_v37  ;;  %13472 = vmatprep.subr.bf16.mxu0 %v15928_v31  ;;  %1264 = vst [vmem:[#allocation2 + $0x24] sm:$0xf] %v1263_v60  ;;  %v985_v2 = vshrl.u32 %v12910_v52, 16 }
  0xad   : > { %1265 = vst [vmem:[#allocation2 + $0x28] sm:$0xf] %v974_v59  ;;  %v979_v1 = vrot.slane %v977_v53, 7  ;;  %v988_v3 = vshll.u32 %v12910_v52, 16  ;;  %v771_v7 = vadd.f32 %v15878_v17, %v732_v55  ;;  %480 = vst [vmem:[#allocation2 + $0x48] sm:$0x1] %v479_v63  ;;  %v734_v12 = vmul.f32 %v15873_v16, %v695_v56 }
  0xae   : > { %v15085_v10 = vld [vmem:[#allocation2 + $0xc] sm:$0xff]   ;;  %v772_v11 = vadd.f32 %v15878_v17, %v733_v62  ;;  %v735_v13 = vmul.f32 %v15873_v16, %v696_v57  ;;  %v482_v14 = vsel %vm15853_vm2, 0, %v481_v58  ;;  %v15962_v19 = vrot.slane %v985_v2, 7  ;;  %v699_v55 = vld [vmem:[%s15838_s22 + $0x70] sm:$0xff] }
  0xaf   : > { %v982_v15 = vor.u32 %v980_v54, %v979_v1  ;;  %v983_v18 = vrot.slane %v979_v1, 4  ;;  %v803_v20 = vmax.f32 %v771_v7, 0.0  ;;  %483 = vst [vmem:[#allocation2 + $0x54] sm:$0x1] %v482_v14  ;;  %13441 = vmatmul.mubr.bf16.vlgmr.msra.gmra.mrb[0].mxu0 %v15085_v10  ;;  %v773_v25 = vadd.f32 %v15878_v17, %v734_v12  ;;  %v15095_v53 = vld [vmem:[#allocation7 + $0x58] sm:$0xff]  }
  0xb0   : > { %v804_v23 = vmax.f32 %v772_v11, 0.0  ;;  %v774_v26 = vadd.f32 %v15878_v17, %v735_v13  ;;  %v736_v27 = vmul.f32 %v15873_v16, %v697_v9  ;;  %13473 = vmatpush3.bf16.msra.mxu0 %v15928_v31  ;;  %v990_v29 = vor.u32 %v988_v3, %v15962_v19  ;;  %v700_v10 = vld [vmem:[%s15838_s22 + $0x78] sm:$0xff] }
  0xb1   : > { %v15087_v28 = vld [vmem:[#allocation2 + $0x18] sm:$0xff]   ;;  %v992_v30 = vrot.slane %v15962_v19, 4  ;;  %v1270_v32 = vsel %vm15916_vm8, %v982_v15, %v1269_v6  ;;  %v12911_v33 = vpack.c.bf16 %v803_v20, %v803_v20  ;;  %13474 = vmatprep.subr.bf16.mxu0 %v15089_v61  ;;  %v805_v36 = vmax.f32 %v773_v25, 0.0  ;;  %v487_v11 = vld [vmem:[#allocation2 + $0x6c] sm:$0x1] }
  0xb2   : > { %1271 = vst [vmem:[#allocation2 + $0x30] sm:$0xf] %v1270_v32  ;;  %v12912_v34 = vpack.c.bf16 %v804_v23, %v804_v23  ;;  %v806_v37 = vmax.f32 %v774_v26, 0.0  ;;  %v737_v38 = vmul.f32 %v15873_v16, %v698_v21  ;;  %13444 = vmatprep.mubr.bf16.mxu0 %v15087_v28  ;;  %v991_v31 = vsel %vm15909_vm7, %v983_v18, %v990_v29  ;;  %v1276_v57 = vld [vmem:[#allocation2 + $0x3c] sm:$0xf]  ;;  %v701_v18 = vld [vmem:[%s15838_s22 + $0x80] sm:$0xff] }
  0xb3   : > { %v994_v41 = vshrl.u32 %v12911_v33, 16  ;;  %v997_v42 = vshll.u32 %v12911_v33, 16  ;;  %v775_v43 = vadd.f32 %v15878_v17, %v736_v27  ;;  %1272 = vst [vmem:[#allocation2 + $0x34] sm:$0xf] %v991_v31  ;;  %v12913_v46 = vpack.c.bf16 %v805_v36, %v805_v36  ;;  %v702_v26 = vld [vmem:[%s15838_s22 + $0x88] sm:$0xff]  ;;  %v15098_v27 = vld [vmem:[#allocation7 + $0x60] sm:$0xff]  }
  0xb4   : > { %v15088_v44 = vld [vmem:[#allocation2 + $0x24] sm:$0xff]   ;;  %v1002_v45 = vshrl.u32 %v12912_v34, 16  ;;  %v12914_v47 = vpack.c.bf16 %v806_v37, %v806_v37  ;;  %v776_v48 = vadd.f32 %v15878_v17, %v737_v38  ;;  %13475 = vmatpush3.bf16.msra.mxu0 %v15089_v61  ;;  %v1005_v50 = vshll.u32 %v12912_v34, 16  ;;  %v490_v28 = vld [vmem:[#allocation2 + $0x78] sm:$0x1] }
  0xb5   : > { %v996_v49 = vrot.slane %v994_v41, 7  ;;  %v807_v52 = vmax.f32 %v775_v43, 0.0  ;;  %v485_v54 = vsel %vm15853_vm2, 0, %v484_v40  ;;  %13476 = vmatprep.subr.bf16.mxu0 %v15092_v24  ;;  %v1011_v58 = vshrl.u32 %v12913_v46, 16  ;;  %v1283_v9 = vld [vmem:[#allocation2 + $0x48] sm:$0xf] }
  0xb6   : > { %v15981_v56 = vrot.slane %v1002_v45, 7  ;;  %v1014_v59 = vshll.u32 %v12913_v46, 16  ;;  %v1019_v60 = vshrl.u32 %v12914_v47, 16  ;;  %486 = vst [vmem:[#allocation2 + $0x60] sm:$0x1] %v485_v54  ;;  %v1022_v61 = vshll.u32 %v12914_v47, 16 }
  0xb7   : > { %v999_v62 = vor.u32 %v997_v42, %v996_v49  ;;  %v1000_v63 = vrot.slane %v996_v49, 4  ;;  %v808_v1 = vmax.f32 %v776_v48, 0.0  ;;  %13445 = vmatmul.mubr.bf16.gmra.mrb[4].mxu0 %v15088_v44  ;;  %v1013_v6 = vrot.slane %v1011_v58, 7  ;;  %v703_v44 = vld [vmem:[%s15838_s22 + $0x90] sm:$0xff]  ;;  %v15101_v45 = vld [vmem:[#allocation7 + $0x68] sm:$0xff]  }
  0xb8   : > { %v1007_v2 = vor.u32 %v1005_v50, %v15981_v56  ;;  %v1009_v3 = vrot.slane %v15981_v56, 4  ;;  %v15985_v7 = vrot.slane %v1019_v60, 7  ;;  %13477 = vmatpush3.bf16.msra.mxu0 %v15092_v24  ;;  %v12915_v13 = vpack.c.bf16 %v807_v52, %v807_v52  ;;  %v1290_v47 = vld [vmem:[#allocation2 + $0x54] sm:$0xf] }
  0xb9   : > { %v1277_v12 = vsel %vm15916_vm8, %v999_v62, %v1276_v57  ;;  %v12916_v14 = vpack.c.bf16 %v808_v1, %v808_v1  ;;  %v738_v15 = vmul.f32 %v15873_v16, %v699_v55  ;;  %v1016_v21 = vor.u32 %v1014_v59, %v1013_v6  ;;  %13478 = vmatprep.subr.bf16.mxu0 %v15095_v53  ;;  %v704_v57 = vld [vmem:[%s15838_s22 + $0x98] sm:$0xff] }
  0xba   : > { %v1008_v20 = vsel %vm15909_vm7, %v1000_v63, %v1007_v2  ;;  %1278 = vst [vmem:[#allocation2 + $0x3c] sm:$0xf] %v1277_v12  ;;  %v1017_v23 = vrot.slane %v1013_v6, 4  ;;  %v1024_v25 = vor.u32 %v1022_v61, %v15985_v7  ;;  %v15090_v29 = vld [vmem:[#allocation2 + $0x30] sm:$0xff]   ;;  %v1026_v24 = vrot.slane %v15985_v7, 4 }
  0xbb   : > { %1279 = vst [vmem:[#allocation2 + $0x40] sm:$0xf] %v1008_v20  ;;  %v1028_v32 = vshrl.u32 %v12915_v13, 16  ;;  %v1031_v33 = vshll.u32 %v12915_v13, 16  ;;  %v739_v34 = vmul.f32 %v15873_v16, %v700_v10  ;;  %v1284_v37 = vsel %vm15916_vm8, %v1016_v21, %v1283_v9  ;;  %13448 = vmatprep.mubr.bf16.mxu0 %v15090_v29  ;;  %v493_v6 = vld [vmem:[#allocation2 + $0x84] sm:$0x1] }
  0xbc   : > { %v1025_v36 = vsel %vm15909_vm7, %v1017_v23, %v1024_v25  ;;  %v1036_v38 = vshrl.u32 %v12916_v14, 16  ;;  %v1039_v40 = vshll.u32 %v12916_v14, 16  ;;  %1285 = vst [vmem:[#allocation2 + $0x48] sm:$0xf] %v1284_v37  ;;  %13479 = vmatpush3.bf16.msra.mxu0 %v15095_v53  ;;  %v777_v41 = vadd.f32 %v15878_v17, %v738_v15  ;;  %v705_v9 = vld [vmem:[%s15838_s22 + $0xa0] sm:$0xff]  ;;  %v15104_v15 = vld [vmem:[#allocation7 + $0x70] sm:$0xff]  }
  0xbd   : > { %1286 = vst [vmem:[#allocation2 + $0x4c] sm:$0xf] %v1025_v36  ;;  %v1030_v31 = vrot.slane %v1028_v32, 7  ;;  %v778_v42 = vadd.f32 %v15878_v17, %v739_v34  ;;  %v488_v43 = vsel %vm15853_vm2, 0, %v487_v11  ;;  %v740_v48 = vmul.f32 %v15873_v16, %v701_v18  ;;  %13480 = vmatprep.subr.bf16.mxu0 %v15098_v27  ;;  %v706_v36 = vld [vmem:[%s15838_s22 + $0xa8] sm:$0xff] }
  0xbe   : > { %v16007_v46 = vrot.slane %v1036_v38, 7  ;;  %489 = vst [vmem:[#allocation2 + $0x6c] sm:$0x1] %v488_v43  ;;  %v741_v49 = vmul.f32 %v15873_v16, %v702_v26  ;;  %v491_v50 = vsel %vm15853_vm2, 0, %v490_v28  ;;  %v809_v54 = vmax.f32 %v777_v41, 0.0  ;;  %v15107_v38 = vld [vmem:[#allocation7 + $0x78] sm:$0xff]  }
  0xbf   : > { %v1033_v52 = vor.u32 %v1031_v33, %v1030_v31  ;;  %v1034_v53 = vrot.slane %v1030_v31, 4  ;;  %v810_v55 = vmax.f32 %v778_v42, 0.0  ;;  %492 = vst [vmem:[#allocation2 + $0x78] sm:$0x1] %v491_v50  ;;  %v779_v60 = vadd.f32 %v15878_v17, %v740_v48  ;;  %v496_v50 = vld [vmem:[#allocation2 + $0x90] sm:$0x1] }
  0xc0   : > { %v1041_v58 = vor.u32 %v1039_v40, %v16007_v46  ;;  %v1043_v59 = vrot.slane %v16007_v46, 4  ;;  %v780_v62 = vadd.f32 %v15878_v17, %v741_v49  ;;  %v12917_v61 = vpack.c.bf16 %v809_v54, %v809_v54  ;;  %13481 = vmatpush3.bf16.msra.mxu0 %v15098_v27  ;;  %v1297_v40 = vld [vmem:[#allocation2 + $0x60] sm:$0xf] }
  0xc1   : > { %v1291_v63 = vsel %vm15916_vm8, %v1033_v52, %v1290_v47  ;;  %v12918_v1 = vpack.c.bf16 %v810_v55, %v810_v55  ;;  %v742_v2 = vmul.f32 %v15873_v16, %v703_v44  ;;  %v811_v12 = vmax.f32 %v779_v60, 0.0  ;;  %13482 = vmatprep.subr.bf16.mxu0 %v15101_v45  ;;  %v546_v46 = vld [vmem:[#allocation2 + $0x80] sm:$0x1] }
  0xc2   : > { %v15091_v10 = vld [vmem:[#allocation2 + $0x3c] sm:$0xff]   ;;  %v1042_v11 = vsel %vm15909_vm7, %v1034_v53, %v1041_v58  ;;  %1292 = vst [vmem:[#allocation2 + $0x54] sm:$0xf] %v1291_v63  ;;  %v812_v13 = vmax.f32 %v780_v62, 0.0  ;;  %v743_v14 = vmul.f32 %v15873_v16, %v704_v57  ;;  %v1045_v18 = vshrl.u32 %v12917_v61, 16 }
  0xc3   : > { %1293 = vst [vmem:[#allocation2 + $0x58] sm:$0xf] %v1042_v11  ;;  %v1048_v20 = vshll.u32 %v12917_v61, 16  ;;  %v1053_v21 = vshrl.u32 %v12918_v1, 16  ;;  %v1056_v23 = vshll.u32 %v12918_v1, 16  ;;  %13449 = vmatmul.mubr.bf16.gmra.mrb[8].mxu0 %v15091_v10  ;;  %v12919_v26 = vpack.c.bf16 %v811_v12, %v811_v12  ;;  %v707_v63 = vld [vmem:[%s15838_s22 + $0xb0] sm:$0xff] }
  0xc4   : > { %v15093_v25 = vld [vmem:[#allocation2 + $0x48] sm:$0xff]   ;;  %v12920_v27 = vpack.c.bf16 %v812_v13, %v812_v13  ;;  %v781_v28 = vadd.f32 %v15878_v17, %v742_v2  ;;  %v782_v29 = vadd.f32 %v15878_v17, %v743_v14  ;;  %v1047_v32 = vrot.slane %v1045_v18, 7  ;;  %13483 = vmatpush3.bf16.msra.mxu0 %v15101_v45  ;;  %v16046_v10 = vld [vmem:[#allocation7 + $0x80] sm:$0xff]  }
  0xc5   : > { %v16027_v33 = vrot.slane %v1053_v21, 7  ;;  %v494_v34 = vsel %vm15853_vm2, 0, %v493_v6  ;;  %v744_v37 = vmul.f32 %v15873_v16, %v705_v9  ;;  %13452 = vmatprep.mubr.bf16.mxu0 %v15093_v25  ;;  %v1062_v31 = vshrl.u32 %v12919_v26, 16  ;;  %13484 = vmatprep.subr.bf16.mxu0 %v15104_v15  ;;  %v1304_v58 = vld [vmem:[#allocation2 + $0x6c] sm:$0xf] }
  0xc6   : > { %v1065_v41 = vshll.u32 %v12919_v26, 16  ;;  %v1070_v42 = vshrl.u32 %v12920_v27, 16  ;;  %v1073_v43 = vshll.u32 %v12920_v27, 16  ;;  %495 = vst [vmem:[#allocation2 + $0x84] sm:$0x1] %v494_v34  ;;  %v1050_v44 = vor.u32 %v1048_v20, %v1047_v32  ;;  %v708_v18 = vld [vmem:[%s15838_s22 + $0xb8] sm:$0xff] }
  0xc7   : > { %v1051_v47 = vrot.slane %v1047_v32, 4  ;;  %v1058_v48 = vor.u32 %v1056_v23, %v16027_v33  ;;  %v1064_v52 = vrot.slane %v1062_v31, 7  ;;  %v813_v45 = vmax.f32 %v781_v28, 0.0  ;;  %v499_v25 = vld [vmem:[#allocation2 + $0x9c] sm:$0x1]  ;;  %v709_v26 = vld [vmem:[%s15838_s22 + $0xc0] sm:$0xff] }
  0xc8   : > { %v16035_v53 = vrot.slane %v1070_v42, 7  ;;  %v814_v54 = vmax.f32 %v782_v29, 0.0  ;;  %v1298_v57 = vsel %vm15916_vm8, %v1050_v44, %v1297_v40  ;;  %v745_v60 = vmul.f32 %v15873_v16, %v706_v36  ;;  %13485 = vmatpush3.bf16.msra.mxu0 %v15104_v15  ;;  %v710_v31 = vld [vmem:[%s15838_s22 + $0xc8] sm:$0xff] }
  0xc9   : > { %v1059_v55 = vsel %vm15909_vm7, %v1051_v47, %v1058_v48  ;;  %v783_v62 = vadd.f32 %v15878_v17, %v744_v37  ;;  %1299 = vst [vmem:[#allocation2 + $0x60] sm:$0xf] %v1298_v57  ;;  %v1067_v1 = vor.u32 %v1065_v41, %v1064_v52  ;;  %v1068_v2 = vrot.slane %v1064_v52, 4  ;;  %13486 = vmatprep.subr.bf16.mxu0 %v15107_v38  ;;  %v1311_v47 = vld [vmem:[#allocation2 + $0x78] sm:$0xf] }
  0xca   : > { %v15094_v61 = vld [vmem:[#allocation2 + $0x54] sm:$0xff]   ;;  %1300 = vst [vmem:[#allocation2 + $0x64] sm:$0xf] %v1059_v55  ;;  %v1075_v6 = vor.u32 %v1073_v43, %v16035_v53  ;;  %v12921_v11 = vpack.c.bf16 %v813_v45, %v813_v45  ;;  %v12922_v12 = vpack.c.bf16 %v814_v54, %v814_v54  ;;  %v784_v13 = vadd.f32 %v15878_v17, %v745_v60 }
  0xcb   : > { %v815_v14 = vmax.f32 %v783_v62, 0.0  ;;  %13453 = vmatmul.mubr.bf16.gmra.mrb[12].mxu0 %v15094_v61  ;;  %v1305_v20 = vsel %vm15916_vm8, %v1067_v1, %v1304_v58  ;;  %v497_v21 = vsel %vm15853_vm2, 0, %v496_v50  ;;  %v746_v23 = vmul.f32 %v15873_v16, %v707_v63  ;;  %v502_v1 = vld [vmem:[#allocation2 + $0xa8] sm:$0x1] }
  0xcc   : > { %v1076_v15 = vsel %vm15909_vm7, %v1068_v2, %v1075_v6  ;;  %1306 = vst [vmem:[#allocation2 + $0x6c] sm:$0xf] %v1305_v20  ;;  %v1079_v27 = vshrl.u32 %v12921_v11, 16  ;;  %v1082_v28 = vshll.u32 %v12921_v11, 16  ;;  %v1087_v29 = vshrl.u32 %v12922_v12, 16  ;;  %13487 = vmatpush3.bf16.msra.mxu0 %v15107_v38 }
  0xcd   : > { %1307 = vst [vmem:[#allocation2 + $0x70] sm:$0xf] %v1076_v15  ;;  %v1090_v32 = vshll.u32 %v12922_v12, 16  ;;  %498 = vst [vmem:[#allocation2 + $0x90] sm:$0x1] %v497_v21  ;;  %v816_v34 = vmax.f32 %v784_v13, 0.0  ;;  %v12923_v36 = vpack.c.bf16 %v815_v14, %v815_v14  ;;  %v747_v37 = vmul.f32 %v15873_v16, %v708_v18  ;;  %13520 = vmatprep.subr.bf16.mxu0 %v16046_v10 }
  0xce   : > { %v785_v40 = vadd.f32 %v15878_v17, %v746_v23  ;;  %v1081_v41 = vrot.slane %v1079_v27, 7  ;;  %v16062_v42 = vrot.slane %v1087_v29, 7  ;;  %v500_v43 = vsel %vm15853_vm2, 0, %v499_v25  ;;  %v1318_v11 = vld [vmem:[#allocation2 + $0x84] sm:$0xf] }
  0xcf   : > { %v748_v44 = vmul.f32 %v15873_v16, %v709_v26  ;;  %v12924_v48 = vpack.c.bf16 %v816_v34, %v816_v34  ;;  %v1096_v38 = vshrl.u32 %v12923_v36, 16  ;;  %v1099_v50 = vshll.u32 %v12923_v36, 16  ;;  %501 = vst [vmem:[#allocation2 + $0x9c] sm:$0x1] %v500_v43  ;;  %v711_v14 = vld [vmem:[%s15838_s22 + $0xd0] sm:$0xff]  ;;  %v712_v36 = vld [vmem:[%s15838_s22 + $0xd8] sm:$0xff] }
  0xd0   : > { %v786_v52 = vadd.f32 %v15878_v17, %v747_v37  ;;  %v1084_v54 = vor.u32 %v1082_v28, %v1081_v41  ;;  %v1085_v55 = vrot.slane %v1081_v41, 4  ;;  %v1092_v57 = vor.u32 %v1090_v32, %v16062_v42 }
  0xd1   : > { %v15096_v45 = vld [vmem:[#allocation2 + $0x60] sm:$0xff]   ;;  %v749_v58 = vmul.f32 %v15873_v16, %v710_v31  ;;  %v1098_v62 = vrot.slane %v1096_v38, 7  ;;  %v1104_v63 = vshrl.u32 %v12924_v48, 16  ;;  %v1107_v61 = vshll.u32 %v12924_v48, 16 }
  0xd2   : > { %13456 = vmatprep.mubr.bf16.mxu0 %v15096_v45  ;;  %v1093_v2 = vsel %vm15909_vm7, %v1085_v55, %v1092_v57  ;;  %v1312_v6 = vsel %vm15916_vm8, %v1084_v54, %v1311_v47  ;;  %v817_v12 = vmax.f32 %v785_v40, 0.0  ;;  %v818_v13 = vmax.f32 %v786_v52, 0.0  ;;  %v15110_v31 = vld [vmem:[#allocation7 + $0x90] sm:$0xff]  }
  0xd3   : > { %1313 = vst [vmem:[#allocation2 + $0x78] sm:$0xf] %v1312_v6  ;;  %1314 = vst [vmem:[#allocation2 + $0x7c] sm:$0xf] %v1093_v2  ;;  %v1101_v15 = vor.u32 %v1099_v50, %v1098_v62  ;;  %v1102_v20 = vrot.slane %v1098_v62, 4  ;;  %v787_v21 = vadd.f32 %v15878_v17, %v748_v44  ;;  %v788_v23 = vadd.f32 %v15878_v17, %v749_v58  ;;  %v713_v50 = vld [vmem:[%s15838_s22 + $0xe0] sm:$0xff] }
  0xd4   : > { %v15097_v18 = vld [vmem:[#allocation2 + $0x6c] sm:$0xff]   ;;  %v16078_v25 = vrot.slane %v1104_v63, 7  ;;  %v12925_v26 = vpack.c.bf16 %v817_v12, %v817_v12  ;;  %v12926_v27 = vpack.c.bf16 %v818_v13, %v818_v13  ;;  %v503_v28 = vsel %vm15853_vm2, 0, %v502_v1  ;;  %v505_v1 = vld [vmem:[#allocation2 + $0xb4] sm:$0x1] }
  0xd5   : > { %13457 = vmatmul.mubr.bf16.gmra.mrb[16].mxu0 %v15097_v18  ;;  %v1319_v29 = vsel %vm15916_vm8, %v1101_v15, %v1318_v11  ;;  %v819_v32 = vmax.f32 %v787_v21, 0.0  ;;  %v820_v34 = vmax.f32 %v788_v23, 0.0  ;;  %504 = vst [vmem:[#allocation2 + $0xa8] sm:$0x1] %v503_v28  ;;  %v750_v37 = vmul.f32 %v15873_v16, %v711_v14  ;;  %v1325_v58 = vld [vmem:[#allocation2 + $0x90] sm:$0xf] }
  0xd6   : > { %v1109_v40 = vor.u32 %v1107_v61, %v16078_v25  ;;  %1320 = vst [vmem:[#allocation2 + $0x84] sm:$0xf] %v1319_v29  ;;  %v1113_v41 = vshrl.u32 %v12925_v26, 16  ;;  %v1116_v43 = vshll.u32 %v12925_v26, 16  ;;  %v1121_v44 = vshrl.u32 %v12926_v27, 16 }
  0xd7   : > { %v1124_v47 = vshll.u32 %v12926_v27, 16  ;;  %v12927_v48 = vpack.c.bf16 %v819_v32, %v819_v32  ;;  %v12928_v38 = vpack.c.bf16 %v820_v34, %v820_v34  ;;  %v751_v54 = vmul.f32 %v15873_v16, %v712_v36  ;;  %v516_v14 = vld [vmem:[#allocation2 + $0x8] sm:$0x1]  ;;  %v1332_v27 = vld [vmem:[#allocation2 + $0x9c] sm:$0xf] }
  0xd8   : > { %v1110_v52 = vsel %vm15909_vm7, %v1102_v20, %v1109_v40  ;;  %v1115_v45 = vrot.slane %v1113_v41, 7  ;;  %v789_v55 = vadd.f32 %v15878_v17, %v750_v37  ;;  %v16093_v57 = vrot.slane %v1121_v44, 7  ;;  %v714_v32 = vld [vmem:[%s15838_s22 + $0xe8] sm:$0xff] }
  0xd9   : > { %1321 = vst [vmem:[#allocation2 + $0x88] sm:$0xf] %v1110_v52  ;;  %v1130_v62 = vshrl.u32 %v12927_v48, 16  ;;  %v1133_v63 = vshll.u32 %v12927_v48, 16  ;;  %v1138_v61 = vshrl.u32 %v12928_v38, 16  ;;  %v790_v12 = vadd.f32 %v15878_v17, %v751_v54 }
  0xda   : > { %v15099_v2 = vld [vmem:[#allocation2 + $0x78] sm:$0xff]   ;;  %v1118_v6 = vor.u32 %v1116_v43, %v1115_v45  ;;  %v1119_v11 = vrot.slane %v1115_v45, 4  ;;  %v752_v13 = vmul.f32 %v15873_v16, %v713_v50  ;;  %v1126_v18 = vor.u32 %v1124_v47, %v16093_v57  ;;  %v1752_v48 = vld [vmem:[#allocation2] sm:$0xf]  ;;  %v1753_v54 = vld [vmem:[#allocation2 + $0x4] sm:$0xf] }
  0xdb   : > { %v1132_v20 = vrot.slane %v1130_v62, 7  ;;  %v16099_v21 = vrot.slane %v1138_v61, 7  ;;  %13460 = vmatprep.mubr.bf16.mxu0 %v15099_v2  ;;  %v1141_v26 = vshll.u32 %v12928_v38, 16  ;;  %v821_v28 = vmax.f32 %v789_v55, 0.0 }
  0xdc   : > { %v1326_v23 = vsel %vm15916_vm8, %v1118_v6, %v1325_v58  ;;  %v822_v29 = vmax.f32 %v790_v12, 0.0  ;;  %vm1800_vm9 = vsmask.f32 3328  ;;  %vm1801_vm10 = vsmask.f32 7440 }
  0xdd   : > { %v1127_v34 = vsel %vm15909_vm7, %v1119_v11, %v1126_v18  ;;  %1327 = vst [vmem:[#allocation2 + $0x90] sm:$0xf] %v1326_v23  ;;  %v1135_v36 = vor.u32 %v1133_v63, %v1132_v20  ;;  %v1136_v37 = vrot.slane %v1132_v20, 4  ;;  %v1143_v41 = vor.u32 %v1141_v26, %v16099_v21  ;;  %vm16131_vm11 = vmor %vm1800_vm9, %vm1801_vm10 }
  0xde   : > { %1328 = vst [vmem:[#allocation2 + $0x94] sm:$0xf] %v1127_v34  ;;  %v12929_v43 = vpack.c.bf16 %v821_v28, %v821_v28  ;;  %v12930_v44 = vpack.c.bf16 %v822_v29, %v822_v29  ;;  %v506_v47 = vsel %vm15853_vm2, 0, %v505_v1  ;;  %v753_v50 = vmul.f32 %v15873_v16, %v714_v32  ;;  %v15324_v16 = vld [vmem:[%s19945_s2] ss:$0 sm:$0xff] }
  0xdf   : > { %v1333_v38 = vsel %vm15916_vm8, %v1135_v36, %v1332_v27  ;;  %507 = vst [vmem:[#allocation2 + $0xb4] sm:$0x1] %v506_v47  ;;  %v791_v52 = vadd.f32 %v15878_v17, %v752_v13  ;;  %v517_v45 = vsel %vm15858_vm4, 0, %v516_v14  ;;  %v1144_v58 = vsel %vm15909_vm7, %v1136_v37, %v1143_v41  ;;  %v1339_v13 = vld [vmem:[#allocation2 + $0xa8] sm:$0xf] }
  0xe0   : > { %v15100_v55 = vld [vmem:[#allocation2 + $0x84] sm:$0xff]   ;;  %1334 = vst [vmem:[#allocation2 + $0x9c] sm:$0xf] %v1333_v38  ;;  %v1147_v62 = vshrl.u32 %v12929_v43, 16  ;;  %v1150_v63 = vshll.u32 %v12929_v43, 16  ;;  %v1155_v61 = vshrl.u32 %v12930_v44, 16  ;;  %v792_v17 = vadd.f32 %v15324_v16, %v753_v50 }
  0xe1   : > { %518 = vst [vmem:[#allocation2 + $0x8] sm:$0x1] %v517_v45  ;;  %1335 = vst [vmem:[#allocation2 + $0xa0] sm:$0xf] %v1144_v58  ;;  %v1158_v1 = vshll.u32 %v12930_v44, 16  ;;  %v823_v2 = vmax.f32 %v791_v52, 0.0  ;;  %13461 = vmatmul.mubr.bf16.gmra.mrb[20].mxu0 %v15100_v55 }
  0xe2   : > { %v1804_v6 = vshrl.u32 %v1752_v48, 16  ;;  %v1149_v11 = vrot.slane %v1147_v62, 7  ;;  %v16121_v12 = vrot.slane %v1155_v61, 7  ;;  %v1807_v14 = vshll.u32 %v1752_v48, 16  ;;  %v1755_v28 = vld [vmem:[#allocation2 + $0xc] sm:$0xf] }
  0xe3   : > { %v1813_v18 = vshll.u32 %v1753_v54, 16  ;;  %v824_v20 = vmax.f32 %v792_v17, 0.0  ;;  %v12931_v23 = vpack.c.bf16 %v823_v2, %v823_v2  ;;  %v1817_v27 = vshrl.u32 %v1753_v54, 16  ;;  %v16135_v61 = vld [vmem:[#allocation2 + $0x10] sm:$0xf]  ;;  %v15318_v62 = vld [vmem:[#allocation10 + $0x10] sm:$0xff]  }
  0xe4   : > { %v1806_v26 = vrot.slane %v1804_v6, 4  ;;  %v1152_v29 = vor.u32 %v1150_v63, %v1149_v11  ;;  %v1153_v32 = vrot.slane %v1149_v11, 4  ;;  %v1160_v34 = vor.u32 %v1158_v1, %v16121_v12  ;;  %v16139_v2 = vld [vmem:[#allocation2 + $0x14] sm:$0x1] }
  0xe5   : > { %v15102_v37 = vld [vmem:[#allocation2 + $0x90] sm:$0xff]   ;;  %v12932_v41 = vpack.c.bf16 %v824_v20, %v824_v20  ;;  %v1164_v43 = vshrl.u32 %v12931_v23, 16  ;;  %v1167_v44 = vshll.u32 %v12931_v23, 16  ;;  %v1809_v47 = vrot.slane %v1807_v14, 5  ;;  %v522_v20 = vld [vmem:[#allocation2 + $0x20] sm:$0x1] }
  0xe6   : > { %v1161_v48 = vsel %vm15909_vm7, %v1153_v32, %v1160_v34  ;;  %v1340_v38 = vsel %vm15916_vm8, %v1152_v29, %v1339_v13  ;;  %v1346_v50 = vld [vmem:[#allocation2 + $0xb4] sm:$0xf]  ;;  %v1815_v52 = vrot.slane %v1813_v18, 5  ;;  %v1819_v45 = vrot.slane %v1817_v27, 4  ;;  %13464 = vmatprep.mubr.bf16.mxu0 %v15102_v37  ;;  %v1758_v32 = vld [vmem:[#allocation2 + $0x18] sm:$0xf] }
  0xe7   : > { %1341 = vst [vmem:[#allocation2 + $0xa8] sm:$0xf] %v1340_v38  ;;  %1342 = vst [vmem:[#allocation2 + $0xac] sm:$0xf] %v1161_v48  ;;  %v1166_v54 = vrot.slane %v1164_v43, 7  ;;  %v1172_v55 = vshrl.u32 %v12932_v41, 16  ;;  %v1810_v63 = vor.u32 %v1809_v47, %v1806_v26 }
  0xe8   : > { %v1175_v58 = vshll.u32 %v12932_v41, 16  ;;  %v15103_v1 = vld [vmem:[#allocation2 + $0x9c] sm:$0xff]   ;;  %v16137_v16 = vld [vmem:[#allocation2 + $0x8] sm:$0x1]  ;;  %v1820_v17 = vor.u32 %v1819_v45, %v1815_v52  ;;  %v1828_v6 = vshrl.u32 %v1755_v28, 16  ;;  %v1831_v29 = vshll.u32 %v1755_v28, 16 }
  0xe9   : > { %v1169_v11 = vor.u32 %v1167_v44, %v1166_v54  ;;  %v1170_v13 = vrot.slane %v1166_v54, 4  ;;  %v16141_v14 = vrot.slane %v1172_v55, 7  ;;  %v1811_v18 = vrot.slane %v1810_v63, 4  ;;  %13465 = vmatmul.mubr.bf16.gmra.mrb[24].mxu0 %v15103_v1  ;;  %v16150_v44 = vld [vmem:[#allocation2 + $0x1c] sm:$0xf] }
  0xea   : > { %v1821_v23 = vrot.slane %v1820_v17, 4  ;;  %v1823_v27 = vshll.u32 %v16137_v16, 16  ;;  %v1830_v26 = vrot.slane %v1828_v6, 4  ;;  %v1833_v48 = vrot.slane %v1831_v29, 5  ;;  %v525_v45 = vld [vmem:[#allocation2 + $0x2c] sm:$0x1] }
  0xeb   : > { %v1177_v34 = vor.u32 %v1175_v58, %v16141_v14  ;;  %v1347_v41 = vsel %vm15916_vm8, %v1169_v11, %v1346_v50  ;;  %v1816_v43 = vsel %vm16131_vm11, %v1811_v18, %v1815_v52  ;;  %v1837_v38 = vshll.u32 %v16135_v61, 16  ;;  %v1761_v54 = vld [vmem:[#allocation2 + $0x24] sm:$0xf]  ;;  %v16163_v37 = vld [vmem:[#allocation2 + $0x28] sm:$0xf] }
  0xec   : > { %1348 = vst [vmem:[#allocation2 + $0xb4] sm:$0xf] %v1347_v41  ;;  %v1825_v47 = vrot.slane %v1823_v27, 5  ;;  %v1841_v28 = vshrl.u32 %v16135_v61, 16  ;;  %v1847_v58 = vshll.u32 %v16139_v2, 16  ;;  %v523_v50 = vsel %vm15858_vm4, 0, %v522_v20 }
  0xed   : > { %v1178_v55 = vsel %vm15909_vm7, %v1170_v13, %v1177_v34  ;;  %v1852_v52 = vshrl.u32 %v1758_v32, 16  ;;  %v1834_v17 = vor.u32 %v1833_v48, %v1830_v26  ;;  %v1839_v6 = vrot.slane %v1837_v38, 5  ;;  %524 = vst [vmem:[#allocation2 + $0x20] sm:$0x1] %v523_v50  ;;  %v528_v48 = vld [vmem:[#allocation2 + $0x38] sm:$0x1] }
  0xee   : > { %v15105_v63 = vld [vmem:[#allocation2 + $0xa8] sm:$0xff]   ;;  %1349 = vst [vmem:[#allocation2 + $0xb8] sm:$0xf] %v1178_v55  ;;  %v1826_v1 = vsel %vm16131_vm11, %v1821_v23, %v1825_v47  ;;  %v1843_v18 = vrot.slane %v1841_v28, 4  ;;  %v1849_v27 = vrot.slane %v1847_v58, 5  ;;  %v1855_v34 = vshll.u32 %v1758_v32, 16 }
  0xef   : > { %v12349_v11 = vcombine.low %v1816_v43, %v1826_v1  ;;  %v1854_v29 = vrot.slane %v1852_v52, 4  ;;  %13468 = vmatprep.mubr.bf16.mxu0 %v15105_v63  ;;  %v1835_v13 = vrot.slane %v1834_v17, 4  ;;  %v1861_v41 = vshll.u32 %v16150_v44, 16  ;;  %v1764_v58 = vld [vmem:[#allocation2 + $0x30] sm:$0xf] }
  0xf0   : > { %v1865_v20 = vshrl.u32 %v16150_v44, 16  ;;  %v1844_v55 = vor.u32 %v1843_v18, %v1839_v6  ;;  %v526_v23 = vsel %vm15858_vm4, 0, %v525_v45  ;;  %v1876_v26 = vshrl.u32 %v1761_v54, 16 }
  0xf1   : > { %v1879_v47 = vshll.u32 %v1761_v54, 16  ;;  %v1840_v43 = vsel %vm16131_vm11, %v1835_v13, %v1839_v6  ;;  %v1857_v38 = vrot.slane %v1855_v34, 5  ;;  %v16169_v28 = vrot.slane %v1861_v41, 5  ;;  %527 = vst [vmem:[#allocation2 + $0x2c] sm:$0x1] %v526_v23 }
  0xf2   : > { %v1867_v32 = vrot.slane %v1865_v20, 4  ;;  %v1845_v50 = vrot.slane %v1844_v55, 4  ;;  %v1878_v52 = vrot.slane %v1876_v26, 4  ;;  %v1885_v1 = vshll.u32 %v16163_v37, 16  ;;  %v16176_v6 = vld [vmem:[#allocation2 + $0x34] sm:$0xf] }
  0xf3   : > { %v1881_v63 = vrot.slane %v1879_v47, 5  ;;  %v1858_v17 = vor.u32 %v1857_v38, %v1854_v29  ;;  %v1889_v54 = vshrl.u32 %v16163_v37, 16  ;;  %v529_v18 = vsel %vm15858_vm4, 0, %v528_v48  ;;  %v531_v13 = vld [vmem:[#allocation2 + $0x44] sm:$0x1] }
  0xf4   : > { %v1868_v45 = vor.u32 %v1867_v32, %v16169_v28  ;;  %v1850_v41 = vsel %vm16131_vm11, %v1845_v50, %v1849_v27  ;;  %v1259_v20 = vld [vmem:[#allocation2 + $0x20] sm:$0x1]  ;;  %v16180_v23 = vrot.slane %v1885_v1, 5  ;;  %530 = vst [vmem:[#allocation2 + $0x38] sm:$0x1] %v529_v18  ;;  %v532_v1 = vsel %vm15858_vm4, 0, %v531_v13 }
  0xf5   : > { %v15106_v34 = vld [vmem:[#allocation2 + $0xb4] sm:$0xff]   ;;  %v1882_v55 = vor.u32 %v1881_v63, %v1878_v52  ;;  %v1767_v29 = vld [vmem:[#allocation2 + $0x3c] sm:$0xf]  ;;  %v12350_v26 = vcombine.low %v1840_v43, %v1850_v41  ;;  %v1260_v47 = vsel %vm15853_vm2, %v958_v35, %v1259_v20  ;;  %v16186_v48 = vrot.slane %v1858_v17, 4  ;;  %v16190_v32 = vld [vmem:[#allocation2 + $0x40] sm:$0xf] }
  0xf6   : > { %v16188_v38 = vrot.slane %v1868_v45, 4  ;;  %13469 = vmatmul.mubr.bf16.gmra.mrb[28].mxu0 %v15106_v34  ;;  %1261 = vst [vmem:[#allocation2 + $0x20] sm:$0x1] %v1260_v47  ;;  %v1891_v50 = vrot.slane %v1889_v54, 4  ;;  %v1900_v52 = vshrl.u32 %v1764_v58, 16  ;;  %v1903_v63 = vshll.u32 %v1764_v58, 16 }
  0xf7   : > { %v16192_v27 = vrot.slane %v1882_v55, 4  ;;  %13488 = vmatprep.mubr.bf16.mxu0 %v12349_v11  ;;  %v1864_v22 = vsel %vm16131_vm11, %v16186_v48, %v16169_v28  ;;  %v1909_v35 = vshll.u32 %v16176_v6, 16  ;;  %v1913_v43 = vshrl.u32 %v16176_v6, 16  ;;  %v534_v17 = vld [vmem:[#allocation2 + $0x50] sm:$0x1] }
  0xf8   : > { %v1266_v45 = vld [vmem:[#allocation2 + $0x2c] sm:$0x1]  ;;  %v1892_v11 = vor.u32 %v1891_v50, %v16180_v23  ;;  %v1902_v54 = vrot.slane %v1900_v52, 4  ;;  %v1905_v18 = vrot.slane %v1903_v63, 5  ;;  %533 = vst [vmem:[#allocation2 + $0x44] sm:$0x1] %v532_v1 }
  0xf9   : > { %v1888_v58 = vsel %vm16131_vm11, %v16192_v27, %v16180_v23  ;;  %v1770_v34 = vld [vmem:[#allocation2 + $0x48] sm:$0xf]  ;;  %v1267_v41 = vsel %vm15853_vm2, %v975_v51, %v1266_v45  ;;  %v16211_v20 = vrot.slane %v1909_v35, 5  ;;  %v1915_v13 = vrot.slane %v1913_v43, 4  ;;  %v16213_v47 = vld [vmem:[#allocation2 + $0x4c] sm:$0xf] }
  0xfa   : > { %v1924_v55 = vshrl.u32 %v1767_v29, 16  ;;  %1268 = vst [vmem:[#allocation2 + $0x2c] sm:$0x1] %v1267_v41  ;;  %v16215_v36 = vrot.slane %v1892_v11, 4  ;;  %v1906_v40 = vor.u32 %v1905_v18, %v1902_v54  ;;  %v1927_v50 = vshll.u32 %v1767_v29, 16  ;;  %v15109_v35 = vld [vmem:[#allocation7 + $0x88] sm:$0xff]  }
  0xfb   : > { %v1933_v52 = vshll.u32 %v16190_v32, 16  ;;  %v1273_v63 = vld [vmem:[#allocation2 + $0x38] sm:$0x1]  ;;  %v1916_v1 = vor.u32 %v1915_v13, %v16211_v20  ;;  %v1937_v15 = vshrl.u32 %v16190_v32, 16  ;;  %v535_v51 = vsel %vm15858_vm4, 0, %v534_v17 }
  0xfc   : > { %v1926_v39 = vrot.slane %v1924_v55, 4  ;;  %v1274_v43 = vsel %vm15853_vm2, %v992_v30, %v1273_v63  ;;  %v16226_v45 = vrot.slane %v1906_v40, 4  ;;  %v1929_v29 = vrot.slane %v1927_v50, 5  ;;  %536 = vst [vmem:[#allocation2 + $0x50] sm:$0x1] %v535_v51 }
  0xfd   : > { %v16228_v11 = vrot.slane %v1933_v52, 5  ;;  %v537_v54 = vld [vmem:[#allocation2 + $0x5c] sm:$0x1]  ;;  %v16230_v18 = vld [vmem:[#allocation2 + $0x20] sm:$0x1]  ;;  %v16232_v41 = vrot.slane %v1916_v1, 4 }
  0xfe   : > { %1275 = vst [vmem:[#allocation2 + $0x38] sm:$0x1] %v1274_v43  ;;  %v1939_v13 = vrot.slane %v1937_v15, 4  ;;  %v1948_v17 = vshrl.u32 %v1770_v34, 16  ;;  %v1951_v55 = vshll.u32 %v1770_v34, 16  ;;  %13489 = vmatmul.mubr.bf16.vlgmr.msra.gmra.mrb[0].mxu0 %v12350_v26  ;;  %v1871_v19 = vshll.u32 %v16230_v18, 16 }
  0xff   : > { %v1912_v30 = vsel %vm16131_vm11, %v16226_v45, %v16211_v20  ;;  %v1930_v40 = vor.u32 %v1929_v29, %v1926_v39  ;;  %v1957_v50 = vshll.u32 %v16213_v47, 16  ;;  %v1773_v52 = vld [vmem:[#allocation2 + $0x54] sm:$0xf]  ;;  %13521 = vmatpush3.bf16.msra.mxu0 %v16046_v10  ;;  %v1280_v63 = vld [vmem:[#allocation2 + $0x44] sm:$0x1]  ;;  %v1961_v26 = vshrl.u32 %v16213_v47, 16 }
 0x100   : > { %v1940_v1 = vor.u32 %v1939_v13, %v16228_v11  ;;  %v1950_v15 = vrot.slane %v1948_v17, 4  ;;  %v1953_v51 = vrot.slane %v1951_v55, 5  ;;  %v16243_v34 = vld [vmem:[#allocation2 + $0x58] sm:$0xf]  ;;  %v1873_v43 = vrot.slane %v1871_v19, 5  ;;  %13522 = vmatprep.subr.bf16.mxu0 %v15109_v35 }
 0x101   : > { %v1281_v39 = vsel %vm15853_vm2, %v1009_v3, %v1280_v63  ;;  %v16249_v29 = vrot.slane %v1930_v40, 4  ;;  %v16251_v10 = vrot.slane %v1957_v50, 5  ;;  %v16253_v60 = vld [vmem:[#allocation2 + $0x2c] sm:$0x1]  ;;  %v1963_v55 = vrot.slane %v1961_v26, 4 }
 0x102   : > { %1282 = vst [vmem:[#allocation2 + $0x44] sm:$0x1] %v1281_v39  ;;  %v16255_v13 = vrot.slane %v1940_v1, 4  ;;  %v1954_v17 = vor.u32 %v1953_v51, %v1950_v15  ;;  %v538_v19 = vsel %vm15858_vm4, 0, %v537_v54  ;;  %v1874_v56 = vsel %vm16131_vm11, %v16188_v38, %v1873_v43  ;;  %v540_v63 = vld [vmem:[#allocation2 + $0x68] sm:$0x1] }
 0x103   : > { %v1895_v3 = vshll.u32 %v16253_v60, 16  ;;  %v1936_v40 = vsel %vm16131_vm11, %v16249_v29, %v16228_v11  ;;  %539 = vst [vmem:[#allocation2 + $0x5c] sm:$0x1] %v538_v19  ;;  %v1972_v50 = vshrl.u32 %v1773_v52, 16  ;;  %v1776_v1 = vld [vmem:[#allocation2 + $0x60] sm:$0xf]  ;;  %v12351_v54 = vcombine.low %v1864_v22, %v1874_v56  ;;  %13523 = vmatpush3.bf16.msra.mxu0 %v15109_v35 }
 0x104   : > { %v1287_v15 = vld [vmem:[#allocation2 + $0x50] sm:$0x1]  ;;  %v16272_v38 = vrot.slane %v1954_v17, 4  ;;  %v1964_v51 = vor.u32 %v1963_v55, %v16251_v10  ;;  %v1975_v26 = vshll.u32 %v1773_v52, 16  ;;  %v16275_v43 = vld [vmem:[#allocation2 + $0x64] sm:$0xf]  ;;  %13524 = vmatprep.subr.bf16.mxu0 %v15110_v31 }
 0x105   : > { %v1897_v39 = vrot.slane %v1895_v3, 5  ;;  %v16277_v19 = vld [vmem:[#allocation2 + $0x38] sm:$0x1]  ;;  %v1288_v9 = vsel %vm15853_vm2, %v1026_v24, %v1287_v15  ;;  %v1974_v28 = vrot.slane %v1972_v50, 4  ;;  %v1981_v48 = vshll.u32 %v16243_v34, 16  ;;  %v15111_v22 = vld [vmem:[#allocation7 + $0x98] sm:$0xff]   ;;  %13492 = vmatprep.mubr.bf16.mxu0 %v12351_v54 }
 0x106   : > { %v1919_v35 = vshll.u32 %v16277_v19, 16  ;;  %1289 = vst [vmem:[#allocation2 + $0x50] sm:$0x1] %v1288_v9  ;;  %v16289_v17 = vrot.slane %v1964_v51, 4  ;;  %v1977_v55 = vrot.slane %v1975_v26, 5  ;;  %v1985_v56 = vshrl.u32 %v16243_v34, 16 }
 0x107   : > { %v1898_v7 = vsel %vm16131_vm11, %v16215_v36, %v1897_v39  ;;  %v16294_v24 = vrot.slane %v1981_v48, 5  ;;  %v541_v3 = vsel %vm15858_vm4, 0, %v540_v63  ;;  %v15112_v9 = vld [vmem:[#allocation7 + $0xa0] sm:$0xff]   ;;  %13525 = vmatpush3.bf16.msra.mxu0 %v15110_v31  ;;  %v1996_v51 = vshrl.u32 %v1776_v1, 16  ;;  %v1779_v26 = vld [vmem:[#allocation2 + $0x6c] sm:$0xf] }
 0x108   : > { %v12352_v50 = vcombine.low %v1888_v58, %v1898_v7  ;;  %v1921_v54 = vrot.slane %v1919_v35, 5  ;;  %v1978_v15 = vor.u32 %v1977_v55, %v1974_v28  ;;  %542 = vst [vmem:[#allocation2 + $0x68] sm:$0x1] %v541_v3  ;;  %v543_v36 = vld [vmem:[#allocation2 + $0x74] sm:$0x1]  ;;  %v1987_v48 = vrot.slane %v1985_v56, 4  ;;  %13526 = vmatprep.subr.bf16.mxu0 %v15111_v22 }
 0x109   : > { %v16304_v39 = vld [vmem:[#allocation2 + $0x44] sm:$0x1]  ;;  %v1999_v52 = vshll.u32 %v1776_v1, 16  ;;  %v2005_v63 = vshll.u32 %v16275_v43, 16  ;;  %v2009_v49 = vshrl.u32 %v16275_v43, 16  ;;  %v1998_v28 = vrot.slane %v1996_v51, 4 }
 0x10a   : > { %13493 = vmatmul.mubr.bf16.gmra.mrb[4].mxu0 %v12352_v50  ;;  %v1922_v23 = vsel %vm16131_vm11, %v16232_v41, %v1921_v54  ;;  %v1943_v31 = vshll.u32 %v16304_v39, 16  ;;  %v1294_v27 = vld [vmem:[#allocation2 + $0x5c] sm:$0x1]  ;;  %v16312_v58 = vrot.slane %v1978_v15, 4  ;;  %v1988_v55 = vor.u32 %v1987_v48, %v16294_v24  ;;  %v16324_v7 = vld [vmem:[#allocation2 + $0x70] sm:$0xf] }
 0x10b   : > { %v12353_v1 = vcombine.low %v1912_v30, %v1922_v23  ;;  %v1295_v35 = vsel %vm15853_vm2, %v1043_v59, %v1294_v27  ;;  %v2001_v41 = vrot.slane %v1999_v52, 5  ;;  %13527 = vmatpush3.bf16.msra.mxu0 %v15111_v22  ;;  %v16330_v20 = vrot.slane %v2005_v63, 5  ;;  %v1782_v15 = vld [vmem:[#allocation2 + $0x78] sm:$0xf] }
 0x10c   : > { %v1945_v56 = vrot.slane %v1943_v31, 5  ;;  %1296 = vst [vmem:[#allocation2 + $0x5c] sm:$0x1] %v1295_v35  ;;  %v1984_v3 = vsel %vm16131_vm11, %v16312_v58, %v16294_v24  ;;  %v2011_v45 = vrot.slane %v2009_v49, 4  ;;  %v16334_v59 = vrot.slane %v1988_v55, 4  ;;  %13528 = vmatprep.subr.bf16.mxu0 %v15112_v9  ;;  %v15113_v51 = vld [vmem:[#allocation7 + $0xa8] sm:$0xff]  }
 0x10d   : > { %13496 = vmatprep.mubr.bf16.mxu0 %v12353_v1  ;;  %v16332_v30 = vld [vmem:[#allocation2 + $0x50] sm:$0x1]  ;;  %v2002_v52 = vor.u32 %v2001_v41, %v1998_v28  ;;  %v544_v50 = vsel %vm15858_vm4, 0, %v543_v36  ;;  %v2020_v54 = vshrl.u32 %v1779_v26, 16  ;;  %v2023_v63 = vshll.u32 %v1779_v26, 16 }
 0x10e   : > { %v1946_v22 = vsel %vm16131_vm11, %v16255_v13, %v1945_v56  ;;  %v1967_v49 = vshll.u32 %v16332_v30, 16  ;;  %v2012_v48 = vor.u32 %v2011_v45, %v16330_v20  ;;  %545 = vst [vmem:[#allocation2 + $0x74] sm:$0x1] %v544_v50  ;;  %v2029_v28 = vshll.u32 %v16324_v7, 16  ;;  %v16357_v41 = vld [vmem:[#allocation2 + $0x7c] sm:$0xf] }
 0x10f   : > { %v12354_v36 = vcombine.low %v1936_v40, %v1946_v22  ;;  %v1301_v23 = vld [vmem:[#allocation2 + $0x68] sm:$0x1]  ;;  %v16348_v31 = vrot.slane %v2002_v52, 4  ;;  %v2022_v27 = vrot.slane %v2020_v54, 4  ;;  %v20097_v13 = vrot.slane %v16027_v33, 4  ;;  %13529 = vmatpush3.bf16.msra.mxu0 %v15112_v9  ;;  %v15114_v45 = vld [vmem:[#allocation7 + $0xb0] sm:$0xff]  }
 0x110   : > { %v1969_v1 = vrot.slane %v1967_v49, 5  ;;  %v16355_v55 = vrot.slane %v2012_v48, 4  ;;  %v2025_v26 = vrot.slane %v2023_v63, 5  ;;  %v16363_v29 = vrot.slane %v2029_v28, 5  ;;  %v549_v56 = vld [vmem:[#allocation2 + $0x8c] sm:$0x1]  ;;  %13530 = vmatprep.subr.bf16.mxu0 %v15113_v51 }
 0x111   : > { %v1302_v35 = vsel %vm15853_vm2, %v20097_v13, %v1301_v23  ;;  %v2008_v11 = vsel %vm16131_vm11, %v16348_v31, %v16330_v20  ;;  %v2033_v40 = vshrl.u32 %v16324_v7, 16  ;;  %v547_v33 = vsel %vm15858_vm4, 0, %v546_v46  ;;  %v1785_v22 = vld [vmem:[#allocation2 + $0x84] sm:$0xf] }
 0x112   : > { %1303 = vst [vmem:[#allocation2 + $0x68] sm:$0x1] %v1302_v35  ;;  %13497 = vmatmul.mubr.bf16.gmra.mrb[8].mxu0 %v12354_v36  ;;  %v1970_v9 = vsel %vm16131_vm11, %v16289_v17, %v1969_v1  ;;  %v2026_v52 = vor.u32 %v2025_v26, %v2022_v27  ;;  %548 = vst [vmem:[#allocation2 + $0x80] sm:$0x1] %v547_v33  ;;  %v2044_v50 = vshrl.u32 %v1782_v15, 16  ;;  %v2047_v54 = vshll.u32 %v1782_v15, 16 }
 0x113   : > { %v20098_v49 = vsel %vm16131_vm11, %v16272_v38, %v16251_v10  ;;  %v16376_v46 = vld [vmem:[#allocation2 + $0x5c] sm:$0x1]  ;;  %v2035_v63 = vrot.slane %v2033_v40, 4  ;;  %v2053_v36 = vshll.u32 %v16357_v41, 16  ;;  %v2057_v23 = vshrl.u32 %v16357_v41, 16  ;;  %13531 = vmatpush3.bf16.msra.mxu0 %v15113_v51  ;;  %v15115_v40 = vld [vmem:[#allocation7 + $0xb8] sm:$0xff]  }
 0x114   : > { %v12355_v48 = vcombine.low %v20098_v49, %v1970_v9  ;;  %v1991_v17 = vshll.u32 %v16376_v46, 16  ;;  %v16381_v27 = vrot.slane %v2026_v52, 4  ;;  %v2046_v28 = vrot.slane %v2044_v50, 4  ;;  %v16383_v1 = vld [vmem:[#allocation2 + $0x88] sm:$0xf]  ;;  %13532 = vmatprep.subr.bf16.mxu0 %v15114_v45 }
 0x115   : > { %v2049_v15 = vrot.slane %v2047_v54, 5  ;;  %v1308_v13 = vld [vmem:[#allocation2 + $0x74] sm:$0x1]  ;;  %v2036_v10 = vor.u32 %v2035_v63, %v16363_v29  ;;  %v16386_v38 = vrot.slane %v2053_v36, 5  ;;  %v2059_v35 = vrot.slane %v2057_v23, 4 }
 0x116   : > { %13500 = vmatprep.mubr.bf16.mxu0 %v12355_v48  ;;  %v550_v26 = vsel %vm15858_vm4, 0, %v549_v56  ;;  %v1993_v33 = vrot.slane %v1991_v17, 5  ;;  %v20099_v9 = vrot.slane %v16035_v53, 4  ;;  %v552_v54 = vld [vmem:[#allocation2 + $0x98] sm:$0x1]  ;;  %v2068_v63 = vshrl.u32 %v1785_v22, 16 }
 0x117   : > { %v2050_v50 = vor.u32 %v2049_v15, %v2046_v28  ;;  %551 = vst [vmem:[#allocation2 + $0x8c] sm:$0x1] %v550_v26  ;;  %v1788_v49 = vld [vmem:[#allocation2 + $0x90] sm:$0xf]  ;;  %v16398_v48 = vrot.slane %v2036_v10, 4  ;;  %v2060_v56 = vor.u32 %v2059_v35, %v16386_v38  ;;  %v2071_v36 = vshll.u32 %v1785_v22, 16  ;;  %13533 = vmatpush3.bf16.msra.mxu0 %v15114_v45 }
 0x118   : > { %v1309_v52 = vsel %vm15853_vm2, %v20099_v9, %v1308_v13  ;;  %v16401_v53 = vld [vmem:[#allocation2 + $0x94] sm:$0xf]  ;;  %v1994_v23 = vsel %vm16131_vm11, %v16334_v59, %v1993_v33  ;;  %v2077_v28 = vshll.u32 %v16383_v1, 16  ;;  %v2081_v15 = vshrl.u32 %v16383_v1, 16  ;;  %13534 = vmatprep.subr.bf16.mxu0 %v15115_v40 }
 0x119   : > { %1310 = vst [vmem:[#allocation2 + $0x74] sm:$0x1] %v1309_v52  ;;  %v16406_v17 = vld [vmem:[#allocation2 + $0x68] sm:$0x1]  ;;  %v16408_v13 = vrot.slane %v2050_v50, 4  ;;  %v12356_v22 = vcombine.low %v1984_v3, %v1994_v23  ;;  %v16418_v26 = vrot.slane %v2060_v56, 4 }
 0x11a   : > { %v2015_v10 = vshll.u32 %v16406_v17, 16  ;;  %v1315_v35 = vld [vmem:[#allocation2 + $0x80] sm:$0x1]  ;;  %v2070_v59 = vrot.slane %v2068_v63, 4  ;;  %v16420_v33 = vld [vmem:[#allocation7 + $0xc0] sm:$0xff]   ;;  %v20100_v9 = vrot.slane %v16062_v42, 4 }
 0x11b   : > { %v2073_v58 = vrot.slane %v2071_v36, 5  ;;  %v16430_v3 = vrot.slane %v2077_v28, 5  ;;  %v555_v52 = vld [vmem:[#allocation2 + $0xa4] sm:$0x1]  ;;  %13501 = vmatmul.mubr.bf16.gmra.mrb[12].mxu0 %v12356_v22  ;;  %v2083_v56 = vrot.slane %v2081_v15, 4  ;;  %v553_v63 = vsel %vm15858_vm4, 0, %v552_v54 }
 0x11c   : > { %v1316_v45 = vsel %vm15853_vm2, %v20100_v9, %v1315_v35  ;;  %v2017_v50 = vrot.slane %v2015_v10, 5  ;;  %v2092_v42 = vshrl.u32 %v1788_v49, 16  ;;  %v1791_v23 = vld [vmem:[#allocation2 + $0x9c] sm:$0xf]  ;;  %554 = vst [vmem:[#allocation2 + $0x98] sm:$0x1] %v553_v63  ;;  %13535 = vmatpush3.bf16.msra.mxu0 %v15115_v40 }
 0x11d   : > { %1317 = vst [vmem:[#allocation2 + $0x80] sm:$0x1] %v1316_v45  ;;  %v2074_v51 = vor.u32 %v2073_v58, %v2070_v59  ;;  %v2095_v35 = vshll.u32 %v1788_v49, 16  ;;  %v2101_v9 = vshll.u32 %v16401_v53, 16  ;;  %v2105_v24 = vshrl.u32 %v16401_v53, 16  ;;  %13568 = vmatprep.subr.bf16.mxu0 %v16420_v33 }
 0x11e   : > { %v16436_v36 = vld [vmem:[#allocation2 + $0xa0] sm:$0xf]  ;;  %v2018_v28 = vsel %vm16131_vm11, %v16355_v55, %v2017_v50  ;;  %v1322_v15 = vld [vmem:[#allocation2 + $0x8c] sm:$0x1]  ;;  %v2084_v22 = vor.u32 %v2083_v56, %v16430_v3  ;;  %v2094_v54 = vrot.slane %v2092_v42, 4  ;;  %v556_v10 = vsel %vm15858_vm4, 0, %v555_v52 }
 0x11f   : > { %v558_v59 = vld [vmem:[#allocation2 + $0xb0] sm:$0x1]  ;;  %v12357_v40 = vcombine.low %v2008_v11, %v2018_v28  ;;  %v20101_v55 = vrot.slane %v16078_v25, 4  ;;  %v16456_v58 = vrot.slane %v2074_v51, 4  ;;  %v2097_v50 = vrot.slane %v2095_v35, 5 }
 0x120   : > { %v16450_v49 = vld [vmem:[#allocation2 + $0x74] sm:$0x1]  ;;  %557 = vst [vmem:[#allocation2 + $0xa4] sm:$0x1] %v556_v10  ;;  %v16459_v56 = vrot.slane %v2084_v22, 4  ;;  %v16461_v63 = vrot.slane %v2101_v9, 5 }
 0x121   : > { %v1323_v45 = vsel %vm15853_vm2, %v20101_v55, %v1322_v15  ;;  %v2039_v52 = vshll.u32 %v16450_v49, 16  ;;  %v2107_v20 = vrot.slane %v2105_v24, 4  ;;  %13504 = vmatprep.mubr.bf16.mxu0 %v12357_v40  ;;  %v2098_v31 = vor.u32 %v2097_v50, %v2094_v54  ;;  %v1794_v42 = vld [vmem:[#allocation2 + $0xa8] sm:$0xf]  ;;  %v16470_v9 = vld [vmem:[#allocation2 + $0xac] sm:$0xf] }
 0x122   : > { %1324 = vst [vmem:[#allocation2 + $0x8c] sm:$0x1] %v1323_v45  ;;  %v2116_v11 = vshrl.u32 %v1791_v23, 16  ;;  %v2119_v51 = vshll.u32 %v1791_v23, 16  ;;  %v2125_v15 = vshll.u32 %v16436_v36, 16  ;;  %v2129_v22 = vshrl.u32 %v16436_v36, 16 }
 0x123   : > { %v2041_v35 = vrot.slane %v2039_v52, 5  ;;  %v2108_v28 = vor.u32 %v2107_v20, %v16461_v63  ;;  %v16474_v10 = vrot.slane %v2098_v31, 4  ;;  %v559_v54 = vsel %vm15858_vm4, 0, %v558_v59  ;;  %v1329_v50 = vld [vmem:[#allocation2 + $0x98] sm:$0x1] }
 0x124   : > { %v16472_v24 = vld [vmem:[#allocation2 + $0x80] sm:$0x1]  ;;  %v2118_v40 = vrot.slane %v2116_v11, 4  ;;  %v2121_v55 = vrot.slane %v2119_v51, 5  ;;  %v16484_v20 = vrot.slane %v2125_v15, 5  ;;  %v20102_v31 = vsel %vm16131_vm11, %v16381_v27, %v16363_v29 }
 0x125   : > { %v2042_v23 = vsel %vm16131_vm11, %v16398_v48, %v2041_v35  ;;  %v2063_v45 = vshll.u32 %v16472_v24, 16  ;;  %v16482_v52 = vrot.slane %v2108_v28, 4  ;;  %560 = vst [vmem:[#allocation2 + $0xb0] sm:$0x1] %v559_v54  ;;  %v20103_v59 = vrot.slane %v16093_v57, 4 }
 0x126   : > { %v12358_v11 = vcombine.low %v20102_v31, %v2042_v23  ;;  %v2104_v48 = vsel %vm16131_vm11, %v16474_v10, %v16461_v63  ;;  %v2122_v35 = vor.u32 %v2121_v55, %v2118_v40  ;;  %v561_v28 = vld [vmem:[#allocation2 + $0xbc] sm:$0x1]  ;;  %v2131_v25 = vrot.slane %v2129_v22, 4  ;;  %v1797_v29 = vld [vmem:[#allocation2 + $0xb4] sm:$0xf] }
 0x127   : > { %v1330_v51 = vsel %vm15853_vm2, %v20103_v59, %v1329_v50  ;;  %v2065_v15 = vrot.slane %v2063_v45, 5  ;;  %v1336_v54 = vld [vmem:[#allocation2 + $0xa4] sm:$0x1]  ;;  %v2140_v8 = vshrl.u32 %v1794_v42, 16  ;;  %v2143_v0 = vshll.u32 %v1794_v42, 16 }
 0x128   : > { %1331 = vst [vmem:[#allocation2 + $0x98] sm:$0x1] %v1330_v51  ;;  %v16499_v27 = vld [vmem:[#allocation2 + $0xb8] sm:$0xf]  ;;  %13505 = vmatmul.mubr.bf16.gmra.mrb[16].mxu0 %v12358_v11  ;;  %v20104_v23 = vrot.slane %v16099_v21, 4  ;;  %v16507_v31 = vrot.slane %v2122_v35, 4  ;;  %v2132_v45 = vor.u32 %v2131_v25, %v16484_v20  ;;  %v20105_v21 = vsel %vm16131_vm11, %v16408_v13, %v16386_v38 }
 0x129   : > { %v16501_v57 = vld [vmem:[#allocation2 + $0x8c] sm:$0x1]  ;;  %v2149_v40 = vshll.u32 %v16470_v9, 16  ;;  %v2153_v55 = vshrl.u32 %v16470_v9, 16  ;;  %v2066_v42 = vsel %vm16131_vm11, %v16418_v26, %v2065_v15  ;;  %v2142_v11 = vrot.slane %v2140_v8, 4 }
 0x12a   : > { %v1337_v50 = vsel %vm15853_vm2, %v20104_v23, %v1336_v54  ;;  %v2087_v22 = vshll.u32 %v16501_v57, 16  ;;  %v12359_v59 = vcombine.low %v20105_v21, %v2066_v42  ;;  %v2145_v35 = vrot.slane %v2143_v0, 5  ;;  %v2509_v21 = vld [vmem:[#allocation2] sm:$0xe] }
 0x12b   : > { %1338 = vst [vmem:[#allocation2 + $0xa4] sm:$0x1] %v1337_v50  ;;  %v16525_v54 = vrot.slane %v2149_v40, 5  ;;  %v2133_v15 = vrot.slane %v2132_v45, 4  ;;  %v2155_v23 = vrot.slane %v2153_v55, 4  ;;  %v562_v8 = vsel %vm15858_vm4, 0, %v561_v28 }
 0x12c   : > { %v2089_v26 = vrot.slane %v2087_v22, 5  ;;  %13508 = vmatprep.mubr.bf16.mxu0 %v12359_v59  ;;  %v1343_v25 = vld [vmem:[#allocation2 + $0xb0] sm:$0x1]  ;;  %v2146_v50 = vor.u32 %v2145_v35, %v2142_v11  ;;  %563 = vst [vmem:[#allocation2 + $0xbc] sm:$0x1] %v562_v8  ;;  %v2164_v38 = vshrl.u32 %v1797_v29, 16 }
 0x12d   : > { %v2167_v13 = vshll.u32 %v1797_v29, 16  ;;  %v2173_v42 = vshll.u32 %v16499_v27, 16  ;;  %v20106_v40 = vrot.slane %v16121_v12, 4  ;;  %v2156_v28 = vor.u32 %v2155_v23, %v16525_v54  ;;  %v2510_v45 = vld [vmem:[#allocation2 + $0xc] sm:$0xe] }
 0x12e   : > { %v2090_v0 = vsel %vm16131_vm11, %v16459_v56, %v2089_v26  ;;  %v2177_v22 = vshrl.u32 %v16499_v27, 16  ;;  %v20107_v29 = vsel %vm16131_vm11, %v16456_v58, %v16430_v3  ;;  %v16546_v56 = vrot.slane %v2146_v50, 4 }
 0x12f   : > { %v1344_v55 = vsel %vm15853_vm2, %v20106_v40, %v1343_v25  ;;  %v12360_v11 = vcombine.low %v20107_v29, %v2090_v0  ;;  %v16544_v59 = vld [vmem:[#allocation2 + $0x98] sm:$0x1]  ;;  %v2166_v12 = vrot.slane %v2164_v38, 4  ;;  %v2169_v35 = vrot.slane %v2167_v13, 5 }
 0x130   : > { %1345 = vst [vmem:[#allocation2 + $0xb0] sm:$0x1] %v1344_v55  ;;  %v2111_v26 = vshll.u32 %v16544_v59, 16  ;;  %v2157_v8 = vrot.slane %v2156_v28, 4  ;;  %v16549_v23 = vrot.slane %v2173_v42, 5  ;;  %v2179_v25 = vrot.slane %v2177_v22, 4 }
 0x131   : > { %13509 = vmatmul.mubr.bf16.gmra.mrb[20].mxu0 %v12360_v11  ;;  %v2152_v3 = vsel %vm16131_vm11, %v16546_v56, %v16525_v54  ;;  %v2170_v58 = vor.u32 %v2169_v35, %v2166_v12  ;;  %vm2574_vm13 = vcmask 1046532   ;;  %v12373_v0 = vrot.slane %v2509_v21, 9  ;;  %v2511_v55 = vld [vmem:[#allocation2 + $0x18] sm:$0xe]  ;;  %v15325_v22 = vld [vmem:[#allocation2 + $0x4] sm:$0xf] }
 0x132   : > { %v16551_v40 = vld [vmem:[#allocation2 + $0xa4] sm:$0x1]  ;;  %v2113_v50 = vrot.slane %v2111_v26, 5  ;;  %v2180_v13 = vor.u32 %v2179_v25, %v16549_v23  ;;  %vm16559_vm14 = vmor %vm2573_vm12, %vm2574_vm13  ;;  %v2578_v29 = vrot.slane %v15325_v22, 5  ;;  %v2581_v54 = vrot.slane %v16137_v16, 5 }
 0x133   : > { %v2135_v38 = vshll.u32 %v16551_v40, 16  ;;  %v16563_v28 = vrot.slane %v2170_v58, 4  ;;  %v12374_v11 = vrot.slane %v2510_v45, 9  ;;  %v2512_v56 = vld [vmem:[#allocation2 + $0x24] sm:$0xe]  ;;  %v2585_v51 = vrot.slane %v16135_v61, 5 }
 0x134   : > { %v2114_v12 = vsel %vm16131_vm11, %v16482_v52, %v2113_v50  ;;  %v1350_v26 = vld [vmem:[#allocation2 + $0xbc] sm:$0x1]  ;;  %v16569_v25 = vrot.slane %v2180_v13, 4  ;;  %v20110_v16 = vrot.slane %v16141_v14, 4  ;;  %v16587_v58 = vsel %vm16559_vm14, %v12373_v0, %v2578_v29 }
 0x135   : > { %v2137_v35 = vrot.slane %v2135_v38, 5  ;;  %v12361_v21 = vcombine.low %v2104_v48, %v2114_v12  ;;  %v2176_v52 = vsel %vm16131_vm11, %v16563_v28, %v16549_v23  ;;  %v2580_v63 = vrot.slane %v2578_v29, 4  ;;  %v2513_v48 = vld [vmem:[#allocation2 + $0x30] sm:$0xe] }
 0x136   : > { %v1351_v45 = vsel %vm15853_vm2, %v20110_v16, %v1350_v26  ;;  %v16595_v14 = vsel %vm16559_vm14, %v12374_v11, %v2585_v51  ;;  %v2587_v10 = vrot.slane %v2585_v51, 4  ;;  %v20111_v38 = vsel %vm16131_vm11, %v16507_v31, %v16484_v20 }
 0x137   : > { %v2138_v61 = vsel %vm16131_vm11, %v2133_v15, %v2137_v35  ;;  %v16591_v50 = vld [vmem:[#allocation2 + $0xb0] sm:$0x1]  ;;  %1352 = vst [vmem:[#allocation2 + $0xbc] sm:$0x1] %v1351_v45  ;;  %13512 = vmatprep.mubr.bf16.mxu0 %v12361_v21  ;;  %v2588_v15 = vrot.slane %v16139_v2, 5  ;;  %v12375_v22 = vrot.slane %v2511_v55, 9  ;;  %v16606_v29 = vsel %vm16559_vm14, %v2580_v63, %v2581_v54 }
 0x138   : > { %v12362_v13 = vcombine.low %v20111_v38, %v2138_v61  ;;  %v2159_v0 = vshll.u32 %v16591_v50, 16  ;;  %v2592_v11 = vrot.slane %v16150_v44, 5  ;;  %v2595_v51 = vrot.slane %v16230_v18, 5  ;;  %v2514_v35 = vld [vmem:[#allocation2 + $0x3c] sm:$0xe] }
 0x139   : > { %v12376_v12 = vrot.slane %v2512_v56, 9  ;;  %v12389_v20 = vcombine.low %v16587_v58, %v16606_v29  ;;  %v16614_v31 = vsel %vm16559_vm14, %v2587_v10, %v2588_v15  ;;  %v2599_v2 = vrot.slane %v16163_v37, 5  ;;  %v2515_v56 = vld [vmem:[#allocation2 + $0x48] sm:$0xe] }
 0x13a   : > { %13513 = vmatmul.mubr.bf16.gmra.mrb[24].mxu0 %v12362_v13  ;;  %v2161_v26 = vrot.slane %v2159_v0, 5  ;;  %v12390_v55 = vcombine.low %v16595_v14, %v16614_v31  ;;  %v16621_v44 = vsel %vm16559_vm14, %v12375_v22, %v2592_v11  ;;  %v2594_v18 = vrot.slane %v2592_v11, 4 }
 0x13b   : > { %v2602_v54 = vrot.slane %v16253_v60, 5  ;;  %v16628_v16 = vsel %vm16559_vm14, %v12376_v12, %v2599_v2  ;;  %v2601_v45 = vrot.slane %v2599_v2, 4  ;;  %v12377_v37 = vrot.slane %v2513_v48, 9  ;;  %v2516_v60 = vld [vmem:[#allocation2 + $0x54] sm:$0xe] }
 0x13c   : > { %v2162_v21 = vsel %vm16131_vm11, %v2157_v8, %v2161_v26  ;;  %v16632_v61 = vsel %vm16559_vm14, %v2594_v18, %v2595_v51  ;;  %v2606_v63 = vrot.slane %v16176_v6, 5  ;;  %v2609_v10 = vrot.slane %v16277_v19, 5  ;;  %v2518_v18 = vld [vmem:[#allocation2 + $0x6c] sm:$0xe] }
 0x13d   : > { %v12363_v58 = vcombine.low %v2152_v3, %v2162_v21  ;;  %v12391_v8 = vcombine.low %v16621_v44, %v16632_v61  ;;  %v16642_v13 = vsel %vm16559_vm14, %v2601_v45, %v2602_v54  ;;  %v12378_v48 = vrot.slane %v2514_v35, 9  ;;  %v715_v61 = vld [vmem:[%s15838_s22 + $0xf0] sm:$0xff] }
 0x13e   : > { %v16636_v38 = vld [vmem:[#allocation2 + $0xbc] sm:$0x1]  ;;  %v2613_v3 = vrot.slane %v16190_v32, 5  ;;  %v12392_v6 = vcombine.low %v16628_v16, %v16642_v13  ;;  %v16650_v19 = vsel %vm16559_vm14, %v12377_v37, %v2606_v63  ;;  %v2608_v15 = vrot.slane %v2606_v63, 4  ;;  %v2517_v32 = vld [vmem:[#allocation2 + $0x60] sm:$0xe] }
 0x13f   : > { %13516 = vmatprep.mubr.bf16.mxu0 %v12363_v58  ;;  %v2183_v0 = vshll.u32 %v16636_v38, 16  ;;  %v2616_v11 = vrot.slane %v16304_v39, 5  ;;  %v12379_v51 = vrot.slane %v2515_v56, 9  ;;  %v2620_v26 = vrot.slane %v16213_v47, 5 }
 0x140   : > { %v16654_v22 = vsel %vm16559_vm14, %v12378_v48, %v2613_v3  ;;  %v2615_v29 = vrot.slane %v2613_v3, 4  ;;  %v16659_v35 = vsel %vm16559_vm14, %v2608_v15, %v2609_v10  ;;  %v2623_v2 = vrot.slane %v16332_v30, 5  ;;  %v2519_v10 = vld [vmem:[#allocation2 + $0x78] sm:$0xe]  ;;  %v2520_v15 = vld [vmem:[#allocation2 + $0x84] sm:$0xe] }
 0x141   : > { %v2185_v12 = vrot.slane %v2183_v0, 5  ;;  %v12393_v54 = vcombine.low %v16650_v19, %v16659_v35  ;;  %v12380_v39 = vrot.slane %v2516_v60, 9  ;;  %v2627_v56 = vrot.slane %v16243_v34, 5 }
 0x142   : > { %v16667_v21 = vsel %vm16559_vm14, %v2615_v29, %v2616_v11  ;;  %v16677_v30 = vsel %vm16559_vm14, %v12379_v51, %v2620_v26  ;;  %v2622_v37 = vrot.slane %v2620_v26, 4  ;;  %v12381_v48 = vrot.slane %v2517_v32, 9 }
 0x143   : > { %v2186_v45 = vsel %vm16131_vm11, %v16569_v25, %v2185_v12  ;;  %v12394_v47 = vcombine.low %v16654_v22, %v16667_v21  ;;  %v16686_v34 = vsel %vm16559_vm14, %v12380_v39, %v2627_v56  ;;  %v2629_v63 = vrot.slane %v2627_v56, 4  ;;  %v2521_v39 = vld [vmem:[#allocation2 + $0x90] sm:$0xe]  ;;  %v15123_v22 = vld [vmem:[#allocation7 + $0xf8] sm:$0xff]  }
 0x144   : > { %v12364_v58 = vcombine.low %v2176_v52, %v2186_v45  ;;  %v2630_v25 = vrot.slane %v16376_v46, 5  ;;  %v16691_v60 = vsel %vm16559_vm14, %v2622_v37, %v2623_v2  ;;  %v2634_v3 = vrot.slane %v16275_v43, 5  ;;  %v2522_v37 = vld [vmem:[#allocation2 + $0x9c] sm:$0xe]  ;;  %v16839_v21 = vld [vmem:[#allocation7 + $0x100] sm:$0xff]  }
 0x145   : > { %v2637_v0 = vrot.slane %v16406_v17, 5  ;;  %v12395_v23 = vcombine.low %v16677_v30, %v16691_v60  ;;  %v12382_v46 = vrot.slane %v2518_v18, 9  ;;  %v2641_v52 = vrot.slane %v16324_v7, 5  ;;  %v3397_v30 = vld [vmem:[#allocation2 + $0x10] sm:$0xf] }
 0x146   : > { %13517 = vmatmul.mubr.bf16.gmra.mrb[28].mxu0 %v12364_v58  ;;  %v16699_v28 = vsel %vm16559_vm14, %v2629_v63, %v2630_v25  ;;  %v16706_v43 = vsel %vm16559_vm14, %v12381_v48, %v2634_v3  ;;  %v2636_v17 = vrot.slane %v2634_v3, 4  ;;  %v2644_v11 = vrot.slane %v16450_v49, 5  ;;  %v2523_v25 = vld [vmem:[#allocation2 + $0xa8] sm:$0xe]  ;;  %v3399_v60 = vld [vmem:[#allocation2 + $0x18] sm:$0xf] }
 0x147   : > { %13536 = vmatprep.mubr.bf16.mxu0 %v12389_v20  ;;  %v12396_v29 = vcombine.low %v16686_v34, %v16699_v28  ;;  %v16711_v51 = vsel %vm16559_vm14, %v12382_v46, %v2641_v52  ;;  %v2643_v32 = vrot.slane %v2641_v52, 4  ;;  %v12383_v12 = vrot.slane %v2519_v10, 9  ;;  %v15117_v10 = vld [vmem:[#allocation7 + $0xc8] sm:$0xff]  }
 0x148   : > { %v2648_v26 = vrot.slane %v16357_v41, 5  ;;  %v16716_v7 = vsel %vm16559_vm14, %v2636_v17, %v2637_v0  ;;  %v2651_v20 = vrot.slane %v16472_v24, 5  ;;  %v12384_v2 = vrot.slane %v2520_v15, 9  ;;  %v3400_v34 = vld [vmem:[#allocation2 + $0x1c] sm:$0xf] }
 0x149   : > { %v2655_v18 = vrot.slane %v16383_v1, 5  ;;  %v12397_v49 = vcombine.low %v16706_v43, %v16716_v7  ;;  %v16724_v56 = vsel %vm16559_vm14, %v2643_v32, %v2644_v11  ;;  %v2658_v63 = vrot.slane %v16501_v57, 5  ;;  %v2524_v11 = vld [vmem:[#allocation2 + $0xb4] sm:$0xe]  ;;  %v3398_v43 = vld [vmem:[#allocation2 + $0x14] sm:$0x1] }
 0x14a   : > { %v16728_v41 = vsel %vm16559_vm14, %v12383_v12, %v2648_v26  ;;  %v2650_v45 = vrot.slane %v2648_v26, 4  ;;  %v12398_v24 = vcombine.low %v16711_v51, %v16724_v56  ;;  %v12385_v3 = vrot.slane %v2521_v39, 9  ;;  %v508_v26 = vld [vmem:[#allocation2 + $0xc0] sm:$0x1] }
 0x14b   : > { %v16734_v1 = vsel %vm16559_vm14, %v12384_v2, %v2655_v18  ;;  %v2657_v58 = vrot.slane %v2655_v18, 4  ;;  %v2662_v0 = vrot.slane %v16401_v53, 5  ;;  %v2665_v15 = vrot.slane %v16544_v59, 5 }
 0x14c   : > { %v16739_v48 = vsel %vm16559_vm14, %v2650_v45, %v2651_v20  ;;  %v12386_v17 = vrot.slane %v2522_v37, 9  ;;  %v2669_v57 = vrot.slane %v16436_v36, 5  ;;  %v2672_v12 = vrot.slane %v16551_v40, 5  ;;  %v15118_v20 = vld [vmem:[#allocation7 + $0xd0] sm:$0xff]  }
 0x14d   : > { %v12399_v46 = vcombine.low %v16728_v41, %v16739_v48  ;;  %v16747_v52 = vsel %vm16559_vm14, %v2657_v58, %v2658_v63  ;;  %v16757_v59 = vsel %vm16559_vm14, %v12385_v3, %v2662_v0  ;;  %v2664_v32 = vrot.slane %v2662_v0, 4  ;;  %v15326_v3 = vld [vmem:[%s19944_s1] ss:$0 sm:$0xff]  ;;  %v3402_v48 = vld [vmem:[#allocation2 + $0x24] sm:$0xf] }
 0x14e   : > { %13537 = vmatmul.mubr.bf16.vlgmr.msra.gmra.mrb[0].mxu0 %v12390_v55  ;;  %v12400_v53 = vcombine.low %v16734_v1, %v16747_v52  ;;  %v16766_v36 = vsel %vm16559_vm14, %v12386_v17, %v2669_v57  ;;  %v2671_v14 = vrot.slane %v2669_v57, 4  ;;  %v12387_v31 = vrot.slane %v2523_v25, 9  ;;  %v15119_v17 = vld [vmem:[#allocation7 + $0xd8] sm:$0xff]  }
 0x14f   : > { %13569 = vmatpush3.bf16.msra.mxu0 %v16420_v33  ;;  %13540 = vmatprep.mubr.bf16.mxu0 %v12391_v8  ;;  %v2676_v55 = vrot.slane %v16470_v9, 5  ;;  %v16771_v40 = vsel %vm16559_vm14, %v2664_v32, %v2665_v15  ;;  %v2679_v33 = vrot.slane %v16591_v50, 5  ;;  %v12388_v2 = vrot.slane %v2524_v11, 9  ;;  %v716_v8 = vld [vmem:[%s15838_s22 + $0xf8] sm:$0xff]  ;;  %v15327_v11 = vld [vmem:[%s19945_s2] ss:$0 sm:$0xff] }
 0x150   : > { %13570 = vmatprep.subr.bf16.mxu0 %v15117_v10  ;;  %v2683_v44 = vrot.slane %v16499_v27, 5  ;;  %v12401_v18 = vcombine.low %v16757_v59, %v16771_v40  ;;  %v16781_v9 = vsel %vm16559_vm14, %v2671_v14, %v2672_v12  ;;  %v2686_v58 = vrot.slane %v16636_v38, 5 }
 0x151   : > { %v16785_v39 = vsel %vm16559_vm14, %v12387_v31, %v2676_v55  ;;  %v2678_v45 = vrot.slane %v2676_v55, 4  ;;  %v12402_v50 = vcombine.low %v16766_v36, %v16781_v9  ;;  %v509_v25 = vsel %vm15853_vm2, 0, %v508_v26  ;;  %v15120_v55 = vld [vmem:[#allocation7 + $0xe0] sm:$0xff]  }
 0x152   : > { %v16791_v27 = vsel %vm16559_vm14, %v12388_v2, %v2683_v44  ;;  %v2685_v37 = vrot.slane %v2683_v44, 4  ;;  %v754_v0 = vmul.f32 %v15326_v3, %v715_v61  ;;  %v755_v15 = vmul.f32 %v15326_v3, %v716_v8  ;;  %510 = vst [vmem:[#allocation2 + $0xc0] sm:$0x1] %v509_v25  ;;  %v3426_v25 = vld [vmem:[#allocation2 + $0x84] sm:$0xf] }
 0x153   : > { %13571 = vmatpush3.bf16.msra.mxu0 %v15117_v10  ;;  %v16796_v63 = vsel %vm16559_vm14, %v2678_v45, %v2679_v33  ;;  %v15121_v45 = vld [vmem:[#allocation7 + $0xe8] sm:$0xff]   ;;  %v3469_v28 = vshrl.u32 %v3399_v60, 16  ;;  %v3478_v7 = vshll.u32 %v3400_v34, 16 }
 0x154   : > { %13572 = vmatprep.subr.bf16.mxu0 %v15118_v20  ;;  %v12403_v57 = vcombine.low %v16785_v39, %v16796_v63  ;;  %v16807_v38 = vsel %vm16559_vm14, %v2685_v37, %v2686_v58  ;;  %v793_v32 = vadd.f32 %v15327_v11, %v754_v0  ;;  %v794_v12 = vadd.f32 %v15327_v11, %v755_v15  ;;  %v3414_v63 = vld [vmem:[#allocation2 + $0x54] sm:$0xf] }
 0x155   : > { %v12404_v10 = vcombine.low %v16791_v27, %v16807_v38  ;;  %v3454_v15 = vshll.u32 %v3397_v30, 16  ;;  %v3420_v27 = vld [vmem:[#allocation2 + $0x6c] sm:$0xf]  ;;  %v15125_v38 = vld [vmem:[#allocation2 + $0x18] sm:$0xff]  }
 0x156   : > { %13541 = vmatmul.mubr.bf16.gmra.mrb[4].mxu0 %v12392_v6  ;;  %v825_v14 = vmax.f32 %v793_v32, 0.0  ;;  %v826_v31 = vmax.f32 %v794_v12, 0.0 }
 0x157   : > { %13544 = vmatprep.mubr.bf16.mxu0 %v12393_v54  ;;  %13573 = vmatpush3.bf16.msra.mxu0 %v15118_v20  ;;  %v15122_v20 = vld [vmem:[#allocation7 + $0xf0] sm:$0xff]   ;;  %v16848_v12 = vrot.slane %v3454_v15, 5 }
 0x158   : > { %13574 = vmatprep.subr.bf16.mxu0 %v15119_v17  ;;  %v12933_v26 = vpack.c.bf16 %v825_v14, %v825_v14  ;;  %v12934_v33 = vpack.c.bf16 %v826_v31, %v826_v31  ;;  %v3464_v31 = vshll.u32 %v3398_v43, 16 }
 0x159   : > { %v1353_v6 = vld [vmem:[#allocation2 + $0xc0] sm:$0xf] }
 0x15a   : > { %v1181_v2 = vshrl.u32 %v12933_v26, 16  ;;  %v1184_v44 = vshll.u32 %v12933_v26, 16  ;;  %v1189_v61 = vshrl.u32 %v12934_v33, 16  ;;  %v1192_v8 = vshll.u32 %v12934_v33, 16 }
 0x15b   : > { %13575 = vmatpush3.bf16.msra.mxu0 %v15119_v17  ;;  %v3458_v17 = vshrl.u32 %v3397_v30, 16  ;;  %v16850_v33 = vrot.slane %v3478_v7, 5  ;;  %v16889_v7 = vld [vmem:[#allocation2 + $0x38] sm:$0x1] }
 0x15c   : > { %13576 = vmatprep.subr.bf16.mxu0 %v15120_v55  ;;  %v1183_v16 = vrot.slane %v1181_v2, 7  ;;  %v16820_v13 = vrot.slane %v1189_v61, 7  ;;  %v3405_v2 = vld [vmem:[#allocation2 + $0x30] sm:$0xf]  ;;  %v16863_v61 = vrot.slane %v3464_v31, 5  ;;  %v3536_v39 = vshll.u32 %v16889_v7, 16 }
 0x15d   : > { %v3460_v14 = vrot.slane %v3458_v17, 4  ;;  %v3517_v59 = vshrl.u32 %v3405_v2, 16  ;;  %v3520_v40 = vshll.u32 %v3405_v2, 16 }
 0x15e   : > { %13545 = vmatmul.mubr.bf16.gmra.mrb[8].mxu0 %v12394_v47  ;;  %v1186_v19 = vor.u32 %v1184_v44, %v1183_v16  ;;  %v1187_v35 = vrot.slane %v1183_v16, 4  ;;  %v1194_v54 = vor.u32 %v1192_v8, %v16820_v13  ;;  %v3396_v47 = vld [vmem:[#allocation2 + $0xc] sm:$0xf]  ;;  %v16858_v44 = vld [vmem:[#allocation2 + $0x34] sm:$0xf] }
 0x15f   : > { %13548 = vmatprep.mubr.bf16.mxu0 %v12395_v23  ;;  %13577 = vmatpush3.bf16.msra.mxu0 %v15120_v55  ;;  %v3445_v23 = vshrl.u32 %v3396_v47, 16  ;;  %v3448_v0 = vshll.u32 %v3396_v47, 16  ;;  %v3471_v55 = vrot.slane %v3469_v28, 4  ;;  %v3461_v41 = vor.u32 %v3460_v14, %v16848_v12  ;;  %v16885_v28 = vld [vmem:[#allocation2 + $0x2c] sm:$0x1] }
 0x160   : > { %13578 = vmatprep.subr.bf16.mxu0 %v15121_v45  ;;  %v1195_v58 = vsel %vm15909_vm7, %v1187_v35, %v1194_v54  ;;  %v1354_v3 = vsel %vm15916_vm8, %v1186_v19, %v1353_v6  ;;  %v3493_v19 = vshrl.u32 %v3402_v48, 16  ;;  %v3496_v35 = vshll.u32 %v3402_v48, 16  ;;  %v16903_v48 = vld [vmem:[#allocation2 + $0x50] sm:$0x1] }
 0x161   : > { %1355 = vst [vmem:[#allocation2 + $0xc0] sm:$0xf] %v1354_v3  ;;  %1356 = vst [vmem:[#allocation2 + $0xc4] sm:$0xf] %v1195_v58  ;;  %v3447_v11 = vrot.slane %v3445_v23, 4  ;;  %v3450_v32 = vrot.slane %v3448_v0, 5 }
 0x162   : > { %v16868_v52 = vrot.slane %v3461_v41, 4  ;;  %v3530_v58 = vshrl.u32 %v16858_v44, 16  ;;  %v3411_v3 = vld [vmem:[#allocation2 + $0x48] sm:$0xf]  ;;  %v16879_v23 = vld [vmem:[#allocation2 + $0x4c] sm:$0xf] }
 0x163   : > { %13579 = vmatpush3.bf16.msra.mxu0 %v15121_v45  ;;  %v3451_v56 = vor.u32 %v3450_v32, %v3447_v11  ;;  %v3408_v45 = vld [vmem:[#allocation2 + $0x3c] sm:$0xf]  ;;  %v3495_v17 = vrot.slane %v3493_v19, 4  ;;  %v3519_v32 = vrot.slane %v3517_v59, 4  ;;  %v3522_v14 = vrot.slane %v3520_v40, 5 }
 0x164   : > { %13580 = vmatprep.subr.bf16.mxu0 %v15122_v20  ;;  %v3541_v30 = vshrl.u32 %v3408_v45, 16  ;;  %v3565_v41 = vshrl.u32 %v3411_v3, 16  ;;  %v3574_v36 = vshll.u32 %v16879_v23, 16  ;;  %v3578_v9 = vshrl.u32 %v16879_v23, 16 }
 0x165   : > { %v16866_v1 = vrot.slane %v3451_v56, 4 }
 0x166   : > { %13549 = vmatmul.mubr.bf16.gmra.mrb[12].mxu0 %v12396_v29  ;;  %v3472_v29 = vshll.u32 %v3399_v60, 16  ;;  %v3544_v60 = vshll.u32 %v3408_v45, 16  ;;  %v3567_v59 = vrot.slane %v3565_v41, 4 }
 0x167   : > { %13552 = vmatprep.mubr.bf16.mxu0 %v12397_v49  ;;  %13581 = vmatpush3.bf16.msra.mxu0 %v15122_v20  ;;  %v3482_v49 = vshrl.u32 %v3400_v34, 16  ;;  %v16872_v20 = vld [vmem:[#allocation2 + $0x40] sm:$0xf]  ;;  %v3498_v34 = vrot.slane %v3496_v35, 5 }
 0x168   : > { %13582 = vmatprep.subr.bf16.mxu0 %v15123_v22  ;;  %v3474_v26 = vrot.slane %v3472_v29, 5  ;;  %v3554_v11 = vshrl.u32 %v16872_v20, 16  ;;  %v3546_v56 = vrot.slane %v3544_v60, 5  ;;  %v3589_v60 = vshrl.u32 %v3414_v63, 16 }
 0x169   : > { %v3484_v51 = vrot.slane %v3482_v49, 4  ;;  %v3550_v49 = vshll.u32 %v16872_v20, 16 }
 0x16a   : > { %v3475_v8 = vor.u32 %v3474_v26, %v3471_v55  ;;  %v3532_v55 = vrot.slane %v3530_v58, 4  ;;  %v16898_v26 = vld [vmem:[#allocation2 + $0x44] sm:$0x1]  ;;  %v3556_v2 = vrot.slane %v3554_v11, 4  ;;  %v3580_v58 = vrot.slane %v3578_v9, 4 }
 0x16b   : > { %13583 = vmatpush3.bf16.msra.mxu0 %v15123_v22  ;;  %v3485_v16 = vor.u32 %v3484_v51, %v16850_v33  ;;  %v3543_v51 = vrot.slane %v3541_v30, 4  ;;  %v3584_v30 = vshll.u32 %v16903_v48, 16  ;;  %v16929_v11 = vrot.slane %v3536_v39, 5  ;;  %v16956_v22 = vld [vmem:[#allocation2 + $0x7c] sm:$0xf] }
 0x16c   : > { %13616 = vmatprep.subr.bf16.mxu0 %v16839_v21  ;;  %v16877_v47 = vrot.slane %v3475_v8, 4  ;;  %v3499_v8 = vor.u32 %v3498_v34, %v3495_v17  ;;  %v3417_v17 = vld [vmem:[#allocation2 + $0x60] sm:$0xf]  ;;  %v16951_v39 = vrot.slane %v3589_v60, 4 }
 0x16d   : > { %v16881_v0 = vrot.slane %v3485_v16, 4  ;;  %v3512_v16 = vshll.u32 %v16885_v28, 16  ;;  %v3547_v35 = vor.u32 %v3546_v56, %v3543_v51  ;;  %20122 = vst [vmem:[#allocation31_spill] sm:$0xff] %v16929_v11 }
 0x16e   : > { %13553 = vmatmul.mubr.bf16.gmra.mrb[16].mxu0 %v12398_v24  ;;  %v3401_v24 = vld [vmem:[#allocation2 + $0x20] sm:$0x1]  ;;  %v16923_v34 = vrot.slane %v3499_v8, 4  ;;  %v15127_v8 = vld [vmem:[#allocation2 + $0x24] sm:$0xff]  }
 0x16f   : > { %13556 = vmatprep.mubr.bf16.mxu0 %v12399_v46  ;;  %v16856_v46 = vld [vmem:[#allocation2 + $0x28] sm:$0xf]  ;;  %v3488_v6 = vshll.u32 %v3401_v24, 16  ;;  %20114 = vst [vmem:[#allocation23_spill] sm:$0xff] %v16881_v0  ;;  %v3568_v24 = vshll.u32 %v3411_v3, 16  ;;  %v16937_v51 = vrot.slane %v3547_v35, 4 }
 0x170   : > { %v3506_v54 = vshrl.u32 %v16856_v46, 16  ;;  %20119 = vst [vmem:[#allocation28_spill] sm:$0xff] %v16923_v34  ;;  %v3613_v35 = vshrl.u32 %v3417_v17, 16  ;;  %v15135_v34 = vld [vmem:[#allocation7 + $0x118] sm:$0xff]  }
 0x171   : > { %v16883_v15 = vrot.slane %v3488_v6, 5  ;;  %v3523_v6 = vor.u32 %v3522_v14, %v3519_v32  ;;  %v3570_v40 = vrot.slane %v3568_v24, 5  ;;  %v16931_v32 = vld [vmem:[#allocation2 + $0x64] sm:$0xf]  ;;  %20125 = vst [vmem:[#allocation34_spill] sm:$0xff] %v16937_v51 }
 0x172   : > { %v3508_v43 = vrot.slane %v3506_v54, 4  ;;  %v16914_v54 = vld [vmem:[#allocation2 + $0x58] sm:$0xf]  ;;  %v16942_v24 = vld [vmem:[#allocation2 + $0x5c] sm:$0x1]  ;;  %v3615_v51 = vrot.slane %v3613_v35, 4 }
 0x173   : > { %v16933_v14 = vrot.slane %v3523_v6, 4  ;;  %v3598_v9 = vshll.u32 %v16914_v54, 16  ;;  %v3423_v6 = vld [vmem:[#allocation2 + $0x78] sm:$0xf]  ;;  %v3670_v35 = vshll.u32 %v16956_v22, 16 }
 0x175   : > { %20123 = vst [vmem:[#allocation32_spill] sm:$0xff] %v16933_v14  ;;  %v16962_v37 = vrot.slane %v3598_v9, 5 }
 0x176   : > { %13557 = vmatmul.mubr.bf16.gmra.mrb[20].mxu0 %v12400_v53  ;;  %v3502_v53 = vshll.u32 %v16856_v46, 16 }
 0x177   : > { %13560 = vmatprep.mubr.bf16.mxu0 %v12401_v18  ;;  %v3526_v18 = vshll.u32 %v16858_v44, 16 }
 0x178   : > { %v16887_v29 = vrot.slane %v3502_v53, 5  ;;  %v3560_v53 = vshll.u32 %v16898_v26, 16 }
 0x179   : > { %v16896_v31 = vrot.slane %v3526_v18, 5  ;;  %v16916_v18 = vrot.slane %v3574_v36, 5  ;;  %v3592_v36 = vshll.u32 %v3414_v63, 16  ;;  %v3626_v63 = vshrl.u32 %v16931_v32, 16 }
 0x17a   : > { %20115 = vst [vmem:[#allocation24_spill] sm:$0xff] %v16887_v29  ;;  %v3509_v45 = vor.u32 %v3508_v43, %v16887_v29  ;;  %v16939_v56 = vrot.slane %v3560_v53, 5  ;;  %v3616_v53 = vshll.u32 %v3417_v17, 16 }
 0x17b   : > { %20116 = vst [vmem:[#allocation25_spill] sm:$0xff] %v16896_v31  ;;  %v3533_v19 = vor.u32 %v3532_v55, %v16896_v31  ;;  %20118 = vst [vmem:[#allocation27_spill] sm:$0xff] %v16916_v18  ;;  %v3581_v41 = vor.u32 %v3580_v58, %v16916_v18  ;;  %v3640_v58 = vshll.u32 %v3420_v27, 16  ;;  %v3594_v60 = vrot.slane %v3592_v36, 5 }
 0x17c   : > { %v16925_v43 = vrot.slane %v3509_v45, 4  ;;  %20126 = vst [vmem:[#allocation35_spill] sm:$0xff] %v16939_v56  ;;  %v3608_v18 = vshll.u32 %v16942_v24, 16  ;;  %v15132_v56 = vld [vmem:[#allocation7 + $0x110] sm:$0xff]   ;;  %v3664_v36 = vshll.u32 %v3423_v6, 16 }
 0x17d   : > { %v16935_v55 = vrot.slane %v3533_v19, 4  ;;  %v15129_v19 = vld [vmem:[#allocation7 + $0x108] sm:$0xff]   ;;  %v3595_v11 = vor.u32 %v3594_v60, %v16951_v39 }
 0x17e   : > { %13561 = vmatmul.mubr.bf16.gmra.mrb[24].mxu0 %v12402_v50  ;;  %v16907_v50 = vrot.slane %v3550_v49, 5  ;;  %20120 = vst [vmem:[#allocation29_spill] sm:$0xff] %v16925_v43  ;;  %v16927_v49 = vrot.slane %v3512_v16, 5  ;;  %v16949_v16 = vrot.slane %v3584_v30, 5  ;;  %v16960_v30 = vrot.slane %v3581_v41, 4 }
 0x17f   : > { %13564 = vmatprep.mubr.bf16.mxu0 %v12403_v57  ;;  %v15124_v57 = vld [vmem:[#allocation2 + $0xc] sm:$0xff]   ;;  %20124 = vst [vmem:[#allocation33_spill] sm:$0xff] %v16935_v55  ;;  %v3661_v41 = vshrl.u32 %v3423_v6, 16  ;;  %v16974_v55 = vld [vmem:[#allocation2 + $0x80] sm:$0x1]  ;;  %v3666_v43 = vrot.slane %v3664_v36, 5 }
 0x180   : > { %20117 = vst [vmem:[#allocation26_spill] sm:$0xff] %v16907_v50  ;;  %v3557_v3 = vor.u32 %v3556_v2, %v16907_v50  ;;  %20121 = vst [vmem:[#allocation30_spill] sm:$0xff] %v16927_v49  ;;  %v16945_v2 = vld [vmem:[#allocation2 + $0x70] sm:$0xf]  ;;  %v3642_v50 = vrot.slane %v3640_v58, 5  ;;  %v16984_v58 = vrot.slane %v3608_v18, 5 }
 0x181   : > { %20128 = vst [vmem:[#allocation37_spill] sm:$0xff] %v16949_v16  ;;  %20130 = vst [vmem:[#allocation39_spill] sm:$0xff] %v16960_v30  ;;  %v3646_v17 = vshll.u32 %v16945_v2, 16  ;;  %v3663_v31 = vrot.slane %v3661_v41, 4  ;;  %v3680_v18 = vshll.u32 %v16974_v55, 16 }
 0x182   : > { %v16947_v45 = vrot.slane %v3557_v3, 4  ;;  %v16993_v36 = vld [vmem:[#allocation2 + $0x8c] sm:$0x1] }
 0x183   : > { %v16979_v14 = vrot.slane %v3646_v17, 5 }
 0x184   : > { %20127 = vst [vmem:[#allocation36_spill] sm:$0xff] %v16947_v45  ;;  %v3650_v45 = vshrl.u32 %v16945_v2, 16 }
 0x185   : > { %20132 = vst [vmem:[#allocation41_spill] sm:$0xff] %v16979_v14 }
 0x186   : > { %13565 = vmatmul.mubr.bf16.gmra.mrb[28].mxu0 %v12404_v10  ;;  %v3571_v10 = vor.u32 %v3570_v40, %v3567_v59  ;;  %v3622_v59 = vshll.u32 %v16931_v32, 16  ;;  %v3637_v40 = vshrl.u32 %v3420_v27, 16  ;;  %v16967_v27 = vld [vmem:[#allocation2 + $0x68] sm:$0x1]  ;;  %v3652_v6 = vrot.slane %v3650_v45, 4 }
 0x187   : > { %13584 = vmatprep.mubr.bf16.mxu0 %v15124_v57  ;;  %v3602_v57 = vshrl.u32 %v16914_v54, 16  ;;  %v3632_v49 = vshll.u32 %v16967_v27, 16  ;;  %v564_v45 = vld [vmem:[#allocation2 + $0xc8] sm:$0x1] }
 0x188   : > { %v16958_v3 = vrot.slane %v3571_v10, 4  ;;  %v3618_v10 = vrot.slane %v3616_v53, 5  ;;  %v16972_v9 = vrot.slane %v3622_v59, 5  ;;  %v3639_v30 = vrot.slane %v3637_v40, 4 }
 0x189   : > { %v3604_v16 = vrot.slane %v3602_v57, 4  ;;  %v3628_v57 = vrot.slane %v3626_v63, 4  ;;  %v3674_v53 = vshrl.u32 %v16956_v22, 16  ;;  %v3688_v59 = vshll.u32 %v3426_v25, 16  ;;  %v15130_v63 = vld [vmem:[#allocation2 + $0x3c] sm:$0xff]  }
 0x18a   : > { %20129 = vst [vmem:[#allocation38_spill] sm:$0xff] %v16958_v3  ;;  %v16969_v3 = vld [vmem:[#allocation2 + $0x74] sm:$0x1]  ;;  %20131 = vst [vmem:[#allocation40_spill] sm:$0xff] %v16972_v9  ;;  %v3619_v39 = vor.u32 %v3618_v10, %v3615_v51  ;;  %v3643_v29 = vor.u32 %v3642_v50, %v3639_v30  ;;  %v3429_v51 = vld [vmem:[#allocation2 + $0x90] sm:$0xf]  ;;  %v3667_v10 = vor.u32 %v3666_v43, %v3663_v31 }
 0x18b   : > { %v3605_v40 = vor.u32 %v3604_v16, %v16962_v37  ;;  %v3629_v60 = vor.u32 %v3628_v57, %v16972_v9  ;;  %v3656_v17 = vshll.u32 %v16969_v3, 16  ;;  %v3676_v0 = vrot.slane %v3674_v53, 4  ;;  %v17007_v31 = vld [vmem:[#allocation2 + $0x94] sm:$0xf]  ;;  %v15131_v43 = vld [vmem:[#allocation2 + $0x48] sm:$0xff]  }
 0x18c   : > { %v3653_v16 = vor.u32 %v3652_v6, %v16979_v14  ;;  %v565_v50 = vsel %vm15858_vm4, 0, %v564_v45  ;;  %v16999_v30 = vrot.slane %v3595_v11, 4  ;;  %v17003_v53 = vrot.slane %v3619_v39, 4 }
 0x18d   : > { %v17005_v6 = vrot.slane %v3632_v49, 5  ;;  %566 = vst [vmem:[#allocation2 + $0xc8] sm:$0x1] %v565_v50  ;;  %v17018_v39 = vrot.slane %v3680_v18, 5  ;;  %v3704_v45 = vshll.u32 %v16993_v36, 16  ;;  %v15141_v50 = vld [vmem:[#allocation7 + $0x128] sm:$0xff]  }
 0x18e   : > { %13585 = vmatmul.mubr.bf16.vlgmr.msra.gmra.mrb[0].mxu0 %v15125_v38  ;;  %v15128_v38 = vld [vmem:[#allocation2 + $0x30] sm:$0xff]   ;;  %v17021_v5 = vrot.slane %v3667_v10, 4 }
 0x18f   : > { %13617 = vmatpush3.bf16.msra.mxu0 %v16839_v21  ;;  %13588 = vmatprep.mubr.bf16.mxu0 %v15127_v8  ;;  %v16981_v21 = vld [vmem:[#allocation2 + $0x88] sm:$0xf]  ;;  %v3685_v8 = vshrl.u32 %v3426_v25, 16  ;;  %v16989_v25 = vrot.slane %v3670_v35, 5  ;;  %v17001_v35 = vrot.slane %v3605_v40, 4  ;;  %v17016_v40 = vrot.slane %v3653_v16, 4 }
 0x190   : > { %13618 = vmatprep.subr.bf16.mxu0 %v15129_v19  ;;  %v3694_v57 = vshll.u32 %v16981_v21, 16  ;;  %v3698_v9 = vshrl.u32 %v16981_v21, 16  ;;  %20135 = vst [vmem:[#allocation44_spill] sm:$0xff] %v17018_v39  ;;  %20136 = vst [vmem:[#allocation45_spill] sm:$0xff] %v17021_v5  ;;  %v4152_v16 = vld [vmem:[#allocation2 + $0x24] sm:$0xe] }
 0x191   : > { %20133 = vst [vmem:[#allocation42_spill] sm:$0xff] %v16989_v25  ;;  %v3687_v41 = vrot.slane %v3685_v8, 4  ;;  %v17009_v8 = vrot.slane %v3629_v60, 4  ;;  %v3677_v11 = vor.u32 %v3676_v0, %v16989_v25  ;;  %v3718_v0 = vshll.u32 %v17007_v31, 16  ;;  %v15144_v5 = vld [vmem:[#allocation7 + $0x130] sm:$0xff]  }
 0x192   : > { %v17023_v14 = vrot.slane %v3694_v57, 5  ;;  %v3700_v60 = vrot.slane %v3698_v9, 4  ;;  %v17033_v10 = vrot.slane %v3704_v45, 5  ;;  %v12463_v39 = vrot.slane %v4152_v16, 9 }
 0x193   : > { %13619 = vmatpush3.bf16.msra.mxu0 %v15129_v19  ;;  %v3690_v19 = vrot.slane %v3688_v59, 5  ;;  %v17011_v59 = vrot.slane %v3643_v29, 4  ;;  %v3709_v29 = vshrl.u32 %v3429_v51, 16  ;;  %v17028_v18 = vrot.slane %v3677_v11, 4 }
 0x194   : > { %13620 = vmatprep.subr.bf16.mxu0 %v15132_v56  ;;  %20138 = vst [vmem:[#allocation47_spill] sm:$0xff] %v17033_v10  ;;  %v3701_v9 = vor.u32 %v3700_v60, %v17023_v14  ;;  %v17040_v11 = vrot.slane %v3718_v0, 5  ;;  %v4154_v60 = vld [vmem:[#allocation2 + $0x3c] sm:$0xe]  ;;  %v4233_v16 = vrot.slane %v16885_v28, 5  ;;  %v4247_v28 = vrot.slane %v16898_v26, 5 }
 0x195   : > { %v3691_v49 = vor.u32 %v3690_v19, %v3687_v41  ;;  %v3722_v41 = vshrl.u32 %v17007_v31, 16  ;;  %v17036_v57 = vrot.slane %v3709_v29, 4  ;;  %v15134_v29 = vld [vmem:[#allocation2 + $0x60] sm:$0xff]  }
 0x196   : > { %13589 = vmatmul.mubr.bf16.gmra.mrb[4].mxu0 %v15128_v38  ;;  %v15138_v38 = vld [vmem:[#allocation7 + $0x120] sm:$0xff]   ;;  %v17055_v4 = vrot.slane %v3701_v9, 4  ;;  %v4268_v9 = vrot.slane %v16967_v27, 5  ;;  %v4272_v27 = vrot.slane %v16945_v2, 5 }
 0x197   : > { %13592 = vmatprep.mubr.bf16.mxu0 %v15130_v63  ;;  %13621 = vmatpush3.bf16.msra.mxu0 %v15132_v56  ;;  %v17013_v63 = vrot.slane %v3656_v17, 5  ;;  %v15133_v56 = vld [vmem:[#allocation2 + $0x54] sm:$0xff]   ;;  %v17031_v19 = vrot.slane %v3691_v49, 4  ;;  %v20139_v49 = vrot.slane %v16820_v13, 4  ;;  %v17047_v10 = vrot.slane %v3722_v41, 4 }
 0x198   : > { %13622 = vmatprep.subr.bf16.mxu0 %v15135_v34  ;;  %v17025_v17 = vld [vmem:[#allocation2 + $0x98] sm:$0x1]  ;;  %v4237_v41 = vrot.slane %v16858_v44, 5 }
 0x199   : > { %20134 = vst [vmem:[#allocation43_spill] sm:$0xff] %v17013_v63  ;;  %v3712_v63 = vshll.u32 %v3429_v51, 16  ;;  %20137 = vst [vmem:[#allocation46_spill] sm:$0xff] %v17031_v19  ;;  %v4153_v51 = vld [vmem:[#allocation2 + $0x30] sm:$0xe]  ;;  %v4240_v19 = vrot.slane %v16889_v7, 5 }
 0x19a   : > { %v4239_v7 = vrot.slane %v4237_v41, 4 }
 0x19b   : > { %13623 = vmatpush3.bf16.msra.mxu0 %v15135_v34  ;;  %v1357_v34 = vld [vmem:[#allocation2 + $0xc8] sm:$0x1]  ;;  %v17038_v25 = vrot.slane %v3712_v63, 5  ;;  %v15136_v63 = vld [vmem:[#allocation2 + $0x6c] sm:$0xff]  }
 0x19c   : > { %13624 = vmatprep.subr.bf16.mxu0 %v15138_v38  ;;  %v1358_v45 = vsel %vm15853_vm2, %v20139_v49, %v1357_v34  ;;  %v12464_v34 = vrot.slane %v4153_v51, 9  ;;  %v4156_v49 = vld [vmem:[#allocation2 + $0x54] sm:$0xe]  ;;  %v17081_v26 = vsel %vm16559_vm14, %v4239_v7, %v4240_v19 }
 0x19d   : > { %1359 = vst [vmem:[#allocation2 + $0xc8] sm:$0x1] %v1358_v45  ;;  %v17059_v45 = vld [vmem:[#allocation2 + $0x9c] sm:$0xf]  ;;  %20140 = vst [vmem:[#allocation48_spill] sm:$0xff] %v17081_v26 }
 0x19e   : > { %13593 = vmatmul.mubr.bf16.gmra.mrb[8].mxu0 %v15131_v43  ;;  %v4230_v43 = vrot.slane %v16856_v46, 5  ;;  %v15147_v46 = vld [vmem:[#allocation7 + $0x138] sm:$0xff]   ;;  %v17071_v44 = vsel %vm16559_vm14, %v12464_v34, %v4237_v41  ;;  %v4258_v34 = vrot.slane %v16914_v54, 5  ;;  %v4261_v41 = vrot.slane %v16942_v24, 5  ;;  %v15137_v24 = vld [vmem:[#allocation2 + $0x78] sm:$0xff]  }
 0x19f   : > { %13596 = vmatprep.mubr.bf16.mxu0 %v15133_v56  ;;  %13625 = vmatpush3.bf16.msra.mxu0 %v15138_v38  ;;  %v4155_v38 = vld [vmem:[#allocation2 + $0x48] sm:$0xe]  ;;  %v12465_v56 = vrot.slane %v4154_v60, 9  ;;  %v4158_v54 = vld [vmem:[#allocation2 + $0x6c] sm:$0xe]  ;;  %v3736_v26 = vshll.u32 %v17059_v45, 16 }
 0x1a0   : > { %13626 = vmatprep.subr.bf16.mxu0 %v15141_v50  ;;  %v17052_v0 = vsel %vm16559_vm14, %v12463_v39, %v4230_v43  ;;  %v4232_v13 = vrot.slane %v4230_v43, 4  ;;  %v4244_v43 = vrot.slane %v16872_v20, 5  ;;  %v4254_v20 = vrot.slane %v16903_v48, 5 }
 0x1a1   : > { %v4260_v7 = vrot.slane %v4258_v34, 4 }
 0x1a2   : > { %v17063_v39 = vsel %vm16559_vm14, %v4232_v13, %v4233_v16  ;;  %v17075_v51 = vsel %vm16559_vm14, %v12465_v56, %v4244_v43  ;;  %v4246_v60 = vrot.slane %v4244_v43, 4  ;;  %v4251_v13 = vrot.slane %v16879_v23, 5  ;;  %v17085_v56 = vld [vmem:[#allocation7 + $0x140] sm:$0xff]   ;;  %v15142_v43 = vld [vmem:[#allocation2 + $0x9c] sm:$0xff]  }
 0x1a3   : > { %13627 = vmatpush3.bf16.msra.mxu0 %v15141_v50  ;;  %v12466_v50 = vrot.slane %v4155_v38, 9  ;;  %v12467_v16 = vrot.slane %v4156_v49, 9  ;;  %v4157_v38 = vld [vmem:[#allocation2 + $0x60] sm:$0xe]  ;;  %v4159_v49 = vld [vmem:[#allocation2 + $0x78] sm:$0xe] }
 0x1a4   : > { %13628 = vmatprep.subr.bf16.mxu0 %v15144_v5  ;;  %v17091_v48 = vsel %vm16559_vm14, %v4246_v60, %v4247_v28  ;;  %v15139_v60 = vld [vmem:[#allocation2 + $0x84] sm:$0xff]   ;;  %v4265_v23 = vrot.slane %v16931_v32, 5 }
 0x1a5   : > { %v17095_v19 = vsel %vm16559_vm14, %v12466_v50, %v4251_v13  ;;  %v17104_v28 = vsel %vm16559_vm14, %v12467_v16, %v4258_v34  ;;  %v17117_v16 = vsel %vm16559_vm14, %v4260_v7, %v4261_v41  ;;  %v12469_v34 = vrot.slane %v4158_v54, 9 }
 0x1a6   : > { %13597 = vmatmul.mubr.bf16.gmra.mrb[12].mxu0 %v15134_v29  ;;  %v4253_v29 = vrot.slane %v4251_v13, 4  ;;  %v12468_v13 = vrot.slane %v4157_v38, 9  ;;  %v4267_v32 = vrot.slane %v4265_v23, 4  ;;  %v4275_v41 = vrot.slane %v16969_v3, 5 }
 0x1a7   : > { %13600 = vmatprep.mubr.bf16.mxu0 %v15136_v63  ;;  %13629 = vmatpush3.bf16.msra.mxu0 %v15144_v5  ;;  %v17097_v63 = vld [vmem:[#allocation2 + $0xa0] sm:$0xf]  ;;  %v3733_v5 = vshrl.u32 %v17059_v45, 16  ;;  %v20141_v45 = vshll.u32 %v17025_v17, 16  ;;  %v12470_v54 = vrot.slane %v4159_v49, 9  ;;  %v17140_v2 = vsel %vm16559_vm14, %v12469_v34, %v4272_v27 }
 0x1a8   : > { %13630 = vmatprep.subr.bf16.mxu0 %v15147_v46  ;;  %v17108_v50 = vsel %vm16559_vm14, %v4253_v29, %v4254_v20  ;;  %v17123_v38 = vsel %vm16559_vm14, %v12468_v13, %v4265_v23  ;;  %v17136_v13 = vsel %vm16559_vm14, %v4267_v32, %v4268_v9  ;;  %20142 = vst [vmem:[#allocation49_spill] sm:$0xff] %v17140_v2  ;;  %v4274_v23 = vrot.slane %v4272_v27, 4  ;;  %v4160_v20 = vld [vmem:[#allocation2 + $0x84] sm:$0xe]  ;;  %v4161_v27 = vld [vmem:[#allocation2 + $0x90] sm:$0xe] }
 0x1a9   : > { %v17129_v29 = vrot.slane %v20141_v45, 5  ;;  %v4282_v49 = vrot.slane %v16974_v55, 5  ;;  %v12471_v34 = vrot.slane %v4160_v20, 9  ;;  %v4286_v32 = vrot.slane %v16981_v21, 5  ;;  %v15140_v45 = vld [vmem:[#allocation2 + $0x90] sm:$0xff]  }
 0x1aa   : > { %v17151_v9 = vsel %vm16559_vm14, %v4274_v23, %v4275_v41  ;;  %v12472_v55 = vrot.slane %v4161_v27, 9  ;;  %v4296_v41 = vrot.slane %v17025_v17, 5  ;;  %v17169_v23 = vrot.slane %v3733_v5, 4  ;;  %v17177_v27 = vld [vmem:[#allocation2 + $0xa4] sm:$0x1] }
 0x1ab   : > { %13631 = vmatpush3.bf16.msra.mxu0 %v15147_v46  ;;  %v4279_v46 = vrot.slane %v16956_v22, 5  ;;  %20144 = vst [vmem:[#allocation51_spill] sm:$0xff] %v17151_v9  ;;  %v17166_v21 = vsel %vm16559_vm14, %v12471_v34, %v4286_v32  ;;  %v17183_v34 = vld [vmem:[#allocation2 + $0xac] sm:$0xf] }
 0x1ac   : > { %13664 = vmatprep.subr.bf16.mxu0 %v17085_v56  ;;  %20146 = vst [vmem:[#allocation53_spill] sm:$0xff] %v17166_v21  ;;  %v4307_v7 = vrot.slane %v17183_v34, 5 }
 0x1ad   : > { %v17146_v3 = vsel %vm16559_vm14, %v12470_v54, %v4279_v46  ;;  %v4281_v22 = vrot.slane %v4279_v46, 4  ;;  %v4303_v54 = vrot.slane %v17177_v27, 5 }
 0x1ae   : > { %13601 = vmatmul.mubr.bf16.gmra.mrb[16].mxu0 %v15137_v24  ;;  %20143 = vst [vmem:[#allocation50_spill] sm:$0xff] %v17146_v3  ;;  %v4289_v24 = vrot.slane %v16993_v36, 5  ;;  %v4288_v36 = vrot.slane %v4286_v32, 4  ;;  %v17185_v32 = vld [vmem:[#allocation2 + $0xb0] sm:$0x1]  ;;  %v4309_v21 = vrot.slane %v4307_v7, 4 }
 0x1af   : > { %13604 = vmatprep.mubr.bf16.mxu0 %v15139_v60  ;;  %v17159_v46 = vsel %vm16559_vm14, %v4281_v22, %v4282_v49  ;;  %v4293_v60 = vrot.slane %v17007_v31, 5  ;;  %v3715_v31 = vor.u32 %v17038_v25, %v17036_v57  ;;  %v3725_v25 = vor.u32 %v17047_v10, %v17040_v11 }
 0x1b0   : > { %20145 = vst [vmem:[#allocation52_spill] sm:$0xff] %v17159_v46  ;;  %v17181_v20 = vsel %vm16559_vm14, %v4288_v36, %v4289_v24  ;;  %v3738_v24 = vrot.slane %v3736_v26, 5  ;;  %v4300_v36 = vrot.slane %v17097_v63, 5  ;;  %v4310_v10 = vrot.slane %v17185_v32, 5  ;;  %v15145_v26 = vld [vmem:[#allocation2 + $0xb4] sm:$0xff]  }
 0x1b1   : > { %v17173_v22 = vsel %vm16559_vm14, %v12472_v55, %v4293_v60  ;;  %v4295_v49 = vrot.slane %v4293_v60, 4  ;;  %20148 = vst [vmem:[#allocation55_spill] sm:$0xff] %v17181_v20  ;;  %v3746_v55 = vshrl.u32 %v17097_v63, 16  ;;  %v4162_v60 = vld [vmem:[#allocation2 + $0x9c] sm:$0xe]  ;;  %v17200_v17 = vrot.slane %v3715_v31, 4 }
 0x1b2   : > { %20147 = vst [vmem:[#allocation54_spill] sm:$0xff] %v17173_v22  ;;  %v15143_v20 = vld [vmem:[#allocation2 + $0xa8] sm:$0xff]   ;;  %v4302_v57 = vrot.slane %v4300_v36, 4  ;;  %v17220_v46 = vld [vmem:[#allocation2 + $0xbc] sm:$0x1] }
 0x1b3   : > { %v17191_v5 = vsel %vm16559_vm14, %v4295_v49, %v4296_v41  ;;  %v12473_v41 = vrot.slane %v4162_v60, 9  ;;  %v4163_v49 = vld [vmem:[#allocation2 + $0xa8] sm:$0xe]  ;;  %v17218_v60 = vld [vmem:[#allocation2 + $0xb8] sm:$0xf] }
 0x1b4   : > { %20149 = vst [vmem:[#allocation56_spill] sm:$0xff] %v17191_v5  ;;  %v17204_v5 = vrot.slane %v3725_v25, 4  ;;  %v20154_v25 = vshll.u32 %v17097_v63, 16 }
 0x1b5   : > { %v17208_v22 = vsel %vm16559_vm14, %v12473_v41, %v4300_v36  ;;  %v17226_v36 = vsel %vm16559_vm14, %v4309_v21, %v4310_v10  ;;  %v17228_v41 = vld [vmem:[#allocation2 + $0xc4] sm:$0xf]  ;;  %v4165_v10 = vld [vmem:[#allocation2 + $0xc0] sm:$0xe] }
 0x1b6   : > { %13605 = vmatmul.mubr.bf16.gmra.mrb[20].mxu0 %v15140_v45  ;;  %v12474_v45 = vrot.slane %v4163_v49, 9  ;;  %20150 = vst [vmem:[#allocation57_spill] sm:$0xff] %v17208_v22  ;;  %20153 = vst [vmem:[#allocation60_spill] sm:$0xff] %v17226_v36  ;;  %v4314_v49 = vrot.slane %v17218_v60, 5  ;;  %v4321_v22 = vrot.slane %v17228_v41, 5 }
 0x1b7   : > { %13608 = vmatprep.mubr.bf16.mxu0 %v15142_v43  ;;  %v17212_v43 = vsel %vm16559_vm14, %v4302_v57, %v4303_v54  ;;  %v17232_v57 = vld [vmem:[#allocation2 + $0xc8] sm:$0x1]  ;;  %v15146_v54 = vld [vmem:[#allocation2 + $0xc0] sm:$0xff]  }
 0x1b8   : > { %20151 = vst [vmem:[#allocation58_spill] sm:$0xff] %v17212_v43  ;;  %v17216_v31 = vsel %vm16559_vm14, %v12474_v45, %v4307_v7  ;;  %v4164_v7 = vld [vmem:[#allocation2 + $0xb4] sm:$0xe]  ;;  %v4317_v45 = vrot.slane %v17220_v46, 5  ;;  %v17238_v43 = vrot.slane %v20154_v25, 5  ;;  %v4324_v3 = vrot.slane %v17232_v57, 5 }
 0x1b9   : > { %20152 = vst [vmem:[#allocation59_spill] sm:$0xff] %v17216_v31  ;;  %v12475_v21 = vrot.slane %v4164_v7, 9  ;;  %v4316_v63 = vrot.slane %v4314_v49, 4  ;;  %v12476_v25 = vrot.slane %v4165_v10, 9  ;;  %v3752_v7 = vshll.u32 %v17177_v27, 16 }
 0x1ba   : > { %v3435_v36 = vld [vmem:[#allocation2 + $0xa8] sm:$0xf]  ;;  %v4323_v9 = vrot.slane %v4321_v22, 4 }
 0x1bb   : > { %v17253_v31 = vsel %vm16559_vm14, %v12475_v21, %v4314_v49  ;;  %v17257_v2 = vsel %vm16559_vm14, %v4316_v63, %v4317_v45  ;;  %v3748_v45 = vrot.slane %v3746_v55, 4  ;;  %v3757_v21 = vshrl.u32 %v3435_v36, 16  ;;  %v20158_v55 = vld [vmem:[#allocation24_spill] sm:$0xff]  ;;  %v20161_v63 = vld [vmem:[#allocation29_spill] sm:$0xff] }
 0x1bc   : > { %v17268_v27 = vsel %vm16559_vm14, %v4323_v9, %v4324_v3  ;;  %v3760_v10 = vshll.u32 %v3435_v36, 16 }
 0x1bd   : > { %20156 = vst [vmem:[#allocation62_spill] sm:$0xff] %v17268_v27  ;;  %v3749_v49 = vor.u32 %v3748_v45, %v17238_v43  ;;  %v3759_v27 = vrot.slane %v3757_v21, 4  ;;  %v20169_v21 = vld [vmem:[#allocation36_spill] sm:$0xff] }
 0x1be   : > { %13609 = vmatmul.mubr.bf16.gmra.mrb[24].mxu0 %v15143_v20  ;;  %v3457_v20 = vsel %vm16131_vm11, %v16866_v1, %v16848_v12  ;;  %v17261_v12 = vsel %vm16559_vm14, %v12476_v25, %v4321_v22  ;;  %v3766_v22 = vshll.u32 %v17183_v34, 16 }
 0x1bf   : > { %13612 = vmatprep.mubr.bf16.mxu0 %v15145_v26  ;;  %v3467_v26 = vsel %vm16131_vm11, %v16868_v52, %v16863_v61  ;;  %20155 = vst [vmem:[#allocation61_spill] sm:$0xff] %v17261_v12  ;;  %v3739_v61 = vor.u32 %v3738_v24, %v17169_v23  ;;  %v3481_v23 = vsel %vm16131_vm11, %v16877_v47, %v16850_v33  ;;  %v20157_v24 = vld [vmem:[#allocation23_spill] sm:$0xff]  ;;  %v15149_v47 = vld [vmem:[#allocation7 + $0x148] sm:$0xff]   ;;  %v20165_v52 = vld [vmem:[#allocation33_spill] sm:$0xff]  ;;  %v3762_v12 = vrot.slane %v3760_v10, 5 }
 0x1c0   : > { %v12437_v1 = vcombine.low %v3457_v20, %v3467_v26  ;;  %v3491_v3 = vsel %vm16131_vm11, %v20157_v24, %v16883_v15  ;;  %v17283_v20 = vrot.slane %v3752_v7, 5  ;;  %v20160_v26 = vld [vmem:[#allocation30_spill] sm:$0xff]  ;;  %v20162_v15 = vld [vmem:[#allocation25_spill] sm:$0xff]  ;;  %v20164_v24 = vld [vmem:[#allocation31_spill] sm:$0xff]  ;;  %v17305_v45 = vrot.slane %v3766_v22, 5 }
 0x1c1   : > { %v17281_v9 = vrot.slane %v3739_v61, 4  ;;  %v3515_v25 = vsel %vm16131_vm11, %v20161_v63, %v20160_v26  ;;  %v12438_v33 = vcombine.low %v3481_v23, %v3491_v3  ;;  %v20163_v61 = vld [vmem:[#allocation32_spill] sm:$0xff]  ;;  %v17303_v23 = vrot.slane %v3749_v49, 4  ;;  %v20166_v26 = vld [vmem:[#allocation26_spill] sm:$0xff]  ;;  %v3438_v10 = vld [vmem:[#allocation2 + $0xb4] sm:$0xf] }
 0x1c2   : > { %v3529_v7 = vsel %vm16131_vm11, %v20163_v61, %v20162_v15  ;;  %v3770_v3 = vshrl.u32 %v17183_v34, 16  ;;  %v20167_v63 = vld [vmem:[#allocation34_spill] sm:$0xff]  ;;  %v15152_v34 = vld [vmem:[#allocation7 + $0x160] sm:$0xff]   ;;  %v3784_v15 = vshll.u32 %v3438_v10, 16  ;;  %v3790_v61 = vshll.u32 %v17218_v60, 16 }
 0x1c6   : > { %13613 = vmatmul.mubr.bf16.gmra.mrb[28].mxu0 %v15146_v54  ;;  %v20159_v54 = vld [vmem:[#allocation28_spill] sm:$0xff] }
 0x1c7   : > { %13632 = vmatprep.mubr.bf16.mxu0 %v12437_v1  ;;  %v3505_v36 = vsel %vm16131_vm11, %v20159_v54, %v20158_v55  ;;  %v3539_v55 = vsel %vm16131_vm11, %v20165_v52, %v20164_v24  ;;  %v15150_v54 = vld [vmem:[#allocation7 + $0x150] sm:$0xff]   ;;  %v3553_v52 = vsel %vm16131_vm11, %v20167_v63, %v20166_v26  ;;  %v20170_v24 = vld [vmem:[#allocation27_spill] sm:$0xff]  ;;  %v20171_v26 = vld [vmem:[#allocation38_spill] sm:$0xff] }
 0x1c8   : > { %v12439_v1 = vcombine.low %v3505_v36, %v3515_v25  ;;  %v3776_v36 = vshll.u32 %v17185_v32, 16  ;;  %v20168_v25 = vld [vmem:[#allocation35_spill] sm:$0xff]  ;;  %v12440_v49 = vcombine.low %v3529_v7, %v3539_v55  ;;  %v3772_v32 = vrot.slane %v3770_v3, 4 }
 0x1c9   : > { %v3577_v63 = vsel %vm16131_vm11, %v20171_v26, %v20170_v24  ;;  %v3794_v55 = vshrl.u32 %v17218_v60, 16  ;;  %v3601_v3 = vsel %vm16131_vm11, %v16999_v30, %v16962_v37  ;;  %v15154_v60 = vld [vmem:[#allocation7 + $0x170] sm:$0xff]   ;;  %v3786_v24 = vrot.slane %v3784_v15, 5  ;;  %v20174_v37 = vld [vmem:[#allocation40_spill] sm:$0xff] }
 0x1ca   : > { %v17326_v7 = vrot.slane %v3776_v36, 5  ;;  %v17339_v26 = vrot.slane %v3790_v61, 5  ;;  %v3635_v30 = vsel %vm16131_vm11, %v17009_v8, %v17005_v6  ;;  %v15155_v6 = vld [vmem:[#allocation7 + $0x178] sm:$0xff]  }
 0x1ce   : > { %13633 = vmatmul.mubr.bf16.vlgmr.msra.gmra.mrb[0].mxu0 %v12438_v33  ;;  %v15151_v33 = vld [vmem:[#allocation7 + $0x158] sm:$0xff]  }
 0x1cf   : > { %13665 = vmatpush3.bf16.msra.mxu0 %v17085_v56  ;;  %13636 = vmatprep.mubr.bf16.mxu0 %v12439_v1  ;;  %v3563_v56 = vsel %vm16131_vm11, %v20169_v21, %v20168_v25  ;;  %v3781_v1 = vshrl.u32 %v3438_v10, 16  ;;  %v20172_v25 = vld [vmem:[#allocation37_spill] sm:$0xff]  ;;  %v20173_v21 = vld [vmem:[#allocation39_spill] sm:$0xff]  ;;  %v15153_v10 = vld [vmem:[#allocation7 + $0x168] sm:$0xff]  }
 0x1d0   : > { %13666 = vmatprep.subr.bf16.mxu0 %v15149_v47  ;;  %v12441_v22 = vcombine.low %v3553_v52, %v3563_v56  ;;  %v3611_v52 = vsel %vm16131_vm11, %v17001_v35, %v16984_v58  ;;  %v3625_v58 = vsel %vm16131_vm11, %v17003_v53, %v20174_v37  ;;  %v3796_v35 = vrot.slane %v3794_v55, 4  ;;  %v3441_v53 = vld [vmem:[#allocation2 + $0xc0] sm:$0xf] }
 0x1d1   : > { %v3783_v36 = vrot.slane %v3781_v1, 4  ;;  %v20176_v1 = vld [vmem:[#allocation43_spill] sm:$0xff]  ;;  %v12444_v61 = vcombine.low %v3625_v58, %v3635_v30  ;;  %v20178_v55 = vld [vmem:[#allocation45_spill] sm:$0xff] }
 0x1d2   : > { %v3659_v15 = vsel %vm16131_vm11, %v17016_v40, %v20176_v1  ;;  %v3755_v1 = vsel %vm16131_vm11, %v17303_v23, %v17283_v20 }
 0x1d3   : > { %13667 = vmatpush3.bf16.msra.mxu0 %v15149_v47  ;;  %v3587_v47 = vsel %vm16131_vm11, %v20173_v21, %v20172_v25  ;;  %v3805_v25 = vshrl.u32 %v3441_v53, 16  ;;  %v3808_v21 = vshll.u32 %v3441_v53, 16  ;;  %v3787_v30 = vor.u32 %v3786_v24, %v3783_v36 }
 0x1d4   : > { %13668 = vmatprep.subr.bf16.mxu0 %v15150_v54  ;;  %v12442_v56 = vcombine.low %v3577_v63, %v3587_v47  ;;  %v3773_v63 = vor.u32 %v3772_v32, %v17305_v45  ;;  %v20177_v47 = vld [vmem:[#allocation42_spill] sm:$0xff] }
 0x1d5   : > { %v3673_v40 = vsel %vm16131_vm11, %v20178_v55, %v20177_v47  ;;  %v15329_v47 = vld [vmem:[#allocation2 + $0x14] sm:$0x1] }
 0x1d6   : > { %13637 = vmatmul.mubr.bf16.gmra.mrb[4].mxu0 %v12440_v49  ;;  %v3763_v49 = vor.u32 %v3762_v12, %v3759_v27  ;;  %v3800_v12 = vshll.u32 %v17220_v46, 16  ;;  %v20175_v27 = vld [vmem:[#allocation41_spill] sm:$0xff]  ;;  %v3774_v46 = vrot.slane %v3773_v63, 4  ;;  %v4150_v63 = vld [vmem:[#allocation2 + $0xc] sm:$0xe] }
 0x1d7   : > { %13640 = vmatprep.mubr.bf16.mxu0 %v12441_v22  ;;  %13669 = vmatpush3.bf16.msra.mxu0 %v15150_v54  ;;  %v12443_v22 = vcombine.low %v3601_v3, %v3611_v52  ;;  %v20179_v3 = vld [vmem:[#allocation44_spill] sm:$0xff]  ;;  %v3814_v52 = vshll.u32 %v17228_v41, 16 }
 0x1d8   : > { %13670 = vmatprep.subr.bf16.mxu0 %v15151_v33  ;;  %v17337_v54 = vrot.slane %v3763_v49, 4  ;;  %v3683_v32 = vsel %vm16131_vm11, %v17028_v18, %v20179_v3  ;;  %v3797_v18 = vor.u32 %v3796_v35, %v17339_v26  ;;  %v3745_v35 = vsel %vm16131_vm11, %v17281_v9, %v17238_v43  ;;  %v15328_v9 = vld [vmem:[#allocation2 + $0x10] sm:$0xf]  ;;  %v15330_v3 = vld [vmem:[#allocation2 + $0x1c] sm:$0xf] }
 0x1d9   : > { %v12446_v58 = vcombine.low %v3673_v40, %v3683_v32  ;;  %v3816_v36 = vrot.slane %v3814_v52, 5  ;;  %v12449_v53 = vcombine.low %v3745_v35, %v3755_v1  ;;  %v3824_v43 = vshll.u32 %v17232_v57, 16 }
 0x1da   : > { %v4219_v57 = vrot.slane %v15329_v47, 5  ;;  %v4223_v32 = vrot.slane %v15330_v3, 5  ;;  %v20186_v35 = vcombine.low %v17075_v51, %v17091_v48  ;;  %v20188_v1 = vcombine.low %v17104_v28, %v17117_v16  ;;  %v15163_v51 = vld [vmem:[#allocation7 + $0x1b8] sm:$0xff]  }
 0x1db   : > { %13671 = vmatpush3.bf16.msra.mxu0 %v15151_v33  ;;  %v3649_v33 = vsel %vm16131_vm11, %v17011_v59, %v20175_v27  ;;  %v17359_v59 = vld [vmem:[#allocation7 + $0x180] sm:$0xff]   ;;  %v3807_v27 = vrot.slane %v3805_v25, 4  ;;  %v12461_v25 = vrot.slane %v4150_v63, 9  ;;  %v20189_v48 = vcombine.low %v17123_v38, %v17136_v13  ;;  %v20193_v28 = vld [vmem:[#allocation50_spill] sm:$0xff]  ;;  %v20200_v38 = vld [vmem:[#allocation56_spill] sm:$0xff] }
 0x1dc   : > { %13672 = vmatprep.subr.bf16.mxu0 %v15152_v34  ;;  %v12445_v8 = vcombine.low %v3649_v33, %v3659_v15  ;;  %v3810_v33 = vrot.slane %v3808_v21, 5  ;;  %v20206_v63 = vld [vmem:[#allocation60_spill] sm:$0xff]  ;;  %v15175_v3 = vld [vmem:[#allocation7 + $0x1d8] sm:$0xff]  }
 0x1de   : > { %13641 = vmatmul.mubr.bf16.gmra.mrb[8].mxu0 %v12442_v56  ;;  %v3818_v56 = vshrl.u32 %v17228_v41, 16  ;;  %v3788_v41 = vrot.slane %v3787_v30, 4  ;;  %v15331_v30 = vld [vmem:[#allocation2 + $0x20] sm:$0x1] }
 0x1df   : > { %13644 = vmatprep.mubr.bf16.mxu0 %v12443_v22  ;;  %13673 = vmatpush3.bf16.msra.mxu0 %v15152_v34  ;;  %v3802_v34 = vrot.slane %v3800_v12, 5  ;;  %v20181_v22 = vld [vmem:[#allocation47_spill] sm:$0xff]  ;;  %v3798_v12 = vrot.slane %v3797_v18, 4  ;;  %v4226_v18 = vrot.slane %v15331_v30, 5 }
 0x1e0   : > { %13674 = vmatprep.subr.bf16.mxu0 %v15153_v10  ;;  %v3707_v37 = vsel %vm16131_vm11, %v17055_v4, %v20181_v22  ;;  %v3721_v4 = vsel %vm16131_vm11, %v17200_v17, %v17040_v11  ;;  %v3820_v24 = vrot.slane %v3818_v56, 4  ;;  %v3769_v11 = vsel %vm16131_vm11, %v17337_v54, %v17305_v45  ;;  %v15171_v30 = vld [vmem:[#allocation2 + $0x54] sm:$0xff]  }
 0x1e1   : > { %v3811_v17 = vor.u32 %v3810_v33, %v3807_v27  ;;  %v3793_v20 = vsel %vm16131_vm11, %v3788_v41, %v17339_v26  ;;  %v3803_v23 = vsel %vm16131_vm11, %v3798_v12, %v3802_v34  ;;  %v15157_v27 = vld [vmem:[#allocation7 + $0x188] sm:$0xff]   ;;  %v20183_v33 = vcombine.low %v17052_v0, %v17063_v39 }
 0x1e2   : > { %v12451_v54 = vcombine.low %v3793_v20, %v3803_v23  ;;  %v15161_v0 = vld [vmem:[#allocation7 + $0x1a8] sm:$0xff]   ;;  %v20187_v39 = vcombine.low %v17095_v19, %v17108_v50  ;;  %v15166_v19 = vld [vmem:[#allocation7 + $0x1c0] sm:$0xff]  }
 0x1e3   : > { %13675 = vmatpush3.bf16.msra.mxu0 %v15153_v10  ;;  %v20180_v10 = vld [vmem:[#allocation46_spill] sm:$0xff]  ;;  %v20194_v50 = vld [vmem:[#allocation52_spill] sm:$0xff]  ;;  %v20205_v23 = vld [vmem:[#allocation59_spill] sm:$0xff] }
 0x1e4   : > { %13676 = vmatprep.subr.bf16.mxu0 %v15154_v60  ;;  %v3697_v49 = vsel %vm16131_vm11, %v20180_v10, %v17023_v14  ;;  %v3731_v14 = vsel %vm16131_vm11, %v17204_v5, %v17129_v29  ;;  %v3779_v29 = vsel %vm16131_vm11, %v3774_v46, %v17326_v7  ;;  %v3821_v5 = vor.u32 %v3820_v24, %v3816_v36  ;;  %v511_v46 = vld [vmem:[#allocation2 + $0xcc] sm:$0x1]  ;;  %v4151_v10 = vld [vmem:[#allocation2 + $0x18] sm:$0xe] }
 0x1e5   : > { %v12448_v15 = vcombine.low %v3721_v4, %v3731_v14  ;;  %v12450_v45 = vcombine.low %v3769_v11, %v3779_v29  ;;  %v3826_v7 = vrot.slane %v3824_v43, 5  ;;  %v512_v40 = vsel %vm15853_vm2, 0, %v511_v46  ;;  %v15158_v4 = vld [vmem:[#allocation7 + $0x190] sm:$0xff]   ;;  %v15159_v14 = vld [vmem:[#allocation7 + $0x198] sm:$0xff]   ;;  %v15164_v46 = vld [vmem:[#allocation2 + $0x18] sm:$0xff]  }
 0x1e6   : > { %13645 = vmatmul.mubr.bf16.gmra.mrb[12].mxu0 %v12444_v61  ;;  %v4216_v61 = vrot.slane %v15328_v9, 5  ;;  %513 = vst [vmem:[#allocation2 + $0xcc] sm:$0x1] %v512_v40  ;;  %v20195_v16 = vcombine.low %v20193_v28, %v20194_v50  ;;  %v20196_v29 = vld [vmem:[#allocation53_spill] sm:$0xff]  ;;  %v20199_v43 = vld [vmem:[#allocation54_spill] sm:$0xff]  ;;  %v15167_v40 = vld [vmem:[#allocation2 + $0x30] sm:$0xff]  }
 0x1e7   : > { %13648 = vmatprep.mubr.bf16.mxu0 %v12445_v8  ;;  %13677 = vmatpush3.bf16.msra.mxu0 %v15154_v60  ;;  %v12447_v60 = vcombine.low %v3697_v49, %v3707_v37  ;;  %v3822_v8 = vrot.slane %v3821_v5, 4  ;;  %v12462_v37 = vrot.slane %v4151_v10, 9  ;;  %v20201_v13 = vcombine.low %v20199_v43, %v20200_v38  ;;  %v20202_v9 = vld [vmem:[#allocation57_spill] sm:$0xff]  ;;  %v15187_v28 = vld [vmem:[#allocation7 + $0x1f8] sm:$0xff]  }
 0x1e8   : > { %13678 = vmatprep.subr.bf16.mxu0 %v15155_v6  ;;  %v4218_v21 = vrot.slane %v4216_v61, 4  ;;  %v4217_v52 = vsel %vm16559_vm14, %v12461_v25, %v4216_v61  ;;  %v20203_v61 = vld [vmem:[#allocation58_spill] sm:$0xff]  ;;  %v20210_v25 = vld [vmem:[#allocation61_spill] sm:$0xff] }
 0x1e9   : > { %v3827_v34 = vsel %vm16131_vm11, %v3822_v8, %v3826_v7  ;;  %v20204_v20 = vcombine.low %v20202_v9, %v20203_v61  ;;  %v17507_v38 = vld [vmem:[#allocation2 + $0x88] sm:$0xf] }
 0x1ea   : > { %v4220_v56 = vsel %vm16559_vm14, %v4218_v21, %v4219_v57  ;;  %v20211_v21 = vld [vmem:[#allocation62_spill] sm:$0xff] }
 0x1eb   : > { %13679 = vmatpush3.bf16.msra.mxu0 %v15155_v6  ;;  %v3812_v6 = vrot.slane %v3811_v17, 4  ;;  %v12477_v22 = vcombine.low %v4217_v52, %v4220_v56  ;;  %v20197_v17 = vld [vmem:[#allocation55_spill] sm:$0xff]  ;;  %v20212_v47 = vcombine.low %v20210_v25, %v20211_v21  ;;  %v15165_v57 = vld [vmem:[#allocation2 + $0x24] sm:$0xff]   ;;  %v17471_v52 = vld [vmem:[#allocation2 + $0x5c] sm:$0x1] }
 0x1ec   : > { %13712 = vmatprep.subr.bf16.mxu0 %v17359_v59  ;;  %v20198_v5 = vcombine.low %v20196_v29, %v20197_v17  ;;  %v5794_v56 = vld [vmem:[#allocation2 + $0x54] sm:$0xe]  ;;  %v17505_v17 = vld [vmem:[#allocation2 + $0x28] sm:$0xf] }
 0x1ed   : > { %v3817_v26 = vsel %vm16131_vm11, %v3812_v6, %v3816_v36  ;;  %v20184_v36 = vld [vmem:[#allocation48_spill] sm:$0xff]  ;;  %v20208_v6 = vcombine.low %v17253_v31, %v17257_v2  ;;  %v15170_v31 = vld [vmem:[#allocation2 + $0x48] sm:$0xff]  }
 0x1ee   : > { %13649 = vmatmul.mubr.bf16.gmra.mrb[16].mxu0 %v12446_v58  ;;  %v12452_v49 = vcombine.low %v3817_v26, %v3827_v34  ;;  %v4225_v58 = vrot.slane %v4223_v32, 4  ;;  %v20185_v24 = vcombine.low %v17071_v44, %v20184_v36  ;;  %v15162_v44 = vld [vmem:[#allocation7 + $0x1b0] sm:$0xff]   ;;  %v15169_v26 = vld [vmem:[#allocation7 + $0x1c8] sm:$0xff]  }
 0x1ef   : > { %13652 = vmatprep.mubr.bf16.mxu0 %v12447_v60  ;;  %v4224_v60 = vsel %vm16559_vm14, %v12462_v37, %v4223_v32  ;;  %v15172_v34 = vld [vmem:[#allocation7 + $0x1d0] sm:$0xff]   ;;  %v17469_v32 = vld [vmem:[#allocation2 + $0x58] sm:$0xf]  ;;  %v12554_v37 = vrot.slane %v5794_v56, 9  ;;  %v5044_v56 = vld [vmem:[#allocation2 + $0x3c] sm:$0xf] }
 0x1f0   : > { %v4227_v41 = vsel %vm16559_vm14, %v4225_v58, %v4226_v18  ;;  %v15168_v2 = vld [vmem:[#allocation2 + $0x3c] sm:$0xff]   ;;  %v5890_v10 = vrot.slane %v17469_v32, 5 }
 0x1f1   : > { %v12478_v12 = vcombine.low %v4224_v60, %v4227_v41  ;;  %v15173_v60 = vld [vmem:[#allocation2 + $0x60] sm:$0xff]  }
 0x1f2   : > { %v5892_v58 = vrot.slane %v5890_v10, 4  ;;  %v17477_v18 = vsel %vm16559_vm14, %v12554_v37, %v5890_v10 }
 0x1f3   : > { %20213 = vst [vmem:[#allocation23_spill] sm:$0xff] %v17477_v18  ;;  %v15186_v18 = vld [vmem:[#allocation2 + $0xcc] sm:$0xff]  }
 0x1f6   : > { %13653 = vmatmul.mubr.bf16.gmra.mrb[20].mxu0 %v12448_v15  ;;  %v20190_v15 = vld [vmem:[#allocation49_spill] sm:$0xff] }
 0x1f7   : > { %13656 = vmatprep.mubr.bf16.mxu0 %v12449_v53  ;;  %v20191_v53 = vld [vmem:[#allocation51_spill] sm:$0xff] }
 0x1f8   : > { %v20192_v11 = vcombine.low %v20190_v15, %v20191_v53 }
 0x1fe   : > { %13657 = vmatmul.mubr.bf16.gmra.mrb[24].mxu0 %v12450_v45  ;;  %v20207_v45 = vcombine.low %v20205_v23, %v20206_v63  ;;  %v5918_v23 = vrot.slane %v17507_v38, 5 }
 0x1ff   : > { %13660 = vmatprep.mubr.bf16.mxu0 %v12451_v54  ;;  %v567_v54 = vld [vmem:[#allocation2 + $0xd4] sm:$0x1] }
 0x200   : > { %v568_v7 = vsel %vm15858_vm4, 0, %v567_v54  ;;  %v17514_v54 = vld [vmem:[#allocation7 + $0x200] sm:$0xff]  }
 0x201   : > { %569 = vst [vmem:[#allocation2 + $0xd4] sm:$0x1] %v568_v7  ;;  %v15177_v7 = vld [vmem:[#allocation2 + $0x84] sm:$0xff]  }
 0x206   : > { %13661 = vmatmul.mubr.bf16.gmra.mrb[28].mxu0 %v12452_v49  ;;  %v5893_v49 = vrot.slane %v17471_v52, 5 }
 0x207   : > { %13680 = vmatprep.mubr.bf16.mxu0 %v12477_v22  ;;  %v15178_v22 = vld [vmem:[#allocation7 + $0x1e0] sm:$0xff]  }
 0x208   : > { %v17481_v41 = vsel %vm16559_vm14, %v5892_v58, %v5893_v49  ;;  %v5121_v58 = vshrl.u32 %v17505_v17, 16 }
 0x209   : > { %20214 = vst [vmem:[#allocation24_spill] sm:$0xff] %v17481_v41  ;;  %v5217_v41 = vshrl.u32 %v17469_v32, 16 }
 0x20e   : > { %13681 = vmatmul.mubr.bf16.vlgmr.msra.gmra.mrb[0].mxu0 %v12478_v12  ;;  %v15181_v12 = vld [vmem:[#allocation7 + $0x1e8] sm:$0xff]  }
 0x20f   : > { %13713 = vmatpush3.bf16.msra.mxu0 %v17359_v59  ;;  %13684 = vmatprep.mubr.bf16.mxu0 %v20183_v33  ;;  %v15160_v59 = vld [vmem:[#allocation7 + $0x1a0] sm:$0xff]  }
 0x210   : > { %13714 = vmatprep.subr.bf16.mxu0 %v15157_v27  ;;  %v17485_v33 = vld [vmem:[#allocation2 + $0x70] sm:$0xf] }
 0x211   : > { %v5904_v36 = vrot.slane %v17485_v33, 5 }
 0x213   : > { %13715 = vmatpush3.bf16.msra.mxu0 %v15157_v27  ;;  %v15183_v27 = vld [vmem:[#allocation2 + $0xb4] sm:$0xff]  }
 0x214   : > { %13716 = vmatprep.subr.bf16.mxu0 %v15158_v4 }
 0x216   : > { %13685 = vmatmul.mubr.bf16.gmra.mrb[4].mxu0 %v20185_v24 }
 0x217   : > { %13688 = vmatprep.mubr.bf16.mxu0 %v20186_v35  ;;  %13717 = vmatpush3.bf16.msra.mxu0 %v15158_v4  ;;  %v17487_v4 = vld [vmem:[#allocation2 + $0x74] sm:$0x1]  ;;  %v15184_v35 = vld [vmem:[#allocation7 + $0x1f0] sm:$0xff]  }
 0x218   : > { %13718 = vmatprep.subr.bf16.mxu0 %v15159_v14  ;;  %v5907_v24 = vrot.slane %v17487_v4, 5 }
 0x21b   : > { %13719 = vmatpush3.bf16.msra.mxu0 %v15159_v14  ;;  %v5796_v14 = vld [vmem:[#allocation2 + $0x6c] sm:$0xe] }
 0x21c   : > { %13720 = vmatprep.subr.bf16.mxu0 %v15160_v59 }
 0x21e   : > { %13689 = vmatmul.mubr.bf16.gmra.mrb[8].mxu0 %v20187_v39  ;;  %v5906_v39 = vrot.slane %v5904_v36, 4 }
 0x21f   : > { %13692 = vmatprep.mubr.bf16.mxu0 %v20188_v1  ;;  %13721 = vmatpush3.bf16.msra.mxu0 %v15160_v59  ;;  %v5035_v59 = vld [vmem:[#allocation2 + $0x18] sm:$0xf]  ;;  %v15174_v1 = vld [vmem:[#allocation2 + $0x6c] sm:$0xff]  }
 0x220   : > { %13722 = vmatprep.subr.bf16.mxu0 %v15161_v0  ;;  %v5084_v15 = vshrl.u32 %v5035_v59, 16  ;;  %v5087_v53 = vshll.u32 %v5035_v59, 16 }
 0x222   : > { %v5086_v9 = vrot.slane %v5084_v15, 4  ;;  %v5089_v61 = vrot.slane %v5087_v53, 5 }
 0x223   : > { %13723 = vmatpush3.bf16.msra.mxu0 %v15161_v0  ;;  %v12556_v0 = vrot.slane %v5796_v14, 9 }
 0x224   : > { %13724 = vmatprep.subr.bf16.mxu0 %v15162_v44 }
 0x226   : > { %13693 = vmatmul.mubr.bf16.gmra.mrb[12].mxu0 %v20189_v48  ;;  %v15176_v48 = vld [vmem:[#allocation2 + $0x78] sm:$0xff]  }
 0x227   : > { %13696 = vmatprep.mubr.bf16.mxu0 %v20192_v11  ;;  %13725 = vmatpush3.bf16.msra.mxu0 %v15162_v44  ;;  %v17491_v44 = vld [vmem:[#allocation2 + $0x1c] sm:$0xf]  ;;  %v5038_v11 = vld [vmem:[#allocation2 + $0x24] sm:$0xf] }
 0x228   : > { %13726 = vmatprep.subr.bf16.mxu0 %v15163_v51  ;;  %v5097_v29 = vshrl.u32 %v17491_v44, 16  ;;  %v5111_v43 = vshll.u32 %v5038_v11, 16 }
 0x22a   : > { %v5099_v21 = vrot.slane %v5097_v29, 4  ;;  %v5123_v29 = vrot.slane %v5121_v58, 4 }
 0x22b   : > { %13727 = vmatpush3.bf16.msra.mxu0 %v15163_v51  ;;  %v17495_v51 = vsel %vm16559_vm14, %v12556_v0, %v5904_v36  ;;  %v5156_v0 = vshrl.u32 %v5044_v56, 16 }
 0x22c   : > { %13760 = vmatprep.subr.bf16.mxu0 %v15166_v19  ;;  %20215 = vst [vmem:[#allocation28_spill] sm:$0xff] %v17495_v51  ;;  %v5213_v51 = vshll.u32 %v17469_v32, 16 }
 0x22e   : > { %13697 = vmatmul.mubr.bf16.gmra.mrb[16].mxu0 %v20195_v16  ;;  %v5093_v16 = vshll.u32 %v17491_v44, 16 }
 0x22f   : > { %13700 = vmatprep.mubr.bf16.mxu0 %v20198_v5  ;;  %v5108_v5 = vshrl.u32 %v5038_v11, 16  ;;  %v5800_v11 = vld [vmem:[#allocation2 + $0x9c] sm:$0xe] }
 0x230   : > { %v17518_v25 = vrot.slane %v5093_v16, 5 }
 0x236   : > { %13701 = vmatmul.mubr.bf16.gmra.mrb[20].mxu0 %v20201_v13  ;;  %v17509_v13 = vld [vmem:[#allocation2 + $0x8c] sm:$0x1] }
 0x237   : > { %13704 = vmatprep.mubr.bf16.mxu0 %v20204_v20  ;;  %v5798_v20 = vld [vmem:[#allocation2 + $0x84] sm:$0xe]  ;;  %v5921_v63 = vrot.slane %v17509_v13, 5 }
 0x23e   : > { %13705 = vmatmul.mubr.bf16.gmra.mrb[24].mxu0 %v20207_v45  ;;  %v5117_v45 = vshll.u32 %v17505_v17, 16 }
 0x23f   : > { %13708 = vmatprep.mubr.bf16.mxu0 %v20208_v6  ;;  %v12558_v6 = vrot.slane %v5798_v20, 9 }
 0x240   : > { %v17533_v37 = vrot.slane %v5117_v45, 5  ;;  %v15180_v45 = vld [vmem:[#allocation2 + $0x9c] sm:$0xff]  }
 0x246   : > { %13709 = vmatmul.mubr.bf16.gmra.mrb[28].mxu0 %v20212_v47  ;;  %v5920_v47 = vrot.slane %v5918_v23, 4 }
 0x247   : > { %13728 = vmatprep.mubr.bf16.mxu0 %v15164_v46  ;;  %v17516_v46 = vld [vmem:[#allocation2 + $0x20] sm:$0x1] }
 0x248   : > { %v17528_v10 = vsel %vm16559_vm14, %v5920_v47, %v5921_v63  ;;  %v5103_v49 = vshll.u32 %v17516_v46, 16 }
 0x249   : > { %20218 = vst [vmem:[#allocation25_spill] sm:$0xff] %v17528_v10 }
 0x24e   : > { %13729 = vmatmul.mubr.bf16.vlgmr.msra.gmra.mrb[0].mxu0 %v15165_v57  ;;  %v5110_v57 = vrot.slane %v5108_v5, 4 }
 0x24f   : > { %13761 = vmatpush3.bf16.msra.mxu0 %v15166_v19  ;;  %13732 = vmatprep.mubr.bf16.mxu0 %v15167_v40  ;;  %v17499_v19 = vsel %vm16559_vm14, %v5906_v39, %v5907_v24  ;;  %v5113_v40 = vrot.slane %v5111_v43, 5  ;;  %v17541_v24 = vld [vmem:[#allocation2 + $0x40] sm:$0xf]  ;;  %v5159_v39 = vshll.u32 %v5044_v56, 16  ;;  %v5047_v56 = vld [vmem:[#allocation2 + $0x48] sm:$0xf] }
 0x250   : > { %13762 = vmatprep.subr.bf16.mxu0 %v15169_v26  ;;  %20216 = vst [vmem:[#allocation30_spill] sm:$0xff] %v17499_v19  ;;  %v5165_v5 = vshll.u32 %v17541_v24, 16  ;;  %v5169_v43 = vshrl.u32 %v17541_v24, 16 }
 0x251   : > { %v5114_v59 = vor.u32 %v5113_v40, %v5110_v57  ;;  %v5161_v47 = vrot.slane %v5159_v39, 5  ;;  %v15182_v40 = vld [vmem:[#allocation2 + $0xa8] sm:$0xff]  }
 0x253   : > { %13763 = vmatpush3.bf16.msra.mxu0 %v15169_v26  ;;  %v5041_v26 = vld [vmem:[#allocation2 + $0x30] sm:$0xf] }
 0x254   : > { %13764 = vmatprep.subr.bf16.mxu0 %v15172_v34 }
 0x256   : > { %13733 = vmatmul.mubr.bf16.gmra.mrb[4].mxu0 %v15168_v2  ;;  %v17524_v2 = vsel %vm16559_vm14, %v12558_v6, %v5918_v23  ;;  %v17557_v6 = vld [vmem:[#allocation2 + $0x38] sm:$0x1] }
 0x257   : > { %13736 = vmatprep.mubr.bf16.mxu0 %v15170_v31  ;;  %13765 = vmatpush3.bf16.msra.mxu0 %v15172_v34  ;;  %v17520_v34 = vld [vmem:[#allocation2 + $0x34] sm:$0xf]  ;;  %20217 = vst [vmem:[#allocation29_spill] sm:$0xff] %v17524_v2  ;;  %v5151_v39 = vshll.u32 %v17557_v6, 16 }
 0x258   : > { %13766 = vmatprep.subr.bf16.mxu0 %v15175_v3  ;;  %v15179_v31 = vld [vmem:[#allocation2 + $0x90] sm:$0xff]   ;;  %v5141_v14 = vshll.u32 %v17520_v34, 16  ;;  %v5145_v36 = vshrl.u32 %v17520_v34, 16 }
 0x25a   : > { %v17555_v23 = vrot.slane %v5141_v14, 5  ;;  %v5171_v14 = vrot.slane %v5169_v43, 4  ;;  %v17584_v43 = vld [vmem:[#allocation2 + $0xbc] sm:$0x1] }
 0x25b   : > { %13767 = vmatpush3.bf16.msra.mxu0 %v15175_v3  ;;  %v5090_v3 = vor.u32 %v5089_v61, %v5086_v9  ;;  %v12560_v9 = vrot.slane %v5800_v11, 9 }
 0x25c   : > { %13768 = vmatprep.subr.bf16.mxu0 %v15178_v22 }
 0x25d   : > { %v17548_v15 = vrot.slane %v5090_v3, 4  ;;  %v17563_v3 = vrot.slane %v5114_v59, 4 }
 0x25e   : > { %13737 = vmatmul.mubr.bf16.gmra.mrb[8].mxu0 %v15171_v30  ;;  %v5050_v30 = vld [vmem:[#allocation2 + $0x54] sm:$0xf] }
 0x25f   : > { %13740 = vmatprep.mubr.bf16.mxu0 %v15173_v60  ;;  %13769 = vmatpush3.bf16.msra.mxu0 %v15178_v22  ;;  %v17531_v22 = vld [vmem:[#allocation2 + $0x2c] sm:$0x1]  ;;  %v5132_v60 = vshrl.u32 %v5041_v26, 16  ;;  %v5207_v19 = vshll.u32 %v5050_v30, 16 }
 0x260   : > { %13770 = vmatprep.subr.bf16.mxu0 %v15181_v12  ;;  %v5127_v53 = vshll.u32 %v17531_v22, 16 }
 0x261   : > { %v5134_v61 = vrot.slane %v5132_v60, 4  ;;  %v17569_v60 = vld [vmem:[#allocation2 + $0x44] sm:$0x1] }
 0x262   : > { %20221 = vst [vmem:[#allocation33_spill] sm:$0xff] %v17569_v60 }
 0x263   : > { %13771 = vmatpush3.bf16.msra.mxu0 %v15181_v12  ;;  %v5135_v12 = vshll.u32 %v5041_v26, 16 }
 0x264   : > { %13772 = vmatprep.subr.bf16.mxu0 %v15184_v35 }
 0x265   : > { %v5137_v20 = vrot.slane %v5135_v12, 5  ;;  %v17571_v12 = vrot.slane %v5165_v5, 5  ;;  %v5183_v5 = vshll.u32 %v5047_v56, 16 }
 0x266   : > { %13741 = vmatmul.mubr.bf16.gmra.mrb[12].mxu0 %v15174_v1  ;;  %v17544_v1 = vld [vmem:[#allocation2 + $0xa0] sm:$0xf] }
 0x267   : > { %13744 = vmatprep.mubr.bf16.mxu0 %v15176_v48  ;;  %13773 = vmatpush3.bf16.msra.mxu0 %v15184_v35  ;;  %v5100_v35 = vor.u32 %v5099_v21, %v17518_v25  ;;  %v17546_v48 = vld [vmem:[#allocation2 + $0xa4] sm:$0x1]  ;;  %v5158_v21 = vrot.slane %v5156_v0, 4  ;;  %v5138_v59 = vor.u32 %v5137_v20, %v5134_v61  ;;  %v5949_v20 = vrot.slane %v17584_v43, 5 }
 0x268   : > { %13774 = vmatprep.subr.bf16.mxu0 %v15187_v28  ;;  %v5935_v16 = vrot.slane %v17546_v48, 5  ;;  %v17601_v0 = vrot.slane %v5151_v39, 5  ;;  %v17621_v39 = vld [vmem:[#allocation2 + $0x50] sm:$0x1] }
 0x269   : > { %v5101_v26 = vrot.slane %v5100_v35, 4  ;;  %v5124_v35 = vor.u32 %v5123_v29, %v17533_v37  ;;  %20225 = vst [vmem:[#allocation36_spill] sm:$0xff] %v17621_v39 }
 0x26b   : > { %13775 = vmatpush3.bf16.msra.mxu0 %v15187_v28  ;;  %v5932_v28 = vrot.slane %v17544_v1, 5 }
 0x26c   : > { %13808 = vmatprep.subr.bf16.mxu0 %v17514_v54 }
 0x26d   : > { %v5934_v63 = vrot.slane %v5932_v28, 4  ;;  %v17561_v57 = vsel %vm16559_vm14, %v12560_v9, %v5932_v28  ;;  %v5162_v28 = vor.u32 %v5161_v47, %v5158_v21  ;;  %v17582_v9 = vld [vmem:[#allocation2 + $0xb8] sm:$0xf]  ;;  %v5172_v21 = vor.u32 %v5171_v14, %v17571_v12 }
 0x26e   : > { %13745 = vmatmul.mubr.bf16.gmra.mrb[16].mxu0 %v15177_v7  ;;  %v5147_v7 = vrot.slane %v5145_v36, 4  ;;  %20219 = vst [vmem:[#allocation32_spill] sm:$0xff] %v17561_v57  ;;  %v17573_v36 = vld [vmem:[#allocation2 + $0x4c] sm:$0xf]  ;;  %v5946_v61 = vrot.slane %v17582_v9, 5  ;;  %v5185_v57 = vrot.slane %v5183_v5, 5 }
 0x26f   : > { %13748 = vmatprep.mubr.bf16.mxu0 %v15179_v31  ;;  %v5105_v31 = vrot.slane %v5103_v49, 5  ;;  %v17567_v58 = vsel %vm16559_vm14, %v5934_v63, %v5935_v16  ;;  %20222 = vst [vmem:[#allocation26_spill] sm:$0xff] %v17573_v36  ;;  %v17578_v49 = vrot.slane %v5127_v53, 5  ;;  %v5180_v16 = vshrl.u32 %v5047_v56, 16  ;;  %v5802_v53 = vld [vmem:[#allocation2 + $0xb4] sm:$0xe] }
 0x270   : > { %20220 = vst [vmem:[#allocation31_spill] sm:$0xff] %v17567_v58  ;;  %v5148_v11 = vor.u32 %v5147_v7, %v17555_v23  ;;  %v5175_v63 = vshll.u32 %v17569_v60, 16  ;;  %v5189_v29 = vshll.u32 %v17573_v36, 16  ;;  %v12562_v47 = vrot.slane %v5802_v53, 9  ;;  %v17630_v53 = vld [vmem:[#allocation2 + $0xc4] sm:$0xf] }
 0x271   : > { %v5106_v7 = vsel %vm16131_vm11, %v5101_v26, %v5105_v31  ;;  %v17599_v56 = vrot.slane %v5138_v59, 4  ;;  %v5948_v50 = vrot.slane %v5946_v61, 4  ;;  %v5182_v58 = vrot.slane %v5180_v16, 4 }
 0x272   : > { %v17603_v8 = vrot.slane %v5148_v11, 4  ;;  %v17609_v26 = vrot.slane %v5162_v28, 4  ;;  %v17611_v31 = vrot.slane %v5175_v63, 5  ;;  %v17613_v14 = vrot.slane %v5189_v29, 5  ;;  %v5053_v29 = vld [vmem:[#allocation2 + $0x60] sm:$0xf] }
 0x273   : > { %v17619_v59 = vrot.slane %v5172_v21, 4  ;;  %v5193_v11 = vshrl.u32 %v17573_v36, 16  ;;  %v5204_v16 = vshrl.u32 %v5050_v30, 16  ;;  %v5186_v21 = vor.u32 %v5185_v57, %v5182_v58 }
 0x274   : > { %v5199_v63 = vshll.u32 %v17621_v39, 16  ;;  %v5228_v39 = vshrl.u32 %v5053_v29, 16  ;;  %v5231_v60 = vshll.u32 %v5053_v29, 16 }
 0x275   : > { %v5195_v2 = vrot.slane %v5193_v11, 4  ;;  %v5206_v36 = vrot.slane %v5204_v16, 4 }
 0x276   : > { %13749 = vmatmul.mubr.bf16.gmra.mrb[20].mxu0 %v15180_v45  ;;  %v5096_v45 = vsel %vm16131_vm11, %v17548_v15, %v17518_v25  ;;  %v17607_v25 = vsel %vm16559_vm14, %v12562_v47, %v5946_v61  ;;  %v15185_v15 = vld [vmem:[#allocation2 + $0xc0] sm:$0xff]   ;;  %v17634_v61 = vld [vmem:[#allocation2 + $0xd0] sm:$0xf]  ;;  %v5953_v47 = vrot.slane %v17630_v53, 5 }
 0x277   : > { %13752 = vmatprep.mubr.bf16.mxu0 %v15182_v40  ;;  %v17597_v40 = vrot.slane %v5124_v35, 4  ;;  %20223 = vst [vmem:[#allocation34_spill] sm:$0xff] %v17607_v25  ;;  %v17617_v35 = vsel %vm16559_vm14, %v5948_v50, %v5949_v20  ;;  %v12525_v28 = vcombine.low %v5096_v45, %v5106_v7  ;;  %v17632_v50 = vld [vmem:[#allocation2 + $0xc8] sm:$0x1]  ;;  %v17640_v45 = vld [vmem:[#allocation2 + $0xd4] sm:$0x1]  ;;  %v5196_v29 = vor.u32 %v5195_v2, %v17613_v14 }
 0x278   : > { %20224 = vst [vmem:[#allocation35_spill] sm:$0xff] %v17617_v35  ;;  %v5803_v7 = vld [vmem:[#allocation2 + $0xc0] sm:$0xe]  ;;  %v5956_v5 = vrot.slane %v17632_v50, 5  ;;  %v5804_v25 = vld [vmem:[#allocation2 + $0xcc] sm:$0xe]  ;;  %v5154_v2 = vsel %vm16131_vm11, %v17603_v8, %v17601_v0 }
 0x279   : > { %v12563_v35 = vrot.slane %v5803_v7, 9  ;;  %v5963_v10 = vrot.slane %v17640_v45, 5  ;;  %v17647_v20 = vld [vmem:[#allocation2 + $0x64] sm:$0xf]  ;;  %v5955_v57 = vrot.slane %v5953_v47, 4  ;;  %v12564_v58 = vrot.slane %v5804_v25, 9 }
 0x27a   : > { %20226 = vst [vmem:[#allocation27_spill] sm:$0xff] %v17647_v20  ;;  %v5237_v25 = vshll.u32 %v17647_v20, 16  ;;  %v5241_v32 = vshrl.u32 %v17647_v20, 16  ;;  %v17680_v20 = vrot.slane %v5213_v51, 5  ;;  %v5056_v51 = vld [vmem:[#allocation2 + $0x6c] sm:$0xf] }
 0x27b   : > { %v17657_v11 = vsel %vm16559_vm14, %v5955_v57, %v5956_v5  ;;  %v5209_v5 = vrot.slane %v5207_v19, 5  ;;  %v5168_v19 = vsel %vm16131_vm11, %v17609_v26, %v17571_v12  ;;  %v5201_v12 = vrot.slane %v5199_v63, 5  ;;  %v17701_v57 = vld [vmem:[#allocation2 + $0x68] sm:$0x1] }
 0x27c   : > { %v17696_v16 = vrot.slane %v5237_v25, 5  ;;  %v5243_v8 = vrot.slane %v5241_v32, 4 }
 0x27d   : > { %v5210_v26 = vor.u32 %v5209_v5, %v5206_v36  ;;  %v20227_v36 = vsel %vm16131_vm11, %v17597_v40, %v17578_v49  ;;  %v5247_v5 = vshll.u32 %v17701_v57, 16 }
 0x27e   : > { %13753 = vmatmul.mubr.bf16.gmra.mrb[24].mxu0 %v15183_v27  ;;  %v5960_v27 = vrot.slane %v17634_v61, 5 }
 0x27f   : > { %13756 = vmatprep.mubr.bf16.mxu0 %v15185_v15  ;;  %v17653_v15 = vsel %vm16559_vm14, %v12563_v35, %v5953_v47  ;;  %v5219_v35 = vrot.slane %v5217_v41, 4  ;;  %v5233_v41 = vrot.slane %v5231_v60, 5  ;;  %v5261_v60 = vshll.u32 %v17485_v33, 16 }
 0x280   : > { %v5962_v7 = vrot.slane %v5960_v27, 4  ;;  %v17661_v30 = vsel %vm16559_vm14, %v12564_v58, %v5960_v27  ;;  %v5144_v27 = vsel %vm16131_vm11, %v17599_v56, %v17555_v23  ;;  %v17678_v58 = vrot.slane %v5186_v21, 4  ;;  %v17694_v56 = vld [vmem:[#allocation9] sm:$0xff]  }
 0x281   : > { %v5230_v23 = vrot.slane %v5228_v39, 4  ;;  %v5197_v21 = vrot.slane %v5196_v29, 4  ;;  %14336 = vmatprep.subr.bf16.mxu1 %v17694_v56  ;;  %v5265_v39 = vshrl.u32 %v17485_v33, 16  ;;  %v12527_v63 = vcombine.low %v5144_v27, %v5154_v2 }
 0x282   : > { %v17669_v47 = vsel %vm16559_vm14, %v5962_v7, %v5963_v10  ;;  %v5178_v10 = vsel %vm16131_vm11, %v17619_v59, %v17611_v31  ;;  %v5223_v7 = vshll.u32 %v17471_v52, 16  ;;  %v5252_v31 = vshrl.u32 %v5056_v51, 16  ;;  %14344 = vmatpush3.bf16.msra.mxu1 %v17694_v56 }
 0x283   : > { %v5255_v59 = vshll.u32 %v5056_v51, 16  ;;  %v20228_v52 = vsel %vm16131_vm11, %v17563_v3, %v17533_v37  ;;  %v12528_v25 = vcombine.low %v5168_v19, %v5178_v10  ;;  %v5220_v32 = vor.u32 %v5219_v35, %v17680_v20  ;;  %v5059_v51 = vld [vmem:[#allocation2 + $0x78] sm:$0xf]  ;;  %v5062_v10 = vld [vmem:[#allocation2 + $0x84] sm:$0xf] }
 0x284   : > { %v5234_v29 = vor.u32 %v5233_v41, %v5230_v23  ;;  %v5244_v33 = vor.u32 %v5243_v8, %v17696_v16  ;;  %v5192_v49 = vsel %vm16131_vm11, %v17678_v58, %v17613_v14  ;;  %v5202_v37 = vsel %vm16131_vm11, %v5197_v21, %v5201_v12 }
 0x285   : > { %v5211_v3 = vrot.slane %v5210_v26, 4  ;;  %v5225_v40 = vrot.slane %v5223_v7, 5  ;;  %v5254_v35 = vrot.slane %v5252_v31, 4  ;;  %v5257_v27 = vrot.slane %v5255_v59, 5  ;;  %v15190_v26 = vld [vmem:[#allocation7 + $0x210] sm:$0xff]  }
 0x286   : > { %13757 = vmatmul.mubr.bf16.gmra.mrb[28].mxu0 %v15186_v18  ;;  %v583_v18 = vld [vmem:[#allocation3 + $0x18] sm:$0x1]  ;;  %v17728_v2 = vrot.slane %v5261_v60, 5  ;;  %v5267_v19 = vrot.slane %v5265_v39, 4  ;;  %v5276_v23 = vshrl.u32 %v5059_v51, 16  ;;  %v5279_v41 = vshll.u32 %v5059_v51, 16 }
 0x287   : > { %13776 = vmatprep.mubr.bf16.mxu0 %v12525_v28  ;;  %v584_v0 = vsel %vm15853_vm2, 0, %v583_v18  ;;  %v12526_v28 = vcombine.low %v20228_v52, %v20227_v36  ;;  %v17720_v18 = vld [vmem:[#allocation2 + $0x7c] sm:$0xf]  ;;  %v5221_v14 = vrot.slane %v5220_v32, 4  ;;  %v5235_v58 = vrot.slane %v5234_v29, 4 }
 0x288   : > { %585 = vst [vmem:[#allocation3 + $0x18] sm:$0x1] %v584_v0  ;;  %v15189_v0 = vld [vmem:[#allocation7 + $0x208] sm:$0xff]   ;;  %v5285_v8 = vshll.u32 %v17720_v18, 16  ;;  %v5289_v36 = vshrl.u32 %v17720_v18, 16  ;;  %v5245_v21 = vrot.slane %v5244_v33, 4  ;;  %v12529_v39 = vcombine.low %v5192_v49, %v5202_v37 }
 0x289   : > { %v5249_v12 = vrot.slane %v5247_v5, 5  ;;  %v5300_v7 = vshrl.u32 %v5062_v10, 16  ;;  %v5303_v31 = vshll.u32 %v5062_v10, 16  ;;  %v5309_v59 = vshll.u32 %v17507_v38, 16  ;;  %v15191_v37 = vld [vmem:[#allocation7 + $0x218] sm:$0xff]  }
 0x28a   : > { %v5313_v60 = vshrl.u32 %v17507_v38, 16  ;;  %v5258_v52 = vor.u32 %v5257_v27, %v5254_v35  ;;  %v5271_v51 = vshll.u32 %v17487_v4, 16  ;;  %v5281_v32 = vrot.slane %v5279_v41, 5  ;;  %v5065_v35 = vld [vmem:[#allocation2 + $0x90] sm:$0xf] }
 0x28b   : > { %v17739_v29 = vrot.slane %v5285_v8, 5  ;;  %v5291_v33 = vrot.slane %v5289_v36, 4  ;;  %v5216_v5 = vsel %vm16131_vm11, %v5211_v3, %v17680_v20  ;;  %v5226_v38 = vsel %vm16131_vm11, %v5221_v14, %v5225_v40 }
 0x28c   : > { %v5240_v49 = vsel %vm16131_vm11, %v5235_v58, %v17696_v16  ;;  %v5250_v4 = vsel %vm16131_vm11, %v5245_v21, %v5249_v12  ;;  %v5302_v27 = vrot.slane %v5300_v7, 4  ;;  %v5315_v10 = vrot.slane %v5313_v60, 4  ;;  %v15192_v60 = vld [vmem:[#allocation7 + $0x220] sm:$0xff]  }
 0x28d   : > { %v17755_v20 = vrot.slane %v5258_v52, 4  ;;  %v17759_v40 = vrot.slane %v5271_v51, 5  ;;  %v5292_v8 = vor.u32 %v5291_v33, %v17739_v29  ;;  %v5324_v36 = vshrl.u32 %v5065_v35, 16  ;;  %v17775_v51 = vld [vmem:[#allocation2 + $0x98] sm:$0x1] }
 0x28e   : > { %13777 = vmatmul.mubr.bf16.vlgmr.msra.gmra.mrb[0].mxu0 %v12526_v28  ;;  %v5268_v28 = vor.u32 %v5267_v19, %v17728_v2  ;;  %v5305_v19 = vrot.slane %v5303_v31, 5  ;;  %v5327_v14 = vshll.u32 %v5065_v35, 16  ;;  %v12530_v12 = vcombine.low %v5216_v5, %v5226_v38  ;;  %v5071_v5 = vld [vmem:[#allocation2 + $0xa8] sm:$0xf] }
 0x28f   : > { %13809 = vmatpush3.bf16.msra.mxu0 %v17514_v54  ;;  %13780 = vmatprep.mubr.bf16.mxu0 %v12527_v63  ;;  %v17737_v54 = vld [vmem:[#allocation2 + $0x80] sm:$0x1]  ;;  %v5278_v63 = vrot.slane %v5276_v23, 4  ;;  %v17753_v23 = vld [vmem:[#allocation2 + $0x94] sm:$0xf]  ;;  %v12531_v52 = vcombine.low %v5240_v49, %v5250_v4  ;;  %v5326_v33 = vrot.slane %v5324_v36, 4 }
 0x290   : > { %13810 = vmatprep.subr.bf16.mxu0 %v15189_v0  ;;  %v17757_v3 = vrot.slane %v5268_v28, 4  ;;  %v5295_v16 = vshll.u32 %v17737_v54, 16  ;;  %v5333_v58 = vshll.u32 %v17753_v23, 16  ;;  %v5337_v21 = vshrl.u32 %v17753_v23, 16 }
 0x291   : > { %v5282_v41 = vor.u32 %v5281_v32, %v5278_v63  ;;  %v5306_v7 = vor.u32 %v5305_v19, %v5302_v27  ;;  %v5293_v32 = vrot.slane %v5292_v8, 4 }
 0x292   : > { %v5297_v28 = vrot.slane %v5295_v16, 5  ;;  %v17777_v38 = vrot.slane %v5333_v58, 5  ;;  %v5339_v49 = vrot.slane %v5337_v21, 4  ;;  %v5361_v16 = vshrl.u32 %v17544_v1, 16 }
 0x293   : > { %13811 = vmatpush3.bf16.msra.mxu0 %v15189_v0  ;;  %v17751_v0 = vrot.slane %v5309_v59, 5  ;;  %v5319_v59 = vshll.u32 %v17509_v13, 16  ;;  %v5283_v63 = vrot.slane %v5282_v41, 4  ;;  %v5329_v13 = vrot.slane %v5327_v14, 5 }
 0x294   : > { %13812 = vmatprep.subr.bf16.mxu0 %v15190_v26  ;;  %v5307_v27 = vrot.slane %v5306_v7, 4  ;;  %v5372_v41 = vshrl.u32 %v5071_v5, 16  ;;  %v5298_v36 = vsel %vm16131_vm11, %v5293_v32, %v5297_v28  ;;  %v5340_v7 = vor.u32 %v5339_v49, %v17777_v38 }
 0x295   : > { %v5316_v31 = vor.u32 %v5315_v10, %v17751_v0  ;;  %v5321_v10 = vrot.slane %v5319_v59, 5  ;;  %v5288_v8 = vsel %vm16131_vm11, %v5283_v63, %v17739_v29  ;;  %v5330_v21 = vor.u32 %v5329_v13, %v5326_v33  ;;  %v17799_v13 = vld [vmem:[#allocation2 + $0xb0] sm:$0x1] }
 0x296   : > { %13781 = vmatmul.mubr.bf16.gmra.mrb[4].mxu0 %v12528_v25  ;;  %v5068_v25 = vld [vmem:[#allocation2 + $0x9c] sm:$0xf]  ;;  %v5363_v63 = vrot.slane %v5361_v16, 4  ;;  %v12533_v33 = vcombine.low %v5288_v8, %v5298_v36  ;;  %v5405_v36 = vshll.u32 %v17582_v9, 16 }
 0x297   : > { %13784 = vmatprep.mubr.bf16.mxu0 %v12529_v39  ;;  %13813 = vmatpush3.bf16.msra.mxu0 %v15190_v26  ;;  %v5264_v39 = vsel %vm16131_vm11, %v17755_v20, %v17728_v2  ;;  %v5274_v26 = vsel %vm16131_vm11, %v17757_v3, %v17759_v40  ;;  %v5348_v4 = vshrl.u32 %v5068_v25, 16  ;;  %v5351_v35 = vshll.u32 %v5068_v25, 16  ;;  %v17779_v2 = vld [vmem:[#allocation2 + $0xac] sm:$0xf]  ;;  %v15193_v3 = vld [vmem:[#allocation7 + $0x228] sm:$0xff]   ;;  %v15194_v25 = vld [vmem:[#allocation7 + $0x230] sm:$0xff]  }
 0x298   : > { %13814 = vmatprep.subr.bf16.mxu0 %v15191_v37  ;;  %v5317_v19 = vrot.slane %v5316_v31, 4  ;;  %v5343_v20 = vshll.u32 %v17775_v51, 16  ;;  %v5357_v40 = vshll.u32 %v17544_v1, 16  ;;  %v5381_v14 = vshll.u32 %v17779_v2, 16 }
 0x299   : > { %v5385_v58 = vshrl.u32 %v17779_v2, 16  ;;  %v5350_v1 = vrot.slane %v5348_v4, 4  ;;  %v5353_v31 = vrot.slane %v5351_v35, 5  ;;  %v12532_v32 = vcombine.low %v5264_v39, %v5274_v26  ;;  %v5074_v4 = vld [vmem:[#allocation2 + $0xb4] sm:$0xf] }
 0x29a   : > { %v5322_v29 = vsel %vm16131_vm11, %v5317_v19, %v5321_v10  ;;  %v5345_v59 = vrot.slane %v5343_v20, 5  ;;  %v17797_v28 = vrot.slane %v5357_v40, 5  ;;  %v5341_v35 = vrot.slane %v5340_v7, 4  ;;  %v15195_v20 = vld [vmem:[#allocation7 + $0x238] sm:$0xff]  }
 0x29b   : > { %13815 = vmatpush3.bf16.msra.mxu0 %v15191_v37  ;;  %v5375_v37 = vshll.u32 %v5071_v5, 16  ;;  %v17801_v5 = vrot.slane %v5381_v14, 5  ;;  %v5387_v49 = vrot.slane %v5385_v58, 4  ;;  %v5367_v19 = vshll.u32 %v17546_v48, 16 }
 0x29c   : > { %13816 = vmatprep.subr.bf16.mxu0 %v15192_v60  ;;  %v5364_v40 = vor.u32 %v5363_v63, %v17797_v28  ;;  %v5391_v39 = vshll.u32 %v17799_v13, 16  ;;  %v5396_v26 = vshrl.u32 %v5074_v4, 16  ;;  %v5399_v8 = vshll.u32 %v5074_v4, 16 }
 0x29d   : > { %v5409_v14 = vshrl.u32 %v17582_v9, 16 }
 0x29e   : > { %13785 = vmatmul.mubr.bf16.gmra.mrb[8].mxu0 %v12530_v12  ;;  %v5312_v12 = vsel %vm16131_vm11, %v5307_v27, %v17751_v0  ;;  %v5331_v0 = vrot.slane %v5330_v21, 4  ;;  %v5354_v27 = vor.u32 %v5353_v31, %v5350_v1  ;;  %v5369_v21 = vrot.slane %v5367_v19, 5 }
 0x29f   : > { %13788 = vmatprep.mubr.bf16.mxu0 %v12531_v52  ;;  %13817 = vmatpush3.bf16.msra.mxu0 %v15192_v60  ;;  %v5374_v52 = vrot.slane %v5372_v41, 4  ;;  %v5377_v60 = vrot.slane %v5375_v37, 5  ;;  %v12534_v10 = vcombine.low %v5312_v12, %v5322_v29  ;;  %v5077_v41 = vld [vmem:[#allocation2 + $0xc0] sm:$0xf]  ;;  %v5388_v37 = vor.u32 %v5387_v49, %v17801_v5 }
 0x2a0   : > { %13818 = vmatprep.subr.bf16.mxu0 %v15193_v3  ;;  %v5336_v48 = vsel %vm16131_vm11, %v5331_v0, %v17777_v38  ;;  %v5355_v58 = vrot.slane %v5354_v27, 4  ;;  %v5420_v7 = vshrl.u32 %v5077_v41, 16  ;;  %v5423_v1 = vshll.u32 %v5077_v41, 16 }
 0x2a1   : > { %v5378_v16 = vor.u32 %v5377_v60, %v5374_v52  ;;  %v5429_v31 = vshll.u32 %v17630_v53, 16  ;;  %v5433_v12 = vshrl.u32 %v17630_v53, 16  ;;  %v5365_v29 = vrot.slane %v5364_v40, 4 }
 0x2a2   : > { %v5393_v63 = vrot.slane %v5391_v39, 5  ;;  %v5398_v52 = vrot.slane %v5396_v26, 4  ;;  %v5389_v60 = vrot.slane %v5388_v37, 4  ;;  %v5407_v38 = vrot.slane %v5405_v36, 5 }
 0x2a3   : > { %13819 = vmatpush3.bf16.msra.mxu0 %v15193_v3  ;;  %v5346_v3 = vsel %vm16131_vm11, %v5341_v35, %v5345_v59  ;;  %v5379_v9 = vrot.slane %v5378_v16, 4  ;;  %v5422_v59 = vrot.slane %v5420_v7, 4  ;;  %v5425_v4 = vrot.slane %v5423_v1, 5  ;;  %v5080_v35 = vld [vmem:[#allocation2 + $0xcc] sm:$0xf] }
 0x2a4   : > { %13820 = vmatprep.subr.bf16.mxu0 %v15194_v25  ;;  %v12535_v49 = vcombine.low %v5336_v48, %v5346_v3  ;;  %v5435_v0 = vrot.slane %v5433_v12, 4  ;;  %v5360_v53 = vsel %vm16131_vm11, %v5355_v58, %v17797_v28  ;;  %v5370_v27 = vsel %vm16131_vm11, %v5365_v29, %v5369_v21 }
 0x2a5   : > { %v5415_v19 = vshll.u32 %v17584_v43, 16  ;;  %v5394_v40 = vsel %vm16131_vm11, %v5389_v60, %v5393_v63  ;;  %v5444_v26 = vshrl.u32 %v5080_v35, 16  ;;  %v5447_v41 = vshll.u32 %v5080_v35, 16 }
 0x2a6   : > { %13789 = vmatmul.mubr.bf16.gmra.mrb[12].mxu0 %v12532_v32  ;;  %v5401_v32 = vrot.slane %v5399_v8, 5  ;;  %v5453_v28 = vshll.u32 %v17634_v61, 16  ;;  %v5457_v37 = vshrl.u32 %v17634_v61, 16  ;;  %v5426_v8 = vor.u32 %v5425_v4, %v5422_v59 }
 0x2a7   : > { %13792 = vmatprep.mubr.bf16.mxu0 %v12533_v33  ;;  %13821 = vmatpush3.bf16.msra.mxu0 %v15194_v25  ;;  %v5411_v33 = vrot.slane %v5409_v14, 4  ;;  %v5431_v25 = vrot.slane %v5429_v31, 5  ;;  %v5439_v43 = vshll.u32 %v17632_v50, 16  ;;  %v5417_v3 = vrot.slane %v5415_v19, 5 }
 0x2a8   : > { %13822 = vmatprep.subr.bf16.mxu0 %v15195_v20  ;;  %v5402_v16 = vor.u32 %v5401_v32, %v5398_v52  ;;  %v5446_v58 = vrot.slane %v5444_v26, 4  ;;  %v5449_v21 = vrot.slane %v5447_v41, 5  ;;  %v5455_v7 = vrot.slane %v5453_v28, 5 }
 0x2a9   : > { %v5412_v39 = vor.u32 %v5411_v33, %v5407_v38  ;;  %v5436_v36 = vor.u32 %v5435_v0, %v5431_v25  ;;  %v5459_v1 = vrot.slane %v5457_v37, 4  ;;  %v5427_v31 = vrot.slane %v5426_v8, 4 }
 0x2aa   : > { %v5403_v48 = vrot.slane %v5402_v16, 4  ;;  %v5441_v29 = vrot.slane %v5439_v43, 5  ;;  %v5463_v52 = vshll.u32 %v17640_v45, 16  ;;  %v5855_v33 = vrot.slane %v17491_v44, 5  ;;  %v5790_v16 = vld [vmem:[#allocation2 + $0x24] sm:$0xe] }
 0x2ab   : > { %13823 = vmatpush3.bf16.msra.mxu0 %v15195_v20  ;;  %v5384_v20 = vsel %vm16131_vm11, %v5379_v9, %v17801_v5  ;;  %v5413_v5 = vrot.slane %v5412_v39, 4  ;;  %v5437_v12 = vrot.slane %v5436_v36, 4  ;;  %v5450_v9 = vor.u32 %v5449_v21, %v5446_v58 }
 0x2ac   : > { %13856 = vmatprep.subr.bf16.mxu0 %v17694_v56  ;;  %v12537_v14 = vcombine.low %v5384_v20, %v5394_v40  ;;  %v5408_v61 = vsel %vm16131_vm11, %v5403_v48, %v5407_v38  ;;  %v5460_v63 = vor.u32 %v5459_v1, %v5455_v7  ;;  %v5432_v60 = vsel %vm16131_vm11, %v5427_v31, %v5431_v25 }
 0x2ad   : > { %v5418_v50 = vsel %vm16131_vm11, %v5413_v5, %v5417_v3  ;;  %v5442_v32 = vsel %vm16131_vm11, %v5437_v12, %v5441_v29  ;;  %v5451_v38 = vrot.slane %v5450_v9, 4  ;;  %v5465_v35 = vrot.slane %v5463_v52, 5  ;;  %v5792_v5 = vld [vmem:[#allocation2 + $0x3c] sm:$0xe]  ;;  %v20229_v3 = vld [vmem:[#allocation26_spill] sm:$0xff]  ;;  %v20230_v12 = vld [vmem:[#allocation33_spill] sm:$0xff] }
 0x2ae   : > { %13793 = vmatmul.mubr.bf16.gmra.mrb[16].mxu0 %v12534_v10  ;;  %v12536_v10 = vcombine.low %v5360_v53, %v5370_v27  ;;  %v12538_v59 = vcombine.low %v5408_v61, %v5418_v50  ;;  %v12539_v4 = vcombine.low %v5432_v60, %v5442_v32  ;;  %v5461_v0 = vrot.slane %v5460_v63, 4  ;;  %v20231_v9 = vld [vmem:[#allocation36_spill] sm:$0xff] }
 0x2af   : > { %13796 = vmatprep.mubr.bf16.mxu0 %v12535_v49  ;;  %v5789_v49 = vld [vmem:[#allocation2 + $0x18] sm:$0xe]  ;;  %v5857_v27 = vrot.slane %v5855_v33, 4  ;;  %v5858_v19 = vrot.slane %v17516_v46, 5  ;;  %v5456_v45 = vsel %vm16131_vm11, %v5451_v38, %v5455_v7  ;;  %v5862_v44 = vrot.slane %v17505_v17, 5 }
 0x2b0   : > { %v12549_v53 = vrot.slane %v5789_v49, 9  ;;  %v5466_v25 = vsel %vm16131_vm11, %v5461_v0, %v5465_v35  ;;  %v5869_v39 = vrot.slane %v17520_v34, 5  ;;  %v5791_v46 = vld [vmem:[#allocation2 + $0x30] sm:$0xe]  ;;  %v12550_v28 = vrot.slane %v5790_v16, 9 }
 0x2b1   : > { %v5859_v40 = vsel %vm16559_vm14, %v5857_v27, %v5858_v19  ;;  %v12540_v26 = vcombine.low %v5456_v45, %v5466_v25  ;;  %v5864_v37 = vrot.slane %v5862_v44, 4  ;;  %v5865_v8 = vrot.slane %v17531_v22, 5  ;;  %v5797_v45 = vld [vmem:[#allocation2 + $0x78] sm:$0xe]  ;;  %v20233_v16 = vld [vmem:[#allocation23_spill] sm:$0xff] }
 0x2b2   : > { %v5856_v20 = vsel %vm16559_vm14, %v12549_v53, %v5855_v33  ;;  %v12551_v36 = vrot.slane %v5791_v46, 9  ;;  %v5871_v43 = vrot.slane %v5869_v39, 4  ;;  %v5872_v17 = vrot.slane %v17557_v6, 5  ;;  %v5793_v6 = vld [vmem:[#allocation2 + $0x48] sm:$0xe]  ;;  %v20232_v33 = vld [vmem:[#allocation27_spill] sm:$0xff] }
 0x2b3   : > { %v12565_v41 = vcombine.low %v5856_v20, %v5859_v40  ;;  %v5876_v34 = vrot.slane %v17541_v24, 5  ;;  %v5883_v58 = vrot.slane %v20229_v3, 5  ;;  %v12552_v1 = vrot.slane %v5792_v5, 9 }
 0x2b4   : > { %v5870_v48 = vsel %vm16559_vm14, %v12551_v36, %v5869_v39  ;;  %v5873_v22 = vsel %vm16559_vm14, %v5871_v43, %v5872_v17  ;;  %v5879_v29 = vrot.slane %v20230_v12, 5  ;;  %v12553_v61 = vrot.slane %v5793_v6, 9  ;;  %v20234_v39 = vld [vmem:[#allocation24_spill] sm:$0xff]  ;;  %v20237_v43 = vld [vmem:[#allocation30_spill] sm:$0xff] }
 0x2b5   : > { %v12567_v7 = vcombine.low %v5870_v48, %v5873_v22  ;;  %v5878_v31 = vrot.slane %v5876_v34, 4  ;;  %v5885_v50 = vrot.slane %v5883_v58, 4  ;;  %v5886_v24 = vrot.slane %v20231_v9, 5 }
 0x2b6   : > { %13797 = vmatmul.mubr.bf16.gmra.mrb[20].mxu0 %v12536_v10  ;;  %v5863_v10 = vsel %vm16559_vm14, %v12550_v28, %v5862_v44  ;;  %v5877_v63 = vsel %vm16559_vm14, %v12552_v1, %v5876_v34  ;;  %v5884_v60 = vsel %vm16559_vm14, %v12553_v61, %v5883_v58  ;;  %v5897_v49 = vrot.slane %v20232_v33, 5  ;;  %v20240_v58 = vld [vmem:[#allocation25_spill] sm:$0xff]  ;;  %v20246_v61 = vld [vmem:[#allocation35_spill] sm:$0xff]  ;;  %v589_v33 = vld [vmem:[#allocation3 + $0x30] sm:$0x1] }
 0x2b7   : > { %13800 = vmatprep.mubr.bf16.mxu0 %v12537_v14  ;;  %v5866_v14 = vsel %vm16559_vm14, %v5864_v37, %v5865_v8  ;;  %v5880_v52 = vsel %vm16559_vm14, %v5878_v31, %v5879_v29  ;;  %v5887_v32 = vsel %vm16559_vm14, %v5885_v50, %v5886_v24  ;;  %v5900_v53 = vrot.slane %v17701_v57, 5  ;;  %v20242_v31 = vld [vmem:[#allocation32_spill] sm:$0xff]  ;;  %v20245_v29 = vld [vmem:[#allocation34_spill] sm:$0xff] }
 0x2b8   : > { %v12566_v21 = vcombine.low %v5863_v10, %v5866_v14  ;;  %v12569_v38 = vcombine.low %v5884_v60, %v5887_v32  ;;  %v5899_v35 = vrot.slane %v5897_v49, 4  ;;  %v5911_v19 = vrot.slane %v17720_v18, 5  ;;  %v5799_v18 = vld [vmem:[#allocation2 + $0x90] sm:$0xe]  ;;  %v15197_v24 = vld [vmem:[#allocation9 + $0x8] sm:$0xff]  }
 0x2b9   : > { %v12557_v44 = vrot.slane %v5797_v45, 9  ;;  %v5914_v40 = vrot.slane %v17737_v54, 5  ;;  %v20235_v46 = vcombine.low %v20233_v16, %v20234_v39  ;;  %v12559_v37 = vrot.slane %v5799_v18, 9  ;;  %v20236_v54 = vld [vmem:[#allocation28_spill] sm:$0xff]  ;;  %14337 = vmatprep.subr.bf16.mxu1 %v15197_v24  ;;  %v15202_v45 = vld [vmem:[#allocation9 + $0x30] sm:$0xff]   ;;  %v15203_v18 = vld [vmem:[#allocation9 + $0x38] sm:$0xff]  }
 0x2ba   : > { %v5901_v27 = vsel %vm16559_vm14, %v5899_v35, %v5900_v53  ;;  %v5913_v20 = vrot.slane %v5911_v19, 4  ;;  %v5928_v36 = vrot.slane %v17775_v51, 5  ;;  %v20238_v17 = vcombine.low %v20236_v54, %v20237_v43  ;;  %v20239_v51 = vld [vmem:[#allocation29_spill] sm:$0xff]  ;;  %14345 = vmatpush3.bf16.msra.mxu1 %v15197_v24  ;;  %v15199_v35 = vld [vmem:[#allocation9 + $0x18] sm:$0xff]   ;;  %v15200_v53 = vld [vmem:[#allocation9 + $0x20] sm:$0xff]  }
 0x2bb   : > { %v5912_v57 = vsel %vm16559_vm14, %v12557_v44, %v5911_v19  ;;  %v5939_v34 = vrot.slane %v17779_v2, 5  ;;  %v5942_v3 = vrot.slane %v17799_v13, 5  ;;  %v20241_v6 = vcombine.low %v20239_v51, %v20240_v58  ;;  %v20243_v2 = vld [vmem:[#allocation31_spill] sm:$0xff]  ;;  %v595_v44 = vld [vmem:[#allocation3 + $0x48] sm:$0x1] }
 0x2bc   : > { %v20244_v12 = vcombine.low %v20242_v31, %v20243_v2  ;;  %v20247_v13 = vcombine.low %v20245_v29, %v20246_v61  ;;  %v20248_v50 = vcombine.low %v17653_v15, %v17657_v11  ;;  %v20249_v9 = vcombine.low %v17661_v30, %v17669_v47  ;;  %v637_v15 = vld [vmem:[#allocation3 + $0x20] sm:$0x1]  ;;  %v634_v47 = vld [vmem:[#allocation3 + $0x14] sm:$0x1]  ;;  %v592_v16 = vld [vmem:[#allocation3 + $0x3c] sm:$0x1] }
 0x2bd   : > { %v5941_v5 = vrot.slane %v5939_v34, 4  ;;  %v638_v30 = vsel %vm15858_vm4, 0, %v637_v15  ;;  %v635_v32 = vsel %vm15858_vm4, 0, %v634_v47  ;;  %v593_v39 = vsel %vm15853_vm2, 0, %v592_v16  ;;  %v655_v43 = vld [vmem:[#allocation3 + $0x68] sm:$0x1] }
 0x2be   : > { %13801 = vmatmul.mubr.bf16.gmra.mrb[24].mxu0 %v12538_v59  ;;  %v5795_v59 = vld [vmem:[#allocation2 + $0x60] sm:$0xe]  ;;  %639 = vst [vmem:[#allocation3 + $0x20] sm:$0x1] %v638_v30  ;;  %636 = vst [vmem:[#allocation3 + $0x14] sm:$0x1] %v635_v32 }
 0x2bf   : > { %13804 = vmatprep.mubr.bf16.mxu0 %v12539_v4  ;;  %v12568_v4 = vcombine.low %v5877_v63, %v5880_v52  ;;  %v12555_v0 = vrot.slane %v5795_v59, 9  ;;  %v15198_v63 = vld [vmem:[#allocation9 + $0x10] sm:$0xff]   ;;  %v586_v59 = vld [vmem:[#allocation3 + $0x24] sm:$0x1]  ;;  %594 = vst [vmem:[#allocation3 + $0x3c] sm:$0x1] %v593_v39 }
 0x2c0   : > { %14338 = vmatprep.subr.bf16.mxu1 %v15198_v63  ;;  %v580_v52 = vld [vmem:[#allocation3 + $0xc] sm:$0x1]  ;;  %v658_v51 = vld [vmem:[#allocation3 + $0x74] sm:$0x1]  ;;  %v667_v31 = vld [vmem:[#allocation3 + $0x98] sm:$0x1] }
 0x2c1   : > { %14346 = vmatpush3.bf16.msra.mxu1 %v15198_v63  ;;  %v581_v60 = vsel %vm15853_vm2, 0, %v580_v52  ;;  %v659_v58 = vsel %vm15858_vm4, 0, %v658_v51  ;;  %v668_v2 = vsel %vm15858_vm4, 0, %v667_v31  ;;  %v619_v61 = vld [vmem:[#allocation3 + $0xa8] sm:$0x1]  ;;  %v17976_v30 = vld [vmem:[#allocation9 + $0x40] sm:$0xff]  }
 0x2c2   : > { %582 = vst [vmem:[#allocation3 + $0xc] sm:$0x1] %v581_v60  ;;  %14339 = vmatprep.subr.bf16.mxu1 %v15199_v35  ;;  %660 = vst [vmem:[#allocation3 + $0x74] sm:$0x1] %v659_v58  ;;  %v670_v52 = vld [vmem:[#allocation3 + $0xa4] sm:$0x1] }
 0x2c3   : > { %669 = vst [vmem:[#allocation3 + $0x98] sm:$0x1] %v668_v2  ;;  %v671_v60 = vsel %vm15858_vm4, 0, %v670_v52  ;;  %v625_v15 = vld [vmem:[#allocation3 + $0xc0] sm:$0x1] }
 0x2c4   : > { %672 = vst [vmem:[#allocation3 + $0xa4] sm:$0x1] %v671_v60  ;;  %v626_v47 = vsel %vm15853_vm2, 0, %v625_v15  ;;  %v622_v32 = vld [vmem:[#allocation3 + $0xb4] sm:$0x1] }
 0x2c5   : > { %14347 = vmatpush3.bf16.msra.mxu1 %v15199_v35  ;;  %627 = vst [vmem:[#allocation3 + $0xc0] sm:$0x1] %v626_v47  ;;  %v17997_v39 = vld [vmem:[%s19948_s5] ss:$0 sm:$0xff] }
 0x2c6   : > { %13805 = vmatmul.mubr.bf16.gmra.mrb[28].mxu0 %v12540_v26  ;;  %v5915_v26 = vsel %vm16559_vm14, %v5913_v20, %v5914_v40  ;;  %14340 = vmatprep.subr.bf16.mxu1 %v15200_v53  ;;  %v596_v40 = vsel %vm15853_vm2, 0, %v595_v44  ;;  %v17992_v44 = vld [vmem:[%s19947_s4] ss:$0 sm:$0xff] }
 0x2c7   : > { %13824 = vmatprep.mubr.bf16.mxu0 %v12565_v41  ;;  %v5925_v41 = vrot.slane %v17753_v23, 5  ;;  %v12573_v28 = vcombine.low %v5912_v57, %v5915_v26  ;;  %v5801_v23 = vld [vmem:[#allocation2 + $0xa8] sm:$0xe]  ;;  %597 = vst [vmem:[#allocation3 + $0x48] sm:$0x1] %v596_v40 }
 0x2c8   : > { %v12561_v22 = vrot.slane %v5801_v23, 9  ;;  %v646_v26 = vld [vmem:[#allocation3 + $0x44] sm:$0x1] }
 0x2c9   : > { %v5927_v8 = vrot.slane %v5925_v41, 4  ;;  %v5926_v10 = vsel %vm16559_vm14, %v12559_v37, %v5925_v41  ;;  %14348 = vmatpush3.bf16.msra.mxu1 %v15200_v53  ;;  %v647_v41 = vsel %vm15858_vm4, 0, %v646_v26 }
 0x2ca   : > { %648 = vst [vmem:[#allocation3 + $0x44] sm:$0x1] %v647_v41 }
 0x2cb   : > { %v5929_v14 = vsel %vm16559_vm14, %v5927_v8, %v5928_v36  ;;  %v598_v36 = vld [vmem:[#allocation3 + $0x54] sm:$0x1] }
 0x2cc   : > { %v12575_v48 = vcombine.low %v5926_v10, %v5929_v14  ;;  %v599_v54 = vsel %vm15853_vm2, 0, %v598_v36  ;;  %v652_v10 = vld [vmem:[#allocation3 + $0x5c] sm:$0x1] }
 0x2cd   : > { %600 = vst [vmem:[#allocation3 + $0x54] sm:$0x1] %v599_v54  ;;  %v653_v14 = vsel %vm15858_vm4, 0, %v652_v10 }
 0x2ce   : > { %13825 = vmatmul.mubr.bf16.vlgmr.msra.gmra.mrb[0].mxu0 %v12566_v21  ;;  %v5940_v21 = vsel %vm16559_vm14, %v12561_v22, %v5939_v34  ;;  %654 = vst [vmem:[#allocation3 + $0x5c] sm:$0x1] %v653_v14  ;;  %v607_v34 = vld [vmem:[#allocation3 + $0x78] sm:$0x1] }
 0x2cf   : > { %13828 = vmatprep.mubr.bf16.mxu0 %v12567_v7  ;;  %13857 = vmatpush3.bf16.msra.mxu0 %v17694_v56  ;;  %v5898_v56 = vsel %vm16559_vm14, %v12555_v0, %v5897_v49  ;;  %v5943_v7 = vsel %vm16559_vm14, %v5941_v5, %v5942_v3  ;;  %v590_v49 = vsel %vm15853_vm2, 0, %v589_v33  ;;  %v608_v23 = vsel %vm15853_vm2, 0, %v607_v34  ;;  %v661_v5 = vld [vmem:[#allocation3 + $0x80] sm:$0x1] }
 0x2d0   : > { %v12571_v25 = vcombine.low %v5898_v56, %v5901_v27  ;;  %v12577_v1 = vcombine.low %v5940_v21, %v5943_v7  ;;  %13858 = vmatprep.subr.bf16.mxu0 %v15197_v24  ;;  %591 = vst [vmem:[#allocation3 + $0x30] sm:$0x1] %v590_v49  ;;  %v15201_v56 = vld [vmem:[#allocation9 + $0x28] sm:$0xff]   ;;  %v640_v27 = vld [vmem:[#allocation3 + $0x2c] sm:$0x1]  ;;  %v662_v3 = vsel %vm15858_vm4, 0, %v661_v5 }
 0x2d1   : > { %14341 = vmatprep.subr.bf16.mxu1 %v15201_v56  ;;  %v641_v19 = vsel %vm15858_vm4, 0, %v640_v27  ;;  %609 = vst [vmem:[#allocation3 + $0x78] sm:$0x1] %v608_v23  ;;  %663 = vst [vmem:[#allocation3 + $0x80] sm:$0x1] %v662_v3  ;;  %v623_v33 = vsel %vm15853_vm2, 0, %v622_v32 }
 0x2d2   : > { %14349 = vmatpush3.bf16.msra.mxu1 %v15201_v56  ;;  %642 = vst [vmem:[#allocation3 + $0x2c] sm:$0x1] %v641_v19  ;;  %v610_v7 = vld [vmem:[#allocation3 + $0x84] sm:$0x1]  ;;  %v679_v49 = vld [vmem:[#allocation3 + $0xc8] sm:$0x1] }
 0x2d3   : > { %13859 = vmatpush3.bf16.msra.mxu0 %v15197_v24  ;;  %14342 = vmatprep.subr.bf16.mxu1 %v15202_v45  ;;  %v673_v24 = vld [vmem:[#allocation3 + $0xb0] sm:$0x1]  ;;  %624 = vst [vmem:[#allocation3 + $0xb4] sm:$0x1] %v623_v33 }
 0x2d4   : > { %13860 = vmatprep.subr.bf16.mxu0 %v15198_v63 }
 0x2d6   : > { %13829 = vmatmul.mubr.bf16.gmra.mrb[4].mxu0 %v12568_v4  ;;  %v587_v4 = vsel %vm15853_vm2, 0, %v586_v59  ;;  %14350 = vmatpush3.bf16.msra.mxu1 %v15202_v45  ;;  %v680_v59 = vsel %vm15858_vm4, 0, %v679_v49 }
 0x2d7   : > { %13832 = vmatprep.mubr.bf16.mxu0 %v12569_v38  ;;  %13861 = vmatpush3.bf16.msra.mxu0 %v15198_v63  ;;  %v643_v38 = vld [vmem:[#allocation3 + $0x38] sm:$0x1]  ;;  %588 = vst [vmem:[#allocation3 + $0x24] sm:$0x1] %v587_v4  ;;  %v674_v63 = vsel %vm15858_vm4, 0, %v673_v24 }
 0x2d8   : > { %v644_v0 = vsel %vm15858_vm4, 0, %v643_v38  ;;  %13862 = vmatprep.subr.bf16.mxu0 %v15199_v35  ;;  %14343 = vmatprep.subr.bf16.mxu1 %v15203_v18  ;;  %675 = vst [vmem:[#allocation3 + $0xb0] sm:$0x1] %v674_v63  ;;  %v676_v4 = vld [vmem:[#allocation3 + $0xbc] sm:$0x1] }
 0x2d9   : > { %645 = vst [vmem:[#allocation3 + $0x38] sm:$0x1] %v644_v0  ;;  %681 = vst [vmem:[#allocation3 + $0xc8] sm:$0x1] %v680_v59  ;;  %v677_v38 = vsel %vm15858_vm4, 0, %v676_v4 }
 0x2da   : > { %14351 = vmatpush3.bf16.msra.mxu1 %v15203_v18  ;;  %678 = vst [vmem:[#allocation3 + $0xbc] sm:$0x1] %v677_v38  ;;  %v631_v0 = vld [vmem:[#allocation3 + $0x8] sm:$0x1] }
 0x2db   : > { %13863 = vmatpush3.bf16.msra.mxu0 %v15199_v35  ;;  %13904 = vmatprep.subr.bf16.mxu1 %v17976_v30  ;;  %v632_v35 = vsel %vm15858_vm4, 0, %v631_v0 }
 0x2dc   : > { %13864 = vmatprep.subr.bf16.mxu0 %v15200_v53  ;;  %633 = vst [vmem:[#allocation3 + $0x8] sm:$0x1] %v632_v35 }
 0x2de   : > { %13833 = vmatmul.mubr.bf16.gmra.mrb[8].mxu0 %v20235_v46  ;;  %v649_v46 = vld [vmem:[#allocation3 + $0x50] sm:$0x1] }
 0x2df   : > { %13836 = vmatprep.mubr.bf16.mxu0 %v12571_v25  ;;  %13865 = vmatpush3.bf16.msra.mxu0 %v15200_v53  ;;  %v577_v25 = vld [vmem:[#allocation3] sm:$0x1]  ;;  %v650_v57 = vsel %vm15858_vm4, 0, %v649_v46 }
 0x2e0   : > { %13866 = vmatprep.subr.bf16.mxu0 %v15201_v56  ;;  %v578_v20 = vsel %vm15853_vm2, 0, %v577_v25  ;;  %651 = vst [vmem:[#allocation3 + $0x50] sm:$0x1] %v650_v57 }
 0x2e1   : > { %579 = vst [vmem:[#allocation3] sm:$0x1] %v578_v20 }
 0x2e3   : > { %13867 = vmatpush3.bf16.msra.mxu0 %v15201_v56  ;;  %v7319_v56 = vld [vmem:[#allocation3 + $0x4] sm:$0xf] }
 0x2e4   : > { %13868 = vmatprep.subr.bf16.mxu0 %v15202_v45  ;;  %v7380_v25 = vshrl.u32 %v7319_v56, 16 }
 0x2e6   : > { %13837 = vmatmul.mubr.bf16.gmra.mrb[12].mxu0 %v20238_v17  ;;  %v656_v17 = vsel %vm15858_vm4, 0, %v655_v43  ;;  %v7382_v57 = vrot.slane %v7380_v25, 4 }
 0x2e7   : > { %13840 = vmatprep.mubr.bf16.mxu0 %v12573_v28  ;;  %13869 = vmatpush3.bf16.msra.mxu0 %v15202_v45  ;;  %v601_v28 = vld [vmem:[#allocation3 + $0x60] sm:$0x1]  ;;  %657 = vst [vmem:[#allocation3 + $0x68] sm:$0x1] %v656_v17  ;;  %v7376_v45 = vshll.u32 %v7319_v56, 16 }
 0x2e8   : > { %13870 = vmatprep.subr.bf16.mxu0 %v15203_v18  ;;  %v15204_v37 = vld [vmem:[#allocation3] sm:$0xff]   ;;  %v602_v8 = vsel %vm15853_vm2, 0, %v601_v28 }
 0x2e9   : > { %603 = vst [vmem:[#allocation3 + $0x60] sm:$0x1] %v602_v8  ;;  %v7318_v53 = vld [vmem:[#allocation3] sm:$0xf]  ;;  %v17999_v46 = vrot.slane %v7376_v45, 5 }
 0x2ea   : > { %v7367_v27 = vshrl.u32 %v7318_v53, 16  ;;  %v7370_v19 = vshll.u32 %v7318_v53, 16  ;;  %v7320_v8 = vld [vmem:[#allocation3 + $0x8] sm:$0x1] }
 0x2eb   : > { %13871 = vmatpush3.bf16.msra.mxu0 %v15203_v18  ;;  %v18005_v18 = vld [vmem:[%s19949_s6] ss:$0 sm:$0xff]  ;;  %v7383_v34 = vor.u32 %v7382_v57, %v17999_v46  ;;  %v6814_v57 = vld [vmem:[#allocation3 + $0xc] sm:$0xf] }
 0x2ec   : > { %v7369_v20 = vrot.slane %v7367_v27, 4  ;;  %v7372_v40 = vrot.slane %v7370_v19, 5  ;;  %v6821_v27 = vld [vmem:[#allocation3 + $0x18] sm:$0xf] }
 0x2ed   : > { %v18021_v31 = vrot.slane %v7383_v34, 4 }
 0x2ee   : > { %13841 = vmatmul.mubr.bf16.gmra.mrb[16].mxu0 %v20241_v6  ;;  %v613_v6 = vld [vmem:[#allocation3 + $0x90] sm:$0x1]  ;;  %v7373_v36 = vor.u32 %v7372_v40, %v7369_v20 }
 0x2ef   : > { %13844 = vmatprep.mubr.bf16.mxu0 %v12575_v48  ;;  %v604_v48 = vld [vmem:[#allocation3 + $0x6c] sm:$0x1]  ;;  %v614_v21 = vsel %vm15853_vm2, 0, %v613_v6 }
 0x2f0   : > { %v605_v22 = vsel %vm15853_vm2, 0, %v604_v48  ;;  %615 = vst [vmem:[#allocation3 + $0x90] sm:$0x1] %v614_v21  ;;  %v18017_v51 = vrot.slane %v7373_v36, 4 }
 0x2f1   : > { %606 = vst [vmem:[#allocation3 + $0x6c] sm:$0x1] %v605_v22  ;;  %v7386_v22 = vshll.u32 %v7320_v8, 16  ;;  %v6825_v8 = vld [vmem:[#allocation3 + $0x20] sm:$0x1] }
 0x2f2   : > { %v7379_v52 = vsel %vm16131_vm11, %v18017_v51, %v17999_v46 }
 0x2f6   : > { %13845 = vmatmul.mubr.bf16.gmra.mrb[20].mxu0 %v20244_v12  ;;  %v664_v12 = vld [vmem:[#allocation3 + $0x8c] sm:$0x1] }
 0x2f7   : > { %13848 = vmatprep.mubr.bf16.mxu0 %v12577_v1  ;;  %v611_v1 = vsel %vm15853_vm2, 0, %v610_v7  ;;  %v665_v29 = vsel %vm15858_vm4, 0, %v664_v12 }
 0x2f8   : > { %612 = vst [vmem:[#allocation3 + $0x84] sm:$0x1] %v611_v1  ;;  %666 = vst [vmem:[#allocation3 + $0x8c] sm:$0x1] %v665_v29 }
 0x2fe   : > { %13849 = vmatmul.mubr.bf16.gmra.mrb[24].mxu0 %v20247_v13  ;;  %v620_v13 = vsel %vm15853_vm2, 0, %v619_v61 }
 0x2ff   : > { %13852 = vmatprep.mubr.bf16.mxu0 %v20248_v50  ;;  %v616_v50 = vld [vmem:[#allocation3 + $0x9c] sm:$0x1]  ;;  %621 = vst [vmem:[#allocation3 + $0xa8] sm:$0x1] %v620_v13  ;;  %v18024_v13 = vrot.slane %v7386_v22, 5 }
 0x306   : > { %13853 = vmatmul.mubr.bf16.gmra.mrb[28].mxu0 %v20249_v9  ;;  %v617_v9 = vsel %vm15853_vm2, 0, %v616_v50 }
 0x307   : > { %13872 = vmatprep.mubr.bf16.mxu0 %v15204_v37  ;;  %618 = vst [vmem:[#allocation3 + $0x9c] sm:$0x1] %v617_v9 }
 0x3a1   : > { %v13826_v16 = vpop.f32.mrb[0].mxu0 }
 0x3a2   : > { %v14352_v26 = vadd.f32 %v13826_v16, %v17992_v44  ;;  %v6128_v41 = vpop.f32.mrb[1].mxu0 }
 0x3a3   : > { %v14353_v28 = vadd.f32 %v17992_v44, %v6128_v41  ;;  %v13827_v37 = vpop.f32.mrb[2].mxu0 }
 0x3a4   : > { %v6296_v54 = vmul.f32 %v14352_v26, %v17997_v39  ;;  %v14354_v43 = vadd.f32 %v13827_v37, %v17992_v44  ;;  %v6131_v17 = vpop.f32.mrb[3].mxu0 }
 0x3a5   : > { %v6294_v10 = vmul.f32 %v14353_v28, %v17997_v39  ;;  %v14355_v14 = vadd.f32 %v17992_v44, %v6131_v17 }
 0x3a6   : > { %v6335_v23 = vadd.f32 %v18005_v18, %v6296_v54  ;;  %v6297_v48 = vmul.f32 %v14354_v43, %v17997_v39 }
 0x3a7   : > { %v6333_v5 = vadd.f32 %v18005_v18, %v6294_v10  ;;  %v6295_v3 = vmul.f32 %v14355_v14, %v17997_v39 }
 0x3a8   : > { %v6367_v58 = vmax.f32 %v6335_v23, 0.0  ;;  %v6336_v6 = vadd.f32 %v18005_v18, %v6297_v48  ;;  %v6818_v23 = vld [vmem:[#allocation3 + $0x14] sm:$0x1] }
 0x3a9   : > { %v6365_v21 = vmax.f32 %v6333_v5, 0.0  ;;  %v6334_v7 = vadd.f32 %v18005_v18, %v6295_v3  ;;  %v13830_v1 = vpop.f32.mrb[4].mxu0 }
 0x3aa   : > { %v12937_v2 = vpack.c.bf16 %v6367_v58, %v6367_v58  ;;  %v6368_v12 = vmax.f32 %v6336_v6, 0.0  ;;  %v14356_v29 = vadd.f32 %v13830_v1, %v17992_v44  ;;  %v6144_v61 = vpop.f32.mrb[5].mxu0 }
 0x3ab   : > { %v12935_v50 = vpack.c.bf16 %v6365_v21, %v6365_v21  ;;  %v6366_v9 = vmax.f32 %v6334_v7, 0.0  ;;  %v14357_v24 = vadd.f32 %v17992_v44, %v6144_v61  ;;  %v13831_v63 = vpop.f32.mrb[6].mxu0 }
 0x3ac   : > { %v6511_v60 = vshrl.u32 %v12937_v2, 16  ;;  %v6514_v15 = vshll.u32 %v12937_v2, 16  ;;  %v12938_v47 = vpack.c.bf16 %v6368_v12, %v6368_v12  ;;  %v6300_v32 = vmul.f32 %v14356_v29, %v17997_v39  ;;  %v6147_v33 = vpop.f32.mrb[7].mxu0 }
 0x3ad   : > { %v6494_v49 = vshrl.u32 %v12935_v50, 16  ;;  %v6497_v59 = vshll.u32 %v12935_v50, 16  ;;  %v12936_v4 = vpack.c.bf16 %v6366_v9, %v6366_v9  ;;  %v6298_v38 = vmul.f32 %v14357_v24, %v17997_v39 }
 0x3ae   : > { %v6513_v0 = vrot.slane %v6511_v60, 7  ;;  %v6519_v35 = vshrl.u32 %v12938_v47, 16  ;;  %v6522_v53 = vshll.u32 %v12938_v47, 16  ;;  %v6339_v56 = vadd.f32 %v18005_v18, %v6300_v32 }
 0x3af   : > { %v6496_v19 = vrot.slane %v6494_v49, 7  ;;  %v6502_v45 = vshrl.u32 %v12936_v4, 16  ;;  %v6505_v25 = vshll.u32 %v12936_v4, 16  ;;  %v6337_v20 = vadd.f32 %v18005_v18, %v6298_v38 }
 0x3b0   : > { %v6516_v40 = vor.u32 %v6514_v15, %v6513_v0  ;;  %v6517_v16 = vrot.slane %v6513_v0, 4  ;;  %v6521_v26 = vrot.slane %v6519_v35, 7  ;;  %v6371_v41 = vmax.f32 %v6339_v56, 0.0 }
 0x3b1   : > { %v6499_v28 = vor.u32 %v6497_v59, %v6496_v19  ;;  %v6500_v37 = vrot.slane %v6496_v19, 4  ;;  %v6504_v36 = vrot.slane %v6502_v45, 7  ;;  %v6369_v54 = vmax.f32 %v6337_v20, 0.0  ;;  %v13834_v43 = vpop.f32.mrb[8].mxu0  ;;  %v6835_v59 = vld [vmem:[#allocation3 + $0x30] sm:$0xf] }
 0x3b2   : > { %v6822_v10 = vsel %vm15916_vm8, %v6516_v40, %v6821_v27  ;;  %v6524_v14 = vor.u32 %v6522_v53, %v6521_v26  ;;  %v6526_v34 = vrot.slane %v6521_v26, 4  ;;  %v12941_v48 = vpack.c.bf16 %v6371_v41, %v6371_v41  ;;  %v6160_v22 = vpop.f32.mrb[9].mxu0  ;;  %v6828_v27 = vld [vmem:[#allocation3 + $0x24] sm:$0xf] }
 0x3b3   : > { %6823 = vst [vmem:[#allocation3 + $0x18] sm:$0xf] %v6822_v10  ;;  %v6815_v5 = vsel %vm15916_vm8, %v6499_v28, %v6814_v57  ;;  %v6507_v3 = vor.u32 %v6505_v25, %v6504_v36  ;;  %v6509_v58 = vrot.slane %v6504_v36, 4  ;;  %v12939_v6 = vpack.c.bf16 %v6369_v54, %v6369_v54  ;;  %v13835_v21 = vpop.f32.mrb[10].mxu0 }
 0x3b4   : > { %6816 = vst [vmem:[#allocation3 + $0xc] sm:$0xf] %v6815_v5  ;;  %v6525_v1 = vsel %vm15909_vm7, %v6517_v16, %v6524_v14  ;;  %v6826_v2 = vsel %vm15853_vm2, %v6526_v34, %v6825_v8  ;;  %v6545_v12 = vshrl.u32 %v12941_v48, 16  ;;  %v6548_v29 = vshll.u32 %v12941_v48, 16  ;;  %v6163_v61 = vpop.f32.mrb[11].mxu0 }
 0x3b5   : > { %6824 = vst [vmem:[#allocation3 + $0x1c] sm:$0xf] %v6525_v1  ;;  %6827 = vst [vmem:[#allocation3 + $0x20] sm:$0x1] %v6826_v2  ;;  %v6508_v50 = vsel %vm15909_vm7, %v6500_v37, %v6507_v3  ;;  %v6819_v9 = vsel %vm15853_vm2, %v6509_v58, %v6818_v23  ;;  %v6528_v24 = vshrl.u32 %v12939_v6, 16  ;;  %v6531_v60 = vshll.u32 %v12939_v6, 16 }
 0x3b6   : > { %6817 = vst [vmem:[#allocation3 + $0x10] sm:$0xf] %v6508_v50  ;;  %6820 = vst [vmem:[#allocation3 + $0x14] sm:$0x1] %v6819_v9  ;;  %v18047_v15 = vrot.slane %v6545_v12, 7  ;;  %v14358_v47 = vadd.f32 %v13831_v63, %v17992_v44  ;;  %v14359_v32 = vadd.f32 %v17992_v44, %v6147_v33  ;;  %v14360_v49 = vadd.f32 %v13834_v43, %v17992_v44 }
 0x3b7   : > { %v18052_v4 = vrot.slane %v6528_v24, 7  ;;  %v14361_v38 = vadd.f32 %v17992_v44, %v6160_v22  ;;  %v14362_v0 = vadd.f32 %v13835_v21, %v17992_v44  ;;  %v14363_v35 = vadd.f32 %v17992_v44, %v6163_v61 }
 0x3b8   : > { %v6550_v53 = vor.u32 %v6548_v29, %v18047_v15  ;;  %v6551_v56 = vrot.slane %v18047_v15, 4  ;;  %v6301_v63 = vmul.f32 %v14358_v47, %v17997_v39  ;;  %v6299_v33 = vmul.f32 %v14359_v32, %v17997_v39 }
 0x3b9   : > { %v6533_v19 = vor.u32 %v6531_v60, %v18052_v4  ;;  %v6534_v45 = vrot.slane %v18052_v4, 4  ;;  %v6304_v25 = vmul.f32 %v14360_v49, %v17997_v39  ;;  %v6302_v20 = vmul.f32 %v14361_v38, %v17997_v39  ;;  %v13838_v40 = vpop.f32.mrb[12].mxu0  ;;  %v6832_v38 = vld [vmem:[#allocation3 + $0x2c] sm:$0x1] }
 0x3ba   : > { %v6836_v16 = vsel %vm15916_vm8, %v6550_v53, %v6835_v59  ;;  %v6340_v57 = vadd.f32 %v18005_v18, %v6301_v63  ;;  %v6338_v26 = vadd.f32 %v18005_v18, %v6299_v33  ;;  %v6305_v41 = vmul.f32 %v14362_v0, %v17997_v39  ;;  %v6176_v28 = vpop.f32.mrb[13].mxu0  ;;  %v6839_v59 = vld [vmem:[#allocation3 + $0x38] sm:$0x1] }
 0x3bb   : > { %6837 = vst [vmem:[#allocation3 + $0x30] sm:$0xf] %v6836_v16  ;;  %v6829_v37 = vsel %vm15916_vm8, %v6533_v19, %v6828_v27  ;;  %v6343_v8 = vadd.f32 %v18005_v18, %v6304_v25  ;;  %v6341_v36 = vadd.f32 %v18005_v18, %v6302_v20  ;;  %v6303_v54 = vmul.f32 %v14363_v35, %v17997_v39  ;;  %v18075_v43 = vpop.f32.mrb[14].mxu0  ;;  %v6849_v25 = vld [vmem:[#allocation3 + $0x48] sm:$0xf] }
 0x3bc   : > { %6830 = vst [vmem:[#allocation3 + $0x24] sm:$0xf] %v6829_v37  ;;  %v6372_v10 = vmax.f32 %v6340_v57, 0.0  ;;  %v6370_v14 = vmax.f32 %v6338_v26, 0.0  ;;  %v6344_v34 = vadd.f32 %v18005_v18, %v6305_v41  ;;  %v14364_v23 = vadd.f32 %v13838_v40, %v17992_v44  ;;  %v18079_v48 = vpop.f32.mrb[15].mxu0  ;;  %v15206_v29 = vld [vmem:[#allocation3 + $0x18] sm:$0xff]  }
 0x3bd   : > { %v6375_v22 = vmax.f32 %v6343_v8, 0.0  ;;  %v6373_v5 = vmax.f32 %v6341_v36, 0.0  ;;  %v6342_v3 = vadd.f32 %v18005_v18, %v6303_v54  ;;  %v14365_v58 = vadd.f32 %v17992_v44, %v6176_v28  ;;  %v15205_v6 = vld [vmem:[#allocation3 + $0xc] sm:$0xff]  }
 0x3be   : > { %v12942_v21 = vpack.c.bf16 %v6372_v10, %v6372_v10  ;;  %v12940_v1 = vpack.c.bf16 %v6370_v14, %v6370_v14  ;;  %v6376_v2 = vmax.f32 %v6344_v34, 0.0  ;;  %v6308_v12 = vmul.f32 %v14364_v23, %v17997_v39  ;;  %13873 = vmatmul.mubr.bf16.vlgmr.msra.gmra.mrb[32].mxu0 %v15205_v6  ;;  %v6842_v14 = vld [vmem:[#allocation3 + $0x3c] sm:$0xf] }
 0x3bf   : > { %v12945_v61 = vpack.c.bf16 %v6375_v22, %v6375_v22  ;;  %v12943_v50 = vpack.c.bf16 %v6373_v5, %v6373_v5  ;;  %v6374_v9 = vmax.f32 %v6342_v3, 0.0  ;;  %v6306_v24 = vmul.f32 %v14365_v58, %v17997_v39  ;;  %13876 = vmatprep.mubr.bf16.mxu0 %v15206_v29 }
 0x3c0   : > { %v6553_v60 = vshrl.u32 %v12942_v21, 16  ;;  %v6556_v47 = vshll.u32 %v12942_v21, 16  ;;  %v6536_v32 = vshrl.u32 %v12940_v1, 16  ;;  %v6539_v49 = vshll.u32 %v12940_v1, 16 }
 0x3c1   : > { %v6579_v0 = vshrl.u32 %v12945_v61, 16  ;;  %v6582_v35 = vshll.u32 %v12945_v61, 16  ;;  %v6562_v53 = vshrl.u32 %v12943_v50, 16  ;;  %v6565_v27 = vshll.u32 %v12943_v50, 16  ;;  %v13842_v63 = vpop.f32.mrb[16].mxu0 }
 0x3c2   : > { %v6555_v33 = vrot.slane %v6553_v60, 7  ;;  %v6538_v19 = vrot.slane %v6536_v32, 7  ;;  %v12946_v20 = vpack.c.bf16 %v6376_v2, %v6376_v2  ;;  %v12944_v40 = vpack.c.bf16 %v6374_v9, %v6374_v9  ;;  %v6192_v16 = vpop.f32.mrb[17].mxu0  ;;  %v6853_v32 = vld [vmem:[#allocation3 + $0x50] sm:$0x1] }
 0x3c3   : > { %v6581_v57 = vrot.slane %v6579_v0, 7  ;;  %v18085_v26 = vrot.slane %v6562_v53, 7  ;;  %v6347_v41 = vadd.f32 %v18005_v18, %v6308_v12  ;;  %v6345_v28 = vadd.f32 %v18005_v18, %v6306_v24  ;;  %v18089_v37 = vpop.f32.mrb[18].mxu0 }
 0x3c4   : > { %v6558_v8 = vor.u32 %v6556_v47, %v6555_v33  ;;  %v6560_v36 = vrot.slane %v6555_v33, 4  ;;  %v6541_v54 = vor.u32 %v6539_v49, %v6538_v19  ;;  %v6543_v10 = vrot.slane %v6538_v19, 4  ;;  %v18091_v34 = vpop.f32.mrb[19].mxu0  ;;  %v6846_v33 = vld [vmem:[#allocation3 + $0x44] sm:$0x1] }
 0x3c5   : > { %v6584_v23 = vor.u32 %v6582_v35, %v6581_v57  ;;  %v6585_v22 = vrot.slane %v6581_v57, 4  ;;  %v6567_v5 = vor.u32 %v6565_v27, %v18085_v26  ;;  %v6568_v3 = vrot.slane %v18085_v26, 4 }
 0x3c6   : > { %v6559_v58 = vsel %vm15909_vm7, %v6551_v56, %v6558_v8  ;;  %v6840_v6 = vsel %vm15853_vm2, %v6560_v36, %v6839_v59  ;;  %v6542_v21 = vsel %vm15909_vm7, %v6534_v45, %v6541_v54  ;;  %v6833_v1 = vsel %vm15853_vm2, %v6543_v10, %v6832_v38 }
 0x3c7   : > { %6838 = vst [vmem:[#allocation3 + $0x34] sm:$0xf] %v6559_v58  ;;  %6841 = vst [vmem:[#allocation3 + $0x38] sm:$0x1] %v6840_v6  ;;  %v6850_v15 = vsel %vm15916_vm8, %v6584_v23, %v6849_v25  ;;  %v6843_v56 = vsel %vm15916_vm8, %v6567_v5, %v6842_v14  ;;  %v6587_v2 = vshrl.u32 %v12946_v20, 16  ;;  %v6590_v12 = vshll.u32 %v12946_v20, 16 }
 0x3c8   : > { %6831 = vst [vmem:[#allocation3 + $0x28] sm:$0xf] %v6542_v21  ;;  %6834 = vst [vmem:[#allocation3 + $0x2c] sm:$0x1] %v6833_v1  ;;  %v6570_v4 = vshrl.u32 %v12944_v40, 16  ;;  %v6573_v29 = vshll.u32 %v12944_v40, 16  ;;  %v14366_v9 = vadd.f32 %v18075_v43, %v17992_v44  ;;  %v14367_v24 = vadd.f32 %v17992_v44, %v18079_v48 }
 0x3c9   : > { %6851 = vst [vmem:[#allocation3 + $0x48] sm:$0xf] %v6850_v15  ;;  %6844 = vst [vmem:[#allocation3 + $0x3c] sm:$0xf] %v6843_v56  ;;  %v6379_v45 = vmax.f32 %v6347_v41, 0.0  ;;  %v6377_v61 = vmax.f32 %v6345_v28, 0.0  ;;  %v14368_v60 = vadd.f32 %v13842_v63, %v17992_v44  ;;  %v14369_v0 = vadd.f32 %v17992_v44, %v6192_v16 }
 0x3ca   : > { %v6589_v50 = vrot.slane %v6587_v2, 7  ;;  %v18116_v47 = vpop.f32.mrb[20].mxu0  ;;  %v6572_v49 = vrot.slane %v6570_v4, 7  ;;  %v6309_v43 = vmul.f32 %v14366_v9, %v17997_v39  ;;  %v6307_v19 = vmul.f32 %v14367_v24, %v17997_v39  ;;  %v6863_v41 = vld [vmem:[#allocation3 + $0x60] sm:$0xf] }
 0x3cb   : > { %v12949_v59 = vpack.c.bf16 %v6379_v45, %v6379_v45  ;;  %v12947_v38 = vpack.c.bf16 %v6377_v61, %v6377_v61  ;;  %v18119_v35 = vpop.f32.mrb[21].mxu0  ;;  %v6312_v58 = vmul.f32 %v14368_v60, %v17997_v39  ;;  %v6310_v6 = vmul.f32 %v14369_v0, %v17997_v39  ;;  %v6856_v15 = vld [vmem:[#allocation3 + $0x54] sm:$0xf] }
 0x3cc   : > { %v6592_v53 = vor.u32 %v6590_v12, %v6589_v50  ;;  %v6594_v27 = vrot.slane %v6589_v50, 4  ;;  %v18123_v48 = vpop.f32.mrb[22].mxu0  ;;  %v6575_v63 = vor.u32 %v6573_v29, %v6572_v49  ;;  %v6577_v25 = vrot.slane %v6572_v49, 4 }
 0x3cd   : > { %v6613_v20 = vshrl.u32 %v12949_v59, 16  ;;  %v6616_v40 = vshll.u32 %v12949_v59, 16  ;;  %v18125_v57 = vpop.f32.mrb[23].mxu0  ;;  %v6596_v28 = vshrl.u32 %v12947_v38, 16  ;;  %v6599_v8 = vshll.u32 %v12947_v38, 16 }
 0x3ce   : > { %v6593_v16 = vsel %vm15909_vm7, %v6585_v22, %v6592_v53  ;;  %v6854_v26 = vsel %vm15853_vm2, %v6594_v27, %v6853_v32  ;;  %v6576_v36 = vsel %vm15909_vm7, %v6568_v3, %v6575_v63  ;;  %v6847_v54 = vsel %vm15853_vm2, %v6577_v25, %v6846_v33  ;;  %v15208_v21 = vld [vmem:[#allocation3 + $0x30] sm:$0xff]  }
 0x3cf   : > { %6852 = vst [vmem:[#allocation3 + $0x4c] sm:$0xf] %v6593_v16  ;;  %6855 = vst [vmem:[#allocation3 + $0x50] sm:$0x1] %v6854_v26  ;;  %v18135_v10 = vrot.slane %v6613_v20, 7  ;;  %v6348_v14 = vadd.f32 %v18005_v18, %v6309_v43  ;;  %v15207_v23 = vld [vmem:[#allocation3 + $0x24] sm:$0xff]   ;;  %v6346_v5 = vadd.f32 %v18005_v18, %v6307_v19  ;;  %v14370_v2 = vadd.f32 %v18089_v37, %v17992_v44 }
 0x3d0   : > { %6845 = vst [vmem:[#allocation3 + $0x40] sm:$0xf] %v6576_v36  ;;  %6848 = vst [vmem:[#allocation3 + $0x44] sm:$0x1] %v6847_v54  ;;  %v18138_v22 = vrot.slane %v6596_v28, 7  ;;  %13877 = vmatmul.mubr.bf16.gmra.mrb[36].mxu0 %v15207_v23  ;;  %v6351_v45 = vadd.f32 %v18005_v18, %v6312_v58  ;;  %v6349_v24 = vadd.f32 %v18005_v18, %v6310_v6 }
 0x3d1   : > { %v6618_v3 = vor.u32 %v6616_v40, %v18135_v10  ;;  %v6619_v1 = vrot.slane %v18135_v10, 4  ;;  %v6380_v56 = vmax.f32 %v6348_v14, 0.0  ;;  %v6378_v29 = vmax.f32 %v6346_v5, 0.0  ;;  %13880 = vmatprep.mubr.bf16.mxu0 %v15208_v21  ;;  %v18150_v61 = vpop.f32.mrb[24].mxu0  ;;  %v6860_v58 = vld [vmem:[#allocation3 + $0x5c] sm:$0x1] }
 0x3d2   : > { %v6601_v12 = vor.u32 %v6599_v8, %v18138_v22  ;;  %v6602_v4 = vrot.slane %v18138_v22, 4  ;;  %v6313_v60 = vmul.f32 %v14370_v2, %v17997_v39  ;;  %v18156_v37 = vpop.f32.mrb[25].mxu0  ;;  %v6383_v59 = vmax.f32 %v6351_v45, 0.0  ;;  %v6867_v8 = vld [vmem:[#allocation3 + $0x68] sm:$0x1] }
 0x3d3   : > { %v6864_v50 = vsel %vm15916_vm8, %v6618_v3, %v6863_v41  ;;  %v12950_v9 = vpack.c.bf16 %v6380_v56, %v6380_v56  ;;  %v12948_v49 = vpack.c.bf16 %v6378_v29, %v6378_v29  ;;  %v14371_v38 = vadd.f32 %v17992_v44, %v18091_v34  ;;  %v18162_v0 = vpop.f32.mrb[26].mxu0  ;;  %v6877_v2 = vld [vmem:[#allocation3 + $0x78] sm:$0xf] }
 0x3d4   : > { %6865 = vst [vmem:[#allocation3 + $0x60] sm:$0xf] %v6864_v50  ;;  %v6857_v32 = vsel %vm15916_vm8, %v6601_v12, %v6856_v15  ;;  %v6381_v33 = vmax.f32 %v6349_v24, 0.0  ;;  %v6352_v43 = vadd.f32 %v18005_v18, %v6313_v60  ;;  %v18165_v19 = vpop.f32.mrb[27].mxu0  ;;  %v12953_v20 = vpack.c.bf16 %v6383_v59, %v6383_v59 }
 0x3d5   : > { %6858 = vst [vmem:[#allocation3 + $0x54] sm:$0xf] %v6857_v32  ;;  %v6621_v53 = vshrl.u32 %v12950_v9, 16  ;;  %v6624_v27 = vshll.u32 %v12950_v9, 16  ;;  %v6604_v63 = vshrl.u32 %v12948_v49, 16  ;;  %v6607_v25 = vshll.u32 %v12948_v49, 16 }
 0x3d6   : > { %v6311_v40 = vmul.f32 %v14371_v38, %v17997_v39  ;;  %v12951_v26 = vpack.c.bf16 %v6381_v33, %v6381_v33  ;;  %v6384_v41 = vmax.f32 %v6352_v43, 0.0  ;;  %v14372_v34 = vadd.f32 %v18116_v47, %v17992_v44  ;;  %v15210_v23 = vld [vmem:[#allocation3 + $0x48] sm:$0xff]  }
 0x3d7   : > { %v6623_v16 = vrot.slane %v6621_v53, 7  ;;  %v15209_v28 = vld [vmem:[#allocation3 + $0x3c] sm:$0xff]   ;;  %v6606_v36 = vrot.slane %v6604_v63, 7  ;;  %v6647_v54 = vshrl.u32 %v12953_v20, 16  ;;  %v6650_v10 = vshll.u32 %v12953_v20, 16 }
 0x3d8   : > { %v6350_v14 = vadd.f32 %v18005_v18, %v6311_v40  ;;  %v6630_v6 = vshrl.u32 %v12951_v26, 16  ;;  %v6633_v21 = vshll.u32 %v12951_v26, 16  ;;  %13881 = vmatmul.mubr.bf16.gmra.mrb[40].mxu0 %v15209_v28  ;;  %v12954_v12 = vpack.c.bf16 %v6384_v41, %v6384_v41  ;;  %v6870_v38 = vld [vmem:[#allocation3 + $0x6c] sm:$0xf]  ;;  %v6881_v41 = vld [vmem:[#allocation3 + $0x80] sm:$0x1] }
 0x3d9   : > { %v6626_v22 = vor.u32 %v6624_v27, %v6623_v16  ;;  %v6628_v5 = vrot.slane %v6623_v16, 4  ;;  %v6609_v3 = vor.u32 %v6607_v25, %v6606_v36  ;;  %v6611_v15 = vrot.slane %v6606_v36, 4  ;;  %13884 = vmatprep.mubr.bf16.mxu0 %v15210_v23  ;;  %v18171_v47 = vpop.f32.mrb[28].mxu0 }
 0x3da   : > { %v6649_v56 = vrot.slane %v6647_v54, 7  ;;  %v6632_v50 = vrot.slane %v6630_v6, 7  ;;  %v6382_v9 = vmax.f32 %v6350_v14, 0.0  ;;  %v18177_v24 = vpop.f32.mrb[29].mxu0  ;;  %v6655_v33 = vshrl.u32 %v12954_v12, 16 }
 0x3db   : > { %v6627_v29 = vsel %vm15909_vm7, %v6619_v1, %v6626_v22  ;;  %v6868_v45 = vsel %vm15853_vm2, %v6628_v5, %v6867_v8  ;;  %v6610_v60 = vsel %vm15909_vm7, %v6602_v4, %v6609_v3  ;;  %v6861_v32 = vsel %vm15853_vm2, %v6611_v15, %v6860_v58  ;;  %v18183_v53 = vpop.f32.mrb[30].mxu0  ;;  %v6874_v3 = vld [vmem:[#allocation3 + $0x74] sm:$0x1] }
 0x3dc   : > { %6866 = vst [vmem:[#allocation3 + $0x64] sm:$0xf] %v6627_v29  ;;  %6869 = vst [vmem:[#allocation3 + $0x68] sm:$0x1] %v6868_v45  ;;  %v6652_v49 = vor.u32 %v6650_v10, %v6649_v56  ;;  %v6653_v59 = vrot.slane %v6649_v56, 4  ;;  %v6635_v1 = vor.u32 %v6633_v21, %v6632_v50  ;;  %v6636_v27 = vrot.slane %v6632_v50, 4 }
 0x3dd   : > { %6859 = vst [vmem:[#allocation3 + $0x58] sm:$0xf] %v6610_v60  ;;  %6862 = vst [vmem:[#allocation3 + $0x5c] sm:$0x1] %v6861_v32  ;;  %v6658_v43 = vshll.u32 %v12954_v12, 16  ;;  %v18185_v63 = vpop.f32.mrb[31].mxu0  ;;  %v12952_v4 = vpack.c.bf16 %v6382_v9, %v6382_v9  ;;  %v6316_v20 = vmul.f32 %v14372_v34, %v17997_v39  ;;  %v14373_v40 = vadd.f32 %v17992_v44, %v18119_v35 }
 0x3de   : > { %v6878_v25 = vsel %vm15916_vm8, %v6652_v49, %v6877_v2  ;;  %v6871_v16 = vsel %vm15916_vm8, %v6635_v1, %v6870_v38  ;;  %v6657_v26 = vrot.slane %v6655_v33, 7  ;;  %v14374_v28 = vadd.f32 %v18123_v48, %v17992_v44 }
 0x3df   : > { %6879 = vst [vmem:[#allocation3 + $0x78] sm:$0xf] %v6878_v25  ;;  %v14375_v8 = vadd.f32 %v17992_v44, %v18125_v57  ;;  %6872 = vst [vmem:[#allocation3 + $0x6c] sm:$0xf] %v6871_v16  ;;  %v6638_v36 = vshrl.u32 %v12952_v4, 16  ;;  %v6641_v54 = vshll.u32 %v12952_v4, 16  ;;  %v6355_v34 = vadd.f32 %v18005_v18, %v6316_v20 }
 0x3e0   : > { %v6314_v10 = vmul.f32 %v14373_v40, %v17997_v39  ;;  %v6660_v35 = vor.u32 %v6658_v43, %v6657_v26  ;;  %v6662_v14 = vrot.slane %v6657_v26, 4  ;;  %v6317_v23 = vmul.f32 %v14374_v28, %v17997_v39  ;;  %v6891_v16 = vld [vmem:[#allocation3 + $0x90] sm:$0xf] }
 0x3e1   : > { %v6315_v22 = vmul.f32 %v14375_v8, %v17997_v39  ;;  %v6640_v5 = vrot.slane %v6638_v36, 7  ;;  %v6387_v58 = vmax.f32 %v6355_v34, 0.0  ;;  %v14376_v57 = vadd.f32 %v18150_v61, %v17992_v44 }
 0x3e2   : > { %v6353_v48 = vadd.f32 %v18005_v18, %v6314_v10  ;;  %v6661_v6 = vsel %vm15909_vm7, %v6653_v59, %v6660_v35  ;;  %v6882_v21 = vsel %vm15853_vm2, %v6662_v14, %v6881_v41  ;;  %v6356_v15 = vadd.f32 %v18005_v18, %v6317_v23  ;;  %v6884_v10 = vld [vmem:[#allocation3 + $0x84] sm:$0xf] }
 0x3e3   : > { %v6354_v56 = vadd.f32 %v18005_v18, %v6315_v22  ;;  %v15211_v2 = vld [vmem:[#allocation3 + $0x60] sm:$0xff]   ;;  %6880 = vst [vmem:[#allocation3 + $0x7c] sm:$0xf] %v6661_v6  ;;  %6883 = vst [vmem:[#allocation3 + $0x80] sm:$0x1] %v6882_v21  ;;  %v6643_v12 = vor.u32 %v6641_v54, %v6640_v5  ;;  %v6645_v29 = vrot.slane %v6640_v5, 4  ;;  %v12957_v45 = vpack.c.bf16 %v6387_v58, %v6387_v58 }
 0x3e4   : > { %v6385_v50 = vmax.f32 %v6353_v48, 0.0  ;;  %v15212_v9 = vld [vmem:[#allocation3 + $0x54] sm:$0xff]   ;;  %v6388_v61 = vmax.f32 %v6356_v15, 0.0  ;;  %v6320_v32 = vmul.f32 %v14376_v57, %v17997_v39  ;;  %v14377_v49 = vadd.f32 %v17992_v44, %v18156_v37  ;;  %13888 = vmatprep.mubr.bf16.mxu1 %v15211_v2 }
 0x3e5   : > { %v6386_v60 = vmax.f32 %v6354_v56, 0.0  ;;  %v6644_v59 = vsel %vm15909_vm7, %v6636_v27, %v6643_v12  ;;  %v6875_v38 = vsel %vm15853_vm2, %v6645_v29, %v6874_v3  ;;  %v6681_v1 = vshrl.u32 %v12957_v45, 16  ;;  %13885 = vmatmul.mubr.bf16.gmra.mrb[44].mxu0 %v15212_v9  ;;  %v6895_v48 = vld [vmem:[#allocation3 + $0x98] sm:$0x1] }
 0x3e6   : > { %v6684_v33 = vshll.u32 %v12957_v45, 16  ;;  %6873 = vst [vmem:[#allocation3 + $0x70] sm:$0xf] %v6644_v59  ;;  %6876 = vst [vmem:[#allocation3 + $0x74] sm:$0x1] %v6875_v38  ;;  %v12955_v43 = vpack.c.bf16 %v6385_v50, %v6385_v50  ;;  %v12958_v25 = vpack.c.bf16 %v6388_v61, %v6388_v61  ;;  %v6359_v20 = vadd.f32 %v18005_v18, %v6320_v32  ;;  %v15216_v61 = vld [vmem:[#allocation9 + $0x48] sm:$0xff]  }
 0x3e7   : > { %v12956_v4 = vpack.c.bf16 %v6386_v60, %v6386_v60  ;;  %v6683_v40 = vrot.slane %v6681_v1, 7  ;;  %v6318_v37 = vmul.f32 %v14377_v49, %v17997_v39  ;;  %v14378_v27 = vadd.f32 %v18162_v0, %v17992_v44 }
 0x3e8   : > { %v14379_v26 = vadd.f32 %v17992_v44, %v18165_v19  ;;  %v6664_v41 = vshrl.u32 %v12955_v43, 16  ;;  %v6667_v28 = vshll.u32 %v12955_v43, 16  ;;  %v6689_v8 = vshrl.u32 %v12958_v25, 16  ;;  %v6888_v19 = vld [vmem:[#allocation3 + $0x8c] sm:$0x1] }
 0x3e9   : > { %v6692_v36 = vshll.u32 %v12958_v25, 16  ;;  %v6686_v54 = vor.u32 %v6684_v33, %v6683_v40  ;;  %v6687_v34 = vrot.slane %v6683_v40, 4  ;;  %v6672_v35 = vshrl.u32 %v12956_v4, 16 }
 0x3ea   : > { %v6675_v14 = vshll.u32 %v12956_v4, 16  ;;  %v6666_v23 = vrot.slane %v6664_v41, 7  ;;  %v6691_v22 = vrot.slane %v6689_v8, 7  ;;  %v6391_v5 = vmax.f32 %v6359_v20, 0.0  ;;  %v15215_v38 = vld [vmem:[#allocation3 + $0x78] sm:$0xff]  }
 0x3eb   : > { %v6357_v58 = vadd.f32 %v18005_v18, %v6318_v37  ;;  %v6892_v0 = vsel %vm15916_vm8, %v6686_v54, %v6891_v16  ;;  %v6674_v57 = vrot.slane %v6672_v35, 7  ;;  %v6321_v6 = vmul.f32 %v14378_v27, %v17997_v39  ;;  %v6905_v8 = vld [vmem:[#allocation3 + $0xa8] sm:$0xf] }
 0x3ec   : > { %v6319_v21 = vmul.f32 %v14379_v26, %v17997_v39  ;;  %6893 = vst [vmem:[#allocation3 + $0x90] sm:$0xf] %v6892_v0  ;;  %v6669_v3 = vor.u32 %v6667_v28, %v6666_v23  ;;  %v6670_v15 = vrot.slane %v6666_v23, 4  ;;  %v6694_v56 = vor.u32 %v6692_v36, %v6691_v22  ;;  %v15218_v28 = vld [vmem:[#allocation9 + $0x50] sm:$0xff]   ;;  %v6898_v23 = vld [vmem:[#allocation3 + $0x9c] sm:$0xf] }
 0x3ed   : > { %v6696_v2 = vrot.slane %v6691_v22, 4  ;;  %v6677_v12 = vor.u32 %v6675_v14, %v6674_v57  ;;  %v6679_v29 = vrot.slane %v6674_v57, 4  ;;  %v12961_v45 = vpack.c.bf16 %v6391_v5, %v6391_v5  ;;  %v15213_v9 = vld [vmem:[#allocation3 + $0x6c] sm:$0xff]  }
 0x3ee   : > { %v6389_v50 = vmax.f32 %v6357_v58, 0.0  ;;  %v6885_v60 = vsel %vm15916_vm8, %v6669_v3, %v6884_v10  ;;  %v6695_v32 = vsel %vm15909_vm7, %v6687_v34, %v6694_v56  ;;  %v6360_v59 = vadd.f32 %v18005_v18, %v6321_v6  ;;  %13889 = vmatmul.mubr.bf16.vlgmr.msra.gmra.mrb[0].mxu1 %v15213_v9  ;;  %v15220_v57 = vld [vmem:[#allocation9 + $0x58] sm:$0xff]  }
 0x3ef   : > { %v6896_v49 = vsel %vm15853_vm2, %v6696_v2, %v6895_v48  ;;  %6886 = vst [vmem:[#allocation3 + $0x84] sm:$0xf] %v6885_v60  ;;  %6894 = vst [vmem:[#allocation3 + $0x94] sm:$0xf] %v6695_v32  ;;  %v6678_v1 = vsel %vm15909_vm7, %v6670_v15, %v6677_v12  ;;  %v6889_v33 = vsel %vm15853_vm2, %v6679_v29, %v6888_v19  ;;  %v6715_v43 = vshrl.u32 %v12961_v45, 16 }
 0x3f0   : > { %6897 = vst [vmem:[#allocation3 + $0x98] sm:$0x1] %v6896_v49  ;;  %v6718_v25 = vshll.u32 %v12961_v45, 16  ;;  %6887 = vst [vmem:[#allocation3 + $0x88] sm:$0xf] %v6678_v1  ;;  %v12959_v4 = vpack.c.bf16 %v6389_v50, %v6389_v50  ;;  %v6392_v20 = vmax.f32 %v6360_v59, 0.0  ;;  %v6358_v40 = vadd.f32 %v18005_v18, %v6319_v21  ;;  %13892 = vmatprep.mubr.bf16.mxu1 %v15215_v38 }
 0x3f1   : > { %6890 = vst [vmem:[#allocation3 + $0x8c] sm:$0x1] %v6889_v33  ;;  %v14380_v16 = vadd.f32 %v18171_v47, %v17992_v44  ;;  %13905 = vmatpush3.bf16.msra.mxu1 %v17976_v30  ;;  %v6717_v37 = vrot.slane %v6715_v43, 7  ;;  %v14381_v27 = vadd.f32 %v17992_v44, %v18177_v24  ;;  %v14382_v26 = vadd.f32 %v18183_v53, %v17992_v44  ;;  %v6902_v60 = vld [vmem:[#allocation3 + $0xa4] sm:$0x1] }
 0x3f2   : > { %v14383_v41 = vadd.f32 %v17992_v44, %v18185_v63  ;;  %13906 = vmatprep.subr.bf16.mxu1 %v15216_v61  ;;  %v6698_v36 = vshrl.u32 %v12959_v4, 16  ;;  %v6701_v54 = vshll.u32 %v12959_v4, 16  ;;  %v12962_v34 = vpack.c.bf16 %v6392_v20, %v6392_v20  ;;  %v6909_v63 = vld [vmem:[#allocation3 + $0xb0] sm:$0x1]  ;;  %v15332_v38 = vld [vmem:[%s19948_s5] ss:$0 sm:$0xff] }
 0x3f3   : > { %v6390_v47 = vmax.f32 %v6358_v40, 0.0  ;;  %v6720_v10 = vor.u32 %v6718_v25, %v6717_v37  ;;  %v6721_v35 = vrot.slane %v6717_v37, 4  ;;  %v6324_v30 = vmul.f32 %v14380_v16, %v17997_v39  ;;  %v7321_v20 = vld [vmem:[#allocation3 + $0xc] sm:$0xf] }
 0x3f4   : > { %v6322_v14 = vmul.f32 %v14381_v27, %v17997_v39  ;;  %v6700_v24 = vrot.slane %v6698_v36, 7  ;;  %v6723_v22 = vshrl.u32 %v12962_v34, 16  ;;  %v6726_v53 = vshll.u32 %v12962_v34, 16  ;;  %v6919_v36 = vld [vmem:[#allocation3 + $0xc0] sm:$0xf] }
 0x3f5   : > { %v12960_v5 = vpack.c.bf16 %v6390_v47, %v6390_v47  ;;  %13907 = vmatpush3.bf16.msra.mxu1 %v15216_v61  ;;  %v6906_v44 = vsel %vm15916_vm8, %v6720_v10, %v6905_v8  ;;  %v6363_v58 = vadd.f32 %v18005_v18, %v6324_v30  ;;  %v6325_v48 = vmul.f32 %v14382_v26, %v17997_v39  ;;  %v15224_v26 = vld [vmem:[#allocation9 + $0x68] sm:$0xff]   ;;  %v15333_v34 = vld [vmem:[%s19949_s6] ss:$0 sm:$0xff] }
 0x3f6   : > { %v6361_v0 = vadd.f32 %v18005_v18, %v6322_v14  ;;  %13908 = vmatprep.subr.bf16.mxu1 %v15218_v28  ;;  %6907 = vst [vmem:[#allocation3 + $0xa8] sm:$0xf] %v6906_v44  ;;  %v6703_v19 = vor.u32 %v6701_v54, %v6700_v24  ;;  %v6704_v6 = vrot.slane %v6700_v24, 4  ;;  %v6725_v21 = vrot.slane %v6723_v22, 7  ;;  %v15219_v39 = vld [vmem:[#allocation3 + $0x90] sm:$0xff]  }
 0x3f7   : > { %v6706_v3 = vshrl.u32 %v12960_v5, 16  ;;  %v6709_v15 = vshll.u32 %v12960_v5, 16  ;;  %v6395_v56 = vmax.f32 %v6363_v58, 0.0  ;;  %v6364_v12 = vadd.f32 %v18005_v18, %v6325_v48  ;;  %v15217_v29 = vld [vmem:[#allocation3 + $0x84] sm:$0xff]   ;;  %v15222_v18 = vld [vmem:[#allocation9 + $0x60] sm:$0xff]  }
 0x3f8   : > { %v6393_v2 = vmax.f32 %v6361_v0, 0.0  ;;  %v6899_v45 = vsel %vm15916_vm8, %v6703_v19, %v6898_v23  ;;  %v6728_v50 = vor.u32 %v6726_v53, %v6725_v21  ;;  %v6730_v9 = vrot.slane %v6725_v21, 4  ;;  %13893 = vmatmul.mubr.bf16.gmra.mrb[4].mxu1 %v15217_v29  ;;  %v6912_v24 = vld [vmem:[#allocation3 + $0xb4] sm:$0xf]  ;;  %v6923_v48 = vld [vmem:[#allocation3 + $0xc8] sm:$0x1] }
 0x3f9   : > { %v6708_v61 = vrot.slane %v6706_v3, 7  ;;  %13909 = vmatpush3.bf16.msra.mxu1 %v15218_v28  ;;  %6900 = vst [vmem:[#allocation3 + $0x9c] sm:$0xf] %v6899_v45  ;;  %v12965_v32 = vpack.c.bf16 %v6395_v56, %v6395_v56  ;;  %v6396_v59 = vmax.f32 %v6364_v12, 0.0  ;;  %v6323_v1 = vmul.f32 %v15332_v38, %v14383_v41  ;;  %13896 = vmatprep.mubr.bf16.mxu1 %v15219_v39  ;;  %v18267_v41 = vld [vmem:[#allocation3 + $0x10] sm:$0xf] }
 0x3fa   : > { %v12963_v49 = vpack.c.bf16 %v6393_v2, %v6393_v2  ;;  %13910 = vmatprep.subr.bf16.mxu1 %v15220_v57  ;;  %v6729_v33 = vsel %vm15909_vm7, %v6721_v35, %v6728_v50  ;;  %v6910_v43 = vsel %vm15853_vm2, %v6730_v9, %v6909_v63  ;;  %v7391_v30 = vshrl.u32 %v7321_v20, 16  ;;  %v7324_v19 = vld [vmem:[#allocation3 + $0x18] sm:$0xf]  ;;  %v15226_v12 = vld [vmem:[#allocation9 + $0x70] sm:$0xff]   ;;  %v18293_v50 = vld [vmem:[#allocation3 + $0x1c] sm:$0xf] }
 0x3fb   : > { %v6711_v25 = vor.u32 %v6709_v15, %v6708_v61  ;;  %v6713_v4 = vrot.slane %v6708_v61, 4  ;;  %6908 = vst [vmem:[#allocation3 + $0xac] sm:$0xf] %v6729_v33  ;;  %6911 = vst [vmem:[#allocation3 + $0xb0] sm:$0x1] %v6910_v43  ;;  %v6749_v40 = vshrl.u32 %v12965_v32, 16  ;;  %v12966_v54 = vpack.c.bf16 %v6396_v59, %v6396_v59 }
 0x3fc   : > { %v6752_v16 = vshll.u32 %v12965_v32, 16  ;;  %v6732_v37 = vshrl.u32 %v12963_v49, 16  ;;  %v6735_v27 = vshll.u32 %v12963_v49, 16  ;;  %v6362_v47 = vadd.f32 %v15333_v34, %v6323_v1  ;;  %v6916_v32 = vld [vmem:[#allocation3 + $0xbc] sm:$0x1] }
 0x3fd   : > { %v6712_v28 = vsel %vm15909_vm7, %v6704_v6, %v6711_v25  ;;  %v6903_v8 = vsel %vm15853_vm2, %v6713_v4, %v6902_v60  ;;  %13911 = vmatpush3.bf16.msra.mxu1 %v15220_v57  ;;  %v6751_v10 = vrot.slane %v6749_v40, 7  ;;  %v7394_v14 = vshll.u32 %v7321_v20, 16  ;;  %v18284_v57 = vld [vmem:[#allocation3 + $0x14] sm:$0x1]  ;;  %v18296_v38 = vld [vmem:[#allocation3 + $0x20] sm:$0x1] }
 0x3fe   : > { %6901 = vst [vmem:[#allocation3 + $0xa0] sm:$0xf] %v6712_v28  ;;  %6904 = vst [vmem:[#allocation3 + $0xa4] sm:$0x1] %v6903_v8  ;;  %v18276_v35 = vrot.slane %v6732_v37, 7  ;;  %13912 = vmatprep.subr.bf16.mxu1 %v15222_v18  ;;  %v6757_v23 = vshrl.u32 %v12966_v54, 16  ;;  %v7389_v53 = vsel %vm16131_vm11, %v18021_v31, %v18024_v13 }
 0x3ff   : > { %v6394_v22 = vmax.f32 %v6362_v47, 0.0  ;;  %v7400_v5 = vshll.u32 %v18267_v41, 16  ;;  %v6754_v44 = vor.u32 %v6752_v16, %v6751_v10  ;;  %v6755_v63 = vrot.slane %v6751_v10, 4  ;;  %v15227_v4 = vld [vmem:[#allocation9 + $0x78] sm:$0xff]   ;;  %v7327_v8 = vld [vmem:[#allocation3 + $0x24] sm:$0xf] }
 0x400   : > { %v6737_v58 = vor.u32 %v6735_v27, %v18276_v35  ;;  %v6760_v0 = vshll.u32 %v12966_v54, 16  ;;  %v6759_v6 = vrot.slane %v6757_v23, 7  ;;  %v7393_v3 = vrot.slane %v7391_v30, 4  ;;  %v18333_v13 = vld [vmem:[#allocation3 + $0x34] sm:$0xf] }
 0x401   : > { %v12964_v21 = vpack.c.bf16 %v6394_v22, %v6394_v22  ;;  %13913 = vmatpush3.bf16.msra.mxu1 %v15222_v18  ;;  %v7396_v15 = vrot.slane %v7394_v14, 5  ;;  %v6920_v56 = vsel %vm15916_vm8, %v6754_v44, %v6919_v36  ;;  %v18290_v29 = vrot.slane %v7400_v5, 5  ;;  %v18315_v5 = vld [vmem:[#allocation9 + $0x80] sm:$0xff]  }
 0x402   : > { %v6913_v2 = vsel %vm15916_vm8, %v6737_v58, %v6912_v24  ;;  %13914 = vmatprep.subr.bf16.mxu1 %v15224_v26  ;;  %v7404_v45 = vshrl.u32 %v18267_v41, 16  ;;  %6921 = vst [vmem:[#allocation3 + $0xc0] sm:$0xf] %v6920_v56  ;;  %v6762_v9 = vor.u32 %v6760_v0, %v6759_v6  ;;  %v6764_v61 = vrot.slane %v6759_v6, 4  ;;  %v15223_v16 = vld [vmem:[#allocation3 + $0xa8] sm:$0xff]  }
 0x403   : > { %6914 = vst [vmem:[#allocation3 + $0xb4] sm:$0xf] %v6913_v2  ;;  %v6740_v39 = vshrl.u32 %v12964_v21, 16  ;;  %v6743_v60 = vshll.u32 %v12964_v21, 16  ;;  %v7397_v49 = vor.u32 %v7396_v15, %v7393_v3  ;;  %v7410_v17 = vshll.u32 %v18284_v57, 16 }
 0x404   : > { %v7406_v59 = vrot.slane %v7404_v45, 4  ;;  %v7415_v1 = vshrl.u32 %v7324_v19, 16  ;;  %v6763_v18 = vsel %vm15909_vm7, %v6755_v63, %v6762_v9  ;;  %v6924_v33 = vsel %vm15853_vm2, %v6764_v61, %v6923_v48  ;;  %v18309_v24 = vld [vmem:[#allocation3 + $0x2c] sm:$0x1]  ;;  %v7333_v45 = vld [vmem:[#allocation3 + $0x3c] sm:$0xf] }
 0x405   : > { %v6742_v43 = vrot.slane %v6740_v39, 7  ;;  %v15221_v25 = vld [vmem:[#allocation3 + $0x9c] sm:$0xff]   ;;  %13915 = vmatpush3.bf16.msra.mxu1 %v15224_v26  ;;  %v7418_v20 = vshll.u32 %v7324_v19, 16  ;;  %v6738_v40 = vrot.slane %v18276_v35, 4  ;;  %6922 = vst [vmem:[#allocation3 + $0xc4] sm:$0xf] %v6763_v18  ;;  %v12648_v7 = vcombine.low %v7379_v52, %v7389_v53 }
 0x406   : > { %6925 = vst [vmem:[#allocation3 + $0xc8] sm:$0x1] %v6924_v33  ;;  %13916 = vmatprep.subr.bf16.mxu1 %v15226_v12  ;;  %v7398_v37 = vrot.slane %v7397_v49, 4  ;;  %v7407_v27 = vor.u32 %v7406_v59, %v18290_v29  ;;  %v7417_v28 = vrot.slane %v7415_v1, 4  ;;  %13897 = vmatmul.mubr.bf16.gmra.mrb[8].mxu1 %v15221_v25  ;;  %v7424_v47 = vshll.u32 %v18293_v50, 16 }
 0x407   : > { %v6745_v36 = vor.u32 %v6743_v60, %v6742_v43  ;;  %v6747_v54 = vrot.slane %v6742_v43, 4  ;;  %v7420_v34 = vrot.slane %v7418_v20, 5  ;;  %v18305_v26 = vld [vmem:[#allocation3 + $0x28] sm:$0xf]  ;;  %13900 = vmatprep.mubr.bf16.mxu1 %v15223_v16  ;;  %v7412_v35 = vrot.slane %v7410_v17, 5 }
 0x408   : > { %v7408_v10 = vrot.slane %v7407_v27, 4  ;;  %v7428_v30 = vshrl.u32 %v18293_v50, 16  ;;  %v7434_v14 = vshll.u32 %v18296_v38, 16  ;;  %v7426_v63 = vrot.slane %v7424_v47, 5  ;;  %v7330_v19 = vld [vmem:[#allocation3 + $0x30] sm:$0xf] }
 0x409   : > { %v6746_v23 = vsel %vm15909_vm7, %v6738_v40, %v6745_v36  ;;  %v6917_v22 = vsel %vm15853_vm2, %v6747_v54, %v6916_v32  ;;  %13917 = vmatpush3.bf16.msra.mxu1 %v15226_v12  ;;  %v7421_v44 = vor.u32 %v7420_v34, %v7417_v28  ;;  %v7403_v58 = vsel %vm16131_vm11, %v7398_v37, %v18290_v29  ;;  %v18337_v52 = vld [vmem:[#allocation3 + $0x38] sm:$0x1]  ;;  %v18342_v32 = vld [vmem:[#allocation3 + $0x40] sm:$0xf]  ;;  %v7336_v54 = vld [vmem:[#allocation3 + $0x48] sm:$0xf] }
 0x40a   : > { %6915 = vst [vmem:[#allocation3 + $0xb8] sm:$0xf] %v6746_v23  ;;  %6918 = vst [vmem:[#allocation3 + $0xbc] sm:$0x1] %v6917_v22  ;;  %13918 = vmatprep.subr.bf16.mxu1 %v15227_v4  ;;  %v7430_v0 = vrot.slane %v7428_v30, 4  ;;  %v7439_v48 = vshrl.u32 %v7327_v8, 16  ;;  %v7413_v6 = vsel %vm16131_vm11, %v7408_v10, %v7412_v35 }
 0x40b   : > { %v7436_v21 = vrot.slane %v7434_v14, 5  ;;  %v7442_v3 = vshll.u32 %v7327_v8, 16  ;;  %v7448_v31 = vshll.u32 %v18305_v26, 16  ;;  %v7452_v46 = vshrl.u32 %v18305_v26, 16  ;;  %v18351_v10 = vld [vmem:[#allocation3 + $0x44] sm:$0x1] }
 0x40c   : > { %v7431_v15 = vor.u32 %v7430_v0, %v7426_v63  ;;  %v7441_v56 = vrot.slane %v7439_v48, 4  ;;  %v7458_v51 = vshll.u32 %v18309_v24, 16  ;;  %v7422_v53 = vrot.slane %v7421_v44, 4  ;;  %v18354_v14 = vld [vmem:[#allocation3 + $0x4c] sm:$0xf] }
 0x40d   : > { %13919 = vmatpush3.bf16.msra.mxu1 %v15227_v4  ;;  %v7444_v2 = vrot.slane %v7442_v3, 5  ;;  %v7450_v12 = vrot.slane %v7448_v31, 5  ;;  %v7463_v29 = vshrl.u32 %v7330_v19, 16  ;;  %v18339_v9 = vcombine.low %v7403_v58, %v7413_v6 }
 0x40e   : > { %13952 = vmatprep.subr.bf16.mxu1 %v18315_v5  ;;  %v7432_v61 = vrot.slane %v7431_v15, 4  ;;  %v7454_v39 = vrot.slane %v7452_v46, 4  ;;  %v7466_v60 = vshll.u32 %v7330_v19, 16  ;;  %v7472_v17 = vshll.u32 %v18333_v13, 16 }
 0x40f   : > { %v7445_v49 = vor.u32 %v7444_v2, %v7441_v56  ;;  %v7465_v59 = vrot.slane %v7463_v29, 4  ;;  %v7476_v1 = vshrl.u32 %v18333_v13, 16  ;;  %v7460_v43 = vrot.slane %v7458_v51, 5  ;;  %v7339_v51 = vld [vmem:[#allocation3 + $0x54] sm:$0xf] }
 0x410   : > { %v7437_v18 = vsel %vm16131_vm11, %v7432_v61, %v7436_v21  ;;  %v7455_v33 = vor.u32 %v7454_v39, %v7450_v12  ;;  %v7468_v25 = vrot.slane %v7466_v60, 5  ;;  %v7427_v20 = vsel %vm16131_vm11, %v7422_v53, %v7426_v63  ;;  %v18371_v61 = vld [vmem:[#allocation3 + $0x58] sm:$0xf]  ;;  %v15229_v39 = vld [vmem:[#allocation9 + $0x88] sm:$0xff]  }
 0x411   : > { %v15225_v4 = vld [vmem:[#allocation3 + $0xb4] sm:$0xff]   ;;  %v7474_v40 = vrot.slane %v7472_v17, 5  ;;  %v7478_v16 = vrot.slane %v7476_v1, 4  ;;  %v7482_v37 = vshll.u32 %v18337_v52, 16  ;;  %v7446_v27 = vrot.slane %v7445_v49, 4 }
 0x412   : > { %v7456_v28 = vrot.slane %v7455_v33, 4  ;;  %v7469_v8 = vor.u32 %v7468_v25, %v7465_v59  ;;  %v7487_v36 = vshrl.u32 %v7333_v45, 16  ;;  %13901 = vmatmul.mubr.bf16.gmra.mrb[12].mxu1 %v15225_v4  ;;  %v12650_v34 = vcombine.low %v7427_v20, %v7437_v18  ;;  %v7342_v25 = vld [vmem:[#allocation3 + $0x60] sm:$0xf] }
 0x413   : > { %v7479_v47 = vor.u32 %v7478_v16, %v7474_v40  ;;  %v7490_v35 = vshll.u32 %v7333_v45, 16  ;;  %v7496_v30 = vshll.u32 %v18342_v32, 16  ;;  %13920 = vmatprep.mubr.bf16.mxu1 %v12648_v7  ;;  %v7500_v63 = vshrl.u32 %v18342_v32, 16  ;;  %v18369_v45 = vld [vmem:[#allocation3 + $0x50] sm:$0x1] }
 0x414   : > { %v7461_v23 = vsel %vm16131_vm11, %v7456_v28, %v7460_v43  ;;  %v7470_v22 = vrot.slane %v7469_v8, 4  ;;  %v7489_v44 = vrot.slane %v7487_v36, 4  ;;  %v7484_v0 = vrot.slane %v7482_v37, 5  ;;  %v18376_v16 = vld [vmem:[#allocation3 + $0x5c] sm:$0x1] }
 0x415   : > { %v7480_v58 = vrot.slane %v7479_v47, 4  ;;  %v7492_v48 = vrot.slane %v7490_v35, 5  ;;  %v7498_v19 = vrot.slane %v7496_v30, 5  ;;  %v7451_v6 = vsel %vm16131_vm11, %v7446_v27, %v7450_v12  ;;  %v15230_v47 = vld [vmem:[#allocation9 + $0x90] sm:$0xff]  }
 0x416   : > { %v7502_v21 = vrot.slane %v7500_v63, 4  ;;  %v7506_v3 = vshll.u32 %v18351_v10, 16  ;;  %v7511_v31 = vshrl.u32 %v7336_v54, 16  ;;  %v18362_v15 = vcombine.low %v7451_v6, %v7461_v23 }
 0x417   : > { %v7493_v7 = vor.u32 %v7492_v48, %v7489_v44  ;;  %v7514_v56 = vshll.u32 %v7336_v54, 16  ;;  %v7520_v46 = vshll.u32 %v18354_v14, 16  ;;  %v7475_v53 = vsel %vm16131_vm11, %v7470_v22, %v7474_v40  ;;  %v18382_v54 = vld [vmem:[#allocation3 + $0x64] sm:$0xf] }
 0x418   : > { %v7485_v2 = vsel %vm16131_vm11, %v7480_v58, %v7484_v0  ;;  %v7503_v29 = vor.u32 %v7502_v21, %v7498_v19  ;;  %v7513_v12 = vrot.slane %v7511_v31, 4  ;;  %v7524_v17 = vshrl.u32 %v18354_v14, 16  ;;  %v18388_v0 = vld [vmem:[#allocation3 + $0x68] sm:$0x1] }
 0x419   : > { %v7494_v60 = vrot.slane %v7493_v7, 4  ;;  %v7516_v49 = vrot.slane %v7514_v56, 5  ;;  %v7522_v59 = vrot.slane %v7520_v46, 5  ;;  %v7508_v18 = vrot.slane %v7506_v3, 5  ;;  %v7345_v7 = vld [vmem:[#allocation3 + $0x6c] sm:$0xf] }
 0x41a   : > { %v7504_v1 = vrot.slane %v7503_v29, 4  ;;  %v7535_v33 = vshrl.u32 %v7339_v51, 16  ;;  %v7538_v43 = vshll.u32 %v7339_v51, 16  ;;  %13921 = vmatmul.mubr.bf16.vlgmr.msra.gmra.mrb[16].mxu1 %v18339_v9  ;;  %v7526_v20 = vrot.slane %v7524_v17, 4  ;;  %v15231_v46 = vld [vmem:[#allocation9 + $0x98] sm:$0xff]  }
 0x41b   : > { %v7517_v4 = vor.u32 %v7516_v49, %v7513_v12  ;;  %v7530_v40 = vshll.u32 %v18369_v45, 16  ;;  %v7544_v37 = vshll.u32 %v18371_v61, 16  ;;  %13924 = vmatprep.mubr.bf16.mxu1 %v12650_v34  ;;  %13953 = vmatpush3.bf16.msra.mxu1 %v18315_v5  ;;  %v12652_v27 = vcombine.low %v7475_v53, %v7485_v2  ;;  %v18394_v29 = vld [vmem:[#allocation3 + $0x70] sm:$0xf] }
 0x41c   : > { %v7499_v28 = vsel %vm16131_vm11, %v7494_v60, %v7498_v19  ;;  %v7537_v8 = vrot.slane %v7535_v33, 4  ;;  %v7540_v36 = vrot.slane %v7538_v43, 5  ;;  %13954 = vmatprep.subr.bf16.mxu1 %v15229_v39  ;;  %v7509_v9 = vsel %vm16131_vm11, %v7504_v1, %v7508_v18 }
 0x41d   : > { %v7518_v35 = vrot.slane %v7517_v4, 4  ;;  %v7527_v30 = vor.u32 %v7526_v20, %v7522_v59  ;;  %v7546_v23 = vrot.slane %v7544_v37, 5  ;;  %v7548_v34 = vshrl.u32 %v18371_v61, 16  ;;  %v18400_v4 = vld [vmem:[#allocation3 + $0x74] sm:$0x1] }
 0x41e   : > { %v7541_v22 = vor.u32 %v7540_v36, %v7537_v8  ;;  %v7554_v5 = vshll.u32 %v18376_v16, 16  ;;  %v7559_v44 = vshrl.u32 %v7342_v25, 16  ;;  %v7532_v58 = vrot.slane %v7530_v40, 5  ;;  %v15232_v8 = vld [vmem:[#allocation9 + $0xa0] sm:$0xff]  }
 0x41f   : > { %v7528_v63 = vrot.slane %v7527_v30, 4  ;;  %v7562_v48 = vshll.u32 %v7342_v25, 16  ;;  %v7568_v19 = vshll.u32 %v18382_v54, 16  ;;  %13955 = vmatpush3.bf16.msra.mxu1 %v15229_v39  ;;  %v12653_v6 = vcombine.low %v7499_v28, %v7509_v9  ;;  %v7348_v36 = vld [vmem:[#allocation3 + $0x78] sm:$0xf] }
 0x420   : > { %v7542_v21 = vrot.slane %v7541_v22, 4  ;;  %v7550_v3 = vrot.slane %v7548_v34, 4  ;;  %v7561_v31 = vrot.slane %v7559_v44, 4  ;;  %13956 = vmatprep.subr.bf16.mxu1 %v15230_v47  ;;  %v7572_v2 = vshrl.u32 %v18382_v54, 16  ;;  %v18408_v30 = vld [vmem:[#allocation3 + $0x7c] sm:$0xf] }
 0x421   : > { %v7533_v56 = vsel %vm16131_vm11, %v7528_v63, %v7532_v58  ;;  %v7564_v51 = vrot.slane %v7562_v48, 5  ;;  %v7570_v53 = vrot.slane %v7568_v19, 5  ;;  %v7523_v12 = vsel %vm16131_vm11, %v7518_v35, %v7522_v59  ;;  %v18413_v58 = vld [vmem:[#allocation3 + $0x80] sm:$0x1] }
 0x422   : > { %v7551_v39 = vor.u32 %v7550_v3, %v7546_v23  ;;  %v7556_v60 = vrot.slane %v7554_v5, 5  ;;  %v7578_v49 = vshll.u32 %v18388_v0, 16  ;;  %13925 = vmatmul.mubr.bf16.gmra.mrb[20].mxu1 %v18362_v15  ;;  %v7574_v1 = vrot.slane %v7572_v2, 4 }
 0x423   : > { %v7565_v17 = vor.u32 %v7564_v51, %v7561_v31  ;;  %v7583_v18 = vshrl.u32 %v7345_v7, 16  ;;  %v7586_v33 = vshll.u32 %v7345_v7, 16  ;;  %13928 = vmatprep.mubr.bf16.mxu1 %v12652_v27  ;;  %v12654_v43 = vcombine.low %v7523_v12, %v7533_v56  ;;  %13957 = vmatpush3.bf16.msra.mxu1 %v15230_v47  ;;  %v7351_v56 = vld [vmem:[#allocation3 + $0x84] sm:$0xf] }
 0x424   : > { %v7552_v25 = vrot.slane %v7551_v39, 4  ;;  %v7592_v20 = vshll.u32 %v18394_v29, 16  ;;  %v7596_v59 = vshrl.u32 %v18394_v29, 16  ;;  %v7547_v40 = vsel %vm16131_vm11, %v7542_v21, %v7546_v23  ;;  %13958 = vmatprep.subr.bf16.mxu1 %v15231_v46  ;;  %v15233_v51 = vld [vmem:[#allocation9 + $0xa8] sm:$0xff]  }
 0x425   : > { %v7575_v37 = vor.u32 %v7574_v1, %v7570_v53  ;;  %v7585_v15 = vrot.slane %v7583_v18, 4  ;;  %v7588_v28 = vrot.slane %v7586_v33, 5  ;;  %v7566_v9 = vrot.slane %v7565_v17, 4 }
 0x426   : > { %v7557_v27 = vsel %vm16131_vm11, %v7552_v25, %v7556_v60  ;;  %v7594_v47 = vrot.slane %v7592_v20, 5  ;;  %v7598_v35 = vrot.slane %v7596_v59, 4  ;;  %v7580_v34 = vrot.slane %v7578_v49, 5  ;;  %v18421_v60 = vld [vmem:[#allocation3 + $0x88] sm:$0xf] }
 0x427   : > { %v7576_v22 = vrot.slane %v7575_v37, 4  ;;  %v7589_v5 = vor.u32 %v7588_v28, %v7585_v15  ;;  %v7602_v44 = vshll.u32 %v18400_v4, 16  ;;  %v18411_v23 = vcombine.low %v7547_v40, %v7557_v27  ;;  %13959 = vmatpush3.bf16.msra.mxu1 %v15231_v46  ;;  %v7354_v40 = vld [vmem:[#allocation3 + $0x90] sm:$0xf] }
 0x428   : > { %v7599_v63 = vor.u32 %v7598_v35, %v7594_v47  ;;  %v7607_v48 = vshrl.u32 %v7348_v36, 16  ;;  %v7610_v19 = vshll.u32 %v7348_v36, 16  ;;  %13960 = vmatprep.subr.bf16.mxu1 %v15232_v8  ;;  %v7616_v31 = vshll.u32 %v18408_v30, 16  ;;  %v15234_v36 = vld [vmem:[#allocation9 + $0xb0] sm:$0xff]   ;;  %v18432_v35 = vld [vmem:[#allocation3 + $0x94] sm:$0xf] }
 0x429   : > { %v7581_v21 = vsel %vm16131_vm11, %v7576_v22, %v7580_v34  ;;  %v7590_v3 = vrot.slane %v7589_v5, 4  ;;  %v7620_v7 = vshrl.u32 %v18408_v30, 16  ;;  %v7571_v2 = vsel %vm16131_vm11, %v7566_v9, %v7570_v53  ;;  %v18436_v5 = vld [vmem:[#allocation3 + $0x98] sm:$0x1] }
 0x42a   : > { %v7600_v46 = vrot.slane %v7599_v63, 4  ;;  %v7609_v12 = vrot.slane %v7607_v48, 4  ;;  %v7612_v39 = vrot.slane %v7610_v19, 5  ;;  %13929 = vmatmul.mubr.bf16.gmra.mrb[24].mxu1 %v12653_v6  ;;  %v7604_v49 = vrot.slane %v7602_v44, 5  ;;  %v18428_v6 = vld [vmem:[#allocation3 + $0x8c] sm:$0x1] }
 0x42b   : > { %v7618_v17 = vrot.slane %v7616_v31, 5  ;;  %v7622_v1 = vrot.slane %v7620_v7, 4  ;;  %v7626_v18 = vshll.u32 %v18413_v58, 16  ;;  %13932 = vmatprep.mubr.bf16.mxu1 %v12654_v43  ;;  %v12656_v33 = vcombine.low %v7571_v2, %v7581_v21  ;;  %13961 = vmatpush3.bf16.msra.mxu1 %v15232_v8 }
 0x42c   : > { %v7613_v25 = vor.u32 %v7612_v39, %v7609_v12  ;;  %v7631_v20 = vshrl.u32 %v7351_v56, 16  ;;  %v7634_v59 = vshll.u32 %v7351_v56, 16  ;;  %v7595_v53 = vsel %vm16131_vm11, %v7590_v3, %v7594_v47  ;;  %13962 = vmatprep.subr.bf16.mxu1 %v15233_v51  ;;  %v7357_v3 = vld [vmem:[#allocation3 + $0x9c] sm:$0xf] }
 0x42d   : > { %v7605_v37 = vsel %vm16131_vm11, %v7600_v46, %v7604_v49  ;;  %v7623_v15 = vor.u32 %v7622_v1, %v7618_v17  ;;  %v7640_v28 = vshll.u32 %v18421_v60, 16  ;;  %v7644_v8 = vshrl.u32 %v18421_v60, 16  ;;  %v15235_v46 = vld [vmem:[#allocation9 + $0xb8] sm:$0xff]  }
 0x42e   : > { %v7614_v43 = vrot.slane %v7613_v25, 4  ;;  %v7633_v27 = vrot.slane %v7631_v20, 4  ;;  %v7636_v9 = vrot.slane %v7634_v59, 5  ;;  %v7628_v34 = vrot.slane %v7626_v18, 5  ;;  %v18445_v18 = vld [vmem:[#allocation3 + $0xa0] sm:$0xf] }
 0x42f   : > { %v7624_v22 = vrot.slane %v7623_v15, 4  ;;  %v18434_v47 = vrot.slane %v7640_v28, 5  ;;  %v7655_v44 = vshrl.u32 %v7354_v40, 16  ;;  %v7646_v48 = vrot.slane %v7644_v8, 4  ;;  %13963 = vmatpush3.bf16.msra.mxu1 %v15233_v51  ;;  %v18453_v8 = vld [vmem:[#allocation9 + $0xc0] sm:$0xff]  }
 0x430   : > { %v7637_v63 = vor.u32 %v7636_v9, %v7633_v27  ;;  %v7650_v19 = vshll.u32 %v18428_v6, 16  ;;  %v7658_v21 = vshll.u32 %v7354_v40, 16  ;;  %v12657_v31 = vcombine.low %v7595_v53, %v7605_v37  ;;  %13964 = vmatprep.subr.bf16.mxu1 %v15234_v36  ;;  %v18450_v37 = vld [vmem:[#allocation3 + $0xa4] sm:$0x1] }
 0x431   : > { %v7619_v7 = vsel %vm16131_vm11, %v7614_v43, %v7618_v17  ;;  %v7657_v56 = vrot.slane %v7655_v44, 4  ;;  %v7664_v2 = vshll.u32 %v18432_v35, 16  ;;  %v7629_v12 = vsel %vm16131_vm11, %v7624_v22, %v7628_v34 }
 0x432   : > { %v7638_v39 = vrot.slane %v7637_v63, 4  ;;  %v7647_v49 = vor.u32 %v7646_v48, %v18434_v47  ;;  %v7660_v1 = vrot.slane %v7658_v21, 5  ;;  %13933 = vmatmul.mubr.bf16.gmra.mrb[28].mxu1 %v18411_v23  ;;  %v7668_v25 = vshrl.u32 %v18432_v35, 16  ;;  %v7360_v23 = vld [vmem:[#allocation3 + $0xa8] sm:$0xf] }
 0x433   : > { %v7666_v51 = vrot.slane %v7664_v2, 5  ;;  %v7674_v17 = vshll.u32 %v18436_v5, 16  ;;  %v7679_v20 = vshrl.u32 %v7357_v3, 16  ;;  %13936 = vmatprep.mubr.bf16.mxu1 %v12656_v33  ;;  %v7652_v40 = vrot.slane %v7650_v19, 5  ;;  %13965 = vmatpush3.bf16.msra.mxu1 %v15234_v36  ;;  %v18459_v63 = vld [vmem:[#allocation3 + $0xac] sm:$0xf] }
 0x434   : > { %v7648_v59 = vrot.slane %v7647_v49, 4  ;;  %v7661_v53 = vor.u32 %v7660_v1, %v7657_v56  ;;  %v7682_v15 = vshll.u32 %v7357_v3, 16  ;;  %v12658_v28 = vcombine.low %v7619_v7, %v7629_v12  ;;  %13966 = vmatprep.subr.bf16.mxu1 %v15235_v46  ;;  %v18462_v3 = vld [vmem:[#allocation3 + $0xb0] sm:$0x1] }
 0x435   : > { %v7670_v43 = vrot.slane %v7668_v25, 4  ;;  %v7681_v27 = vrot.slane %v7679_v20, 4  ;;  %v7688_v9 = vshll.u32 %v18445_v18, 16  ;;  %v7643_v33 = vsel %vm16131_vm11, %v7638_v39, %v18434_v47  ;;  %v7363_v47 = vld [vmem:[#allocation3 + $0xb4] sm:$0xf] }
 0x436   : > { %v7676_v22 = vrot.slane %v7674_v17, 5  ;;  %v7684_v34 = vrot.slane %v7682_v15, 5  ;;  %v7692_v44 = vshrl.u32 %v18445_v18, 16  ;;  %v7662_v36 = vrot.slane %v7661_v53, 4 }
 0x437   : > { %v7671_v48 = vor.u32 %v7670_v43, %v7666_v51  ;;  %v7690_v19 = vrot.slane %v7688_v9, 5  ;;  %v7698_v21 = vshll.u32 %v18450_v37, 16  ;;  %v7653_v7 = vsel %vm16131_vm11, %v7648_v59, %v7652_v40  ;;  %13967 = vmatpush3.bf16.msra.mxu1 %v15235_v46  ;;  %v18469_v43 = vld [vmem:[#allocation3 + $0xb8] sm:$0xf]  ;;  %v18474_v9 = vld [vmem:[#allocation3 + $0xbc] sm:$0x1] }
 0x438   : > { %v7685_v56 = vor.u32 %v7684_v34, %v7681_v27  ;;  %v7694_v2 = vrot.slane %v7692_v44, 4  ;;  %v7703_v12 = vshrl.u32 %v7360_v23, 16  ;;  %v7706_v1 = vshll.u32 %v7360_v23, 16  ;;  %14000 = vmatprep.subr.bf16.mxu1 %v18453_v8 }
 0x439   : > { %v7672_v39 = vrot.slane %v7671_v48, 4  ;;  %v7700_v49 = vrot.slane %v7698_v21, 5  ;;  %v7712_v25 = vshll.u32 %v18459_v63, 16  ;;  %v7716_v15 = vshrl.u32 %v18459_v63, 16  ;;  %v8072_v21 = vld [vmem:[#allocation3] sm:$0xe] }
 0x43a   : > { %v7686_v17 = vrot.slane %v7685_v56, 4  ;;  %v7695_v20 = vor.u32 %v7694_v2, %v7690_v19  ;;  %v7705_v53 = vrot.slane %v7703_v12, 4  ;;  %13937 = vmatmul.mubr.bf16.gmra.mrb[0].mxu1 %v12657_v31  ;;  %v7708_v40 = vrot.slane %v7706_v1, 5 }
 0x43b   : > { %v7677_v59 = vsel %vm16131_vm11, %v7672_v39, %v7676_v22  ;;  %v7714_v46 = vrot.slane %v7712_v25, 5  ;;  %v7722_v27 = vshll.u32 %v18462_v3, 16  ;;  %13940 = vmatprep.mubr.bf16.mxu1 %v12658_v28  ;;  %v12659_v23 = vcombine.low %v7643_v33, %v7653_v7 }
 0x43c   : > { %v7667_v34 = vsel %vm16131_vm11, %v7662_v36, %v7666_v51  ;;  %v7696_v44 = vrot.slane %v7695_v20, 4  ;;  %v7718_v48 = vrot.slane %v7716_v15, 4  ;;  %v7709_v56 = vor.u32 %v7708_v40, %v7705_v53  ;;  %v15334_v40 = vld [vmem:[#allocation3 + $0x4] sm:$0xf] }
 0x43d   : > { %v7724_v2 = vrot.slane %v7722_v27, 5  ;;  %v7727_v31 = vshrl.u32 %v7363_v47, 16  ;;  %v7730_v12 = vshll.u32 %v7363_v47, 16  ;;  %v12660_v11 = vcombine.low %v7667_v34, %v7677_v59 }
 0x43e   : > { %v7719_v22 = vor.u32 %v7718_v48, %v7714_v46  ;;  %v7736_v39 = vshll.u32 %v18469_v43, 16  ;;  %v7740_v1 = vshrl.u32 %v18469_v43, 16  ;;  %v7701_v28 = vsel %vm16131_vm11, %v7696_v44, %v7700_v49  ;;  %v15335_v44 = vld [vmem:[#allocation3 + $0x8] sm:$0x1] }
 0x43f   : > { %v7710_v33 = vrot.slane %v7709_v56, 4  ;;  %v7729_v7 = vrot.slane %v7727_v31, 4  ;;  %v7732_v25 = vrot.slane %v7730_v12, 5  ;;  %v7746_v53 = vshll.u32 %v18474_v9, 16  ;;  %v8073_v31 = vld [vmem:[#allocation3 + $0xc] sm:$0xe] }
 0x440   : > { %v7720_v51 = vrot.slane %v7719_v22, 4  ;;  %v7738_v36 = vrot.slane %v7736_v39, 5  ;;  %v7742_v20 = vrot.slane %v7740_v1, 4  ;;  %v7691_v47 = vsel %vm16131_vm11, %v7686_v17, %v7690_v19  ;;  %v8074_v19 = vld [vmem:[#allocation3 + $0x18] sm:$0xe] }
 0x441   : > { %v7733_v15 = vor.u32 %v7732_v25, %v7729_v7  ;;  %v12672_v59 = vrot.slane %v8072_v21, 9  ;;  %v8138_v27 = vrot.slane %v15334_v40, 5  ;;  %v12661_v34 = vcombine.low %v7691_v47, %v7701_v28  ;;  %v8075_v7 = vld [vmem:[#allocation3 + $0x24] sm:$0xe]  ;;  %v8076_v25 = vld [vmem:[#allocation3 + $0x30] sm:$0xe] }
 0x442   : > { %v7725_v48 = vsel %vm16131_vm11, %v7720_v51, %v7724_v2  ;;  %v7743_v49 = vor.u32 %v7742_v20, %v7738_v36  ;;  %v8141_v56 = vrot.slane %v15335_v44, 5  ;;  %13941 = vmatmul.mubr.bf16.gmra.mrb[4].mxu1 %v12659_v23  ;;  %v7715_v12 = vsel %vm16131_vm11, %v7710_v33, %v7714_v46  ;;  %v8077_v40 = vld [vmem:[#allocation3 + $0x3c] sm:$0xe] }
 0x443   : > { %v7734_v22 = vrot.slane %v7733_v15, 4  ;;  %v7748_v39 = vrot.slane %v7746_v53, 5  ;;  %v8140_v1 = vrot.slane %v8138_v27, 4  ;;  %13944 = vmatprep.mubr.bf16.mxu1 %v12660_v11  ;;  %v12662_v17 = vcombine.low %v7715_v12, %v7725_v48 }
 0x444   : > { %v7744_v21 = vrot.slane %v7743_v49, 4  ;;  %v18491_v28 = vsel %vm16559_vm14, %v12672_v59, %v8138_v27  ;;  %v8145_v2 = vrot.slane %v18267_v41, 5  ;;  %v12673_v46 = vrot.slane %v8073_v31, 9  ;;  %v8078_v49 = vld [vmem:[#allocation3 + $0x48] sm:$0xe] }
 0x445   : > { %v18496_v23 = vsel %vm16559_vm14, %v8140_v1, %v8141_v56  ;;  %v8148_v33 = vrot.slane %v18284_v57, 5  ;;  %v8152_v51 = vrot.slane %v18293_v50, 5  ;;  %v7739_v11 = vsel %vm16131_vm11, %v7734_v22, %v7738_v36  ;;  %v8079_v1 = vld [vmem:[#allocation3 + $0x54] sm:$0xe] }
 0x446   : > { %v7749_v20 = vsel %vm16131_vm11, %v7744_v21, %v7748_v39  ;;  %v8147_v53 = vrot.slane %v8145_v2, 4  ;;  %v12674_v47 = vrot.slane %v8074_v19, 9  ;;  %v12688_v41 = vcombine.low %v18491_v28, %v18496_v23 }
 0x447   : > { %v18508_v15 = vsel %vm16559_vm14, %v12673_v46, %v8145_v2  ;;  %v8154_v59 = vrot.slane %v8152_v51, 4  ;;  %v8155_v57 = vrot.slane %v18296_v38, 5  ;;  %v12663_v50 = vcombine.low %v7739_v11, %v7749_v20  ;;  %v8080_v2 = vld [vmem:[#allocation3 + $0x60] sm:$0xe] }
 0x448   : > { %v18513_v36 = vsel %vm16559_vm14, %v12674_v47, %v8152_v51  ;;  %v12675_v27 = vrot.slane %v8075_v7, 9  ;;  %v8159_v48 = vrot.slane %v18305_v26, 5  ;;  %v18518_v44 = vsel %vm16559_vm14, %v8147_v53, %v8148_v33 }
 0x449   : > { %v18522_v56 = vsel %vm16559_vm14, %v8154_v59, %v8155_v57  ;;  %v12676_v31 = vrot.slane %v8076_v25, 9  ;;  %v8166_v38 = vrot.slane %v18333_v13, 5  ;;  %v8162_v39 = vrot.slane %v18309_v24, 5 }
 0x44a   : > { %v12690_v12 = vcombine.low %v18513_v36, %v18522_v56  ;;  %v18529_v22 = vsel %vm16559_vm14, %v12675_v27, %v8159_v48  ;;  %v8161_v26 = vrot.slane %v8159_v48, 4  ;;  %13945 = vmatmul.mubr.bf16.gmra.mrb[8].mxu1 %v12661_v34  ;;  %v8169_v28 = vrot.slane %v18337_v52, 5 }
 0x44b   : > { %v18534_v19 = vsel %vm16559_vm14, %v12676_v31, %v8166_v38  ;;  %v8168_v21 = vrot.slane %v8166_v38, 4  ;;  %v8173_v13 = vrot.slane %v18342_v32, 5  ;;  %13948 = vmatprep.mubr.bf16.mxu1 %v12662_v17  ;;  %v12677_v25 = vrot.slane %v8077_v40, 9  ;;  %v8081_v40 = vld [vmem:[#allocation3 + $0x6c] sm:$0xe] }
 0x44c   : > { %v18540_v7 = vsel %vm16559_vm14, %v8161_v26, %v8162_v39  ;;  %v8176_v24 = vrot.slane %v18351_v10, 5  ;;  %v8180_v34 = vrot.slane %v18354_v14, 5  ;;  %v12678_v32 = vrot.slane %v8078_v49, 9  ;;  %v8082_v31 = vld [vmem:[#allocation3 + $0x78] sm:$0xe] }
 0x44d   : > { %v12691_v23 = vcombine.low %v18529_v22, %v18540_v7  ;;  %v18548_v46 = vsel %vm16559_vm14, %v8168_v21, %v8169_v28  ;;  %v8175_v52 = vrot.slane %v8173_v13, 4  ;;  %v18554_v33 = vsel %vm16559_vm14, %v12677_v25, %v8173_v13  ;;  %v15242_v22 = vld [vmem:[#allocation9 + $0xf0] sm:$0xff]   ;;  %v15246_v7 = vld [vmem:[#allocation9 + $0x100] sm:$0xff]  }
 0x44e   : > { %v12692_v17 = vcombine.low %v18534_v19, %v18548_v46  ;;  %v8182_v51 = vrot.slane %v8180_v34, 4  ;;  %v8183_v10 = vrot.slane %v18369_v45, 5  ;;  %v18563_v11 = vsel %vm16559_vm14, %v12678_v32, %v8180_v34  ;;  %v15243_v19 = vld [vmem:[#allocation9 + $0xf8] sm:$0xff]  }
 0x44f   : > { %v18559_v14 = vsel %vm16559_vm14, %v8175_v52, %v8176_v24  ;;  %v12679_v20 = vrot.slane %v8079_v1, 9  ;;  %v8187_v53 = vrot.slane %v18371_v61, 5  ;;  %v12680_v57 = vrot.slane %v8080_v2, 9 }
 0x450   : > { %v12693_v47 = vcombine.low %v18554_v33, %v18559_v14  ;;  %v18570_v59 = vsel %vm16559_vm14, %v8182_v51, %v8183_v10  ;;  %v8194_v45 = vrot.slane %v18382_v54, 5  ;;  %v8190_v61 = vrot.slane %v18376_v16, 5 }
 0x451   : > { %v12694_v27 = vcombine.low %v18563_v11, %v18570_v59  ;;  %v18577_v48 = vsel %vm16559_vm14, %v12679_v20, %v8187_v53  ;;  %v8189_v49 = vrot.slane %v8187_v53, 4  ;;  %v8197_v39 = vrot.slane %v18388_v0, 5  ;;  %v8085_v20 = vld [vmem:[#allocation3 + $0x9c] sm:$0xe]  ;;  %v15247_v59 = vld [vmem:[#allocation3 + $0x24] sm:$0xff]  }
 0x452   : > { %v18582_v38 = vsel %vm16559_vm14, %v12680_v57, %v8194_v45  ;;  %v8196_v26 = vrot.slane %v8194_v45, 4  ;;  %v8201_v54 = vrot.slane %v18394_v29, 5  ;;  %13949 = vmatmul.mubr.bf16.gmra.mrb[12].mxu1 %v12663_v50  ;;  %v12681_v21 = vrot.slane %v8081_v40, 9  ;;  %v8083_v50 = vld [vmem:[#allocation3 + $0x84] sm:$0xe]  ;;  %v15245_v11 = vld [vmem:[#allocation3 + $0x18] sm:$0xff]  }
 0x453   : > { %v18588_v1 = vsel %vm16559_vm14, %v8189_v49, %v8190_v61  ;;  %v8204_v28 = vrot.slane %v18400_v4, 5  ;;  %v8208_v16 = vrot.slane %v18408_v30, 5  ;;  %13968 = vmatprep.mubr.bf16.mxu1 %v12688_v41  ;;  %v12682_v29 = vrot.slane %v8082_v31, 9  ;;  %v8084_v41 = vld [vmem:[#allocation3 + $0x90] sm:$0xe]  ;;  %v15237_v49 = vld [vmem:[#allocation9 + $0xc8] sm:$0xff]  }
 0x454   : > { %v12695_v13 = vcombine.low %v18577_v48, %v18588_v1  ;;  %v18596_v2 = vsel %vm16559_vm14, %v8196_v26, %v8197_v39  ;;  %v8203_v0 = vrot.slane %v8201_v54, 4  ;;  %v12689_v25 = vcombine.low %v18508_v15, %v18518_v44  ;;  %v8086_v39 = vld [vmem:[#allocation3 + $0xa8] sm:$0xe]  ;;  %v18692_v48 = vld [vmem:[#allocation3 + $0x10] sm:$0xf] }
 0x455   : > { %v12696_v24 = vcombine.low %v18582_v38, %v18596_v2  ;;  %v8210_v4 = vrot.slane %v8208_v16, 4  ;;  %v8211_v30 = vrot.slane %v18413_v58, 5  ;;  %v18605_v34 = vsel %vm16559_vm14, %v12681_v21, %v8201_v54  ;;  %20257 = vst [vmem:[#allocation41_spill] sm:$0xff] %v18692_v48  ;;  %v15252_v38 = vld [vmem:[#allocation9 + $0x110] sm:$0xff]  }
 0x456   : > { %v18609_v52 = vsel %vm16559_vm14, %v8203_v0, %v8204_v28  ;;  %v18613_v32 = vsel %vm16559_vm14, %v12682_v29, %v8208_v16  ;;  %v8215_v15 = vrot.slane %v18421_v60, 5  ;;  %v12683_v51 = vrot.slane %v8083_v50, 9 }
 0x457   : > { %v12697_v44 = vcombine.low %v18605_v34, %v18609_v52  ;;  %v18620_v58 = vsel %vm16559_vm14, %v8210_v4, %v8211_v30  ;;  %v8222_v10 = vrot.slane %v18432_v35, 5  ;;  %v8218_v45 = vrot.slane %v18428_v6, 5  ;;  %v15238_v4 = vld [vmem:[#allocation9 + $0xd0] sm:$0xff]   ;;  %v8959_v34 = vld [vmem:[#allocation3 + $0x18] sm:$0xf] }
 0x458   : > { %v12698_v53 = vcombine.low %v18613_v32, %v18620_v58  ;;  %v8217_v57 = vrot.slane %v8215_v15, 4  ;;  %v12684_v40 = vrot.slane %v8084_v41, 9  ;;  %v18628_v60 = vsel %vm16559_vm14, %v12683_v51, %v8215_v15  ;;  %v18696_v52 = vld [vmem:[#allocation3 + $0x1c] sm:$0xf]  ;;  %v18698_v32 = vld [vmem:[#allocation3 + $0x14] sm:$0x1] }
 0x459   : > { %v8224_v61 = vrot.slane %v8222_v10, 4  ;;  %v8225_v31 = vrot.slane %v18436_v5, 5  ;;  %v8229_v26 = vrot.slane %v18445_v18, 5  ;;  %v12685_v21 = vrot.slane %v8085_v20, 9  ;;  %20258 = vst [vmem:[#allocation43_spill] sm:$0xff] %v18696_v52  ;;  %20259 = vst [vmem:[#allocation42_spill] sm:$0xff] %v18698_v32 }
 0x45a   : > { %v8219_v35 = vsel %vm16559_vm14, %v8217_v57, %v8218_v45  ;;  %v8223_v54 = vsel %vm16559_vm14, %v12684_v40, %v8222_v10  ;;  %v8236_v6 = vrot.slane %v18459_v63, 5  ;;  %13969 = vmatmul.mubr.bf16.vlgmr.msra.gmra.mrb[16].mxu1 %v12689_v25  ;;  %v8232_v5 = vrot.slane %v18450_v37, 5  ;;  %v8087_v25 = vld [vmem:[#allocation3 + $0xb4] sm:$0xe]  ;;  %v15241_v45 = vld [vmem:[#allocation9 + $0xe8] sm:$0xff]  }
 0x45b   : > { %v12699_v28 = vcombine.low %v18628_v60, %v8219_v35  ;;  %v8226_v16 = vsel %vm16559_vm14, %v8224_v61, %v8225_v31  ;;  %v8231_v0 = vrot.slane %v8229_v26, 4  ;;  %13972 = vmatprep.mubr.bf16.mxu1 %v12690_v12  ;;  %14001 = vmatpush3.bf16.msra.mxu1 %v18453_v8  ;;  %v12686_v29 = vrot.slane %v8086_v39, 9  ;;  %v15239_v10 = vld [vmem:[#allocation9 + $0xd8] sm:$0xff]   ;;  %v15250_v61 = vld [vmem:[#allocation3 + $0x3c] sm:$0xff]  }
 0x45c   : > { %v12700_v18 = vcombine.low %v8223_v54, %v8226_v16  ;;  %v8238_v50 = vrot.slane %v8236_v6, 4  ;;  %v8239_v63 = vrot.slane %v18462_v3, 5  ;;  %14002 = vmatprep.subr.bf16.mxu1 %v15237_v49  ;;  %v8230_v30 = vsel %vm16559_vm14, %v12685_v21, %v8229_v26  ;;  %v15255_v58 = vld [vmem:[#allocation9 + $0x118] sm:$0xff]   ;;  %v8962_v54 = vld [vmem:[#allocation3 + $0x24] sm:$0xf]  ;;  %v15258_v16 = vld [vmem:[#allocation9 + $0x120] sm:$0xff]  }
 0x45d   : > { %v8233_v37 = vsel %vm16559_vm14, %v8231_v0, %v8232_v5  ;;  %v8243_v41 = vrot.slane %v18469_v43, 5  ;;  %v8237_v8 = vsel %vm16559_vm14, %v12686_v29, %v8236_v6  ;;  %v12687_v3 = vrot.slane %v8087_v25, 9  ;;  %v18706_v6 = vld [vmem:[#allocation3 + $0x28] sm:$0xf] }
 0x45e   : > { %v12701_v36 = vcombine.low %v8230_v30, %v8233_v37  ;;  %v8240_v56 = vsel %vm16559_vm14, %v8238_v50, %v8239_v63  ;;  %v8246_v51 = vrot.slane %v18474_v9, 5  ;;  %v15240_v9 = vld [vmem:[#allocation9 + $0xe0] sm:$0xff]   ;;  %v9014_v2 = vshll.u32 %v18692_v48, 16  ;;  %20261 = vst [vmem:[#allocation44_spill] sm:$0xff] %v18706_v6  ;;  %v18722_v37 = vld [vmem:[#allocation3 + $0x30] sm:$0xf] }
 0x45f   : > { %v12702_v12 = vcombine.low %v8237_v8, %v8240_v56  ;;  %v8245_v15 = vrot.slane %v8243_v41, 4  ;;  %14003 = vmatpush3.bf16.msra.mxu1 %v15237_v49  ;;  %v8244_v20 = vsel %vm16559_vm14, %v12687_v3, %v8243_v41  ;;  %v9029_v49 = vshrl.u32 %v8959_v34, 16  ;;  %v18724_v41 = vld [vmem:[#allocation3 + $0x34] sm:$0xf] }
 0x460   : > { %14004 = vmatprep.subr.bf16.mxu1 %v15238_v4  ;;  %v9032_v60 = vshll.u32 %v8959_v34, 16  ;;  %v18700_v31 = vrot.slane %v9014_v2, 5  ;;  %v9038_v39 = vshll.u32 %v18696_v52, 16  ;;  %v9042_v35 = vshrl.u32 %v18696_v52, 16 }
 0x461   : > { %v8247_v43 = vsel %vm16559_vm14, %v8245_v15, %v8246_v51  ;;  %v9024_v5 = vshll.u32 %v18698_v32, 16  ;;  %v9053_v30 = vshrl.u32 %v8962_v54, 16  ;;  %v9056_v8 = vshll.u32 %v8962_v54, 16  ;;  %v18732_v15 = vld [vmem:[#allocation3 + $0x40] sm:$0xf] }
 0x462   : > { %v12703_v57 = vcombine.low %v8244_v20, %v8247_v43  ;;  %13973 = vmatmul.mubr.bf16.gmra.mrb[20].mxu1 %v12691_v23  ;;  %v15244_v23 = vld [vmem:[#allocation3 + $0xc] sm:$0xff]   ;;  %v18713_v29 = vrot.slane %v9032_v60, 5  ;;  %v18718_v25 = vrot.slane %v9038_v39, 5  ;;  %v9062_v56 = vshll.u32 %v18706_v6, 16  ;;  %v18734_v51 = vld [vmem:[#allocation3 + $0x44] sm:$0x1] }
 0x463   : > { %13976 = vmatprep.mubr.bf16.mxu1 %v12692_v17  ;;  %14005 = vmatpush3.bf16.msra.mxu1 %v15238_v4  ;;  %v18720_v4 = vrot.slane %v9042_v35, 4  ;;  %v9066_v3 = vshrl.u32 %v18706_v6, 16  ;;  %v15261_v20 = vld [vmem:[#allocation9 + $0x128] sm:$0xff]   ;;  %v9804_v2 = vrot.slane %v18732_v15, 5  ;;  %v18771_v35 = vld [vmem:[#allocation3 + $0x5c] sm:$0x1] }
 0x464   : > { %14006 = vmatprep.subr.bf16.mxu1 %v15239_v10  ;;  %v18773_v54 = vld [vmem:[#allocation3 + $0x70] sm:$0xf]  ;;  %v9090_v39 = vshrl.u32 %v18724_v41, 16 }
 0x467   : > { %14007 = vmatpush3.bf16.msra.mxu1 %v15239_v10  ;;  %v15251_v10 = vld [vmem:[#allocation3 + $0x48] sm:$0xff]  }
 0x468   : > { %14008 = vmatprep.subr.bf16.mxu1 %v15240_v9 }
 0x46a   : > { %13977 = vmatmul.mubr.bf16.gmra.mrb[24].mxu1 %v12693_v47  ;;  %v15249_v47 = vld [vmem:[#allocation9 + $0x108] sm:$0xff]  }
 0x46b   : > { %13980 = vmatprep.mubr.bf16.mxu1 %v12694_v27  ;;  %14009 = vmatpush3.bf16.msra.mxu1 %v15240_v9  ;;  %v8956_v27 = vld [vmem:[#allocation3 + $0xc] sm:$0xf] }
 0x46c   : > { %14010 = vmatprep.subr.bf16.mxu1 %v15241_v45  ;;  %v9005_v1 = vshrl.u32 %v8956_v27, 16 }
 0x46f   : > { %14011 = vmatpush3.bf16.msra.mxu1 %v15241_v45  ;;  %v18742_v45 = vld [vmem:[#allocation3 + $0x4c] sm:$0xf] }
 0x470   : > { %14012 = vmatprep.subr.bf16.mxu1 %v15242_v22 }
 0x472   : > { %13981 = vmatmul.mubr.bf16.gmra.mrb[28].mxu1 %v12695_v13  ;;  %v9008_v13 = vshll.u32 %v8956_v27, 16  ;;  %v18751_v27 = vrot.slane %v9056_v8, 5  ;;  %v18779_v8 = vld [vmem:[#allocation3 + $0x68] sm:$0x1] }
 0x473   : > { %13984 = vmatprep.mubr.bf16.mxu1 %v12696_v24  ;;  %14013 = vmatpush3.bf16.msra.mxu1 %v15242_v22  ;;  %v9018_v24 = vshrl.u32 %v18692_v48, 16  ;;  %v9713_v22 = vld [vmem:[#allocation3 + $0x30] sm:$0xe] }
 0x474   : > { %14014 = vmatprep.subr.bf16.mxu1 %v15243_v19  ;;  %v9010_v40 = vrot.slane %v9008_v13, 5  ;;  %v18756_v13 = vld [vmem:[#allocation3 + $0x50] sm:$0x1] }
 0x475   : > { %v9020_v26 = vrot.slane %v9018_v24, 4  ;;  %v9715_v24 = vld [vmem:[#allocation3 + $0x48] sm:$0xe] }
 0x477   : > { %14015 = vmatpush3.bf16.msra.mxu1 %v15243_v19  ;;  %v9021_v63 = vor.u32 %v9020_v26, %v18700_v31  ;;  %v15253_v19 = vld [vmem:[#allocation3 + $0x54] sm:$0xff]   ;;  %v15264_v26 = vld [vmem:[#allocation9 + $0x130] sm:$0xff]  }
 0x478   : > { %14048 = vmatprep.subr.bf16.mxu1 %v15246_v7 }
 0x47a   : > { %13985 = vmatmul.mubr.bf16.gmra.mrb[0].mxu1 %v12697_v44  ;;  %v15248_v44 = vld [vmem:[#allocation3 + $0x30] sm:$0xff]  }
 0x47b   : > { %13988 = vmatprep.mubr.bf16.mxu1 %v12698_v53  ;;  %v9007_v53 = vrot.slane %v9005_v1, 4 }
 0x47d   : > { %v9011_v0 = vor.u32 %v9010_v40, %v9007_v53  ;;  %v18765_v53 = vld [vmem:[#allocation3 + $0x64] sm:$0xf]  ;;  %v12763_v40 = vrot.slane %v9713_v22, 9  ;;  %v9716_v22 = vld [vmem:[#allocation3 + $0x54] sm:$0xe] }
 0x47f   : > { %v18736_v43 = vrot.slane %v9011_v0, 4  ;;  %v9806_v0 = vrot.slane %v9804_v2, 4 }
 0x482   : > { %13989 = vmatmul.mubr.bf16.gmra.mrb[4].mxu1 %v12699_v28 }
 0x483   : > { %13992 = vmatprep.mubr.bf16.mxu1 %v12700_v18  ;;  %v18711_v18 = vrot.slane %v9029_v49, 4 }
 0x48a   : > { %13993 = vmatmul.mubr.bf16.gmra.mrb[8].mxu1 %v12701_v36 }
 0x48b   : > { %13996 = vmatprep.mubr.bf16.mxu1 %v12702_v12  ;;  %v18729_v12 = vld [vmem:[#allocation3 + $0x38] sm:$0x1] }
 0x48c   : > { %v9800_v60 = vrot.slane %v18729_v12, 5 }
 0x491   : > { %v18684_v46 = vpop.f32.mrb[32].mxu0 }
 0x492   : > { %13997 = vmatmul.mubr.bf16.gmra.mrb[12].mxu1 %v12703_v57  ;;  %20253 = vst [vmem:[#allocation38_spill] sm:$0xff] %v18684_v46  ;;  %v18686_v17 = vpop.f32.mrb[33].mxu0  ;;  %v18738_v57 = vrot.slane %v9024_v5, 5  ;;  %v9807_v5 = vrot.slane %v18734_v51, 5 }
 0x493   : > { %14016 = vmatprep.mubr.bf16.mxu1 %v15244_v23  ;;  %20254 = vst [vmem:[#allocation37_spill] sm:$0xff] %v18686_v17  ;;  %v18688_v33 = vpop.f32.mrb[34].mxu0  ;;  %v9814_v23 = vrot.slane %v18756_v13, 5  ;;  %v9719_v17 = vld [vmem:[#allocation3 + $0x78] sm:$0xe] }
 0x494   : > { %20255 = vst [vmem:[#allocation39_spill] sm:$0xff] %v18688_v33  ;;  %v18690_v14 = vpop.f32.mrb[35].mxu0  ;;  %v18840_v33 = vld [vmem:[#allocation3 + $0x94] sm:$0xf] }
 0x495   : > { %20256 = vst [vmem:[#allocation40_spill] sm:$0xff] %v18690_v14  ;;  %v18836_v14 = vld [vmem:[#allocation9 + $0x140] sm:$0xff]  }
 0x49a   : > { %14017 = vmatmul.mubr.bf16.vlgmr.msra.gmra.mrb[16].mxu1 %v15245_v11  ;;  %v18748_v11 = vrot.slane %v9053_v30, 4 }
 0x49b   : > { %14020 = vmatprep.mubr.bf16.mxu1 %v15247_v59  ;;  %14049 = vmatpush3.bf16.msra.mxu1 %v15246_v7  ;;  %v18744_v7 = vrot.slane %v9021_v63, 4  ;;  %v9714_v59 = vld [vmem:[#allocation3 + $0x3c] sm:$0xe] }
 0x49c   : > { %14050 = vmatprep.subr.bf16.mxu1 %v15249_v47 }
 0x49f   : > { %14051 = vmatpush3.bf16.msra.mxu1 %v15249_v47  ;;  %v9797_v47 = vrot.slane %v18724_v41, 5 }
 0x4a0   : > { %14052 = vmatprep.subr.bf16.mxu1 %v15252_v38 }
 0x4a1   : > { %v9799_v49 = vrot.slane %v9797_v47, 4 }
 0x4a2   : > { %14021 = vmatmul.mubr.bf16.gmra.mrb[20].mxu1 %v15248_v44  ;;  %v18761_v44 = vrot.slane %v9066_v3, 4 }
 0x4a3   : > { %14024 = vmatprep.mubr.bf16.mxu1 %v15250_v61  ;;  %14053 = vmatpush3.bf16.msra.mxu1 %v15252_v38  ;;  %v18704_v21 = vpop.f32.mrb[36].mxu0  ;;  %v18753_v38 = vrot.slane %v9062_v56, 5  ;;  %v18783_v56 = vsel %vm16559_vm14, %v12763_v40, %v9797_v47  ;;  %v18787_v3 = vsel %vm16559_vm14, %v9799_v49, %v9800_v60  ;;  %v18802_v47 = vsel %vm16559_vm14, %v9806_v0, %v9807_v5  ;;  %v9717_v49 = vld [vmem:[#allocation3 + $0x60] sm:$0xe] }
 0x4a4   : > { %20260 = vst [vmem:[#allocation45_spill] sm:$0xff] %v18704_v21  ;;  %14054 = vmatprep.subr.bf16.mxu1 %v15255_v58  ;;  %v18708_v28 = vpop.f32.mrb[37].mxu0  ;;  %20268 = vst [vmem:[#allocation52_spill] sm:$0xff] %v18783_v56  ;;  %v12765_v40 = vrot.slane %v9715_v24, 9  ;;  %v15254_v60 = vld [vmem:[#allocation3 + $0x60] sm:$0xff]   ;;  %v12766_v24 = vrot.slane %v9716_v22, 9 }
 0x4a5   : > { %20262 = vst [vmem:[#allocation46_spill] sm:$0xff] %v18708_v28  ;;  %v18715_v50 = vpop.f32.mrb[38].mxu0  ;;  %20269 = vst [vmem:[#allocation53_spill] sm:$0xff] %v18787_v3  ;;  %v9825_v5 = vrot.slane %v18765_v53, 5  ;;  %v9828_v28 = vrot.slane %v18779_v8, 5 }
 0x4a6   : > { %20263 = vst [vmem:[#allocation47_spill] sm:$0xff] %v18715_v50  ;;  %v18726_v36 = vpop.f32.mrb[39].mxu0  ;;  %20272 = vst [vmem:[#allocation56_spill] sm:$0xff] %v18802_v47  ;;  %v9832_v50 = vrot.slane %v18773_v54, 5  ;;  %v18838_v22 = vld [vmem:[#allocation3 + $0x8c] sm:$0x1] }
 0x4a7   : > { %20264 = vst [vmem:[#allocation48_spill] sm:$0xff] %v18726_v36  ;;  %14055 = vmatpush3.bf16.msra.mxu1 %v15255_v58  ;;  %v18763_v58 = vld [vmem:[#allocation3 + $0x58] sm:$0xf]  ;;  %v12767_v36 = vrot.slane %v9717_v49, 9  ;;  %v9827_v49 = vrot.slane %v9825_v5, 4  ;;  %v18886_v47 = vrot.slane %v9090_v39, 4 }
 0x4a8   : > { %14056 = vmatprep.subr.bf16.mxu1 %v15258_v16  ;;  %v9849_v56 = vrot.slane %v18838_v22, 5 }
 0x4aa   : > { %14025 = vmatmul.mubr.bf16.gmra.mrb[24].mxu1 %v15251_v10  ;;  %v9811_v10 = vrot.slane %v18742_v45, 5 }
 0x4ab   : > { %14028 = vmatprep.mubr.bf16.mxu1 %v15253_v19  ;;  %14057 = vmatpush3.bf16.msra.mxu1 %v15258_v16  ;;  %v18759_v34 = vpop.f32.mrb[40].mxu0  ;;  %v12764_v16 = vrot.slane %v9714_v59, 9  ;;  %v18792_v59 = vld [vmem:[#allocation3 + $0x74] sm:$0x1] }
 0x4ac   : > { %20265 = vst [vmem:[#allocation49_spill] sm:$0xff] %v18759_v34  ;;  %v18768_v61 = vpop.f32.mrb[41].mxu0  ;;  %14058 = vmatprep.subr.bf16.mxu1 %v15261_v20  ;;  %v9813_v30 = vrot.slane %v9811_v10, 4  ;;  %v18812_v0 = vsel %vm16559_vm14, %v12765_v40, %v9811_v10  ;;  %v9821_v34 = vrot.slane %v18771_v35, 5  ;;  %v18824_v10 = vld [vmem:[#allocation3 + $0x3c] sm:$0xf] }
 0x4ad   : > { %20266 = vst [vmem:[#allocation51_spill] sm:$0xff] %v18768_v61  ;;  %v18776_v63 = vpop.f32.mrb[42].mxu0  ;;  %v18798_v9 = vsel %vm16559_vm14, %v12764_v16, %v9804_v2  ;;  %v15267_v2 = vld [vmem:[#allocation9 + $0x138] sm:$0xff]   ;;  %v18808_v16 = vld [vmem:[#allocation3 + $0x7c] sm:$0xf]  ;;  %20273 = vst [vmem:[#allocation57_spill] sm:$0xff] %v18812_v0 }
 0x4ae   : > { %20267 = vst [vmem:[#allocation50_spill] sm:$0xff] %v18776_v63  ;;  %v18790_v19 = vpop.f32.mrb[43].mxu0  ;;  %20271 = vst [vmem:[#allocation54_spill] sm:$0xff] %v18798_v9  ;;  %v15256_v63 = vld [vmem:[#allocation3 + $0x6c] sm:$0xff]   ;;  %v18816_v61 = vld [vmem:[#allocation3 + $0x80] sm:$0x1]  ;;  %v18820_v1 = vsel %vm16559_vm14, %v9813_v30, %v9814_v23 }
 0x4af   : > { %20270 = vst [vmem:[#allocation55_spill] sm:$0xff] %v18790_v19  ;;  %14059 = vmatpush3.bf16.msra.mxu1 %v15261_v20  ;;  %v9718_v19 = vld [vmem:[#allocation3 + $0x6c] sm:$0xe]  ;;  %v9818_v20 = vrot.slane %v18763_v58, 5  ;;  %20274 = vst [vmem:[#allocation58_spill] sm:$0xff] %v18820_v1  ;;  %v9835_v46 = vrot.slane %v18792_v59, 5 }
 0x4b0   : > { %14060 = vmatprep.subr.bf16.mxu1 %v15264_v26  ;;  %v12768_v21 = vrot.slane %v9718_v19, 9  ;;  %v18829_v23 = vld [vmem:[#allocation3 + $0x88] sm:$0xf]  ;;  %v18857_v1 = vld [vmem:[#allocation3 + $0xa0] sm:$0xf]  ;;  %v9842_v0 = vrot.slane %v18816_v61, 5 }
 0x4b1   : > { %v9820_v40 = vrot.slane %v9818_v20, 4  ;;  %v18833_v30 = vsel %vm16559_vm14, %v12766_v24, %v9818_v20  ;;  %v9839_v24 = vrot.slane %v18808_v16, 5  ;;  %v18855_v20 = vld [vmem:[#allocation3 + $0x98] sm:$0x1] }
 0x4b2   : > { %14029 = vmatmul.mubr.bf16.gmra.mrb[28].mxu1 %v15254_v60  ;;  %20275 = vst [vmem:[#allocation59_spill] sm:$0xff] %v18833_v30  ;;  %v9834_v60 = vrot.slane %v9832_v50, 4  ;;  %v18852_v19 = vsel %vm16559_vm14, %v12768_v21, %v9832_v50  ;;  %v15257_v21 = vld [vmem:[#allocation3 + $0x78] sm:$0xff]   ;;  %v18869_v50 = vld [vmem:[#allocation3 + $0xa4] sm:$0x1]  ;;  %v9853_v30 = vrot.slane %v18840_v33, 5 }
 0x4b3   : > { %14032 = vmatprep.mubr.bf16.mxu1 %v15256_v63  ;;  %14061 = vmatpush3.bf16.msra.mxu1 %v15264_v26  ;;  %v18844_v26 = vsel %vm16559_vm14, %v9820_v40, %v9821_v34  ;;  %v18848_v63 = vsel %vm16559_vm14, %v12767_v36, %v9825_v5  ;;  %20278 = vst [vmem:[#allocation62_spill] sm:$0xff] %v18852_v19  ;;  %v12769_v5 = vrot.slane %v9719_v17, 9  ;;  %20281 = vst [vmem:[#allocation36_spill] sm:$0xff] %v18869_v50  ;;  %v9722_v40 = vld [vmem:[#allocation3 + $0x9c] sm:$0xe] }
 0x4b4   : > { %14062 = vmatprep.subr.bf16.mxu1 %v15267_v2  ;;  %20276 = vst [vmem:[#allocation60_spill] sm:$0xff] %v18844_v26  ;;  %20277 = vst [vmem:[#allocation61_spill] sm:$0xff] %v18848_v63  ;;  %v18863_v34 = vsel %vm16559_vm14, %v9827_v49, %v9828_v28  ;;  %v18867_v36 = vsel %vm16559_vm14, %v9834_v60, %v9835_v46  ;;  %v9841_v9 = vrot.slane %v9839_v24, 4  ;;  %v9720_v26 = vld [vmem:[#allocation3 + $0x84] sm:$0xe]  ;;  %v20282_v49 = vshll.u32 %v18724_v41, 16 }
 0x4b5   : > { %20279 = vst [vmem:[#allocation26_spill] sm:$0xff] %v18863_v34  ;;  %20280 = vst [vmem:[#allocation33_spill] sm:$0xff] %v18867_v36  ;;  %v9721_v28 = vld [vmem:[#allocation3 + $0x90] sm:$0xe]  ;;  %v9846_v60 = vrot.slane %v18829_v23, 5  ;;  %v15259_v34 = vld [vmem:[#allocation3 + $0x84] sm:$0xff]   ;;  %v18892_v41 = vsel %vm16559_vm14, %v12769_v5, %v9839_v24 }
 0x4b6   : > { %v18878_v46 = vrot.slane %v20282_v49, 5  ;;  %v18888_v36 = vld [vmem:[#allocation3 + $0xac] sm:$0xf]  ;;  %20284 = vst [vmem:[#allocation23_spill] sm:$0xff] %v18892_v41  ;;  %v9860_v49 = vrot.slane %v18857_v1, 5  ;;  %v9856_v55 = vrot.slane %v18855_v20, 5 }
 0x4b7   : > { %14063 = vmatpush3.bf16.msra.mxu1 %v15267_v2  ;;  %v18896_v2 = vsel %vm16559_vm14, %v9841_v9, %v9842_v0  ;;  %v18901_v19 = vld [vmem:[#allocation3 + $0xb8] sm:$0xf]  ;;  %v9848_v3 = vrot.slane %v9846_v60, 4  ;;  %v18908_v5 = vld [vmem:[#allocation3 + $0xb0] sm:$0x1]  ;;  %v12771_v9 = vrot.slane %v9721_v28, 9 }
 0x4b8   : > { %v18883_v63 = vpop.f32.mrb[44].mxu0  ;;  %14096 = vmatprep.subr.bf16.mxu1 %v18836_v14  ;;  %20285 = vst [vmem:[#allocation24_spill] sm:$0xff] %v18896_v2  ;;  %20288 = vst [vmem:[#allocation29_spill] sm:$0xff] %v18908_v5  ;;  %v9855_v0 = vrot.slane %v9853_v30, 4  ;;  %v12772_v6 = vrot.slane %v9722_v40, 9  ;;  %v9104_v28 = vshll.u32 %v18824_v10, 16 }
 0x4b9   : > { %20283 = vst [vmem:[#allocation27_spill] sm:$0xff] %v18883_v63  ;;  %v18899_v17 = vpop.f32.mrb[45].mxu0  ;;  %v12770_v63 = vrot.slane %v9720_v26, 9  ;;  %v18919_v26 = vsel %vm16559_vm14, %v9848_v3, %v9849_v56  ;;  %v9723_v2 = vld [vmem:[#allocation3 + $0xa8] sm:$0xe] }
 0x4ba   : > { %20286 = vst [vmem:[#allocation28_spill] sm:$0xff] %v18899_v17  ;;  %14033 = vmatmul.mubr.bf16.gmra.mrb[0].mxu1 %v15257_v21  ;;  %v18906_v24 = vpop.f32.mrb[46].mxu0  ;;  %20291 = vst [vmem:[#allocation31_spill] sm:$0xff] %v18919_v26  ;;  %v9862_v21 = vrot.slane %v9860_v49, 4  ;;  %v18923_v41 = vld [vmem:[#allocation3 + $0xbc] sm:$0x1]  ;;  %v18935_v56 = vsel %vm16559_vm14, %v9855_v0, %v9856_v55 }
 0x4bb   : > { %20287 = vst [vmem:[#allocation30_spill] sm:$0xff] %v18906_v24  ;;  %14036 = vmatprep.mubr.bf16.mxu1 %v15259_v34  ;;  %v18911_v17 = vpop.f32.mrb[47].mxu0  ;;  %v18915_v39 = vsel %vm16559_vm14, %v12770_v63, %v9846_v60  ;;  %v9863_v24 = vrot.slane %v18869_v50, 5  ;;  %20292 = vst [vmem:[#allocation34_spill] sm:$0xff] %v18923_v41  ;;  %v18925_v40 = vld [vmem:[#allocation3 + $0xc4] sm:$0xf]  ;;  %v18931_v63 = vsel %vm16559_vm14, %v12771_v9, %v9853_v30 }
 0x4bc   : > { %20289 = vst [vmem:[#allocation25_spill] sm:$0xff] %v18911_v17  ;;  %20290 = vst [vmem:[#allocation32_spill] sm:$0xff] %v18915_v39  ;;  %v18937_v3 = vld [vmem:[#allocation3 + $0xc8] sm:$0x1]  ;;  %v18943_v17 = vsel %vm16559_vm14, %v12772_v6, %v9860_v49  ;;  %v9867_v30 = vrot.slane %v18888_v36, 5  ;;  %v9110_v26 = vshll.u32 %v18732_v15, 16 }
 0x4bd   : > { %20293 = vst [vmem:[#allocation35_spill] sm:$0xff] %v18931_v63  ;;  %20294 = vst [vmem:[#allocation22_spill] sm:$0xff] %v18935_v56  ;;  %v18947_v34 = vsel %vm16559_vm14, %v9862_v21, %v9863_v24  ;;  %v9724_v9 = vld [vmem:[#allocation3 + $0xb4] sm:$0xe]  ;;  %v12773_v0 = vrot.slane %v9723_v2, 9  ;;  %v9874_v39 = vrot.slane %v18901_v19, 5 }
 0x4be   : > { %20295 = vst [vmem:[#allocation21_spill] sm:$0xff] %v18943_v17  ;;  %20296 = vst [vmem:[#allocation63_spill] sm:$0xff] %v18947_v34  ;;  %v9725_v60 = vld [vmem:[#allocation3 + $0xc0] sm:$0xe]  ;;  %v9114_v56 = vshrl.u32 %v18732_v15, 16  ;;  %v9869_v6 = vrot.slane %v9867_v30, 4 }
 0x4bf   : > { %v9870_v49 = vrot.slane %v18908_v5, 5  ;;  %v9881_v24 = vrot.slane %v18925_v40, 5  ;;  %v15260_v21 = vld [vmem:[#allocation3 + $0x90] sm:$0xff]   ;;  %v18959_v63 = vsel %vm16559_vm14, %v12773_v0, %v9867_v30  ;;  %v12774_v32 = vrot.slane %v9724_v9, 9  ;;  %v15262_v2 = vld [vmem:[#allocation3 + $0x9c] sm:$0xff]  }
 0x4c0   : > { %v9876_v52 = vrot.slane %v9874_v39, 4  ;;  %v9877_v55 = vrot.slane %v18923_v41, 5  ;;  %v18962_v34 = vld [vmem:[#allocation3 + $0x20] sm:$0x1]  ;;  %v12775_v17 = vrot.slane %v9725_v60, 9  ;;  %v9884_v5 = vrot.slane %v18937_v3, 5 }
 0x4c1   : > { %v18966_v15 = vsel %vm16559_vm14, %v9869_v6, %v9870_v49  ;;  %v9883_v48 = vrot.slane %v9881_v24, 4  ;;  %v20297_v50 = vshrl.u32 %v18722_v37, 16  ;;  %v18975_v0 = vsel %vm16559_vm14, %v12774_v32, %v9874_v39  ;;  %v18981_v60 = vld [vmem:[#allocation3 + $0x2c] sm:$0x1] }
 0x4c2   : > { %14037 = vmatmul.mubr.bf16.gmra.mrb[4].mxu1 %v15260_v21  ;;  %v18979_v41 = vsel %vm16559_vm14, %v9876_v52, %v9877_v55  ;;  %v20299_v6 = vshll.u32 %v18722_v37, 16  ;;  %v18989_v21 = vsel %vm16559_vm14, %v12775_v17, %v9881_v24  ;;  %v9048_v52 = vshll.u32 %v18962_v34, 16  ;;  %v15265_v55 = vld [vmem:[#allocation3 + $0xb4] sm:$0xff]  }
 0x4c3   : > { %v9079_v30 = vrot.slane %v20297_v50, 4  ;;  %20298 = vst [vmem:[#allocation64_spill] sm:$0xff] %v18979_v41  ;;  %14040 = vmatprep.mubr.bf16.mxu1 %v15262_v2  ;;  %v18993_v32 = vsel %vm16559_vm14, %v9883_v48, %v9884_v5  ;;  %v9069_v39 = vor.u32 %v18761_v44, %v18753_v38  ;;  %v9093_v37 = vor.u32 %v18886_v47, %v18878_v46  ;;  %v8971_v41 = vld [vmem:[#allocation3 + $0x48] sm:$0xf] }
 0x4c4   : > { %v9082_v49 = vrot.slane %v20299_v6, 5  ;;  %20300 = vst [vmem:[#allocation65_spill] sm:$0xff] %v18993_v32  ;;  %v20301_v2 = vshrl.u32 %v18824_v10, 16  ;;  %v9106_v17 = vrot.slane %v9104_v28, 5  ;;  %v19004_v24 = vrot.slane %v9110_v26, 5 }
 0x4c5   : > { %v9116_v50 = vrot.slane %v9114_v56, 4  ;;  %v20302_v48 = vor.u32 %v18713_v29, %v18711_v18  ;;  %v9072_v9 = vshll.u32 %v18981_v60, 16  ;;  %v9096_v44 = vshll.u32 %v18729_v12, 16  ;;  %v15263_v18 = vld [vmem:[#allocation3 + $0xa8] sm:$0xff]  }
 0x4c6   : > { %v9103_v6 = vrot.slane %v20301_v2, 4  ;;  %v9027_v47 = vsel %vm16131_vm11, %v18744_v7, %v18738_v57  ;;  %v20303_v10 = vor.u32 %v18720_v4, %v18718_v25  ;;  %v9059_v28 = vor.u32 %v18751_v27, %v18748_v11 }
 0x4c7   : > { %v9036_v5 = vrot.slane %v20302_v48, 4  ;;  %v9083_v56 = vor.u32 %v9082_v49, %v9079_v30  ;;  %v9017_v29 = vsel %vm16131_vm11, %v18736_v43, %v18700_v31  ;;  %v9050_v12 = vrot.slane %v9048_v52, 5 }
 0x4c8   : > { %v9046_v26 = vrot.slane %v20303_v10, 4  ;;  %v9070_v2 = vrot.slane %v9069_v39, 4  ;;  %v9094_v48 = vrot.slane %v9093_v37, 4  ;;  %v9107_v32 = vor.u32 %v9106_v17, %v9103_v6  ;;  %v8974_v39 = vld [vmem:[#allocation3 + $0x54] sm:$0xf] }
 0x4c9   : > { %v9117_v57 = vor.u32 %v9116_v50, %v19004_v24  ;;  %v9125_v7 = vshrl.u32 %v8971_v41, 16  ;;  %v9128_v4 = vshll.u32 %v8971_v41, 16  ;;  %v12736_v10 = vcombine.low %v9017_v29, %v9027_v47 }
 0x4ca   : > { %14041 = vmatmul.mubr.bf16.gmra.mrb[8].mxu1 %v15263_v18  ;;  %v9041_v11 = vsel %vm16131_vm11, %v9036_v5, %v18718_v25  ;;  %v9074_v27 = vrot.slane %v9072_v9, 5  ;;  %v9098_v30 = vrot.slane %v9096_v44, 5  ;;  %v9051_v31 = vsel %vm16131_vm11, %v9046_v26, %v9050_v12  ;;  %v15266_v18 = vld [vmem:[#allocation3 + $0xc0] sm:$0xff]  }
 0x4cb   : > { %14044 = vmatprep.mubr.bf16.mxu1 %v15265_v55  ;;  %v9060_v43 = vrot.slane %v9059_v28, 4  ;;  %v9084_v49 = vrot.slane %v9083_v56, 4  ;;  %v9120_v52 = vshll.u32 %v18734_v51, 16  ;;  %v9134_v37 = vshll.u32 %v18742_v45, 16 }
 0x4cc   : > { %v9075_v41 = vsel %vm16131_vm11, %v9070_v2, %v9074_v27  ;;  %v9099_v50 = vsel %vm16131_vm11, %v9094_v48, %v9098_v30  ;;  %v9138_v25 = vshrl.u32 %v18742_v45, 16  ;;  %v9108_v9 = vrot.slane %v9107_v32, 4  ;;  %v8977_v32 = vld [vmem:[#allocation3 + $0x60] sm:$0xf]  ;;  %v8980_v30 = vld [vmem:[#allocation3 + $0x6c] sm:$0xf] }
 0x4cd   : > { %v9118_v55 = vrot.slane %v9117_v57, 4  ;;  %v9127_v6 = vrot.slane %v9125_v7, 4  ;;  %v9130_v17 = vrot.slane %v9128_v4, 5  ;;  %v12737_v5 = vcombine.low %v9041_v11, %v9051_v31 }
 0x4ce   : > { %v9149_v44 = vshrl.u32 %v8974_v39, 16  ;;  %v9152_v47 = vshll.u32 %v8974_v39, 16  ;;  %v9158_v51 = vshll.u32 %v18763_v58, 16  ;;  %v9065_v26 = vsel %vm16131_vm11, %v9060_v43, %v18753_v38 }
 0x4cf   : > { %v9089_v28 = vsel %vm16131_vm11, %v9084_v49, %v18878_v46  ;;  %v9122_v56 = vrot.slane %v9120_v52, 5  ;;  %v9162_v45 = vshrl.u32 %v18763_v58, 16  ;;  %v12738_v29 = vcombine.low %v9065_v26, %v9075_v41 }
 0x4d0   : > { %v19045_v12 = vcombine.low %v9089_v28, %v9099_v50  ;;  %v19047_v2 = vrot.slane %v9134_v37, 5  ;;  %v9140_v48 = vrot.slane %v9138_v25, 4  ;;  %v9113_v57 = vsel %vm16131_vm11, %v9108_v9, %v19004_v24  ;;  %v8983_v9 = vld [vmem:[#allocation3 + $0x78] sm:$0xf]  ;;  %v15269_v28 = vld [vmem:[#allocation9 + $0x148] sm:$0xff]  }
 0x4d1   : > { %v9123_v38 = vsel %vm16131_vm11, %v9118_v55, %v9122_v56  ;;  %v9131_v7 = vor.u32 %v9130_v17, %v9127_v6  ;;  %v9144_v46 = vshll.u32 %v18756_v13, 16  ;;  %v9151_v58 = vrot.slane %v9149_v44, 4 }
 0x4d2   : > { %14045 = vmatmul.mubr.bf16.gmra.mrb[12].mxu1 %v15266_v18  ;;  %v9154_v4 = vrot.slane %v9152_v47, 5  ;;  %v19055_v11 = vrot.slane %v9158_v51, 5  ;;  %v9173_v27 = vshrl.u32 %v8977_v32, 16  ;;  %v9164_v31 = vrot.slane %v9162_v45, 4 }
 0x4d3   : > { %14064 = vmatprep.mubr.bf16.mxu1 %v12736_v10  ;;  %v9176_v43 = vshll.u32 %v8977_v32, 16  ;;  %v9182_v49 = vshll.u32 %v18765_v53, 16  ;;  %v9186_v24 = vshrl.u32 %v18765_v53, 16  ;;  %v19059_v52 = vcombine.low %v9113_v57, %v9123_v38 }
 0x4d4   : > { %v9141_v39 = vor.u32 %v9140_v48, %v19047_v2  ;;  %v9206_v13 = vshll.u32 %v18773_v54, 16  ;;  %v9210_v41 = vshrl.u32 %v18773_v54, 16  ;;  %v19064_v50 = vrot.slane %v9144_v46, 5  ;;  %v8986_v54 = vld [vmem:[#allocation3 + $0x84] sm:$0xf] }
 0x4d5   : > { %v9168_v37 = vshll.u32 %v18771_v35, 16  ;;  %v9197_v25 = vshrl.u32 %v8980_v30, 16  ;;  %v9200_v10 = vshll.u32 %v8980_v30, 16  ;;  %v9155_v55 = vor.u32 %v9154_v4, %v9151_v58 }
 0x4d6   : > { %v9175_v6 = vrot.slane %v9173_v27, 4  ;;  %v9230_v17 = vshll.u32 %v18808_v16, 16  ;;  %v9234_v53 = vshrl.u32 %v18808_v16, 16  ;;  %v9165_v44 = vor.u32 %v9164_v31, %v19055_v11 }
 0x4d7   : > { %v9178_v47 = vrot.slane %v9176_v43, 5  ;;  %v19070_v51 = vrot.slane %v9182_v49, 5  ;;  %v9188_v26 = vrot.slane %v9186_v24, 4  ;;  %v19072_v56 = vrot.slane %v9206_v13, 5  ;;  %v15270_v49 = vld [vmem:[#allocation9 + $0x150] sm:$0xff]  }
 0x4d8   : > { %v9212_v35 = vrot.slane %v9210_v41, 4  ;;  %v9221_v45 = vshrl.u32 %v8983_v9, 16  ;;  %v9224_v32 = vshll.u32 %v8983_v9, 16  ;;  %v9132_v18 = vrot.slane %v9131_v7, 4 }
 0x4d9   : > { %v9142_v48 = vrot.slane %v9141_v39, 4  ;;  %v9199_v57 = vrot.slane %v9197_v25, 4  ;;  %v9202_v38 = vrot.slane %v9200_v10, 5  ;;  %v19074_v46 = vrot.slane %v9230_v17, 5 }
 0x4da   : > { %14065 = vmatmul.mubr.bf16.vlgmr.msra.gmra.mrb[16].mxu1 %v12737_v5  ;;  %v9236_v16 = vrot.slane %v9234_v53, 4  ;;  %v9245_v58 = vshrl.u32 %v8986_v54, 16  ;;  %v9248_v4 = vshll.u32 %v8986_v54, 16  ;;  %v9156_v27 = vrot.slane %v9155_v55, 4  ;;  %v15271_v53 = vld [vmem:[#allocation9 + $0x158] sm:$0xff]  }
 0x4db   : > { %14068 = vmatprep.mubr.bf16.mxu1 %v12738_v29  ;;  %14097 = vmatpush3.bf16.msra.mxu1 %v18836_v14  ;;  %v9170_v30 = vrot.slane %v9168_v37, 5  ;;  %v9179_v31 = vor.u32 %v9178_v47, %v9175_v6  ;;  %v9189_v43 = vor.u32 %v9188_v26, %v19070_v51  ;;  %v9166_v7 = vrot.slane %v9165_v44, 4 }
 0x4dc   : > { %14098 = vmatprep.subr.bf16.mxu1 %v15269_v28  ;;  %v9213_v24 = vor.u32 %v9212_v35, %v19072_v56  ;;  %v9223_v39 = vrot.slane %v9221_v45, 4  ;;  %v9226_v5 = vrot.slane %v9224_v32, 5  ;;  %v9192_v13 = vshll.u32 %v18779_v8, 16 }
 0x4dd   : > { %v9216_v41 = vshll.u32 %v18792_v59, 16  ;;  %v9254_v29 = vshll.u32 %v18829_v23, 16  ;;  %v9258_v14 = vshrl.u32 %v18829_v23, 16  ;;  %v9203_v25 = vor.u32 %v9202_v38, %v9199_v57 }
 0x4de   : > { %v9237_v37 = vor.u32 %v9236_v16, %v19074_v46  ;;  %v9247_v10 = vrot.slane %v9245_v58, 4  ;;  %v9250_v9 = vrot.slane %v9248_v4, 5  ;;  %v9137_v55 = vsel %vm16131_vm11, %v9132_v18, %v19047_v2  ;;  %v15272_v58 = vld [vmem:[#allocation9 + $0x160] sm:$0xff]  }
 0x4df   : > { %14099 = vmatpush3.bf16.msra.mxu1 %v15269_v28  ;;  %v9147_v8 = vsel %vm16131_vm11, %v9142_v48, %v19064_v50  ;;  %v9190_v6 = vrot.slane %v9189_v43, 4  ;;  %v9240_v59 = vshll.u32 %v18816_v61, 16  ;;  %v9161_v23 = vsel %vm16131_vm11, %v9156_v27, %v19055_v11  ;;  %v8989_v50 = vld [vmem:[#allocation3 + $0x90] sm:$0xf]  ;;  %v8992_v43 = vld [vmem:[#allocation3 + $0x9c] sm:$0xf] }
 0x4e0   : > { %14100 = vmatprep.subr.bf16.mxu1 %v15270_v49  ;;  %v9171_v17 = vsel %vm16131_vm11, %v9166_v7, %v9170_v30  ;;  %v9214_v44 = vrot.slane %v9213_v24, 4  ;;  %v9227_v47 = vor.u32 %v9226_v5, %v9223_v39  ;;  %v9180_v26 = vrot.slane %v9179_v31, 4 }
 0x4e1   : > { %v9194_v2 = vrot.slane %v9192_v13, 5  ;;  %v19096_v54 = vrot.slane %v9254_v29, 5  ;;  %v9260_v28 = vrot.slane %v9258_v14, 4  ;;  %v9204_v61 = vrot.slane %v9203_v25, 4  ;;  %v15273_v14 = vld [vmem:[#allocation9 + $0x168] sm:$0xff]  }
 0x4e2   : > { %14069 = vmatmul.mubr.bf16.gmra.mrb[20].mxu1 %v19045_v12  ;;  %v9218_v35 = vrot.slane %v9216_v41, 5  ;;  %v9238_v45 = vrot.slane %v9237_v37, 4  ;;  %v9251_v32 = vor.u32 %v9250_v9, %v9247_v10  ;;  %v12741_v11 = vcombine.low %v9137_v55, %v9147_v8  ;;  %v8995_v55 = vld [vmem:[#allocation3 + $0xa8] sm:$0xf] }
 0x4e3   : > { %14072 = vmatprep.mubr.bf16.mxu1 %v19059_v52  ;;  %v12742_v18 = vcombine.low %v9161_v23, %v9171_v17  ;;  %14101 = vmatpush3.bf16.msra.mxu1 %v15270_v49  ;;  %v9195_v48 = vsel %vm16131_vm11, %v9190_v6, %v9194_v2  ;;  %v9242_v57 = vrot.slane %v9240_v59, 5  ;;  %v9228_v16 = vrot.slane %v9227_v47, 4  ;;  %v8998_v59 = vld [vmem:[#allocation3 + $0xb4] sm:$0xf]  ;;  %v15274_v2 = vld [vmem:[#allocation9 + $0x170] sm:$0xff]  }
 0x4e4   : > { %14102 = vmatprep.subr.bf16.mxu1 %v15271_v53  ;;  %v9219_v38 = vsel %vm16131_vm11, %v9214_v44, %v9218_v35  ;;  %v9269_v12 = vshrl.u32 %v8989_v50, 16  ;;  %v9272_v4 = vshll.u32 %v8989_v50, 16  ;;  %v9185_v27 = vsel %vm16131_vm11, %v9180_v26, %v19070_v51 }
 0x4e5   : > { %v9261_v52 = vor.u32 %v9260_v28, %v19096_v54  ;;  %v9264_v30 = vshll.u32 %v18838_v22, 16  ;;  %v9278_v31 = vshll.u32 %v18840_v33, 16  ;;  %v9209_v49 = vsel %vm16131_vm11, %v9204_v61, %v19072_v56 }
 0x4e6   : > { %v9243_v7 = vsel %vm16131_vm11, %v9238_v45, %v9242_v57  ;;  %v19115_v24 = vrot.slane %v9251_v32, 4  ;;  %v9282_v39 = vshrl.u32 %v18840_v33, 16  ;;  %v12743_v5 = vcombine.low %v9185_v27, %v9195_v48  ;;  %v9001_v32 = vld [vmem:[#allocation3 + $0xc0] sm:$0xf] }
 0x4e7   : > { %v12744_v51 = vcombine.low %v9209_v49, %v9219_v38  ;;  %14103 = vmatpush3.bf16.msra.mxu1 %v15271_v53  ;;  %v9302_v13 = vshll.u32 %v18857_v1, 16  ;;  %v9306_v22 = vshrl.u32 %v18857_v1, 16  ;;  %v9233_v41 = vsel %vm16131_vm11, %v9228_v16, %v19074_v46  ;;  %v20304_v38 = vld [vmem:[#allocation36_spill] sm:$0xff] }
 0x4e8   : > { %14104 = vmatprep.subr.bf16.mxu1 %v15272_v58  ;;  %v9271_v56 = vrot.slane %v9269_v12, 4  ;;  %v9274_v29 = vrot.slane %v9272_v4, 5  ;;  %v9293_v25 = vshrl.u32 %v8992_v43, 16  ;;  %v19123_v37 = vcombine.low %v9233_v41, %v9243_v7 }
 0x4e9   : > { %v19125_v10 = vrot.slane %v9261_v52, 4  ;;  %v19127_v33 = vrot.slane %v9264_v30, 5  ;;  %v19129_v9 = vrot.slane %v9278_v31, 5  ;;  %v9257_v1 = vsel %vm16131_vm11, %v19115_v24, %v19096_v54  ;;  %v15275_v30 = vld [vmem:[#allocation9 + $0x178] sm:$0xff]  }
 0x4ea   : > { %14073 = vmatmul.mubr.bf16.gmra.mrb[24].mxu1 %v12741_v11  ;;  %v9284_v46 = vrot.slane %v9282_v39, 4  ;;  %v9288_v8 = vshll.u32 %v18855_v20, 16  ;;  %v9296_v6 = vshll.u32 %v8992_v43, 16  ;;  %v19136_v23 = vrot.slane %v9302_v13, 5 }
 0x4eb   : > { %14076 = vmatprep.mubr.bf16.mxu1 %v12742_v18  ;;  %14105 = vmatpush3.bf16.msra.mxu1 %v15272_v58  ;;  %v9308_v17 = vrot.slane %v9306_v22, 4  ;;  %v9326_v53 = vshll.u32 %v18888_v36, 16  ;;  %v9330_v44 = vshrl.u32 %v18888_v36, 16  ;;  %v9275_v47 = vor.u32 %v9274_v29, %v9271_v56 }
 0x4ec   : > { %14106 = vmatprep.subr.bf16.mxu1 %v15273_v14  ;;  %v9295_v26 = vrot.slane %v9293_v25, 4  ;;  %v9350_v28 = vshll.u32 %v18901_v19, 16  ;;  %v9354_v50 = vshrl.u32 %v18901_v19, 16  ;;  %v9317_v20 = vshrl.u32 %v8995_v55, 16 }
 0x4ed   : > { %v9320_v61 = vshll.u32 %v8995_v55, 16  ;;  %v9341_v35 = vshrl.u32 %v8998_v59, 16  ;;  %v9344_v45 = vshll.u32 %v8998_v59, 16  ;;  %v9285_v11 = vor.u32 %v9284_v46, %v19129_v9  ;;  %v20305_v59 = vld [vmem:[#allocation29_spill] sm:$0xff] }
 0x4ee   : > { %v9298_v18 = vrot.slane %v9296_v6, 5  ;;  %v9374_v48 = vshll.u32 %v18925_v40, 16  ;;  %v9378_v36 = vshrl.u32 %v18925_v40, 16  ;;  %v9309_v57 = vor.u32 %v9308_v17, %v19136_v23  ;;  %v19159_v6 = vld [vmem:[#allocation9 + $0x180] sm:$0xff]  }
 0x4ef   : > { %v9312_v16 = vshll.u32 %v20304_v38, 16  ;;  %14107 = vmatpush3.bf16.msra.mxu1 %v15273_v14  ;;  %v19147_v58 = vrot.slane %v9326_v53, 5  ;;  %v9332_v19 = vrot.slane %v9330_v44, 4  ;;  %v19149_v12 = vrot.slane %v9350_v28, 5  ;;  %v20306_v44 = vld [vmem:[#allocation34_spill] sm:$0xff] }
 0x4f0   : > { %14108 = vmatprep.subr.bf16.mxu1 %v15274_v2  ;;  %v9356_v4 = vrot.slane %v9354_v50, 4  ;;  %v9365_v27 = vshrl.u32 %v9001_v32, 16  ;;  %v9368_v52 = vshll.u32 %v9001_v32, 16  ;;  %v9319_v31 = vrot.slane %v9317_v20, 4  ;;  %v9710_v38 = vld [vmem:[#allocation3 + $0xc] sm:$0xe] }
 0x4f1   : > { %v9322_v43 = vrot.slane %v9320_v61, 5  ;;  %v9343_v49 = vrot.slane %v9341_v35, 4  ;;  %v9346_v7 = vrot.slane %v9344_v45, 5  ;;  %v9267_v40 = vsel %vm16131_vm11, %v19125_v10, %v19127_v33 }
 0x4f2   : > { %14077 = vmatmul.mubr.bf16.gmra.mrb[28].mxu1 %v12743_v5  ;;  %v9299_v39 = vor.u32 %v9298_v18, %v9295_v26  ;;  %v19155_v13 = vrot.slane %v9374_v48, 5  ;;  %v9380_v22 = vrot.slane %v9378_v36, 4  ;;  %v9276_v41 = vrot.slane %v9275_v47, 4  ;;  %v20307_v26 = vld [vmem:[#allocation41_spill] sm:$0xff]  ;;  %v20308_v18 = vld [vmem:[#allocation43_spill] sm:$0xff] }
 0x4f3   : > { %14080 = vmatprep.mubr.bf16.mxu1 %v12744_v51  ;;  %v9286_v56 = vrot.slane %v9285_v11, 4  ;;  %v9290_v29 = vrot.slane %v9288_v8, 5  ;;  %v9333_v14 = vor.u32 %v9332_v19, %v19147_v58  ;;  %14109 = vmatpush3.bf16.msra.mxu1 %v15274_v2  ;;  %v9310_v25 = vrot.slane %v9309_v57, 4 }
 0x4f4   : > { %v9357_v55 = vor.u32 %v9356_v4, %v19149_v12  ;;  %v9367_v5 = vrot.slane %v9365_v27, 4  ;;  %v9370_v46 = vrot.slane %v9368_v52, 5  ;;  %14110 = vmatprep.subr.bf16.mxu1 %v15275_v30  ;;  %v9314_v10 = vrot.slane %v9312_v16, 5  ;;  %v9711_v27 = vld [vmem:[#allocation3 + $0x18] sm:$0xe] }
 0x4f5   : > { %v9323_v33 = vor.u32 %v9322_v43, %v9319_v31  ;;  %v9336_v17 = vshll.u32 %v20305_v59, 16  ;;  %v9347_v53 = vor.u32 %v9346_v7, %v9343_v49  ;;  %v9300_v51 = vrot.slane %v9299_v39, 4  ;;  %v20309_v31 = vld [vmem:[#allocation42_spill] sm:$0xff]  ;;  %v9712_v39 = vld [vmem:[#allocation3 + $0x24] sm:$0xe] }
 0x4f6   : > { %v9360_v47 = vshll.u32 %v20306_v44, 16  ;;  %v9381_v8 = vor.u32 %v9380_v22, %v19155_v13  ;;  %v9776_v2 = vrot.slane %v20307_v26, 5  ;;  %v12746_v28 = vcombine.low %v9257_v1, %v9267_v40  ;;  %v19195_v22 = vld [vmem:[#allocation3 + $0x1c] sm:$0xf] }
 0x4f7   : > { %v9281_v50 = vsel %vm16131_vm11, %v9276_v41, %v19129_v9  ;;  %v9291_v20 = vsel %vm16131_vm11, %v9286_v56, %v9290_v29  ;;  %v9334_v61 = vrot.slane %v9333_v14, 4  ;;  %14111 = vmatpush3.bf16.msra.mxu1 %v15275_v30  ;;  %v9315_v35 = vsel %vm16131_vm11, %v9310_v25, %v9314_v10  ;;  %v20310_v14 = vld [vmem:[#allocation44_spill] sm:$0xff] }
 0x4f8   : > { %v9358_v45 = vrot.slane %v9357_v55, 4  ;;  %v9371_v32 = vor.u32 %v9370_v46, %v9367_v5  ;;  %v9384_v11 = vshll.u32 %v18937_v3, 16  ;;  %14144 = vmatprep.subr.bf16.mxu1 %v19159_v6  ;;  %v9324_v54 = vrot.slane %v9323_v33, 4  ;;  %v19215_v10 = vld [vmem:[#allocation3 + $0x20] sm:$0x1] }
 0x4f9   : > { %v9338_v24 = vrot.slane %v9336_v17, 5  ;;  %v9348_v1 = vrot.slane %v9347_v53, 4  ;;  %v9783_v48 = vrot.slane %v20308_v18, 5  ;;  %v9305_v9 = vsel %vm16131_vm11, %v9300_v51, %v19136_v23  ;;  %v11349_v33 = vld [vmem:[#allocation3 + $0x18] sm:$0xe] }
 0x4fa   : > { %14081 = vmatmul.mubr.bf16.gmra.mrb[0].mxu1 %v19123_v37  ;;  %v9362_v36 = vrot.slane %v9360_v47, 5  ;;  %v9382_v57 = vrot.slane %v9381_v8, 4  ;;  %v9778_v16 = vrot.slane %v9776_v2, 4  ;;  %v12747_v19 = vcombine.low %v9281_v50, %v9291_v20  ;;  %v19224_v51 = vld [vmem:[#allocation3 + $0x2c] sm:$0x1] }
 0x4fb   : > { %14084 = vmatprep.mubr.bf16.mxu1 %v12746_v28  ;;  %v12748_v3 = vcombine.low %v9305_v9, %v9315_v35  ;;  %v9339_v4 = vsel %vm16131_vm11, %v9334_v61, %v9338_v24  ;;  %v9372_v30 = vrot.slane %v9371_v32, 4  ;;  %v9386_v37 = vrot.slane %v9384_v11, 5  ;;  %v11350_v47 = vld [vmem:[#allocation3 + $0x24] sm:$0xe]  ;;  %v19241_v61 = vld [vmem:[#allocation3 + $0x40] sm:$0xf] }
 0x4fc   : > { %v9363_v52 = vsel %vm16131_vm11, %v9358_v45, %v9362_v36  ;;  %v9779_v43 = vrot.slane %v20309_v31, 5  ;;  %v9329_v23 = vsel %vm16131_vm11, %v9324_v54, %v19147_v58  ;;  %v9353_v49 = vsel %vm16131_vm11, %v9348_v1, %v19149_v12  ;;  %v19204_v58 = vld [vmem:[#allocation3 + $0x28] sm:$0xf]  ;;  %v11351_v32 = vld [vmem:[#allocation3 + $0x30] sm:$0xe] }
 0x4fd   : > { %v12760_v7 = vrot.slane %v9710_v38, 9  ;;  %v9785_v40 = vrot.slane %v9783_v48, 4  ;;  %v9387_v41 = vsel %vm16131_vm11, %v9382_v57, %v9386_v37  ;;  %v12761_v29 = vrot.slane %v9711_v27, 9  ;;  %v19244_v11 = vld [vmem:[#allocation3 + $0x44] sm:$0x1] }
 0x4fe   : > { %v19201_v56 = vsel %vm16559_vm14, %v9778_v16, %v9779_v43  ;;  %v9790_v25 = vrot.slane %v20310_v14, 5  ;;  %v19206_v55 = vcombine.low %v9329_v23, %v9339_v4  ;;  %v19208_v12 = vcombine.low %v9353_v49, %v9363_v52  ;;  %v19246_v54 = vld [vmem:[#allocation3 + $0x4c] sm:$0xf]  ;;  %v19255_v36 = vld [vmem:[#allocation3 + $0x50] sm:$0x1] }
 0x4ff   : > { %v19212_v5 = vsel %vm16559_vm14, %v12760_v7, %v9776_v2  ;;  %v9786_v46 = vrot.slane %v18962_v34, 5  ;;  %v9377_v59 = vsel %vm16131_vm11, %v9372_v30, %v19155_v13  ;;  %v19222_v17 = vsel %vm16559_vm14, %v12761_v29, %v9783_v48  ;;  %v19235_v13 = vld [vmem:[#allocation3 + $0x34] sm:$0xf]  ;;  %v19237_v2 = vld [vmem:[#allocation3 + $0x38] sm:$0x1] }
 0x500   : > { %v12762_v53 = vrot.slane %v9712_v39, 9  ;;  %v11415_v44 = vrot.slane %v19195_v22, 5  ;;  %v19227_v8 = vcombine.low %v9377_v59, %v9387_v41  ;;  %v11422_v28 = vrot.slane %v19204_v58, 5  ;;  %v11352_v16 = vld [vmem:[#allocation3 + $0x3c] sm:$0xe] }
 0x501   : > { %v19233_v26 = vsel %vm16559_vm14, %v9785_v40, %v9786_v46  ;;  %v9792_v50 = vrot.slane %v9790_v25, 4  ;;  %v9793_v20 = vrot.slane %v18981_v60, 5  ;;  %v12848_v35 = vrot.slane %v11349_v33, 9  ;;  %v11353_v30 = vld [vmem:[#allocation3 + $0x48] sm:$0xe] }
 0x502   : > { %14085 = vmatmul.mubr.bf16.gmra.mrb[4].mxu1 %v12747_v19  ;;  %v11418_v45 = vrot.slane %v19215_v10, 5  ;;  %v11417_v24 = vrot.slane %v11415_v44, 4  ;;  %v12849_v1 = vrot.slane %v11350_v47, 9  ;;  %v11424_v18 = vrot.slane %v11422_v28, 4  ;;  %v19262_v19 = vld [vmem:[#allocation3 + $0x58] sm:$0xf] }
 0x503   : > { %14088 = vmatprep.mubr.bf16.mxu1 %v12748_v3  ;;  %v11425_v48 = vrot.slane %v19224_v51, 5  ;;  %v19253_v60 = vsel %vm16559_vm14, %v12762_v53, %v9790_v25  ;;  %v19259_v57 = vsel %vm16559_vm14, %v12848_v35, %v11415_v44  ;;  %v11429_v38 = vrot.slane %v19235_v13, 5  ;;  %v19280_v31 = vld [vmem:[#allocation3 + $0x5c] sm:$0x1]  ;;  %v11354_v7 = vld [vmem:[#allocation3 + $0x54] sm:$0xe] }
 0x504   : > { %v19266_v3 = vsel %vm16559_vm14, %v11417_v24, %v11418_v45  ;;  %v19270_v4 = vsel %vm16559_vm14, %v12849_v1, %v11422_v28  ;;  %v12850_v52 = vrot.slane %v11351_v32, 9  ;;  %v19278_v37 = vsel %vm16559_vm14, %v9792_v50, %v9793_v20  ;;  %v19287_v40 = vld [vmem:[#allocation3 + $0x64] sm:$0xf]  ;;  %v19294_v25 = vld [vmem:[#allocation3 + $0x68] sm:$0x1] }
 0x505   : > { %20311 = vst [vmem:[#allocation36_spill] sm:$0xff] %v19270_v4  ;;  %v19274_v27 = vsel %vm16559_vm14, %v11424_v18, %v11425_v48  ;;  %v11432_v49 = vrot.slane %v19237_v2, 5  ;;  %v11431_v41 = vrot.slane %v11429_v38, 4  ;;  %v12851_v29 = vrot.slane %v11352_v16, 9  ;;  %v19299_v44 = vld [vmem:[#allocation3 + $0x70] sm:$0xf] }
 0x506   : > { %20312 = vst [vmem:[#allocation29_spill] sm:$0xff] %v19274_v27  ;;  %v19291_v39 = vsel %vm16559_vm14, %v12850_v52, %v11429_v38  ;;  %v11436_v14 = vrot.slane %v19241_v61, 5  ;;  %v11439_v46 = vrot.slane %v19244_v11, 5  ;;  %v12852_v33 = vrot.slane %v11353_v30, 9  ;;  %v19307_v35 = vld [vmem:[#allocation3 + $0x74] sm:$0x1] }
 0x507   : > { %20313 = vst [vmem:[#allocation34_spill] sm:$0xff] %v19291_v39  ;;  %v11443_v59 = vrot.slane %v19246_v54, 5  ;;  %v11446_v53 = vrot.slane %v19255_v36, 5  ;;  %v19303_v47 = vsel %vm16559_vm14, %v11431_v41, %v11432_v49  ;;  %v12853_v50 = vrot.slane %v11354_v7, 9  ;;  %v19309_v45 = vld [vmem:[#allocation3 + $0x7c] sm:$0xf] }
 0x508   : > { %20314 = vst [vmem:[#allocation41_spill] sm:$0xff] %v19303_v47  ;;  %v11438_v28 = vrot.slane %v11436_v14, 4  ;;  %v11450_v20 = vrot.slane %v19262_v19, 5  ;;  %v19315_v24 = vsel %vm16559_vm14, %v12851_v29, %v11436_v14  ;;  %v11355_v48 = vld [vmem:[#allocation3 + $0x60] sm:$0xe]  ;;  %v11453_v30 = vrot.slane %v19280_v31, 5 }
 0x509   : > { %20315 = vst [vmem:[#allocation43_spill] sm:$0xff] %v19315_v24  ;;  %v19319_v1 = vsel %vm16559_vm14, %v12852_v33, %v11443_v59  ;;  %v11445_v18 = vrot.slane %v11443_v59, 4  ;;  %v11356_v49 = vld [vmem:[#allocation3 + $0x6c] sm:$0xe]  ;;  %v19333_v29 = vld [vmem:[#allocation3 + $0x80] sm:$0x1] }
 0x50a   : > { %14089 = vmatmul.mubr.bf16.gmra.mrb[8].mxu1 %v19206_v55  ;;  %20316 = vst [vmem:[#allocation42_spill] sm:$0xff] %v19319_v1  ;;  %v628_v55 = vld [vmem:[#allocation3 + $0xcc] sm:$0x1]  ;;  %v19324_v38 = vsel %vm16559_vm14, %v11438_v28, %v11439_v46  ;;  %v19328_v16 = vsel %vm16559_vm14, %v12853_v50, %v11450_v20  ;;  %v11452_v52 = vrot.slane %v11450_v20, 4  ;;  %v11457_v46 = vrot.slane %v19287_v40, 5 }
 0x50b   : > { %14092 = vmatprep.mubr.bf16.mxu1 %v19208_v12  ;;  %20317 = vst [vmem:[#allocation44_spill] sm:$0xff] %v19324_v38  ;;  %20318 = vst [vmem:[#allocation66_spill] sm:$0xff] %v19328_v16  ;;  %v629_v41 = vsel %vm15853_vm2, 0, %v628_v55  ;;  %v19339_v14 = vsel %vm16559_vm14, %v11445_v18, %v11446_v53  ;;  %v11357_v33 = vld [vmem:[#allocation3 + $0x78] sm:$0xe]  ;;  %v12854_v55 = vrot.slane %v11355_v48, 9  ;;  %v12778_v1 = vcombine.low %v19253_v60, %v19278_v37 }
 0x50c   : > { %20320 = vst [vmem:[#allocation19_spill] sm:$0xff] %v19339_v14  ;;  %630 = vst [vmem:[#allocation3 + $0xcc] sm:$0x1] %v629_v41  ;;  %v19342_v59 = vld [vmem:[#allocation3 + $0x88] sm:$0xf]  ;;  %v19350_v20 = vsel %vm16559_vm14, %v11452_v52, %v11453_v30  ;;  %v11460_v7 = vrot.slane %v19294_v25, 5 }
 0x50d   : > { %v19344_v28 = vld [vmem:[#allocation3 + $0x94] sm:$0xf]  ;;  %20321 = vst [vmem:[#allocation67_spill] sm:$0xff] %v19350_v20  ;;  %v11459_v18 = vrot.slane %v11457_v46, 4  ;;  %v12855_v12 = vrot.slane %v11356_v49, 9  ;;  %v11464_v41 = vrot.slane %v19299_v44, 5  ;;  %v19360_v50 = vsel %vm16559_vm14, %v12854_v55, %v11457_v46 }
 0x50e   : > { %v11358_v32 = vld [vmem:[#allocation3 + $0x84] sm:$0xe]  ;;  %v19356_v23 = vld [vmem:[#allocation3 + $0x8c] sm:$0x1]  ;;  %20322 = vst [vmem:[#allocation68_spill] sm:$0xff] %v19360_v50  ;;  %v11467_v52 = vrot.slane %v19307_v35, 5 }
 0x50f   : > { %v12856_v30 = vrot.slane %v11357_v33, 9  ;;  %v11471_v48 = vrot.slane %v19309_v45, 5  ;;  %v19364_v43 = vld [vmem:[#allocation3 + $0x98] sm:$0x1]  ;;  %v19368_v53 = vsel %vm16559_vm14, %v11459_v18, %v11460_v7  ;;  %v19372_v49 = vsel %vm16559_vm14, %v12855_v12, %v11464_v41  ;;  %v11359_v46 = vld [vmem:[#allocation3 + $0x90] sm:$0xe] }
 0x510   : > { %20323 = vst [vmem:[#allocation69_spill] sm:$0xff] %v19368_v53  ;;  %20324 = vst [vmem:[#allocation70_spill] sm:$0xff] %v19372_v49  ;;  %v11466_v9 = vrot.slane %v11464_v41, 4  ;;  %v11474_v34 = vrot.slane %v19333_v29, 5  ;;  %v19375_v55 = vld [vmem:[#allocation3 + $0xac] sm:$0xf]  ;;  %v20327_v53 = vcombine.low %v19212_v5, %v19201_v56 }
 0x511   : > { %v11473_v20 = vrot.slane %v11471_v48, 4  ;;  %v12857_v16 = vrot.slane %v11358_v32, 9  ;;  %v11478_v14 = vrot.slane %v19342_v59, 5  ;;  %v19381_v7 = vld [vmem:[#allocation3 + $0xa0] sm:$0xf]  ;;  %v19391_v41 = vsel %vm16559_vm14, %v12856_v30, %v11471_v48 }
 0x512   : > { %14093 = vmatmul.mubr.bf16.gmra.mrb[12].mxu1 %v19227_v8  ;;  %v19383_v18 = vld [vmem:[#allocation3 + $0xa4] sm:$0x1]  ;;  %v19387_v12 = vsel %vm16559_vm14, %v11466_v9, %v11467_v52  ;;  %20326 = vst [vmem:[#allocation72_spill] sm:$0xff] %v19391_v41  ;;  %v11481_v33 = vrot.slane %v19356_v23, 5  ;;  %v11485_v32 = vrot.slane %v19344_v28, 5  ;;  %v12858_v30 = vrot.slane %v11359_v46, 9 }
 0x513   : > { %20325 = vst [vmem:[#allocation71_spill] sm:$0xff] %v19387_v12  ;;  %14112 = vmatprep.mubr.bf16.mxu1 %v20327_v53  ;;  %v19398_v8 = vld [vmem:[#allocation3 + $0xb0] sm:$0x1]  ;;  %v19404_v9 = vsel %vm16559_vm14, %v11473_v20, %v11474_v34  ;;  %v11480_v52 = vrot.slane %v11478_v14, 4  ;;  %v11360_v48 = vld [vmem:[#allocation3 + $0x9c] sm:$0xe]  ;;  %v19417_v34 = vsel %vm16559_vm14, %v12857_v16, %v11478_v14 }
 0x514   : > { %20328 = vst [vmem:[#allocation73_spill] sm:$0xff] %v19404_v9  ;;  %v11487_v56 = vrot.slane %v11485_v32, 4  ;;  %v11488_v5 = vrot.slane %v19364_v43, 5  ;;  %v11361_v53 = vld [vmem:[#allocation3 + $0xa8] sm:$0xe]  ;;  %20329 = vst [vmem:[#allocation74_spill] sm:$0xff] %v19417_v34  ;;  %v19425_v60 = vsel %vm16559_vm14, %v12858_v30, %v11485_v32 }
 0x515   : > { %v19411_v24 = vld [vmem:[#allocation3 + $0xb8] sm:$0xf]  ;;  %v19413_v50 = vld [vmem:[#allocation3 + $0xc4] sm:$0xf]  ;;  %v19421_v20 = vsel %vm16559_vm14, %v11480_v52, %v11481_v33  ;;  %20331 = vst [vmem:[#allocation76_spill] sm:$0xff] %v19425_v60  ;;  %v11492_v37 = vrot.slane %v19381_v7, 5 }
 0x516   : > { %20330 = vst [vmem:[#allocation75_spill] sm:$0xff] %v19421_v20  ;;  %v19428_v46 = vld [vmem:[#allocation3 + $0xbc] sm:$0x1]  ;;  %v19434_v9 = vsel %vm16559_vm14, %v11487_v56, %v11488_v5  ;;  %v12859_v16 = vrot.slane %v11360_v48, 9  ;;  %v11499_v14 = vrot.slane %v19375_v55, 5  ;;  %v11495_v41 = vrot.slane %v19383_v18, 5 }
 0x517   : > { %20332 = vst [vmem:[#allocation77_spill] sm:$0xff] %v19434_v9  ;;  %v11362_v33 = vld [vmem:[#allocation3 + $0xb4] sm:$0xe]  ;;  %v19437_v52 = vld [vmem:[#allocation3 + $0xc8] sm:$0x1]  ;;  %v11494_v30 = vrot.slane %v11492_v37, 4 }
 0x518   : > { %v12860_v12 = vrot.slane %v11361_v53, 9  ;;  %v15277_v49 = vld [vmem:[#allocation9 + $0x188] sm:$0xff]   ;;  %v19444_v38 = vsel %vm16559_vm14, %v12859_v16, %v11492_v37  ;;  %v11501_v56 = vrot.slane %v11499_v14, 4  ;;  %v11502_v48 = vrot.slane %v19398_v8, 5 }
 0x519   : > { %20333 = vst [vmem:[#allocation78_spill] sm:$0xff] %v19444_v38  ;;  %v11506_v5 = vrot.slane %v19411_v24, 5  ;;  %v11363_v20 = vld [vmem:[#allocation3 + $0xc0] sm:$0xe]  ;;  %v19450_v34 = vsel %vm16559_vm14, %v11494_v30, %v11495_v41  ;;  %v12861_v53 = vrot.slane %v11362_v33, 9  ;;  %v11513_v9 = vrot.slane %v19413_v50, 5 }
 0x51a   : > { %20334 = vst [vmem:[#allocation79_spill] sm:$0xff] %v19450_v34  ;;  %v19454_v32 = vsel %vm16559_vm14, %v12860_v12, %v11499_v14  ;;  %v20336_v37 = vcombine.low %v19222_v17, %v19233_v26  ;;  %v19464_v60 = vsel %vm16559_vm14, %v11501_v56, %v11502_v48  ;;  %v11509_v30 = vrot.slane %v19428_v46, 5  ;;  %v15278_v26 = vld [vmem:[#allocation9 + $0x190] sm:$0xff]   ;;  %v20345_v12 = vld [vmem:[#allocation54_spill] sm:$0xff] }
 0x51b   : > { %20335 = vst [vmem:[#allocation80_spill] sm:$0xff] %v19454_v32  ;;  %20337 = vst [vmem:[#allocation81_spill] sm:$0xff] %v19464_v60  ;;  %v11508_v41 = vrot.slane %v11506_v5, 4  ;;  %v12862_v14 = vrot.slane %v11363_v20, 9  ;;  %v11515_v33 = vrot.slane %v11513_v9, 4  ;;  %v11516_v17 = vrot.slane %v19437_v52, 5 }
 0x51c   : > { %14113 = vmatmul.mubr.bf16.vlgmr.msra.gmra.mrb[16].mxu1 %v20336_v37  ;;  %v19473_v37 = vsel %vm16559_vm14, %v12861_v53, %v11506_v5  ;;  %v15279_v5 = vld [vmem:[#allocation9 + $0x198] sm:$0xff]   ;;  %v20342_v53 = vld [vmem:[#allocation52_spill] sm:$0xff] }
 0x51d   : > { %14116 = vmatprep.mubr.bf16.mxu1 %v12778_v1  ;;  %14145 = vmatpush3.bf16.msra.mxu1 %v19159_v6  ;;  %20338 = vst [vmem:[#allocation82_spill] sm:$0xff] %v19473_v37  ;;  %v19477_v56 = vsel %vm16559_vm14, %v11508_v41, %v11509_v30  ;;  %v19483_v1 = vsel %vm16559_vm14, %v12862_v14, %v11513_v9  ;;  %v20343_v41 = vld [vmem:[#allocation53_spill] sm:$0xff]  ;;  %v20346_v6 = vld [vmem:[#allocation56_spill] sm:$0xff]  ;;  %v15280_v9 = vld [vmem:[#allocation9 + $0x1a0] sm:$0xff]  }
 0x51e   : > { %14146 = vmatprep.subr.bf16.mxu1 %v15277_v49  ;;  %20339 = vst [vmem:[#allocation83_spill] sm:$0xff] %v19477_v56  ;;  %20340 = vst [vmem:[#allocation84_spill] sm:$0xff] %v19483_v1  ;;  %v19487_v20 = vsel %vm16559_vm14, %v11515_v33, %v11516_v17  ;;  %v20344_v30 = vcombine.low %v20342_v53, %v20343_v41  ;;  %v20347_v16 = vcombine.low %v20345_v12, %v20346_v6  ;;  %v15281_v14 = vld [vmem:[#allocation9 + $0x1a8] sm:$0xff]   ;;  %v20348_v33 = vld [vmem:[#allocation57_spill] sm:$0xff] }
 0x51f   : > { %20341 = vst [vmem:[#allocation85_spill] sm:$0xff] %v19487_v20  ;;  %v20349_v17 = vld [vmem:[#allocation58_spill] sm:$0xff]  ;;  %v20352_v20 = vld [vmem:[#allocation60_spill] sm:$0xff]  ;;  %v15282_v53 = vld [vmem:[#allocation9 + $0x1b0] sm:$0xff]  }
 0x520   : > { %v20350_v48 = vcombine.low %v20348_v33, %v20349_v17  ;;  %v20354_v12 = vld [vmem:[#allocation61_spill] sm:$0xff]  ;;  %v20364_v33 = vld [vmem:[#allocation31_spill] sm:$0xff] }
 0x521   : > { %14147 = vmatpush3.bf16.msra.mxu1 %v15277_v49  ;;  %v20351_v49 = vld [vmem:[#allocation59_spill] sm:$0xff]  ;;  %v20358_v41 = vld [vmem:[#allocation33_spill] sm:$0xff] }
 0x522   : > { %14148 = vmatprep.subr.bf16.mxu1 %v15278_v26  ;;  %v20353_v1 = vcombine.low %v20351_v49, %v20352_v20  ;;  %v20361_v20 = vld [vmem:[#allocation24_spill] sm:$0xff]  ;;  %v20366_v49 = vld [vmem:[#allocation35_spill] sm:$0xff]  ;;  %v15302_v37 = vld [vmem:[#allocation3 + $0xa8] sm:$0xff]  }
 0x524   : > { %14117 = vmatmul.mubr.bf16.gmra.mrb[20].mxu1 %v20344_v30 }
 0x525   : > { %14120 = vmatprep.mubr.bf16.mxu1 %v20347_v16  ;;  %14149 = vmatpush3.bf16.msra.mxu1 %v15278_v26  ;;  %v15283_v16 = vld [vmem:[#allocation9 + $0x1b8] sm:$0xff]  }
 0x526   : > { %14150 = vmatprep.subr.bf16.mxu1 %v15279_v5  ;;  %v20355_v26 = vld [vmem:[#allocation26_spill] sm:$0xff] }
 0x527   : > { %v20356_v6 = vcombine.low %v20354_v12, %v20355_v26  ;;  %v20367_v12 = vld [vmem:[#allocation22_spill] sm:$0xff] }
 0x528   : > { %v20368_v26 = vcombine.low %v20366_v49, %v20367_v12  ;;  %v15285_v49 = vld [vmem:[#allocation3 + $0x24] sm:$0xff]  }
 0x529   : > { %14151 = vmatpush3.bf16.msra.mxu1 %v15279_v5  ;;  %v20357_v5 = vld [vmem:[#allocation62_spill] sm:$0xff]  ;;  %v15289_v12 = vld [vmem:[#allocation9 + $0x1c8] sm:$0xff]  }
 0x52a   : > { %14152 = vmatprep.subr.bf16.mxu1 %v15280_v9  ;;  %v20359_v30 = vcombine.low %v20357_v5, %v20358_v41  ;;  %v20370_v5 = vld [vmem:[#allocation63_spill] sm:$0xff] }
 0x52c   : > { %14121 = vmatmul.mubr.bf16.gmra.mrb[24].mxu1 %v20350_v48  ;;  %v15286_v48 = vld [vmem:[#allocation9 + $0x1c0] sm:$0xff]  }
 0x52d   : > { %14124 = vmatprep.mubr.bf16.mxu1 %v20353_v1  ;;  %14153 = vmatpush3.bf16.msra.mxu1 %v15280_v9  ;;  %v20360_v1 = vld [vmem:[#allocation23_spill] sm:$0xff] }
 0x52e   : > { %14154 = vmatprep.subr.bf16.mxu1 %v15281_v14  ;;  %v20362_v9 = vcombine.low %v20360_v1, %v20361_v20  ;;  %v682_v1 = vld [vmem:[#allocation3 + $0xd4] sm:$0x1]  ;;  %v19532_v20 = vld [vmem:[#allocation9 + $0x200] sm:$0xff]  }
 0x531   : > { %14155 = vmatpush3.bf16.msra.mxu1 %v15281_v14  ;;  %v20363_v14 = vld [vmem:[#allocation32_spill] sm:$0xff] }
 0x532   : > { %14156 = vmatprep.subr.bf16.mxu1 %v15282_v53  ;;  %v20365_v17 = vcombine.low %v20363_v14, %v20364_v33  ;;  %v15284_v14 = vld [vmem:[#allocation3 + $0x18] sm:$0xff]   ;;  %v20376_v33 = vld [vmem:[#allocation65_spill] sm:$0xff] }
 0x534   : > { %14125 = vmatmul.mubr.bf16.gmra.mrb[28].mxu1 %v20356_v6  ;;  %v20369_v6 = vld [vmem:[#allocation21_spill] sm:$0xff] }
 0x535   : > { %14128 = vmatprep.mubr.bf16.mxu1 %v20359_v30  ;;  %14157 = vmatpush3.bf16.msra.mxu1 %v15282_v53  ;;  %v20371_v41 = vcombine.low %v20369_v6, %v20370_v5  ;;  %v20372_v53 = vcombine.low %v18959_v63, %v18966_v15  ;;  %v15292_v63 = vld [vmem:[#allocation9 + $0x1d0] sm:$0xff]   ;;  %v15288_v15 = vld [vmem:[#allocation3 + $0x3c] sm:$0xff]   ;;  %v15291_v5 = vld [vmem:[#allocation3 + $0x54] sm:$0xff]  }
 0x536   : > { %14158 = vmatprep.subr.bf16.mxu1 %v15283_v16  ;;  %v15290_v6 = vld [vmem:[#allocation3 + $0x48] sm:$0xff]  }
 0x539   : > { %14159 = vmatpush3.bf16.msra.mxu1 %v15283_v16  ;;  %v20373_v16 = vld [vmem:[#allocation64_spill] sm:$0xff] }
 0x53a   : > { %14192 = vmatprep.subr.bf16.mxu1 %v15286_v48  ;;  %v20374_v30 = vcombine.low %v18975_v0, %v20373_v16  ;;  %v15295_v0 = vld [vmem:[#allocation9 + $0x1d8] sm:$0xff]  }
 0x53b   : > { %v15294_v16 = vld [vmem:[#allocation3 + $0x6c] sm:$0xff]  }
 0x53c   : > { %14129 = vmatmul.mubr.bf16.gmra.mrb[0].mxu1 %v20362_v9  ;;  %v683_v9 = vsel %vm15858_vm4, 0, %v682_v1  ;;  %v15296_v1 = vld [vmem:[#allocation3 + $0x78] sm:$0xff]  }
 0x53d   : > { %14132 = vmatprep.mubr.bf16.mxu1 %v20365_v17  ;;  %684 = vst [vmem:[#allocation3 + $0xd4] sm:$0x1] %v683_v9  ;;  %v20377_v17 = vcombine.low %v18989_v21, %v20376_v33  ;;  %v15298_v21 = vld [vmem:[#allocation9 + $0x1e0] sm:$0xff]   ;;  %v10657_v33 = vshrl.u32 %v19195_v22, 16 }
 0x53e   : > { %v10595_v9 = vld [vmem:[#allocation3 + $0x18] sm:$0xf] }
 0x544   : > { %14133 = vmatmul.mubr.bf16.gmra.mrb[4].mxu1 %v20368_v26  ;;  %v15287_v26 = vld [vmem:[#allocation3 + $0x30] sm:$0xff]  }
 0x545   : > { %14136 = vmatprep.mubr.bf16.mxu1 %v20371_v41  ;;  %v15301_v41 = vld [vmem:[#allocation9 + $0x1e8] sm:$0xff]  }
 0x54c   : > { %14137 = vmatmul.mubr.bf16.gmra.mrb[8].mxu1 %v20372_v53  ;;  %v15293_v53 = vld [vmem:[#allocation3 + $0x60] sm:$0xff]  }
 0x54d   : > { %14140 = vmatprep.mubr.bf16.mxu1 %v20374_v30  ;;  %v15307_v30 = vld [vmem:[#allocation9 + $0x1f8] sm:$0xff]  }
 0x554   : > { %14141 = vmatmul.mubr.bf16.gmra.mrb[12].mxu1 %v20377_v17  ;;  %v15297_v17 = vld [vmem:[#allocation3 + $0x84] sm:$0xff]  }
 0x555   : > { %14160 = vmatprep.mubr.bf16.mxu1 %v15284_v14  ;;  %v10653_v14 = vshll.u32 %v19195_v22, 16 }
 0x55c   : > { %14161 = vmatmul.mubr.bf16.vlgmr.msra.gmra.mrb[16].mxu1 %v15285_v49  ;;  %v10644_v49 = vshrl.u32 %v10595_v9, 16 }
 0x55d   : > { %14164 = vmatprep.mubr.bf16.mxu1 %v15287_v26  ;;  %14193 = vmatpush3.bf16.msra.mxu1 %v15286_v48  ;;  %v15304_v48 = vld [vmem:[#allocation9 + $0x1f0] sm:$0xff]   ;;  %v15299_v26 = vld [vmem:[#allocation3 + $0x90] sm:$0xff]  }
 0x55e   : > { %14194 = vmatprep.subr.bf16.mxu1 %v15289_v12 }
 0x561   : > { %14195 = vmatpush3.bf16.msra.mxu1 %v15289_v12  ;;  %v10647_v12 = vshll.u32 %v10595_v9, 16 }
 0x562   : > { %14196 = vmatprep.subr.bf16.mxu1 %v15292_v63 }
 0x564   : > { %14165 = vmatmul.mubr.bf16.gmra.mrb[20].mxu1 %v15288_v15  ;;  %v10655_v15 = vrot.slane %v10653_v14, 5  ;;  %v10701_v14 = vshll.u32 %v19235_v13, 16 }
 0x565   : > { %14168 = vmatprep.mubr.bf16.mxu1 %v15290_v6  ;;  %14197 = vmatpush3.bf16.msra.mxu1 %v15292_v63  ;;  %v10598_v63 = vld [vmem:[#allocation3 + $0x24] sm:$0xf]  ;;  %v10646_v6 = vrot.slane %v10644_v49, 4 }
 0x566   : > { %14198 = vmatprep.subr.bf16.mxu1 %v15295_v0 }
 0x569   : > { %14199 = vmatpush3.bf16.msra.mxu1 %v15295_v0  ;;  %v10659_v0 = vrot.slane %v10657_v33, 4  ;;  %v10705_v33 = vshrl.u32 %v19235_v13, 16 }
 0x56a   : > { %14200 = vmatprep.subr.bf16.mxu1 %v15298_v21 }
 0x56b   : > { %v10660_v22 = vor.u32 %v10659_v0, %v10655_v15 }
 0x56c   : > { %14169 = vmatmul.mubr.bf16.gmra.mrb[24].mxu1 %v15291_v5  ;;  %v10668_v5 = vshrl.u32 %v10598_v63, 16 }
 0x56d   : > { %14172 = vmatprep.mubr.bf16.mxu1 %v15293_v53  ;;  %14201 = vmatpush3.bf16.msra.mxu1 %v15298_v21  ;;  %v10649_v21 = vrot.slane %v10647_v12, 5  ;;  %v10677_v53 = vshll.u32 %v19204_v58, 16 }
 0x56e   : > { %14202 = vmatprep.subr.bf16.mxu1 %v15301_v41  ;;  %v10670_v9 = vrot.slane %v10668_v5, 4 }
 0x56f   : > { %v19542_v49 = vrot.slane %v10677_v53, 5 }
 0x571   : > { %14203 = vmatpush3.bf16.msra.mxu1 %v15301_v41  ;;  %v10671_v41 = vshll.u32 %v10598_v63, 16 }
 0x572   : > { %14204 = vmatprep.subr.bf16.mxu1 %v15304_v48 }
 0x573   : > { %v10673_v56 = vrot.slane %v10671_v41, 5  ;;  %v19545_v41 = vrot.slane %v10701_v14, 5  ;;  %v10725_v14 = vshll.u32 %v19241_v61, 16 }
 0x574   : > { %14173 = vmatmul.mubr.bf16.gmra.mrb[28].mxu1 %v15294_v16  ;;  %v10601_v16 = vld [vmem:[#allocation3 + $0x30] sm:$0xf] }
 0x575   : > { %14176 = vmatprep.mubr.bf16.mxu1 %v15296_v1  ;;  %14205 = vmatpush3.bf16.msra.mxu1 %v15304_v48  ;;  %v10681_v48 = vshrl.u32 %v19204_v58, 16  ;;  %v10650_v1 = vor.u32 %v10649_v21, %v10646_v6  ;;  %v10695_v63 = vshll.u32 %v10601_v16, 16  ;;  %v10661_v58 = vrot.slane %v10660_v22, 4  ;;  %v10604_v21 = vld [vmem:[#allocation3 + $0x3c] sm:$0xf] }
 0x576   : > { %14206 = vmatprep.subr.bf16.mxu1 %v15307_v30  ;;  %v10674_v60 = vor.u32 %v10673_v56, %v10670_v9  ;;  %v10687_v6 = vshll.u32 %v19224_v51, 16  ;;  %v10719_v51 = vshll.u32 %v10604_v21, 16 }
 0x577   : > { %v10683_v12 = vrot.slane %v10681_v48, 4  ;;  %v10651_v0 = vrot.slane %v10650_v1, 4  ;;  %v10716_v48 = vshrl.u32 %v10604_v21, 16  ;;  %v15305_v1 = vld [vmem:[#allocation3 + $0xc0] sm:$0xff]  }
 0x578   : > { %v10675_v56 = vrot.slane %v10674_v60, 4  ;;  %v10689_v22 = vrot.slane %v10687_v6, 5  ;;  %v19559_v60 = vld [vmem:[#allocation3 + $0xd4] sm:$0x1]  ;;  %v10753_v6 = vshrl.u32 %v19246_v54, 16 }
 0x579   : > { %14207 = vmatpush3.bf16.msra.mxu1 %v15307_v30  ;;  %v15300_v30 = vld [vmem:[#allocation3 + $0x9c] sm:$0xff]   ;;  %v10684_v32 = vor.u32 %v10683_v12, %v19542_v49  ;;  %v10607_v12 = vld [vmem:[#allocation3 + $0x48] sm:$0xf] }
 0x57a   : > { %14240 = vmatprep.subr.bf16.mxu1 %v19532_v20  ;;  %v10740_v38 = vshrl.u32 %v10607_v12, 16  ;;  %v10680_v42 = vsel %vm16131_vm11, %v10675_v56, %v19542_v49 }
 0x57c   : > { %14177 = vmatmul.mubr.bf16.gmra.mrb[0].mxu1 %v15297_v17  ;;  %v10663_v17 = vshll.u32 %v19215_v10, 16  ;;  %v10707_v10 = vrot.slane %v10705_v33, 4  ;;  %v10729_v33 = vshrl.u32 %v19241_v61, 16  ;;  %v11523_v61 = vrot.slane %v19559_v60, 5 }
 0x57d   : > { %14180 = vmatprep.mubr.bf16.mxu1 %v15299_v26  ;;  %v10692_v26 = vshrl.u32 %v10601_v16, 16  ;;  %v15303_v16 = vld [vmem:[#allocation3 + $0xb4] sm:$0xff]  }
 0x57e   : > { %v10665_v5 = vrot.slane %v10663_v17, 5  ;;  %v10708_v9 = vor.u32 %v10707_v10, %v19545_v41  ;;  %v10711_v17 = vshll.u32 %v19237_v2, 16  ;;  %v11364_v2 = vld [vmem:[#allocation3 + $0xcc] sm:$0xe]  ;;  %v10721_v10 = vrot.slane %v10719_v51, 5 }
 0x57f   : > { %v10694_v13 = vrot.slane %v10692_v26, 4  ;;  %v10731_v34 = vrot.slane %v10729_v33, 4  ;;  %v10755_v51 = vrot.slane %v10753_v6, 4  ;;  %v10735_v6 = vshll.u32 %v19244_v11, 16 }
 0x580   : > { %v10666_v53 = vsel %vm16131_vm11, %v10661_v58, %v10665_v5  ;;  %v10749_v5 = vshll.u32 %v19246_v54, 16  ;;  %v10743_v54 = vshll.u32 %v10607_v12, 16 }
 0x582   : > { %v19568_v47 = vrot.slane %v10749_v5, 5 }
 0x584   : > { %14181 = vmatmul.mubr.bf16.gmra.mrb[4].mxu1 %v15300_v30  ;;  %v10697_v30 = vrot.slane %v10695_v63, 5  ;;  %v10685_v63 = vrot.slane %v10684_v32, 4  ;;  %v10773_v32 = vshll.u32 %v19262_v19, 16 }
 0x585   : > { %14184 = vmatprep.mubr.bf16.mxu1 %v15302_v37  ;;  %v10656_v37 = vsel %vm16131_vm11, %v10651_v0, %v10655_v15  ;;  %v19557_v15 = vld [vmem:[#allocation3 + $0xd0] sm:$0xf]  ;;  %v10718_v0 = vrot.slane %v10716_v48, 4 }
 0x586   : > { %v12824_v26 = vcombine.low %v10656_v37, %v10666_v53  ;;  %v10698_v58 = vor.u32 %v10697_v30, %v10694_v13  ;;  %v11520_v21 = vrot.slane %v19557_v15, 5  ;;  %v10777_v13 = vshrl.u32 %v19262_v19, 16  ;;  %v15306_v48 = vld [vmem:[#allocation3 + $0xcc] sm:$0xff]  }
 0x587   : > { %v12863_v30 = vrot.slane %v11364_v2, 9  ;;  %v10709_v53 = vrot.slane %v10708_v9, 4  ;;  %v19566_v37 = vrot.slane %v10725_v14, 5  ;;  %v10713_v9 = vrot.slane %v10711_v17, 5 }
 0x588   : > { %v19578_v14 = vrot.slane %v10773_v32, 5  ;;  %v10779_v33 = vrot.slane %v10777_v13, 4  ;;  %v10690_v5 = vsel %vm16131_vm11, %v10685_v63, %v10689_v22  ;;  %v10699_v2 = vrot.slane %v10698_v58, 4 }
 0x589   : > { %v19572_v39 = vsel %vm16559_vm14, %v12863_v30, %v11520_v21  ;;  %v10613_v30 = vld [vmem:[#allocation3 + $0x60] sm:$0xf]  ;;  %v10714_v17 = vsel %vm16131_vm11, %v10709_v53, %v10713_v9  ;;  %v10745_v32 = vrot.slane %v10743_v54, 5  ;;  %v10756_v22 = vor.u32 %v10755_v51, %v19568_v47 }
 0x58a   : > { %v10780_v11 = vor.u32 %v10779_v33, %v19578_v14  ;;  %v10791_v13 = vshll.u32 %v10613_v30, 16  ;;  %v10704_v49 = vsel %vm16131_vm11, %v10699_v2, %v19545_v41  ;;  %v10737_v53 = vrot.slane %v10735_v6, 5  ;;  %v15309_v33 = vld [vmem:[#allocation9 + $0x208] sm:$0xff]  }
 0x58b   : > { %v10757_v51 = vrot.slane %v10756_v22, 4  ;;  %v10825_v6 = vshrl.u32 %v19299_v44, 16 }
 0x58c   : > { %14185 = vmatmul.mubr.bf16.gmra.mrb[8].mxu1 %v15303_v16  ;;  %v10610_v16 = vld [vmem:[#allocation3 + $0x54] sm:$0xf]  ;;  %v10793_v41 = vrot.slane %v10791_v13, 5 }
 0x58d   : > { %14188 = vmatprep.mubr.bf16.mxu1 %v15305_v1  ;;  %v11522_v1 = vrot.slane %v11520_v21, 4  ;;  %v10764_v27 = vshrl.u32 %v10610_v16, 16  ;;  %v10767_v4 = vshll.u32 %v10610_v16, 16  ;;  %v10722_v21 = vor.u32 %v10721_v10, %v10718_v0 }
 0x58e   : > { %v10742_v16 = vrot.slane %v10740_v38, 4  ;;  %v12825_v0 = vcombine.low %v10680_v42, %v10690_v5  ;;  %v10788_v10 = vshrl.u32 %v10613_v30, 16  ;;  %v10616_v38 = vld [vmem:[#allocation3 + $0x6c] sm:$0xf]  ;;  %v10781_v5 = vrot.slane %v10780_v11, 4 }
 0x58f   : > { %v19576_v19 = vsel %vm16559_vm14, %v11522_v1, %v11523_v61  ;;  %v10732_v61 = vor.u32 %v10731_v34, %v19566_v37  ;;  %v10766_v63 = vrot.slane %v10764_v27, 4  ;;  %v10769_v58 = vrot.slane %v10767_v4, 5 }
 0x590   : > { %v12879_v12 = vcombine.low %v19572_v39, %v19576_v19  ;;  %v10723_v56 = vrot.slane %v10722_v21, 4  ;;  %v10759_v34 = vshll.u32 %v19255_v36, 16  ;;  %v10783_v1 = vshll.u32 %v19280_v31, 16  ;;  %v15344_v39 = vld [vmem:[%s15838_s22 + $0x40] sm:$0xff]  ;;  %v15345_v19 = vld [vmem:[%s15838_s22 + $0x48] sm:$0xff] }
 0x591   : > { %v10797_v27 = vshll.u32 %v19287_v40, 16  ;;  %v10801_v4 = vshrl.u32 %v19287_v40, 16  ;;  %v10746_v54 = vor.u32 %v10745_v32, %v10742_v16  ;;  %v10770_v9 = vor.u32 %v10769_v58, %v10766_v63  ;;  %v10619_v16 = vld [vmem:[#allocation3 + $0x78] sm:$0xf]  ;;  %v15310_v58 = vld [vmem:[#allocation9 + $0x210] sm:$0xff]  }
 0x592   : > { %v10790_v30 = vrot.slane %v10788_v10, 4  ;;  %v10812_v2 = vshrl.u32 %v10616_v38, 16  ;;  %v10728_v36 = vsel %vm16131_vm11, %v10723_v56, %v19566_v37  ;;  %v10761_v21 = vrot.slane %v10759_v34, 5 }
 0x593   : > { %v10821_v31 = vshll.u32 %v19299_v44, 16  ;;  %v10785_v40 = vrot.slane %v10783_v1, 5  ;;  %v19605_v42 = vrot.slane %v10797_v27, 5  ;;  %v10747_v22 = vrot.slane %v10746_v54, 4 }
 0x594   : > { %14189 = vmatmul.mubr.bf16.gmra.mrb[12].mxu1 %v15306_v48  ;;  %v10733_v48 = vrot.slane %v10732_v61, 4  ;;  %v10815_v61 = vshll.u32 %v10616_v38, 16  ;;  %v10762_v37 = vsel %vm16131_vm11, %v10757_v51, %v10761_v21  ;;  %v10771_v63 = vrot.slane %v10770_v9, 4  ;;  %v15311_v9 = vld [vmem:[#allocation9 + $0x218] sm:$0xff]  }
 0x595   : > { %14208 = vmatprep.mubr.bf16.mxu1 %v12824_v26  ;;  %v12826_v26 = vcombine.low %v10704_v49, %v10714_v17  ;;  %v10803_v17 = vrot.slane %v10801_v4, 4  ;;  %v10786_v44 = vsel %vm16131_vm11, %v10781_v5, %v10785_v40  ;;  %v10807_v11 = vshll.u32 %v19294_v25, 16  ;;  %v10622_v5 = vld [vmem:[#allocation3 + $0x84] sm:$0xf] }
 0x596   : > { %v10738_v32 = vsel %vm16131_vm11, %v10733_v48, %v10737_v53  ;;  %v10814_v10 = vrot.slane %v10812_v2, 4  ;;  %v19615_v13 = vrot.slane %v10821_v31, 5  ;;  %v10836_v49 = vshrl.u32 %v10619_v16, 16 }
 0x597   : > { %v10839_v56 = vshll.u32 %v10619_v16, 16  ;;  %v10804_v53 = vor.u32 %v10803_v17, %v19605_v42  ;;  %v10817_v34 = vrot.slane %v10815_v61, 5  ;;  %v10845_v38 = vshll.u32 %v19309_v45, 16  ;;  %v15312_v61 = vld [vmem:[#allocation9 + $0x220] sm:$0xff]  }
 0x598   : > { %v12827_v1 = vcombine.low %v10728_v36, %v10738_v32  ;;  %v10752_v27 = vsel %vm16131_vm11, %v10747_v22, %v19568_v47  ;;  %v10776_v25 = vsel %vm16131_vm11, %v10771_v63, %v19578_v14  ;;  %v10809_v51 = vrot.slane %v10807_v11, 5  ;;  %v10625_v36 = vld [vmem:[#allocation3 + $0x90] sm:$0xf] }
 0x599   : > { %v12828_v4 = vcombine.low %v10752_v27, %v10762_v37  ;;  %v12829_v48 = vcombine.low %v10776_v25, %v10786_v44  ;;  %v10841_v2 = vrot.slane %v10839_v56, 5  ;;  %v10805_v47 = vrot.slane %v10804_v53, 4  ;;  %v10628_v53 = vld [vmem:[#allocation3 + $0x9c] sm:$0xf] }
 0x59a   : > { %v19628_v21 = vrot.slane %v10845_v38, 5  ;;  %v10860_v31 = vshrl.u32 %v10622_v5, 16  ;;  %v10869_v40 = vshll.u32 %v19342_v59, 16  ;;  %v10873_v17 = vshrl.u32 %v19342_v59, 16 }
 0x59b   : > { %v10887_v16 = vshll.u32 %v10625_v36, 16  ;;  %v10893_v32 = vshll.u32 %v19344_v28, 16  ;;  %v10897_v22 = vshrl.u32 %v19344_v28, 16 }
 0x59c   : > { %14209 = vmatmul.mubr.bf16.vlgmr.msra.gmra.mrb[16].mxu1 %v12825_v0  ;;  %v10794_v0 = vor.u32 %v10793_v41, %v10790_v30  ;;  %v10838_v41 = vrot.slane %v10836_v49, 4  ;;  %v19641_v56 = vrot.slane %v10869_v40, 5  ;;  %v10875_v28 = vrot.slane %v10873_v17, 4 }
 0x59d   : > { %14212 = vmatprep.mubr.bf16.mxu1 %v12826_v26  ;;  %14241 = vmatpush3.bf16.msra.mxu1 %v19532_v20  ;;  %v10827_v20 = vrot.slane %v10825_v6, 4  ;;  %v10849_v26 = vshrl.u32 %v19309_v45, 16  ;;  %v10831_v45 = vshll.u32 %v19307_v35, 16  ;;  %v10863_v6 = vshll.u32 %v10622_v5, 16 }
 0x59e   : > { %14242 = vmatprep.subr.bf16.mxu1 %v15309_v33  ;;  %v10795_v54 = vrot.slane %v10794_v0, 4  ;;  %v10884_v35 = vshrl.u32 %v10625_v36, 16  ;;  %v10810_v0 = vsel %vm16131_vm11, %v10805_v47, %v10809_v51  ;;  %v19643_v38 = vrot.slane %v10893_v32, 5  ;;  %v15314_v47 = vld [vmem:[#allocation9 + $0x230] sm:$0xff]  }
 0x59f   : > { %v10828_v30 = vor.u32 %v10827_v20, %v19615_v13  ;;  %v10851_v14 = vrot.slane %v10849_v26, 4  ;;  %v10833_v44 = vrot.slane %v10831_v45, 5  ;;  %v10862_v20 = vrot.slane %v10860_v31, 4  ;;  %v10631_v31 = vld [vmem:[#allocation3 + $0xa8] sm:$0xf] }
 0x5a0   : > { %v10800_v37 = vsel %vm16131_vm11, %v10795_v54, %v19605_v42  ;;  %v10865_v49 = vrot.slane %v10863_v6, 5  ;;  %v10886_v42 = vrot.slane %v10884_v35, 4  ;;  %v10899_v26 = vrot.slane %v10897_v22, 4 }
 0x5a1   : > { %14243 = vmatpush3.bf16.msra.mxu1 %v15309_v33  ;;  %v10818_v33 = vor.u32 %v10817_v34, %v10814_v10  ;;  %v10829_v63 = vrot.slane %v10828_v30, 4  ;;  %v10852_v59 = vor.u32 %v10851_v14, %v19628_v21  ;;  %v10855_v10 = vshll.u32 %v19333_v29, 16 }
 0x5a2   : > { %14244 = vmatprep.subr.bf16.mxu1 %v15310_v58  ;;  %v10889_v34 = vrot.slane %v10887_v16, 5  ;;  %v12830_v27 = vcombine.low %v10800_v37, %v10810_v0  ;;  %v10866_v51 = vor.u32 %v10865_v49, %v10862_v20  ;;  %v10908_v5 = vshrl.u32 %v10628_v53, 16 }
 0x5a3   : > { %v10819_v11 = vrot.slane %v10818_v33, 4  ;;  %v10834_v25 = vsel %vm16131_vm11, %v10829_v63, %v10833_v44  ;;  %v10853_v54 = vrot.slane %v10852_v59, 4  ;;  %v10911_v30 = vshll.u32 %v10628_v53, 16 }
 0x5a4   : > { %14213 = vmatmul.mubr.bf16.gmra.mrb[20].mxu1 %v12827_v1  ;;  %v15313_v1 = vld [vmem:[#allocation9 + $0x228] sm:$0xff]   ;;  %v10900_v36 = vor.u32 %v10899_v26, %v19643_v38  ;;  %v10917_v33 = vshll.u32 %v19381_v7, 16  ;;  %v10921_v14 = vshrl.u32 %v19381_v7, 16  ;;  %v10903_v40 = vshll.u32 %v19364_v43, 16  ;;  %v15315_v7 = vld [vmem:[#allocation9 + $0x238] sm:$0xff]  }
 0x5a5   : > { %14216 = vmatprep.mubr.bf16.mxu1 %v12828_v4  ;;  %14245 = vmatpush3.bf16.msra.mxu1 %v15310_v58  ;;  %v10842_v58 = vor.u32 %v10841_v2, %v10838_v41  ;;  %v10824_v29 = vsel %vm16131_vm11, %v10819_v11, %v19615_v13  ;;  %v10857_v41 = vrot.slane %v10855_v10, 5  ;;  %v10890_v2 = vor.u32 %v10889_v34, %v10886_v42  ;;  %v10634_v10 = vld [vmem:[#allocation3 + $0xb4] sm:$0xf] }
 0x5a6   : > { %14246 = vmatprep.subr.bf16.mxu1 %v15311_v9  ;;  %v12831_v45 = vcombine.low %v10824_v29, %v10834_v25  ;;  %v10879_v13 = vshll.u32 %v19356_v23, 16  ;;  %v10941_v17 = vshll.u32 %v19375_v55, 16  ;;  %v10867_v35 = vrot.slane %v10866_v51, 4  ;;  %v10637_v29 = vld [vmem:[#allocation3 + $0xc0] sm:$0xf] }
 0x5a7   : > { %v10843_v4 = vrot.slane %v10842_v58, 4  ;;  %v10858_v6 = vsel %vm16131_vm11, %v10853_v54, %v10857_v41  ;;  %v10910_v32 = vrot.slane %v10908_v5, 4  ;;  %v10891_v23 = vrot.slane %v10890_v2, 4 }
 0x5a8   : > { %v10901_v22 = vrot.slane %v10900_v36, 4  ;;  %v10932_v37 = vshrl.u32 %v10631_v31, 16  ;;  %v10935_v63 = vshll.u32 %v10631_v31, 16  ;;  %v10881_v58 = vrot.slane %v10879_v13, 5  ;;  %v10640_v13 = vld [vmem:[#allocation3 + $0xcc] sm:$0xf] }
 0x5a9   : > { %14247 = vmatpush3.bf16.msra.mxu1 %v15311_v9  ;;  %v10876_v9 = vor.u32 %v10875_v28, %v19641_v56  ;;  %v19663_v0 = vrot.slane %v10917_v33, 5  ;;  %v10923_v43 = vrot.slane %v10921_v14, 4  ;;  %v10905_v11 = vrot.slane %v10903_v40, 5 }
 0x5aa   : > { %14248 = vmatprep.subr.bf16.mxu1 %v15312_v61  ;;  %v19665_v59 = vrot.slane %v10941_v17, 5  ;;  %v10872_v20 = vsel %vm16131_vm11, %v10867_v35, %v19641_v56  ;;  %v10927_v53 = vshll.u32 %v19383_v18, 16  ;;  %v10896_v42 = vsel %vm16131_vm11, %v10891_v23, %v19643_v38 }
 0x5ab   : > { %v10877_v16 = vrot.slane %v10876_v9, 4  ;;  %v10906_v34 = vsel %vm16131_vm11, %v10901_v22, %v10905_v11  ;;  %v10934_v26 = vrot.slane %v10932_v37, 4  ;;  %v10924_v56 = vor.u32 %v10923_v43, %v19663_v0 }
 0x5ac   : > { %14217 = vmatmul.mubr.bf16.gmra.mrb[24].mxu1 %v12829_v48  ;;  %v10848_v48 = vsel %vm16131_vm11, %v10843_v4, %v19628_v21  ;;  %v10913_v21 = vrot.slane %v10911_v30, 5  ;;  %v10956_v25 = vshrl.u32 %v10634_v10, 16  ;;  %v10965_v4 = vshll.u32 %v19411_v24, 16 }
 0x5ad   : > { %14220 = vmatprep.mubr.bf16.mxu1 %v12830_v27  ;;  %14249 = vmatpush3.bf16.msra.mxu1 %v15312_v61  ;;  %v10945_v61 = vshrl.u32 %v19375_v55, 16  ;;  %v12832_v44 = vcombine.low %v10848_v48, %v10858_v6  ;;  %v10882_v49 = vsel %vm16131_vm11, %v10877_v16, %v10881_v58  ;;  %v19678_v27 = vld [vmem:[#allocation10] sm:$0xff]   ;;  %v10969_v18 = vshrl.u32 %v19411_v24, 16 }
 0x5ae   : > { %14250 = vmatprep.subr.bf16.mxu1 %v15313_v1  ;;  %v10914_v28 = vor.u32 %v10913_v21, %v10910_v32  ;;  %v10959_v51 = vshll.u32 %v10634_v10, 16  ;;  %v10989_v38 = vshll.u32 %v19413_v50, 16  ;;  %v10993_v9 = vshrl.u32 %v19413_v50, 16 }
 0x5af   : > { %v10947_v55 = vrot.slane %v10945_v61, 4  ;;  %v12833_v5 = vcombine.low %v10872_v20, %v10882_v49  ;;  %v12834_v30 = vcombine.low %v10896_v42, %v10906_v34  ;;  %v10929_v41 = vrot.slane %v10927_v53, 5 }
 0x5b0   : > { %v10951_v36 = vshll.u32 %v19398_v8, 16  ;;  %v10983_v48 = vshll.u32 %v10637_v29, 16  ;;  %v10925_v24 = vrot.slane %v10924_v56, 4  ;;  %v10958_v33 = vrot.slane %v10956_v25, 4 }
 0x5b1   : > { %14251 = vmatpush3.bf16.msra.mxu1 %v15313_v1  ;;  %v10937_v1 = vrot.slane %v10935_v63, 5  ;;  %v10948_v54 = vor.u32 %v10947_v55, %v19665_v59  ;;  %v10967_v14 = vrot.slane %v10965_v4, 5  ;;  %v10971_v31 = vrot.slane %v10969_v18, 4 }
 0x5b2   : > { %14252 = vmatprep.subr.bf16.mxu1 %v15314_v47  ;;  %v10961_v50 = vrot.slane %v10959_v51, 5  ;;  %v10991_v40 = vrot.slane %v10989_v38, 5  ;;  %v10995_v17 = vrot.slane %v10993_v9, 4  ;;  %v11004_v61 = vshrl.u32 %v10640_v13, 16 }
 0x5b3   : > { %v10938_v2 = vor.u32 %v10937_v1, %v10934_v26  ;;  %v10949_v6 = vrot.slane %v10948_v54, 4  ;;  %v11007_v35 = vshll.u32 %v10640_v13, 16  ;;  %v11013_v16 = vshll.u32 %v19557_v15, 16  ;;  %v20380_v13 = vld [vmem:[#allocation29_spill] sm:$0xff] }
 0x5b4   : > { %14221 = vmatmul.mubr.bf16.gmra.mrb[28].mxu1 %v12831_v45  ;;  %v10915_v45 = vrot.slane %v10914_v28, 4  ;;  %v11017_v8 = vshrl.u32 %v19557_v15, 16  ;;  %v10953_v21 = vrot.slane %v10951_v36, 5  ;;  %v10985_v22 = vrot.slane %v10983_v48, 5  ;;  %v20379_v48 = vld [vmem:[#allocation36_spill] sm:$0xff] }
 0x5b5   : > { %14224 = vmatprep.mubr.bf16.mxu1 %v12832_v44  ;;  %14253 = vmatpush3.bf16.msra.mxu1 %v15314_v47  ;;  %v10980_v47 = vshrl.u32 %v10637_v29, 16  ;;  %v10939_v32 = vrot.slane %v10938_v2, 4  ;;  %v10930_v63 = vsel %vm16131_vm11, %v10925_v24, %v10929_v41  ;;  %v10962_v58 = vor.u32 %v10961_v50, %v10958_v33  ;;  %v20382_v33 = vld [vmem:[#allocation34_spill] sm:$0xff]  ;;  %v20385_v50 = vld [vmem:[#allocation43_spill] sm:$0xff] }
 0x5b6   : > { %14254 = vmatprep.subr.bf16.mxu1 %v15315_v7  ;;  %v10920_v37 = vsel %vm16131_vm11, %v10915_v45, %v19663_v0  ;;  %v10954_v44 = vsel %vm16131_vm11, %v10949_v6, %v10953_v21  ;;  %v10975_v43 = vshll.u32 %v19428_v46, 16  ;;  %v10996_v11 = vor.u32 %v10995_v17, %v10991_v40  ;;  %v15319_v6 = vld [vmem:[#allocation10 + $0x18] sm:$0xff]   ;;  %v20389_v17 = vld [vmem:[#allocation19_spill] sm:$0xff]  ;;  %v20394_v21 = vld [vmem:[#allocation68_spill] sm:$0xff] }
 0x5b7   : > { %v10982_v23 = vrot.slane %v10980_v47, 4  ;;  %v11006_v15 = vrot.slane %v11004_v61, 4  ;;  %v11009_v55 = vrot.slane %v11007_v35, 5  ;;  %v11015_v10 = vrot.slane %v11013_v16, 5  ;;  %v15317_v47 = vld [vmem:[#allocation10 + $0x8] sm:$0xff]   ;;  %v15320_v35 = vld [vmem:[#allocation10 + $0x20] sm:$0xff]  }
 0x5b8   : > { %v11019_v20 = vrot.slane %v11017_v8, 4  ;;  %v12835_v49 = vcombine.low %v10920_v37, %v10930_v63  ;;  %v10944_v0 = vsel %vm16131_vm11, %v10939_v32, %v19665_v59  ;;  %v10999_v53 = vshll.u32 %v19437_v52, 16  ;;  %v15321_v16 = vld [vmem:[#allocation10 + $0x28] sm:$0xff]   ;;  %v20392_v8 = vld [vmem:[#allocation67_spill] sm:$0xff]  ;;  %v15322_v37 = vld [vmem:[#allocation10 + $0x30] sm:$0xff]  }
 0x5b9   : > { %14255 = vmatpush3.bf16.msra.mxu1 %v15315_v7  ;;  %v10972_v7 = vor.u32 %v10971_v31, %v10967_v14  ;;  %v10986_v28 = vor.u32 %v10985_v22, %v10982_v23  ;;  %v12836_v42 = vcombine.low %v10944_v0, %v10954_v44  ;;  %v10963_v26 = vrot.slane %v10962_v58, 4  ;;  %v20395_v23 = vld [vmem:[#allocation69_spill] sm:$0xff]  ;;  %v15323_v63 = vld [vmem:[#allocation10 + $0x38] sm:$0xff]   ;;  %v20398_v44 = vld [vmem:[#allocation71_spill] sm:$0xff] }
 0x5ba   : > { %14288 = vmatprep.subr.bf16.mxu1 %v19678_v27  ;;  %v10997_v1 = vrot.slane %v10996_v11, 4  ;;  %v10977_v46 = vrot.slane %v10975_v43, 5  ;;  %v11010_v56 = vor.u32 %v11009_v55, %v11006_v15  ;;  %v11020_v25 = vor.u32 %v11019_v20, %v11015_v10  ;;  %v20400_v43 = vld [vmem:[#allocation72_spill] sm:$0xff]  ;;  %v20401_v11 = vld [vmem:[#allocation73_spill] sm:$0xff]  ;;  %v20403_v55 = vld [vmem:[#allocation74_spill] sm:$0xff] }
 0x5bb   : > { %v10973_v34 = vrot.slane %v10972_v7, 4  ;;  %v11023_v4 = vshll.u32 %v19559_v60, 16  ;;  %v10987_v18 = vrot.slane %v10986_v28, 4  ;;  %v11001_v29 = vrot.slane %v10999_v53, 5  ;;  %v20397_v7 = vld [vmem:[#allocation70_spill] sm:$0xff]  ;;  %v20407_v0 = vld [vmem:[#allocation77_spill] sm:$0xff] }
 0x5bc   : > { %14225 = vmatmul.mubr.bf16.gmra.mrb[0].mxu1 %v12833_v5  ;;  %v10968_v52 = vsel %vm16131_vm11, %v10963_v26, %v10967_v14  ;;  %v11011_v51 = vrot.slane %v11010_v56, 4  ;;  %v11021_v38 = vrot.slane %v11020_v25, 4  ;;  %v20378_v36 = vcombine.low %v19259_v57, %v19266_v3  ;;  %v20383_v14 = vld [vmem:[#allocation41_spill] sm:$0xff]  ;;  %v20388_v3 = vld [vmem:[#allocation42_spill] sm:$0xff]  ;;  %v20412_v26 = vld [vmem:[#allocation80_spill] sm:$0xff] }
 0x5bd   : > { %14228 = vmatprep.mubr.bf16.mxu1 %v12834_v30  ;;  %v10978_v54 = vsel %vm16131_vm11, %v10973_v34, %v10977_v46  ;;  %v11002_v59 = vsel %vm16131_vm11, %v10997_v1, %v11001_v29  ;;  %v11025_v9 = vrot.slane %v11023_v4, 5  ;;  %v10992_v30 = vsel %vm16131_vm11, %v10987_v18, %v10991_v40  ;;  %v20386_v40 = vld [vmem:[#allocation44_spill] sm:$0xff]  ;;  %v20409_v53 = vld [vmem:[#allocation78_spill] sm:$0xff]  ;;  %v20413_v1 = vld [vmem:[#allocation81_spill] sm:$0xff] }
 0x5be   : > { %v12837_v5 = vcombine.low %v10968_v52, %v10978_v54  ;;  %v12838_v45 = vcombine.low %v10992_v30, %v11002_v59  ;;  %v11016_v60 = vsel %vm16131_vm11, %v11011_v51, %v11015_v10  ;;  %v20381_v24 = vcombine.low %v20379_v48, %v20380_v13  ;;  %v20404_v10 = vld [vmem:[#allocation75_spill] sm:$0xff]  ;;  %v20415_v56 = vld [vmem:[#allocation82_spill] sm:$0xff]  ;;  %v20418_v18 = vld [vmem:[#allocation84_spill] sm:$0xff] }
 0x5bf   : > { %v11026_v41 = vsel %vm16131_vm11, %v11021_v38, %v11025_v9  ;;  %v20384_v31 = vcombine.low %v20382_v33, %v20383_v14  ;;  %v20387_v57 = vcombine.low %v20385_v50, %v20386_v40  ;;  %v20390_v61 = vcombine.low %v20388_v3, %v20389_v17  ;;  %v20416_v25 = vld [vmem:[#allocation83_spill] sm:$0xff]  ;;  %v20419_v29 = vld [vmem:[#allocation85_spill] sm:$0xff]  ;;  %v15337_v52 = vld [vmem:[%s15838_s22 + $0x8] sm:$0xff] }
 0x5c0   : > { %v12839_v2 = vcombine.low %v11016_v60, %v11026_v41  ;;  %v20396_v22 = vcombine.low %v20394_v21, %v20395_v23  ;;  %v20399_v58 = vcombine.low %v20397_v7, %v20398_v44  ;;  %v20402_v15 = vcombine.low %v20400_v43, %v20401_v11  ;;  %v15336_v59 = vld [vmem:[%s15838_s22] sm:$0xff]  ;;  %v15338_v38 = vld [vmem:[%s15838_s22 + $0x10] sm:$0xff]  ;;  %v15339_v9 = vld [vmem:[%s15838_s22 + $0x18] sm:$0xff] }
 0x5c1   : > { %v20405_v20 = vcombine.low %v20403_v55, %v20404_v10  ;;  %v20414_v46 = vcombine.low %v20412_v26, %v20413_v1  ;;  %v20417_v4 = vcombine.low %v20415_v56, %v20416_v25  ;;  %v20420_v54 = vcombine.low %v20418_v18, %v20419_v29  ;;  %v15340_v30 = vld [vmem:[%s15838_s22 + $0x20] sm:$0xff]  ;;  %v15342_v41 = vld [vmem:[%s15838_s22 + $0x30] sm:$0xff]  ;;  %v15347_v48 = vld [vmem:[%s15838_s22 + $0x58] sm:$0xff] }
 0x5c2   : > { %v11847_v51 = vpack.c.bf16 %v15337_v52, %v15336_v59  ;;  %v15349_v33 = vld [vmem:[%s15838_s22 + $0x68] sm:$0xff]  ;;  %v15352_v50 = vld [vmem:[%s15838_s22 + $0x80] sm:$0xff]  ;;  %v15354_v3 = vld [vmem:[%s15838_s22 + $0x90] sm:$0xff] }
 0x5c3   : > { %v15353_v40 = vld [vmem:[%s15838_s22 + $0x88] sm:$0xff]  ;;  %v15355_v17 = vld [vmem:[%s15838_s22 + $0x98] sm:$0xff]  ;;  %v15360_v23 = vld [vmem:[%s15838_s22 + $0xc0] sm:$0xff] }
 0x5c4   : > { %14229 = vmatmul.mubr.bf16.gmra.mrb[4].mxu1 %v12835_v49  ;;  %v20406_v49 = vld [vmem:[#allocation76_spill] sm:$0xff]  ;;  %v15363_v7 = vld [vmem:[%s15838_s22 + $0xd8] sm:$0xff]  ;;  %v20426_v1 = vld [vmem:[#allocation37_spill] sm:$0xff] }
 0x5c5   : > { %14232 = vmatprep.mubr.bf16.mxu1 %v12836_v42  ;;  %v20408_v28 = vcombine.low %v20406_v49, %v20407_v0  ;;  %v20410_v42 = vld [vmem:[#allocation79_spill] sm:$0xff]  ;;  %v15365_v43 = vld [vmem:[%s15838_s22 + $0xe8] sm:$0xff]  ;;  %v15367_v55 = vld [vmem:[%s15838_s22 + $0xf8] sm:$0xff] }
 0x5c6   : > { %v20411_v34 = vcombine.low %v20409_v53, %v20410_v42  ;;  %v20422_v49 = vld [vmem:[#allocation39_spill] sm:$0xff]  ;;  %v19808_v42 = vld [vmem:[%s20424_s25] ss:$0 sm:$0xff] }
 0x5c7   : > { %v20427_v52 = vld [vmem:[#allocation45_spill] sm:$0xff] }
 0x5cc   : > { %14233 = vmatmul.mubr.bf16.gmra.mrb[8].mxu1 %v12837_v5  ;;  %v11848_v5 = vpack.c.bf16 %v15339_v9, %v15338_v38 }
 0x5cd   : > { %14236 = vmatprep.mubr.bf16.mxu1 %v12838_v45  ;;  %v15341_v45 = vld [vmem:[%s15838_s22 + $0x28] sm:$0xff] }
 0x5ce   : > { %v11849_v60 = vpack.c.bf16 %v15341_v45, %v15340_v30  ;;  %v20428_v30 = vld [vmem:[#allocation46_spill] sm:$0xff] }
 0x5d4   : > { %14237 = vmatmul.mubr.bf16.gmra.mrb[12].mxu1 %v12839_v2  ;;  %v15343_v2 = vld [vmem:[%s15838_s22 + $0x38] sm:$0xff] }
 0x5d5   : > { %14256 = vmatprep.mubr.bf16.mxu1 %v20378_v36  ;;  %v11850_v36 = vpack.c.bf16 %v15343_v2, %v15342_v41  ;;  %v20429_v2 = vld [vmem:[#allocation47_spill] sm:$0xff] }
 0x5dc   : > { %14257 = vmatmul.mubr.bf16.vlgmr.msra.gmra.mrb[16].mxu1 %v20381_v24  ;;  %v15348_v24 = vld [vmem:[%s15838_s22 + $0x60] sm:$0xff] }
 0x5dd   : > { %14260 = vmatprep.mubr.bf16.mxu1 %v20384_v31  ;;  %14289 = vmatpush3.bf16.msra.mxu1 %v19678_v27  ;;  %v20391_v27 = vld [vmem:[#allocation66_spill] sm:$0xff]  ;;  %v11853_v14 = vpack.c.bf16 %v15349_v33, %v15348_v24  ;;  %v15350_v31 = vld [vmem:[%s15838_s22 + $0x70] sm:$0xff] }
 0x5de   : > { %14290 = vmatprep.subr.bf16.mxu1 %v15317_v47  ;;  %v20393_v32 = vcombine.low %v20391_v27, %v20392_v8  ;;  %v15358_v8 = vld [vmem:[%s15838_s22 + $0xb0] sm:$0xff] }
 0x5e1   : > { %14291 = vmatpush3.bf16.msra.mxu1 %v15317_v47  ;;  %v15346_v47 = vld [vmem:[%s15838_s22 + $0x50] sm:$0xff] }
 0x5e2   : > { %14292 = vmatprep.subr.bf16.mxu1 %v15318_v62  ;;  %v11852_v13 = vpack.c.bf16 %v15347_v48, %v15346_v47 }
 0x5e4   : > { %14261 = vmatmul.mubr.bf16.gmra.mrb[20].mxu1 %v20387_v57  ;;  %v11855_v57 = vpack.c.bf16 %v15353_v40, %v15352_v50 }
 0x5e5   : > { %14264 = vmatprep.mubr.bf16.mxu1 %v20390_v61  ;;  %14293 = vmatpush3.bf16.msra.mxu1 %v15318_v62  ;;  %v15351_v62 = vld [vmem:[%s15838_s22 + $0x78] sm:$0xff]  ;;  %v11856_v61 = vpack.c.bf16 %v15355_v17, %v15354_v3  ;;  %v20432_v3 = vld [vmem:[#allocation51_spill] sm:$0xff] }
 0x5e6   : > { %14294 = vmatprep.subr.bf16.mxu1 %v15319_v6 }
 0x5e9   : > { %14295 = vmatpush3.bf16.msra.mxu1 %v15319_v6  ;;  %v11854_v6 = vpack.c.bf16 %v15351_v62, %v15350_v31 }
 0x5ea   : > { %14296 = vmatprep.subr.bf16.mxu1 %v15320_v35 }
 0x5ec   : > { %14265 = vmatmul.mubr.bf16.gmra.mrb[24].mxu1 %v20393_v32  ;;  %v15359_v32 = vld [vmem:[%s15838_s22 + $0xb8] sm:$0xff] }
 0x5ed   : > { %14268 = vmatprep.mubr.bf16.mxu1 %v20396_v22  ;;  %14297 = vmatpush3.bf16.msra.mxu1 %v15320_v35  ;;  %v15356_v35 = vld [vmem:[%s15838_s22 + $0xa0] sm:$0xff]  ;;  %v11858_v21 = vpack.c.bf16 %v15359_v32, %v15358_v8  ;;  %v15361_v22 = vld [vmem:[%s15838_s22 + $0xc8] sm:$0xff] }
 0x5ee   : > { %14298 = vmatprep.subr.bf16.mxu1 %v15321_v16 }
 0x5f1   : > { %14299 = vmatpush3.bf16.msra.mxu1 %v15321_v16  ;;  %v15357_v16 = vld [vmem:[%s15838_s22 + $0xa8] sm:$0xff] }
 0x5f2   : > { %14300 = vmatprep.subr.bf16.mxu1 %v15322_v37  ;;  %v11857_v27 = vpack.c.bf16 %v15357_v16, %v15356_v35  ;;  %v20433_v35 = vld [vmem:[#allocation50_spill] sm:$0xff] }
 0x5f4   : > { %14269 = vmatmul.mubr.bf16.gmra.mrb[28].mxu1 %v20399_v58  ;;  %v15364_v58 = vld [vmem:[%s15838_s22 + $0xe0] sm:$0xff] }
 0x5f5   : > { %14272 = vmatprep.mubr.bf16.mxu1 %v20402_v15  ;;  %14301 = vmatpush3.bf16.msra.mxu1 %v15322_v37  ;;  %v11859_v37 = vpack.c.bf16 %v15361_v22, %v15360_v23  ;;  %v11861_v11 = vpack.c.bf16 %v15365_v43, %v15364_v58  ;;  %v15366_v15 = vld [vmem:[%s15838_s22 + $0xf0] sm:$0xff]  ;;  %v20435_v43 = vld [vmem:[#allocation27_spill] sm:$0xff] }
 0x5f6   : > { %14302 = vmatprep.subr.bf16.mxu1 %v15323_v63  ;;  %v11862_v10 = vpack.c.bf16 %v15367_v55, %v15366_v15 }
 0x5f9   : > { %14303 = vmatpush3.bf16.msra.mxu1 %v15323_v63  ;;  %v15362_v63 = vld [vmem:[%s15838_s22 + $0xd0] sm:$0xff]  ;;  %s19826_s22 = scalar_lea.vmem [#allocation12], %s12285_s13  ;;  %s12967_s13 = sshll.u32 %s15651_s21, 12 }
 0x5fa   : > { %v11860_v44 = vpack.c.bf16 %v15363_v7, %v15362_v63  ;;  %s12173_s29 = sshll.u32 %s19826_s22, 4  ;;  %s19894_s16 = scalar_lea.hbm %s20439_s30, %s12967_s13  ;;  %s19896_s29 = int_to_ptr.vmem [resolvable:$true] %s12173_s29 }
 0x5fb   : > { %s12160_s21 = scalar_lea.sflag [#allocation6], %s15832_s26  ;;  %s15482_s12 = scalar_lea.vmem %s19896_s29, 4096 }
 0x5fc   : > { %14273 = vmatmul.mubr.bf16.gmra.mrb[0].mxu1 %v20405_v20  ;;  %v19799_v20 = vld [vmem:[%s20421_s10] ss:$0 sm:$0xff]  ;;  %p15483_p10 = scmp.ne.s32.totalorder %s19896_s29, %s15482_s12  ;;  %s15488_s10 = scalar_lea.vmem %s15487_s8, 8192 }
 0x5fd   : > { %14276 = vmatprep.mubr.bf16.mxu1 %v20408_v28  ;;  %v7289_v0 = vadd.f32 %v20422_v49, %v19799_v20  ;;  %v20423_v28 = vld [vmem:[#allocation40_spill] sm:$0xff]  ;;  %v7290_v45 = vadd.f32 %v19799_v20, %v20428_v30  ;;  %v7294_v17 = vadd.f32 %v19799_v20, %v20432_v3  ;;  %v7297_v16 = vadd.f32 %v20433_v35, %v19799_v20  ;;  %p15489_p12 = scmp.lt.s32.totalorder %s19896_s29, %s15487_s8  ;;  %p15490_p1 = scmp.lt.s32.totalorder %s15488_s10, %s15482_s12 }
 0x5fe   : > { %v7287_v53 = vadd.f32 %v19799_v20, %v20423_v28  ;;  %v20437_v28 = vld [vmem:[#allocation30_spill] sm:$0xff]  ;;  %p15484_p3 = pnand %p15483_p10, %p15784_p5 }
 0x5ff   : > { %v14391_v18 = vadd.f32 %v19808_v42, %v7289_v0  ;;  %v14400_v48 = vadd.f32 %v19808_v42, %v7290_v45  ;;  %v14412_v23 = vadd.f32 %v19808_v42, %v7294_v17  ;;  %v14415_v63 = vadd.f32 %v19808_v42, %v7297_v16  ;;  %p15491_p2 = por %p15490_p1, %p15489_p12 }
 0x600   : > { %v14394_v59 = vadd.f32 %v19808_v42, %v7287_v53  ;;  %v7301_v53 = vadd.f32 %v20437_v28, %v19799_v20  ;;  %p15485_p7 = pneg %p15484_p3 }
 0x602   : > { %p15492_p4 = pnand %p15491_p2, %p15485_p7 }
 0x604   : > { %14277 = vmatmul.mubr.bf16.gmra.mrb[4].mxu1 %v20411_v34  ;;  %v20425_v34 = vld [vmem:[#allocation38_spill] sm:$0xff] }
 0x605   : > { %14280 = vmatprep.mubr.bf16.mxu1 %v20414_v46  ;;  %v7288_v26 = vadd.f32 %v20425_v34, %v19799_v20  ;;  %v7286_v46 = vadd.f32 %v19799_v20, %v20426_v1  ;;  %v20438_v34 = vld [vmem:[#allocation25_spill] sm:$0xff] }
 0x60c   : > { %14281 = vmatmul.mubr.bf16.gmra.mrb[8].mxu1 %v20417_v4 }
 0x60d   : > { %14284 = vmatprep.mubr.bf16.mxu1 %v20420_v54 }
 0x614   : > { %14285 = vmatmul.mubr.bf16.gmra.mrb[12].mxu1 %v12879_v12  ;;  %v11851_v12 = vpack.c.bf16 %v15345_v19, %v15344_v39  ;;  %v20430_v39 = vld [vmem:[#allocation48_spill] sm:$0xff] }
 0x615   : > { %14304 = vmatprep.mubr.bf16.mxu1 %v11847_v51  ;;  %v7292_v51 = vadd.f32 %v20427_v52, %v19799_v20  ;;  %v7291_v19 = vadd.f32 %v19799_v20, %v20430_v39 }
 0x617   : > { %v14406_v62 = vadd.f32 %v19808_v42, %v7291_v19 }
 0x61c   : > { %14305 = vmatmul.mubr.bf16.vlgmr.msra.gmra.mrb[16].mxu1 %v11848_v5 }
 0x61d   : > { %14308 = vmatprep.mubr.bf16.mxu1 %v11849_v60 }
 0x624   : > { %14309 = vmatmul.mubr.bf16.gmra.mrb[20].mxu1 %v11850_v36  ;;  %v7293_v36 = vadd.f32 %v20429_v2, %v19799_v20 }
 0x625   : > { %14312 = vmatprep.mubr.bf16.mxu1 %v11851_v12  ;;  %v14397_v12 = vadd.f32 %v19808_v42, %v7292_v51 }
 0x626   : > { %v14403_v33 = vadd.f32 %v19808_v42, %v7293_v36 }
 0x62c   : > { %14313 = vmatmul.mubr.bf16.gmra.mrb[24].mxu1 %v11852_v13 }
 0x62d   : > { %14316 = vmatprep.mubr.bf16.mxu1 %v11853_v14 }
 0x634   : > { %14317 = vmatmul.mubr.bf16.gmra.mrb[28].mxu1 %v11854_v6  ;;  %v20431_v6 = vld [vmem:[#allocation49_spill] sm:$0xff] }
 0x635   : > { %14320 = vmatprep.mubr.bf16.mxu1 %v11855_v57  ;;  %v7296_v50 = vadd.f32 %v20431_v6, %v19799_v20 }
 0x637   : > { %v14409_v32 = vadd.f32 %v19808_v42, %v7296_v50 }
 0x63c   : > { %14321 = vmatmul.mubr.bf16.gmra.mrb[0].mxu1 %v11856_v61 }
 0x63d   : > { %14324 = vmatprep.mubr.bf16.mxu1 %v11857_v27  ;;  %v20434_v27 = vld [vmem:[#allocation55_spill] sm:$0xff] }
 0x63e   : > { %v7295_v8 = vadd.f32 %v19799_v20, %v20434_v27 }
 0x640   : > { %v14418_v58 = vadd.f32 %v19808_v42, %v7295_v8 }
 0x644   : > { %14325 = vmatmul.mubr.bf16.gmra.mrb[4].mxu1 %v11858_v21 }
 0x645   : > { %14328 = vmatprep.mubr.bf16.mxu1 %v11859_v37 }
 0x64c   : > { %14329 = vmatmul.mubr.bf16.gmra.mrb[8].mxu1 %v11860_v44 }
 0x64d   : > { %14332 = vmatprep.mubr.bf16.mxu1 %v11861_v11  ;;  %v7300_v11 = vadd.f32 %v20435_v43, %v19799_v20 }
 0x64f   : > { %v14421_v1 = vadd.f32 %v19808_v42, %v7300_v11 }
 0x654   : > { %14333 = vmatmul.mubr.bf16.gmra.mrb[12].mxu1 %v11862_v10  ;;  %v20436_v10 = vld [vmem:[#allocation28_spill] sm:$0xff] }
 0x655   : > { %v7298_v49 = vadd.f32 %v19799_v20, %v20436_v10 }
 0x6ef   : > { %v14306_v56 = vpop.f32.mrb[16].mxu1 }
 0x6f0   : > { %v14385_v25 = vadd.f32 %v14306_v56, %v7288_v26  ;;  %v11968_v4 = vpop.f32.mrb[17].mxu1  ;;  %v7299_v26 = vadd.f32 %v19799_v20, %v20438_v34  ;;  %v14424_v56 = vadd.f32 %v19808_v42, %v7298_v49 }
 0x6f1   : > { %v14388_v29 = vadd.f32 %v11968_v4, %v7286_v46  ;;  %v14307_v54 = vpop.f32.mrb[18].mxu1 }
 0x6f2   : > { %v14386_v38 = vadd.f32 %v14385_v25, %v19808_v42  ;;  %v14392_v9 = vadd.f32 %v14391_v18, %v14307_v54  ;;  %v11971_v5 = vpop.f32.mrb[19].mxu1  ;;  %v14427_v18 = vadd.f32 %v19808_v42, %v7301_v53 }
 0x6f3   : > { %v14389_v60 = vadd.f32 %v14388_v29, %v19808_v42  ;;  %v14395_v41 = vadd.f32 %v14394_v59, %v11971_v5  ;;  %v14430_v59 = vadd.f32 %v19808_v42, %v7299_v26 }
 0x6f4   : > { %12129 = vst [vmem:[%s19826_s22 + $0x10] sm:$0xff] %v14386_v38  ;;  %12130 = vst [vmem:[%s19826_s22 + $0x18] sm:$0xff] %v14392_v9  ;;  %v14434_v9 = vadd.f32 %v19808_v42, %v19799_v20 }
 0x6f5   : > { %12127 = vst [vmem:[%s19826_s22] sm:$0xff] %v14389_v60  ;;  %12128 = vst [vmem:[%s19826_s22 + $0x8] sm:$0xff] %v14395_v41 }
 0x6f7   : > { %v14310_v47 = vpop.f32.mrb[20].mxu1 }
 0x6f8   : > { %v14398_v13 = vadd.f32 %v14397_v12, %v14310_v47  ;;  %v11984_v24 = vpop.f32.mrb[21].mxu1 }
 0x6f9   : > { %v14401_v14 = vadd.f32 %v14400_v48, %v11984_v24  ;;  %v14311_v31 = vpop.f32.mrb[22].mxu1 }
 0x6fa   : > { %12133 = vst [vmem:[%s19826_s22 + $0x30] sm:$0xff] %v14398_v13  ;;  %v14404_v40 = vadd.f32 %v14403_v33, %v14311_v31  ;;  %v11987_v57 = vpop.f32.mrb[23].mxu1 }
 0x6fb   : > { %12131 = vst [vmem:[%s19826_s22 + $0x20] sm:$0xff] %v14401_v14  ;;  %v14407_v61 = vadd.f32 %v14406_v62, %v11987_v57 }
 0x6fc   : > { %12134 = vst [vmem:[%s19826_s22 + $0x38] sm:$0xff] %v14404_v40 }
 0x6fd   : > { %12132 = vst [vmem:[%s19826_s22 + $0x28] sm:$0xff] %v14407_v61 }
 0x6ff   : > { %v14314_v21 = vpop.f32.mrb[24].mxu1 }
 0x700   : > { %v14410_v22 = vadd.f32 %v14409_v32, %v14314_v21  ;;  %v12000_v37 = vpop.f32.mrb[25].mxu1 }
 0x701   : > { %v14413_v7 = vadd.f32 %v14412_v23, %v12000_v37  ;;  %v14315_v44 = vpop.f32.mrb[26].mxu1 }
 0x702   : > { %12137 = vst [vmem:[%s19826_s22 + $0x50] sm:$0xff] %v14410_v22  ;;  %v14416_v15 = vadd.f32 %v14415_v63, %v14315_v44  ;;  %v12003_v55 = vpop.f32.mrb[27].mxu1 }
 0x703   : > { %12135 = vst [vmem:[%s19826_s22 + $0x40] sm:$0xff] %v14413_v7  ;;  %v14419_v0 = vadd.f32 %v14418_v58, %v12003_v55 }
 0x704   : > { %12138 = vst [vmem:[%s19826_s22 + $0x58] sm:$0xff] %v14416_v15 }
 0x705   : > { %12136 = vst [vmem:[%s19826_s22 + $0x48] sm:$0xff] %v14419_v0 }
 0x707   : > { %v14318_v46 = vpop.f32.mrb[28].mxu1 }
 0x708   : > { %v14422_v25 = vadd.f32 %v14421_v1, %v14318_v46  ;;  %v12016_v4 = vpop.f32.mrb[29].mxu1 }
 0x709   : > { %v14425_v29 = vadd.f32 %v14424_v56, %v12016_v4  ;;  %v14319_v54 = vpop.f32.mrb[30].mxu1 }
 0x70a   : > { %12141 = vst [vmem:[%s19826_s22 + $0x70] sm:$0xff] %v14422_v25  ;;  %v14428_v52 = vadd.f32 %v14427_v18, %v14319_v54  ;;  %v12019_v51 = vpop.f32.mrb[31].mxu1 }
 0x70b   : > { %12139 = vst [vmem:[%s19826_s22 + $0x60] sm:$0xff] %v14425_v29  ;;  %v14431_v38 = vadd.f32 %v14430_v59, %v12019_v51 }
 0x70c   : > { %12142 = vst [vmem:[%s19826_s22 + $0x78] sm:$0xff] %v14428_v52 }
 0x70d   : > { %12140 = vst [vmem:[%s19826_s22 + $0x68] sm:$0xff] %v14431_v38 }
 0x70f   : > { %v14322_v5 = vpop.f32.mrb[0].mxu1 }
 0x710   : > { %v14433_v30 = vadd.f32 %v14434_v9, %v14322_v5  ;;  %v12032_v45 = vpop.f32.mrb[1].mxu1 }
 0x711   : > { %v14435_v60 = vadd.f32 %v14434_v9, %v12032_v45  ;;  %v14323_v41 = vpop.f32.mrb[2].mxu1 }
 0x712   : > { %12145 = vst [vmem:[%s19826_s22 + $0x90] sm:$0xff] %v14433_v30  ;;  %v14437_v2 = vadd.f32 %v14434_v9, %v14323_v41  ;;  %v12035_v36 = vpop.f32.mrb[3].mxu1 }
 0x713   : > { %12143 = vst [vmem:[%s19826_s22 + $0x80] sm:$0xff] %v14435_v60  ;;  %v14439_v39 = vadd.f32 %v14434_v9, %v12035_v36 }
 0x714   : > { %12146 = vst [vmem:[%s19826_s22 + $0x98] sm:$0xff] %v14437_v2 }
 0x715   : > { %12144 = vst [vmem:[%s19826_s22 + $0x88] sm:$0xff] %v14439_v39 }
 0x717   : > { %v14326_v19 = vpop.f32.mrb[4].mxu1 }
 0x718   : > { %v14441_v12 = vadd.f32 %v14434_v9, %v14326_v19  ;;  %v12048_v20 = vpop.f32.mrb[5].mxu1 }
 0x719   : > { %v14443_v42 = vadd.f32 %v14434_v9, %v12048_v20  ;;  %v14327_v47 = vpop.f32.mrb[6].mxu1 }
 0x71a   : > { %12149 = vst [vmem:[%s19826_s22 + $0xb0] sm:$0xff] %v14441_v12  ;;  %v14445_v48 = vadd.f32 %v14434_v9, %v14327_v47  ;;  %v12051_v13 = vpop.f32.mrb[7].mxu1 }
 0x71b   : > { %12147 = vst [vmem:[%s19826_s22 + $0xa0] sm:$0xff] %v14443_v42  ;;  %v14447_v24 = vadd.f32 %v14434_v9, %v12051_v13 }
 0x71c   : > { %12150 = vst [vmem:[%s19826_s22 + $0xb8] sm:$0xff] %v14445_v48 }
 0x71d   : > { %12148 = vst [vmem:[%s19826_s22 + $0xa8] sm:$0xff] %v14447_v24 }
 0x71f   : > { %v14330_v33 = vpop.f32.mrb[8].mxu1 }
 0x720   : > { %v14449_v14 = vadd.f32 %v14434_v9, %v14330_v33  ;;  %v12064_v31 = vpop.f32.mrb[9].mxu1 }
 0x721   : > { %v14451_v62 = vadd.f32 %v14434_v9, %v12064_v31  ;;  %v14331_v6 = vpop.f32.mrb[10].mxu1 }
 0x722   : > { %12153 = vst [vmem:[%s19826_s22 + $0xd0] sm:$0xff] %v14449_v14  ;;  %v14453_v50 = vadd.f32 %v14434_v9, %v14331_v6  ;;  %v12067_v40 = vpop.f32.mrb[11].mxu1 }
 0x723   : > { %12151 = vst [vmem:[%s19826_s22 + $0xc0] sm:$0xff] %v14451_v62  ;;  %v14455_v57 = vadd.f32 %v14434_v9, %v12067_v40 }
 0x724   : > { %12154 = vst [vmem:[%s19826_s22 + $0xd8] sm:$0xff] %v14453_v50 }
 0x725   : > { %12152 = vst [vmem:[%s19826_s22 + $0xc8] sm:$0xff] %v14455_v57 }
 0x727   : > { %v14334_v3 = vpop.f32.mrb[12].mxu1 }
 0x728   : > { %v14457_v17 = vadd.f32 %v14434_v9, %v14334_v3  ;;  %v12080_v61 = vpop.f32.mrb[13].mxu1 }
 0x729   : > { %v14459_v35 = vadd.f32 %v14434_v9, %v12080_v61  ;;  %v14335_v16 = vpop.f32.mrb[14].mxu1 }
 0x72a   : > { %12157 = vst [vmem:[%s19826_s22 + $0xf0] sm:$0xff] %v14457_v17  ;;  %v14461_v27 = vadd.f32 %v14434_v9, %v14335_v16  ;;  %v12083_v8 = vpop.f32.mrb[15].mxu1 }
 0x72b   : > { %12155 = vst [vmem:[%s19826_s22 + $0xe0] sm:$0xff] %v14459_v35  ;;  %v14463_v32 = vadd.f32 %v14434_v9, %v12083_v8 }
 0x72c   : > { %12158 = vst [vmem:[%s19826_s22 + $0xf8] sm:$0xff] %v14461_v27 }
 0x72d   : > { %12156 = vst [vmem:[%s19826_s22 + $0xe8] sm:$0xff] %v14463_v32 }
 0x72e   : > { %15495 = shalt.err (!%p15492_p4)
}
 0x72f   : > { %s15496_s15 = scalar_lea.hbm %s19894_s16, 4096  ;;  %s15500_s22 = scalar_lea.hbm %s20439_s30, 8192 }
 0x730   : > { %p15497_p9 = scmp.ne.s32.totalorder %s19894_s16, %s15496_s15  ;;  %p15501_p8 = scmp.lt.u32.totalorder %s19894_s16, %s20439_s30 }
 0x731   : > { %p15502_p13 = scmp.lt.u32.totalorder %s15500_s22, %s15496_s15  ;;  %p15504_p10 = scmp.lt.u32.totalorder %s15496_s15, %s19894_s16 }
 0x732   : > { %p15498_p0 = pnand %p15497_p9, %p15784_p5 }
 0x733   : > { %p15503_p6 = por %p15502_p13, %p15501_p8 }
 0x734   : > { %p15499_p11 = pneg %p15498_p0 }
 0x735   : > { %p15505_p3 = por %p15504_p10, %p15503_p6 }
 0x737   : > { %p15506_p7 = pnand %p15505_p3, %p15499_p11 }
 0x739   : > { %15509 = shalt.err (!%p15506_p7)
}
 0x73a   : > { %s15568_s27 = smov 128   ;;  %s15569_s12 = smov 8  }
 0x73b   : > { %15006 = dma.vmem_to_hbm [thread:$0]  (%p15784_p5), %s19896_s29, 4096, %s19894_s16, %s12160_s21, %s15568_s27, %s15568_s27, %s15569_s12  }
 0x73c PF: > { %s20440_s28 = sld [smem:[#allocation17_spill]]  ;;  %s20441_s8 = sld [smem:[#allocation18_spill]] }
 0x73d   : > { %p20443_p1 = scmp.ge.s32.totalorder %s15556_s20, 2 }
 0x742   : > { %s12188_s10 = sand.u32 1, %s20440_s28   ;;  %p20442_p12 = scmp.ne.s32.totalorder %s20441_s8, 0 }
 0x743   : > { %s12189_s15 = scalar_lea.sflag [#allocation6], %s12188_s10 }
 0x744   : > { %p15023_p2 = pnand %p20443_p1, %p20442_p12 }
 0x746   : > { %15539 = dma.done.wait (!%p15023_p2), %s12189_s15, 4096  }
 0x747   : > { %15541 = vsyncadd (!%p15023_p2), %s12189_s15, 4294963200  ;;  %p26_p4 = scmp.ge.s32.totalorder %s15770_s24, 4   ;;  %s20444_s17 = smov %s15548_s18 }
 0x748   : > { %s20445_s18 = smov %s15552_s19  ;;  %s20446_s19 = smov %s15780_s11 }
 0x749   : > { %s20447_s20 = smov %s15770_s24  ;;  %28 = sbr.rel (!%p26_p4) target bundleno = 11 (0xb), region = 143 }
 0x750   :  { %12194 = vsyncpa [#allocation5], 1 }
 0x751   :  { %12196 = vsyncpa [#allocation5 + $0x1], 1 }
 0x752   :  { %12197 = vsyncpa [#allocation8], 1 }
 0x753   :  { %12198 = vsyncpa [#allocation11], 1 }
 0x754   :  { %12199 = vsyncpa [#allocation6], 1 }
 0x755   :  { %12201 = vsyncpa [#allocation6 + $0x1], 1 }

</bundles_post_ra>
